<compile_context>
chip_gen: v7x
topology: tpu7x:2x2x1
jax: 0.10.0
libtpu: 0.0.40
codegen_flags: <defaults>
</compile_context>

<pallas_src>
import functools
import math

import jax
import jax.numpy as jnp
from jax import lax
from jax.experimental import pallas as pl
from jax.experimental.pallas import tpu as pltpu

F32 = jnp.float32
BF16 = jnp.bfloat16
NEG = -1e30          # additive mask value (avoids -inf -> NaN on fully masked rows)
LN_EPS = 1e-5


# ----------------------------- in-kernel helpers ----------------------------

def _shift_rows(x, k, fill=0.0):
    """result[t] = x[t + k] if 0 <= t + k < T else fill (static k, sublane roll on the XLU)."""
    if k == 0:
        return x
    t = x.shape[0]
    rolled = pltpu.roll(x, shift=(-k) % t, axis=0)
    idx = lax.broadcasted_iota(jnp.int32, x.shape, 0)
    ok = jnp.logical_and(idx + k >= 0, idx + k < t)
    return jnp.where(ok, rolled, fill)


def _layernorm(x, g, b):
    # channel LayerNorm (last axis), matches ActionFormer LayerNorm (eps=1e-5).
    mu = jnp.mean(x, axis=-1, keepdims=True)
    r = x - mu
    var = jnp.mean(r * r, axis=-1, keepdims=True)
    return (r * lax.rsqrt(var + LN_EPS)) * g + b


def _gelu_tanh(x):
    # tanh-approximation GELU (EUP tanh); |err| vs exact erf GELU < 1e-3.
    c = 0.7978845608028654  # sqrt(2/pi)
    return 0.5 * x * (1.0 + jnp.tanh(c * (x + 0.044715 * (x * x * x))))


def _mm(a, b):
    # bf16 operands, f32 accumulation on the MXU.
    return jnp.dot(a.astype(BF16), b.astype(BF16), preferred_element_type=F32)


def _mm_nt(a, b):
    # a @ b.T (contraction over the last dim of both), bf16 operands, f32 accumulation.
    return lax.dot_general(a.astype(BF16), b.astype(BF16),
                           (((1,), (1,)), ((), ())),
                           preferred_element_type=F32)


def _mhsa(q, k, v, mc, mr, n_head):
    """Multi-head self attention on (T, C) tiles.

    Heads are selected with channel masks so every MXU contraction is C-wide (instead of
    hd=C/H), and the per-head outputs land directly in their channel slots (no reshapes).
    q already carries the 1/sqrt(hd) scale (folded into the projection weights).
    mc: (Tk, 1) key mask (column), mr: (1, Tk) key mask (row).
    """
    tq, c = q.shape
    hd = c // n_head
    ch = lax.broadcasted_iota(jnp.int32, (1, c), 1)
    vm = v * mc                                   # zero values at masked keys
    neg = (1.0 - mr) * NEG                        # additive key mask
    out = jnp.zeros((tq, c), F32)
    for h in range(n_head):
        hm = jnp.logical_and(ch >= h * hd, ch < (h + 1) * hd)
        att = _mm_nt(jnp.where(hm, q, 0.0), jnp.where(hm, k, 0.0)) + neg
        att = att - jnp.max(att, axis=-1, keepdims=True)
        p = jnp.exp(att)
        p = p * pl.reciprocal(jnp.sum(p, axis=-1, keepdims=True), approx=True)
        out = out + _mm(p, jnp.where(hm, vm, 0.0))
    return out


def _block_body(x_pool, tap_m1, tap0, tap_p1, mc, mr, wrefs, o_ref, n_head):
    """Shared tail of a TransformerBlock, everything VMEM-resident.

    tap_{m1,0,p1}: the three depthwise-conv taps of ln1(x) at the output resolution.
    x_pool: pool_skip(x) at the output resolution (pre-mask).
    """
    (dww, dwg, dwb, qkvw, qkvb, projw, projb,
     ln2g, ln2b, fc1w, fc1b, fc2w, fc2b) = wrefs

    # MaskedMHCA: depthwise conv -> *mask -> LayerNorm -> 1x1 projection for q, k, v.
    qkv = []
    for i in range(3):
        pre = tap_m1 * dww[i, 0] + tap0 * dww[i, 1] + tap_p1 * dww[i, 2]
        pre = pre * mc
        z = _layernorm(pre, dwg[i], dwb[i])
        qkv.append(_mm(z, qkvw[i]) + qkvb[i])       # attention scale pre-folded into q weights

    att = _mhsa(qkv[0], qkv[1], qkv[2], mc, mr, n_head)
    att = (_mm(att, projw[...]) + projb[...]) * mc  # output proj * qx_mask

    out = x_pool * mc + att                         # pool_skip(x) * mask + attention

    # MLP: ln2 -> 1x1 (C->4C) -> GELU -> 1x1 (4C->C), masked residual.
    h = _layernorm(out, ln2g[...], ln2b[...])
    h = _gelu_tanh(_mm(h, fc1w[...]) + fc1b[...])
    out = out + (_mm(h, fc2w[...]) + fc2b[...]) * mc
    o_ref[0] = out


# ------------------------------- fused kernels ------------------------------

def _embed_kernel(x_ref, mc_ref, *rest, n_layers):
    # Fused embedding stage: n_layers x (MaskedConv1D(ks, s=1, same pad, bias) -> *mask -> ReLU).
    *wb, o_ref = rest
    x = x_ref[0]                      # (T, Cin) f32
    mc = mc_ref[0]                    # (T, 1)
    for l in range(n_layers):
        w, bias = wb[2 * l], wb[2 * l + 1]      # w: (K, Cin_l, C) bf16, bias: (1, C) f32
        k_taps = w.shape[0]
        p = k_taps // 2
        acc = _mm(_shift_rows(x, -p), w[0])
        for k in range(1, k_taps):
            acc = acc + _mm(_shift_rows(x, k - p), w[k])
        x = jnp.maximum((acc + bias[...]) * mc, 0.0)
    o_ref[0] = x


def _tf_block_s1_kernel(x_ref, mc_ref, mr_ref, ln1g_ref, ln1b_ref, *rest, n_head):
    # Stem TransformerBlock (no downsampling): pool_skip = Identity, dwconv stride 1.
    *wrefs, o_ref = rest
    x = x_ref[0]
    mc = mc_ref[0]
    mr = mr_ref[0]
    xn = _layernorm(x, ln1g_ref[...], ln1b_ref[...])
    _block_body(x_pool=x,
                tap_m1=_shift_rows(xn, -1), tap0=xn, tap_p1=_shift_rows(xn, 1),
                mc=mc, mr=mr, wrefs=tuple(wrefs), o_ref=o_ref, n_head=n_head)


def _tf_block_s2_kernel(xe_ref, xo_ref, mc_ref, mr_ref, ln1g_ref, ln1b_ref, *rest, n_head):
    # Branch TransformerBlock (2x downsampling): dwconv k=3/s=2/p=1, pool_skip = MaxPool1d(3,2,1).
    # Input arrives pre-split into even/odd time rows (LayerNorm is per-row so it commutes
    # with the row selection); the stride-2 conv then only needs a single row shift.
    *wrefs, o_ref = rest
    xe = xe_ref[0]                    # x[2t]
    xo = xo_ref[0]                    # x[2t+1]
    mc = mc_ref[0]
    mr = mr_ref[0]
    g = ln1g_ref[...]
    b = ln1b_ref[...]
    xne = _layernorm(xe, g, b)        # ln1(x)[2t]
    xno = _layernorm(xo, g, b)        # ln1(x)[2t+1]
    # MaxPool1d(3, 2, 1) with -inf padding: max(x[2t-1], x[2t], x[2t+1]).
    x_pool = jnp.maximum(jnp.maximum(_shift_rows(xo, -1, NEG), xe), xo)
    _block_body(x_pool=x_pool,
                tap_m1=_shift_rows(xno, -1), tap0=xne, tap_p1=xno,
                mc=mc, mr=mr, wrefs=tuple(wrefs), o_ref=o_ref, n_head=n_head)


# ------------------------------ pallas_call glue -----------------------------

def _bat_index_map(b, *, nd):
    return (b,) + (0,) * (nd - 1)


def _full_index_map(b, *, nd):
    return (0,) * nd


def _pcall(kernel, out_shape, args, batched):
    """Grid over batch; batched args get (1, *rest) blocks, weights are full-array blocks."""
    bsz = args[0].shape[0]
    in_specs = []
    for a, bt in zip(args, batched):
        if bt:
            in_specs.append(pl.BlockSpec((1,) + a.shape[1:],
                                         functools.partial(_bat_index_map, nd=a.ndim)))
        else:
            in_specs.append(pl.BlockSpec(a.shape,
                                         functools.partial(_full_index_map, nd=a.ndim)))
    out_spec = pl.BlockSpec((1,) + out_shape.shape[1:],
                            functools.partial(_bat_index_map, nd=len(out_shape.shape)))
    return pl.pallas_call(
        kernel,
        grid=(bsz,),
        in_specs=in_specs,
        out_specs=out_spec,
        out_shape=out_shape,
        # Batch elements are independent -> "parallel" lets v7x shard over its 2 TensorCores.
        compiler_params=pltpu.CompilerParams(dimension_semantics=("parallel",)),
    )(*args)


# ------------------------------- model wrappers ------------------------------

_WKEYS = ('ln1_g', 'ln1_b', 'dw_w', 'dw_g', 'dw_b', 'qkv_w', 'qkv_b',
          'proj_w', 'proj_b', 'ln2_g', 'ln2_b', 'fc1_w', 'fc1_b', 'fc2_w', 'fc2_b')


def _weight_args(p):
    return [p[k] for k in _WKEYS]


def embed_stage(x, m_col, embd_params):
    b, t, _ = x.shape
    c = embd_params[-1]['w'].shape[-1]
    args = [x, m_col]
    for lp in embd_params:
        args += [lp['w'], lp['b']]
    batched = [True, True] + [False] * (2 * len(embd_params))
    out = jax.ShapeDtypeStruct((b, t, c), F32)
    kern = functools.partial(_embed_kernel, n_layers=len(embd_params))
    return _pcall(kern, out, args, batched)


def tf_block(x, m_col, p, n_head, stride):
    b, t, c = x.shape
    if stride == 1:
        mr = jnp.transpose(m_col, (0, 2, 1))
        args = [x, m_col, mr] + _weight_args(p)
        batched = [True, True, True] + [False] * len(_WKEYS)
        out = jax.ShapeDtypeStruct((b, t, c), F32)
        y = _pcall(functools.partial(_tf_block_s1_kernel, n_head=n_head), out, args, batched)
        return y, m_col
    assert stride == 2 and t % 2 == 0   # kernel specializes MaxPool1d(3,2,1) / dwconv(3,2,1)
    xe, xo = x[:, 0::2, :], x[:, 1::2, :]
    mc = m_col[:, 0::2, :]              # F.interpolate(mask, T//2, 'nearest') == mask[::2]
    mr = jnp.transpose(mc, (0, 2, 1))
    args = [xe, xo, mc, mr] + _weight_args(p)
    batched = [True, True, True, True] + [False] * len(_WKEYS)
    out = jax.ShapeDtypeStruct((b, t // 2, c), F32)
    y = _pcall(functools.partial(_tf_block_s2_kernel, n_head=n_head), out, args, batched)
    return y, mc


def conv_transformer_backbone(x_bct, mask_b1t, packed, cfg):
    # x: (B, C, T)  mask: (B, 1, T) bool  — same convention as the PyTorch module.
    n_head = cfg['n_head']
    x = jnp.transpose(x_bct, (0, 2, 1)).astype(F32)              # (B, T, C)
    m_col = jnp.transpose(mask_b1t.astype(F32), (0, 2, 1))       # (B, T, 1)

    x = embed_stage(x, m_col, packed['embd'])                    # fused conv->mask->ReLU stack

    for blk in packed['stem']:
        x, m_col = tf_block(x, m_col, blk, n_head, 1)

    feats, mcols = [x], [m_col]
    for blk in packed['branch']:
        x, m_col = tf_block(x, m_col, blk, n_head, cfg['scale_factor'])
        feats.append(x)
        mcols.append(m_col)

    out_feats = tuple(jnp.transpose(f, (0, 2, 1)) for f in feats)        # (B, C, T_l)
    out_masks = tuple(jnp.transpose(m, (0, 2, 1)) > 0.5 for m in mcols)  # (B, 1, T_l) bool
    return out_feats, out_masks


# ------------------------------ params init / pack ---------------------------

def init_params(key, cfg):
    n_in, n_embd, ks = cfg['n_in'], cfg['n_embd'], cfg['n_embd_ks']
    arch = cfg['arch']
    keys = iter(jax.random.split(key, 512))

    def nrm(shape, scale=0.05):
        return (scale * jax.random.normal(next(keys), shape)).astype(F32)

    def zeros(*shape):
        return jnp.zeros(shape, F32)

    def ones(*shape):
        return jnp.ones(shape, F32)

    params = {'embd': [], 'stem': [], 'branch': []}
    cin = n_in
    for _ in range(arch[0]):
        params['embd'].append({'w': nrm((ks, cin, n_embd)),      # Conv1d weight; bias=0 per init
                               'b': zeros(1, n_embd)})
        cin = n_embd

    def block_params():
        c = n_embd
        return {
            'ln1_g': ones(1, c), 'ln1_b': zeros(1, c),
            'ln2_g': ones(1, c), 'ln2_b': zeros(1, c),
            'query_conv_w': nrm((3, c)), 'key_conv_w': nrm((3, c)), 'value_conv_w': nrm((3, c)),
            'query_norm_g': ones(1, c), 'query_norm_b': zeros(1, c),
            'key_norm_g': ones(1, c), 'key_norm_b': zeros(1, c),
            'value_norm_g': ones(1, c), 'value_norm_b': zeros(1, c),
            'query_w': nrm((c, c)), 'query_b': zeros(1, c),
            'key_w': nrm((c, c)), 'key_b': zeros(1, c),
            'value_w': nrm((c, c)), 'value_b': zeros(1, c),
            'proj_w': nrm((c, c)), 'proj_b': zeros(1, c),
            'fc1_w': nrm((c, 4 * c)), 'fc1_b': zeros(1, 4 * c),
            'fc2_w': nrm((4 * c, c)), 'fc2_b': zeros(1, c),
        }

    for _ in range(arch[1]):
        params['stem'].append(block_params())
    for _ in range(arch[2]):
        params['branch'].append(block_params())
    return params


def pack_params(params, cfg):
    """Pack per-tensor params into the stacked/bf16 layout used by the fused kernels.

    Also folds the attention scale 1/sqrt(hd) into the query projection weight & bias.
    """
    c, n_head = cfg['n_embd'], cfg['n_head']
    scale = 1.0 / math.sqrt(c // n_head)

    def pack_block(p):
        dw_w = jnp.stack([p['query_conv_w'], p['key_conv_w'], p['value_conv_w']])[:, :, None, :]
        dw_g = jnp.stack([p['query_norm_g'][0], p['key_norm_g'][0], p['value_norm_g'][0]])[:, None, :]
        dw_b = jnp.stack([p['query_norm_b'][0], p['key_norm_b'][0], p['value_norm_b'][0]])[:, None, :]
        qkv_w = jnp.stack([p['query_w'] * scale, p['key_w'], p['value_w']]).astype(BF16)
        qkv_b = jnp.stack([p['query_b'][0] * scale, p['key_b'][0], p['value_b'][0]])[:, None, :]
        return {
            'ln1_g': p['ln1_g'], 'ln1_b': p['ln1_b'],
            'dw_w': dw_w, 'dw_g': dw_g, 'dw_b': dw_b,
            'qkv_w': qkv_w, 'qkv_b': qkv_b,
            'proj_w': p['proj_w'].astype(BF16), 'proj_b': p['proj_b'],
            'ln2_g': p['ln2_g'], 'ln2_b': p['ln2_b'],
            'fc1_w': p['fc1_w'].astype(BF16), 'fc1_b': p['fc1_b'],
            'fc2_w': p['fc2_w'].astype(BF16), 'fc2_b': p['fc2_b'],
        }

    return {
        'embd': [{'w': e['w'].astype(BF16), 'b': e['b']} for e in params['embd']],
        'stem': [pack_block(p) for p in params['stem']],
        'branch': [pack_block(p) for p in params['branch']],
    }


# --------------------------------- main --------------------------------------

if __name__ == "__main__":
    cfg = dict(n_in=8, n_embd=32, n_head=4, n_embd_ks=3, max_len=64,
               arch=(2, 2, 2), scale_factor=2)
    B, T = 2, 32

    key = jax.random.PRNGKey(0)
    k_x, k_p = jax.random.split(key)
    x = jax.random.normal(k_x, (B, cfg['n_in'], T), dtype=jnp.float32)
    valid_lens = jnp.array([T, 24])
    mask = jnp.arange(T)[None, None, :] < valid_lens[:, None, None]   # (B, 1, T) bool

    params = pack_params(init_params(k_p, cfg), cfg)

    @jax.jit
    def fwd(x_, mask_, params_):
        return conv_transformer_backbone(x_, mask_, params_, cfg)

    feats, masks = fwd(x, mask, params)
    feats = jax.block_until_ready(feats)
    masks = jax.block_until_ready(masks)

    expected_t = [T, T // 2, T // 4]
    assert [f.shape for f in feats] == [(B, cfg['n_embd'], t) for t in expected_t]
    assert [m.shape for m in masks] == [(B, 1, t) for t in expected_t]
    assert all(bool(jnp.all(jnp.isfinite(f))) for f in feats)

    print("KERNEL_OK")
</pallas_src>

<mosaic_0001>
module attributes {stable_mosaic.version = 11 : i64} {
  func.func @_embed_kernel(%arg0: i32, %arg1: memref<1x32x8xf32, #tpu.memory_space<vmem>>, %arg2: memref<1x32x1xf32, #tpu.memory_space<vmem>>, %arg3: memref<3x8x32xbf16, #tpu.memory_space<vmem>>, %arg4: memref<1x32xf32, #tpu.memory_space<vmem>>, %arg5: memref<3x32x32xbf16, #tpu.memory_space<vmem>>, %arg6: memref<1x32xf32, #tpu.memory_space<vmem>>, %arg7: memref<1x32x32xf32, #tpu.memory_space<vmem>>) attributes {dimension_semantics = [#tpu.dimension_semantics<parallel>], iteration_bounds = array<i64: 2>, scalar_prefetch = 0 : i64, scratch_operands = 0 : i64, tpu.core_type = #tpu.core_type<tc>, window_params = [{transform_indices = @transform_0, window_bounds = array<i64: 1, 32, 8>}, {transform_indices = @transform_1, window_bounds = array<i64: 1, 32, 1>}, {pipeline_mode = #tpu.pipeline_mode<synchronous>, transform_indices = @transform_2, window_bounds = array<i64: 3, 8, 32>}, {pipeline_mode = #tpu.pipeline_mode<synchronous>, transform_indices = @transform_3, window_bounds = array<i64: 1, 32>}, {pipeline_mode = #tpu.pipeline_mode<synchronous>, transform_indices = @transform_4, window_bounds = array<i64: 3, 32, 32>}, {pipeline_mode = #tpu.pipeline_mode<synchronous>, transform_indices = @transform_5, window_bounds = array<i64: 1, 32>}, {transform_indices = @transform_6, window_bounds = array<i64: 1, 32, 32>}]} {
    %c0 = arith.constant 0 : index
    %c0_0 = arith.constant 0 : index
    %c0_1 = arith.constant 0 : index
    %0 = vector.load %arg1[%c0, %c0_0, %c0_1] : memref<1x32x8xf32, #tpu.memory_space<vmem>>, vector<1x32x8xf32>
    %1 = vector.shape_cast %0 : vector<1x32x8xf32> to vector<32x8xf32>
    %c0_2 = arith.constant 0 : index
    %c0_3 = arith.constant 0 : index
    %c0_4 = arith.constant 0 : index
    %2 = vector.load %arg2[%c0_2, %c0_3, %c0_4] : memref<1x32x1xf32, #tpu.memory_space<vmem>>, vector<1x32x1xf32>
    %3 = vector.shape_cast %2 : vector<1x32x1xf32> to vector<32x1xf32>
    %c1_i32 = arith.constant 1 : i32
    %4 = tpu.dynamic_rotate %1 by %c1_i32 dim 0 : vector<32x8xf32>, i32 -> vector<32x8xf32>
    %5 = tpu.iota {dimensions = array<i32: 0>} : vector<32x8xi32>
    %c-1_i32 = arith.constant -1 : i32
    %6 = vector.broadcast %c-1_i32 : i32 to vector<32x8xi32>
    %7 = arith.addi %5, %6 : vector<32x8xi32>
    %c0_i32 = arith.constant 0 : i32
    %8 = vector.broadcast %c0_i32 : i32 to vector<32x8xi32>
    %9 = arith.cmpi sge, %7, %8 : vector<32x8xi32>
    %c-1_i32_5 = arith.constant -1 : i32
    %10 = vector.broadcast %c-1_i32_5 : i32 to vector<32x8xi32>
    %11 = arith.addi %5, %10 : vector<32x8xi32>
    %c32_i32 = arith.constant 32 : i32
    %12 = vector.broadcast %c32_i32 : i32 to vector<32x8xi32>
    %13 = arith.cmpi slt, %11, %12 : vector<32x8xi32>
    %14 = arith.andi %9, %13 : vector<32x8xi1>
    %cst = arith.constant 0.000000e+00 : f32
    %15 = vector.broadcast %cst : f32 to vector<32x8xf32>
    %16 = arith.select %14, %4, %15 : vector<32x8xi1>, vector<32x8xf32>
    %c0_6 = arith.constant 0 : index
    %c0_7 = arith.constant 0 : index
    %c0_8 = arith.constant 0 : index
    %17 = vector.load %arg3[%c0_6, %c0_7, %c0_8] : memref<3x8x32xbf16, #tpu.memory_space<vmem>>, vector<1x8x32xbf16>
    %18 = vector.shape_cast %17 : vector<1x8x32xbf16> to vector<8x32xbf16>
    %19 = arith.truncf %16 : vector<32x8xf32> to vector<32x8xbf16>
    %cst_9 = arith.constant dense<0.000000e+00> : vector<32x32xf32>
    %20 = tpu.matmul %19, %18, %cst_9 {dimension_numbers = #tpu.dot_dimension_numbers<[1], [0], [0], [1], [0, 0, 1, 1], [], []>} : vector<32x8xbf16>, vector<8x32xbf16>, vector<32x32xf32> -> vector<32x32xf32>
    %c1 = arith.constant 1 : index
    %c0_10 = arith.constant 0 : index
    %c0_11 = arith.constant 0 : index
    %21 = vector.load %arg3[%c1, %c0_10, %c0_11] : memref<3x8x32xbf16, #tpu.memory_space<vmem>>, vector<1x8x32xbf16>
    %22 = vector.shape_cast %21 : vector<1x8x32xbf16> to vector<8x32xbf16>
    %23 = arith.truncf %1 : vector<32x8xf32> to vector<32x8xbf16>
    %cst_12 = arith.constant dense<0.000000e+00> : vector<32x32xf32>
    %24 = tpu.matmul %23, %22, %cst_12 {dimension_numbers = #tpu.dot_dimension_numbers<[1], [0], [0], [1], [0, 0, 1, 1], [], []>} : vector<32x8xbf16>, vector<8x32xbf16>, vector<32x32xf32> -> vector<32x32xf32>
    %25 = arith.addf %20, %24 : vector<32x32xf32>
    %c31_i32 = arith.constant 31 : i32
    %26 = tpu.dynamic_rotate %1 by %c31_i32 dim 0 : vector<32x8xf32>, i32 -> vector<32x8xf32>
    %27 = tpu.iota {dimensions = array<i32: 0>} : vector<32x8xi32>
    %c1_i32_13 = arith.constant 1 : i32
    %28 = vector.broadcast %c1_i32_13 : i32 to vector<32x8xi32>
    %29 = arith.addi %27, %28 : vector<32x8xi32>
    %c0_i32_14 = arith.constant 0 : i32
    %30 = vector.broadcast %c0_i32_14 : i32 to vector<32x8xi32>
    %31 = arith.cmpi sge, %29, %30 : vector<32x8xi32>
    %c1_i32_15 = arith.constant 1 : i32
    %32 = vector.broadcast %c1_i32_15 : i32 to vector<32x8xi32>
    %33 = arith.addi %27, %32 : vector<32x8xi32>
    %c32_i32_16 = arith.constant 32 : i32
    %34 = vector.broadcast %c32_i32_16 : i32 to vector<32x8xi32>
    %35 = arith.cmpi slt, %33, %34 : vector<32x8xi32>
    %36 = arith.andi %31, %35 : vector<32x8xi1>
    %cst_17 = arith.constant 0.000000e+00 : f32
    %37 = vector.broadcast %cst_17 : f32 to vector<32x8xf32>
    %38 = arith.select %36, %26, %37 : vector<32x8xi1>, vector<32x8xf32>
    %c2 = arith.constant 2 : index
    %c0_18 = arith.constant 0 : index
    %c0_19 = arith.constant 0 : index
    %39 = vector.load %arg3[%c2, %c0_18, %c0_19] : memref<3x8x32xbf16, #tpu.memory_space<vmem>>, vector<1x8x32xbf16>
    %40 = vector.shape_cast %39 : vector<1x8x32xbf16> to vector<8x32xbf16>
    %41 = arith.truncf %38 : vector<32x8xf32> to vector<32x8xbf16>
    %cst_20 = arith.constant dense<0.000000e+00> : vector<32x32xf32>
    %42 = tpu.matmul %41, %40, %cst_20 {dimension_numbers = #tpu.dot_dimension_numbers<[1], [0], [0], [1], [0, 0, 1, 1], [], []>} : vector<32x8xbf16>, vector<8x32xbf16>, vector<32x32xf32> -> vector<32x32xf32>
    %43 = arith.addf %25, %42 : vector<32x32xf32>
    %c0_21 = arith.constant 0 : index
    %c0_22 = arith.constant 0 : index
    %44 = vector.load %arg4[%c0_21, %c0_22] : memref<1x32xf32, #tpu.memory_space<vmem>>, vector<1x32xf32>
    %45 = vector.broadcast %44 : vector<1x32xf32> to vector<32x32xf32>
    %46 = arith.addf %43, %45 : vector<32x32xf32>
    %47 = vector.broadcast %3 : vector<32x1xf32> to vector<32x32xf32>
    %48 = arith.mulf %46, %47 : vector<32x32xf32>
    %cst_23 = arith.constant 0.000000e+00 : f32
    %49 = vector.broadcast %cst_23 : f32 to vector<32x32xf32>
    %50 = arith.maximumf %48, %49 : vector<32x32xf32>
    %c1_i32_24 = arith.constant 1 : i32
    %51 = tpu.dynamic_rotate %50 by %c1_i32_24 dim 0 : vector<32x32xf32>, i32 -> vector<32x32xf32>
    %52 = tpu.iota {dimensions = array<i32: 0>} : vector<32x32xi32>
    %c-1_i32_25 = arith.constant -1 : i32
    %53 = vector.broadcast %c-1_i32_25 : i32 to vector<32x32xi32>
    %54 = arith.addi %52, %53 : vector<32x32xi32>
    %c0_i32_26 = arith.constant 0 : i32
    %55 = vector.broadcast %c0_i32_26 : i32 to vector<32x32xi32>
    %56 = arith.cmpi sge, %54, %55 : vector<32x32xi32>
    %c-1_i32_27 = arith.constant -1 : i32
    %57 = vector.broadcast %c-1_i32_27 : i32 to vector<32x32xi32>
    %58 = arith.addi %52, %57 : vector<32x32xi32>
    %c32_i32_28 = arith.constant 32 : i32
    %59 = vector.broadcast %c32_i32_28 : i32 to vector<32x32xi32>
    %60 = arith.cmpi slt, %58, %59 : vector<32x32xi32>
    %61 = arith.andi %56, %60 : vector<32x32xi1>
    %cst_29 = arith.constant 0.000000e+00 : f32
    %62 = vector.broadcast %cst_29 : f32 to vector<32x32xf32>
    %63 = arith.select %61, %51, %62 : vector<32x32xi1>, vector<32x32xf32>
    %c0_30 = arith.constant 0 : index
    %c0_31 = arith.constant 0 : index
    %c0_32 = arith.constant 0 : index
    %64 = vector.load %arg5[%c0_30, %c0_31, %c0_32] : memref<3x32x32xbf16, #tpu.memory_space<vmem>>, vector<1x32x32xbf16>
    %65 = vector.shape_cast %64 : vector<1x32x32xbf16> to vector<32x32xbf16>
    %66 = arith.truncf %63 : vector<32x32xf32> to vector<32x32xbf16>
    %cst_33 = arith.constant dense<0.000000e+00> : vector<32x32xf32>
    %67 = tpu.matmul %66, %65, %cst_33 {dimension_numbers = #tpu.dot_dimension_numbers<[1], [0], [0], [1], [0, 0, 1, 1], [], []>} : vector<32x32xbf16>, vector<32x32xbf16>, vector<32x32xf32> -> vector<32x32xf32>
    %c1_34 = arith.constant 1 : index
    %c0_35 = arith.constant 0 : index
    %c0_36 = arith.constant 0 : index
    %68 = vector.load %arg5[%c1_34, %c0_35, %c0_36] : memref<3x32x32xbf16, #tpu.memory_space<vmem>>, vector<1x32x32xbf16>
    %69 = vector.shape_cast %68 : vector<1x32x32xbf16> to vector<32x32xbf16>
    %70 = arith.truncf %50 : vector<32x32xf32> to vector<32x32xbf16>
    %cst_37 = arith.constant dense<0.000000e+00> : vector<32x32xf32>
    %71 = tpu.matmul %70, %69, %cst_37 {dimension_numbers = #tpu.dot_dimension_numbers<[1], [0], [0], [1], [0, 0, 1, 1], [], []>} : vector<32x32xbf16>, vector<32x32xbf16>, vector<32x32xf32> -> vector<32x32xf32>
    %72 = arith.addf %67, %71 : vector<32x32xf32>
    %c31_i32_38 = arith.constant 31 : i32
    %73 = tpu.dynamic_rotate %50 by %c31_i32_38 dim 0 : vector<32x32xf32>, i32 -> vector<32x32xf32>
    %74 = tpu.iota {dimensions = array<i32: 0>} : vector<32x32xi32>
    %c1_i32_39 = arith.constant 1 : i32
    %75 = vector.broadcast %c1_i32_39 : i32 to vector<32x32xi32>
    %76 = arith.addi %74, %75 : vector<32x32xi32>
    %c0_i32_40 = arith.constant 0 : i32
    %77 = vector.broadcast %c0_i32_40 : i32 to vector<32x32xi32>
    %78 = arith.cmpi sge, %76, %77 : vector<32x32xi32>
    %c1_i32_41 = arith.constant 1 : i32
    %79 = vector.broadcast %c1_i32_41 : i32 to vector<32x32xi32>
    %80 = arith.addi %74, %79 : vector<32x32xi32>
    %c32_i32_42 = arith.constant 32 : i32
    %81 = vector.broadcast %c32_i32_42 : i32 to vector<32x32xi32>
    %82 = arith.cmpi slt, %80, %81 : vector<32x32xi32>
    %83 = arith.andi %78, %82 : vector<32x32xi1>
    %cst_43 = arith.constant 0.000000e+00 : f32
    %84 = vector.broadcast %cst_43 : f32 to vector<32x32xf32>
    %85 = arith.select %83, %73, %84 : vector<32x32xi1>, vector<32x32xf32>
    %c2_44 = arith.constant 2 : index
    %c0_45 = arith.constant 0 : index
    %c0_46 = arith.constant 0 : index
    %86 = vector.load %arg5[%c2_44, %c0_45, %c0_46] : memref<3x32x32xbf16, #tpu.memory_space<vmem>>, vector<1x32x32xbf16>
    %87 = vector.shape_cast %86 : vector<1x32x32xbf16> to vector<32x32xbf16>
    %88 = arith.truncf %85 : vector<32x32xf32> to vector<32x32xbf16>
    %cst_47 = arith.constant dense<0.000000e+00> : vector<32x32xf32>
    %89 = tpu.matmul %88, %87, %cst_47 {dimension_numbers = #tpu.dot_dimension_numbers<[1], [0], [0], [1], [0, 0, 1, 1], [], []>} : vector<32x32xbf16>, vector<32x32xbf16>, vector<32x32xf32> -> vector<32x32xf32>
    %90 = arith.addf %72, %89 : vector<32x32xf32>
    %c0_48 = arith.constant 0 : index
    %c0_49 = arith.constant 0 : index
    %91 = vector.load %arg6[%c0_48, %c0_49] : memref<1x32xf32, #tpu.memory_space<vmem>>, vector<1x32xf32>
    %92 = vector.broadcast %91 : vector<1x32xf32> to vector<32x32xf32>
    %93 = arith.addf %90, %92 : vector<32x32xf32>
    %94 = vector.broadcast %3 : vector<32x1xf32> to vector<32x32xf32>
    %95 = arith.mulf %93, %94 : vector<32x32xf32>
    %cst_50 = arith.constant 0.000000e+00 : f32
    %96 = vector.broadcast %cst_50 : f32 to vector<32x32xf32>
    %97 = arith.maximumf %95, %96 : vector<32x32xf32>
    %c0_51 = arith.constant 0 : index
    %c0_52 = arith.constant 0 : index
    %c0_53 = arith.constant 0 : index
    %98 = vector.load %arg7[%c0_51, %c0_52, %c0_53] : memref<1x32x32xf32, #tpu.memory_space<vmem>>, vector<1x32x32xf32>
    %99 = vector.shape_cast %98 : vector<1x32x32xf32> to vector<32x32xf32>
    %100 = vector.shape_cast %97 : vector<32x32xf32> to vector<1x32x32xf32>
    tpu.vector_store %arg7[%c0_51, %c0_52, %c0_53], %100 {strides = array<i32>} : memref<1x32x32xf32, #tpu.memory_space<vmem>>, vector<1x32x32xf32>,
    return
  }
  func.func @transform_0(%arg0: i32) -> (i32, i32, i32) {
    %c0_i32 = arith.constant 0 : i32
    %c0_i32_0 = arith.constant 0 : i32
    %c0_i32_1 = arith.constant 0 : i32
    return %arg0, %c0_i32, %c0_i32_0 : i32, i32, i32
  }
  func.func @transform_1(%arg0: i32) -> (i32, i32, i32) {
    %c0_i32 = arith.constant 0 : i32
    %c0_i32_0 = arith.constant 0 : i32
    %c0_i32_1 = arith.constant 0 : i32
    return %arg0, %c0_i32, %c0_i32_0 : i32, i32, i32
  }
  func.func @transform_2(%arg0: i32) -> (i32, i32, i32) {
    %c0_i32 = arith.constant 0 : i32
    %c0_i32_0 = arith.constant 0 : i32
    %c0_i32_1 = arith.constant 0 : i32
    %c0_i32_2 = arith.constant 0 : i32
    return %c0_i32, %c0_i32_0, %c0_i32_1 : i32, i32, i32
  }
  func.func @transform_3(%arg0: i32) -> (i32, i32) {
    %c0_i32 = arith.constant 0 : i32
    %c0_i32_0 = arith.constant 0 : i32
    %c0_i32_1 = arith.constant 0 : i32
    return %c0_i32, %c0_i32_0 : i32, i32
  }
  func.func @transform_4(%arg0: i32) -> (i32, i32, i32) {
    %c0_i32 = arith.constant 0 : i32
    %c0_i32_0 = arith.constant 0 : i32
    %c0_i32_1 = arith.constant 0 : i32
    %c0_i32_2 = arith.constant 0 : i32
    return %c0_i32, %c0_i32_0, %c0_i32_1 : i32, i32, i32
  }
  func.func @transform_5(%arg0: i32) -> (i32, i32) {
    %c0_i32 = arith.constant 0 : i32
    %c0_i32_0 = arith.constant 0 : i32
    %c0_i32_1 = arith.constant 0 : i32
    return %c0_i32, %c0_i32_0 : i32, i32
  }
  func.func @transform_6(%arg0: i32) -> (i32, i32, i32) {
    %c0_i32 = arith.constant 0 : i32
    %c0_i32_0 = arith.constant 0 : i32
    %c0_i32_1 = arith.constant 0 : i32
    return %arg0, %c0_i32, %c0_i32_0 : i32, i32, i32
  }
}

module attributes {stable_mosaic.version = 11 : i64} {
  func.func @_tf_block_s1_kernel(%arg0: i32, %arg1: memref<1x32x32xf32, #tpu.memory_space<vmem>>, %arg2: memref<1x32x1xf32, #tpu.memory_space<vmem>>, %arg3: memref<1x1x32xf32, #tpu.memory_space<vmem>>, %arg4: memref<1x32xf32, #tpu.memory_space<vmem>>, %arg5: memref<1x32xf32, #tpu.memory_space<vmem>>, %arg6: memref<3x3x1x32xf32, #tpu.memory_space<vmem>>, %arg7: memref<3x1x32xf32, #tpu.memory_space<vmem>>, %arg8: memref<3x1x32xf32, #tpu.memory_space<vmem>>, %arg9: memref<3x32x32xbf16, #tpu.memory_space<vmem>>, %arg10: memref<3x1x32xf32, #tpu.memory_space<vmem>>, %arg11: memref<32x32xbf16, #tpu.memory_space<vmem>>, %arg12: memref<1x32xf32, #tpu.memory_space<vmem>>, %arg13: memref<1x32xf32, #tpu.memory_space<vmem>>, %arg14: memref<1x32xf32, #tpu.memory_space<vmem>>, %arg15: memref<32x128xbf16, #tpu.memory_space<vmem>>, %arg16: memref<1x128xf32, #tpu.memory_space<vmem>>, %arg17: memref<128x32xbf16, #tpu.memory_space<vmem>>, %arg18: memref<1x32xf32, #tpu.memory_space<vmem>>, %arg19: memref<1x32x32xf32, #tpu.memory_space<vmem>>) attributes {dimension_semantics = [#tpu.dimension_semantics<parallel>], iteration_bounds = array<i64: 2>, scalar_prefetch = 0 : i64, scratch_operands = 0 : i64, tpu.core_type = #tpu.core_type<tc>, window_params = [{transform_indices = @transform_0, window_bounds = array<i64: 1, 32, 32>}, {transform_indices = @transform_1, window_bounds = array<i64: 1, 32, 1>}, {transform_indices = @transform_2, window_bounds = array<i64: 1, 1, 32>}, {pipeline_mode = #tpu.pipeline_mode<synchronous>, transform_indices = @transform_3, window_bounds = array<i64: 1, 32>}, {pipeline_mode = #tpu.pipeline_mode<synchronous>, transform_indices = @transform_4, window_bounds = array<i64: 1, 32>}, {pipeline_mode = #tpu.pipeline_mode<synchronous>, transform_indices = @transform_5, window_bounds = array<i64: 3, 3, 1, 32>}, {pipeline_mode = #tpu.pipeline_mode<synchronous>, transform_indices = @transform_6, window_bounds = array<i64: 3, 1, 32>}, {pipeline_mode = #tpu.pipeline_mode<synchronous>, transform_indices = @transform_7, window_bounds = array<i64: 3, 1, 32>}, {pipeline_mode = #tpu.pipeline_mode<synchronous>, transform_indices = @transform_8, window_bounds = array<i64: 3, 32, 32>}, {pipeline_mode = #tpu.pipeline_mode<synchronous>, transform_indices = @transform_9, window_bounds = array<i64: 3, 1, 32>}, {pipeline_mode = #tpu.pipeline_mode<synchronous>, transform_indices = @transform_10, window_bounds = array<i64: 32, 32>}, {pipeline_mode = #tpu.pipeline_mode<synchronous>, transform_indices = @transform_11, window_bounds = array<i64: 1, 32>}, {pipeline_mode = #tpu.pipeline_mode<synchronous>, transform_indices = @transform_12, window_bounds = array<i64: 1, 32>}, {pipeline_mode = #tpu.pipeline_mode<synchronous>, transform_indices = @transform_13, window_bounds = array<i64: 1, 32>}, {pipeline_mode = #tpu.pipeline_mode<synchronous>, transform_indices = @transform_14, window_bounds = array<i64: 32, 128>}, {pipeline_mode = #tpu.pipeline_mode<synchronous>, transform_indices = @transform_15, window_bounds = array<i64: 1, 128>}, {pipeline_mode = #tpu.pipeline_mode<synchronous>, transform_indices = @transform_16, window_bounds = array<i64: 128, 32>}, {pipeline_mode = #tpu.pipeline_mode<synchronous>, transform_indices = @transform_17, window_bounds = array<i64: 1, 32>}, {transform_indices = @transform_18, window_bounds = array<i64: 1, 32, 32>}]} {
    %c0 = arith.constant 0 : index
    %c0_0 = arith.constant 0 : index
    %c0_1 = arith.constant 0 : index
    %0 = vector.load %arg1[%c0, %c0_0, %c0_1] : memref<1x32x32xf32, #tpu.memory_space<vmem>>, vector<1x32x32xf32>
    %1 = vector.shape_cast %0 : vector<1x32x32xf32> to vector<32x32xf32>
    %c0_2 = arith.constant 0 : index
    %c0_3 = arith.constant 0 : index
    %c0_4 = arith.constant 0 : index
    %2 = vector.load %arg2[%c0_2, %c0_3, %c0_4] : memref<1x32x1xf32, #tpu.memory_space<vmem>>, vector<1x32x1xf32>
    %3 = vector.shape_cast %2 : vector<1x32x1xf32> to vector<32x1xf32>
    %c0_5 = arith.constant 0 : index
    %c0_6 = arith.constant 0 : index
    %c0_7 = arith.constant 0 : index
    %4 = vector.load %arg3[%c0_5, %c0_6, %c0_7] : memref<1x1x32xf32, #tpu.memory_space<vmem>>, vector<1x1x32xf32>
    %5 = vector.shape_cast %4 : vector<1x1x32xf32> to vector<1x32xf32>
    %c0_8 = arith.constant 0 : index
    %c0_9 = arith.constant 0 : index
    %6 = vector.load %arg4[%c0_8, %c0_9] : memref<1x32xf32, #tpu.memory_space<vmem>>, vector<1x32xf32>
    %c0_10 = arith.constant 0 : index
    %c0_11 = arith.constant 0 : index
    %7 = vector.load %arg5[%c0_10, %c0_11] : memref<1x32xf32, #tpu.memory_space<vmem>>, vector<1x32xf32>
    %cst = arith.constant dense<0.000000e+00> : vector<32xf32>
    %8 = vector.multi_reduction <add>, %1, %cst [1] : vector<32x32xf32> to vector<32xf32>
    %9 = vector.shape_cast %8 : vector<32xf32> to vector<32x1xf32>
    %cst_12 = arith.constant 3.200000e+01 : f32
    %10 = vector.broadcast %cst_12 : f32 to vector<32x1xf32>
    %11 = arith.divf %9, %10 : vector<32x1xf32>
    %12 = vector.broadcast %11 : vector<32x1xf32> to vector<32x32xf32>
    %13 = arith.subf %1, %12 : vector<32x32xf32>
    %14 = arith.mulf %13, %13 : vector<32x32xf32>
    %cst_13 = arith.constant dense<0.000000e+00> : vector<32xf32>
    %15 = vector.multi_reduction <add>, %14, %cst_13 [1] : vector<32x32xf32> to vector<32xf32>
    %16 = vector.shape_cast %15 : vector<32xf32> to vector<32x1xf32>
    %cst_14 = arith.constant 3.200000e+01 : f32
    %17 = vector.broadcast %cst_14 : f32 to vector<32x1xf32>
    %18 = arith.divf %16, %17 : vector<32x1xf32>
    %cst_15 = arith.constant 9.99999974E-6 : f32
    %19 = vector.broadcast %cst_15 : f32 to vector<32x1xf32>
    %20 = arith.addf %18, %19 : vector<32x1xf32>
    %21 = math.rsqrt %20 : vector<32x1xf32>
    %22 = vector.broadcast %21 : vector<32x1xf32> to vector<32x32xf32>
    %23 = arith.mulf %13, %22 : vector<32x32xf32>
    %24 = vector.broadcast %6 : vector<1x32xf32> to vector<32x32xf32>
    %25 = arith.mulf %23, %24 : vector<32x32xf32>
    %26 = vector.broadcast %7 : vector<1x32xf32> to vector<32x32xf32>
    %27 = arith.addf %25, %26 : vector<32x32xf32>
    %c1_i32 = arith.constant 1 : i32
    %28 = tpu.dynamic_rotate %27 by %c1_i32 dim 0 : vector<32x32xf32>, i32 -> vector<32x32xf32>
    %29 = tpu.iota {dimensions = array<i32: 0>} : vector<32x32xi32>
    %c-1_i32 = arith.constant -1 : i32
    %30 = vector.broadcast %c-1_i32 : i32 to vector<32x32xi32>
    %31 = arith.addi %29, %30 : vector<32x32xi32>
    %c0_i32 = arith.constant 0 : i32
    %32 = vector.broadcast %c0_i32 : i32 to vector<32x32xi32>
    %33 = arith.cmpi sge, %31, %32 : vector<32x32xi32>
    %c-1_i32_16 = arith.constant -1 : i32
    %34 = vector.broadcast %c-1_i32_16 : i32 to vector<32x32xi32>
    %35 = arith.addi %29, %34 : vector<32x32xi32>
    %c32_i32 = arith.constant 32 : i32
    %36 = vector.broadcast %c32_i32 : i32 to vector<32x32xi32>
    %37 = arith.cmpi slt, %35, %36 : vector<32x32xi32>
    %38 = arith.andi %33, %37 : vector<32x32xi1>
    %cst_17 = arith.constant 0.000000e+00 : f32
    %39 = vector.broadcast %cst_17 : f32 to vector<32x32xf32>
    %40 = arith.select %38, %28, %39 : vector<32x32xi1>, vector<32x32xf32>
    %c31_i32 = arith.constant 31 : i32
    %41 = tpu.dynamic_rotate %27 by %c31_i32 dim 0 : vector<32x32xf32>, i32 -> vector<32x32xf32>
    %42 = tpu.iota {dimensions = array<i32: 0>} : vector<32x32xi32>
    %c1_i32_18 = arith.constant 1 : i32
    %43 = vector.broadcast %c1_i32_18 : i32 to vector<32x32xi32>
    %44 = arith.addi %42, %43 : vector<32x32xi32>
    %c0_i32_19 = arith.constant 0 : i32
    %45 = vector.broadcast %c0_i32_19 : i32 to vector<32x32xi32>
    %46 = arith.cmpi sge, %44, %45 : vector<32x32xi32>
    %c1_i32_20 = arith.constant 1 : i32
    %47 = vector.broadcast %c1_i32_20 : i32 to vector<32x32xi32>
    %48 = arith.addi %42, %47 : vector<32x32xi32>
    %c32_i32_21 = arith.constant 32 : i32
    %49 = vector.broadcast %c32_i32_21 : i32 to vector<32x32xi32>
    %50 = arith.cmpi slt, %48, %49 : vector<32x32xi32>
    %51 = arith.andi %46, %50 : vector<32x32xi1>
    %cst_22 = arith.constant 0.000000e+00 : f32
    %52 = vector.broadcast %cst_22 : f32 to vector<32x32xf32>
    %53 = arith.select %51, %41, %52 : vector<32x32xi1>, vector<32x32xf32>
    %c0_23 = arith.constant 0 : index
    %c0_24 = arith.constant 0 : index
    %c0_25 = arith.constant 0 : index
    %c0_26 = arith.constant 0 : index
    %54 = vector.load %arg6[%c0_23, %c0_24, %c0_25, %c0_26] : memref<3x3x1x32xf32, #tpu.memory_space<vmem>>, vector<1x1x1x32xf32>
    %55 = vector.shape_cast %54 : vector<1x1x1x32xf32> to vector<1x32xf32>
    %56 = vector.broadcast %55 : vector<1x32xf32> to vector<32x32xf32>
    %57 = arith.mulf %40, %56 : vector<32x32xf32>
    %c0_27 = arith.constant 0 : index
    %c1 = arith.constant 1 : index
    %c0_28 = arith.constant 0 : index
    %c0_29 = arith.constant 0 : index
    %58 = vector.load %arg6[%c0_27, %c1, %c0_28, %c0_29] : memref<3x3x1x32xf32, #tpu.memory_space<vmem>>, vector<1x1x1x32xf32>
    %59 = vector.shape_cast %58 : vector<1x1x1x32xf32> to vector<1x32xf32>
    %60 = vector.broadcast %59 : vector<1x32xf32> to vector<32x32xf32>
    %61 = arith.mulf %27, %60 : vector<32x32xf32>
    %62 = arith.addf %57, %61 : vector<32x32xf32>
    %c0_30 = arith.constant 0 : index
    %c2 = arith.constant 2 : index
    %c0_31 = arith.constant 0 : index
    %c0_32 = arith.constant 0 : index
    %63 = vector.load %arg6[%c0_30, %c2, %c0_31, %c0_32] : memref<3x3x1x32xf32, #tpu.memory_space<vmem>>, vector<1x1x1x32xf32>
    %64 = vector.shape_cast %63 : vector<1x1x1x32xf32> to vector<1x32xf32>
    %65 = vector.broadcast %64 : vector<1x32xf32> to vector<32x32xf32>
    %66 = arith.mulf %53, %65 : vector<32x32xf32>
    %67 = arith.addf %62, %66 : vector<32x32xf32>
    %68 = vector.broadcast %3 : vector<32x1xf32> to vector<32x32xf32>
    %69 = arith.mulf %67, %68 : vector<32x32xf32>
    %c0_33 = arith.constant 0 : index
    %c0_34 = arith.constant 0 : index
    %c0_35 = arith.constant 0 : index
    %70 = vector.load %arg7[%c0_33, %c0_34, %c0_35] : memref<3x1x32xf32, #tpu.memory_space<vmem>>, vector<1x1x32xf32>
    %71 = vector.shape_cast %70 : vector<1x1x32xf32> to vector<1x32xf32>
    %c0_36 = arith.constant 0 : index
    %c0_37 = arith.constant 0 : index
    %c0_38 = arith.constant 0 : index
    %72 = vector.load %arg8[%c0_36, %c0_37, %c0_38] : memref<3x1x32xf32, #tpu.memory_space<vmem>>, vector<1x1x32xf32>
    %73 = vector.shape_cast %72 : vector<1x1x32xf32> to vector<1x32xf32>
    %cst_39 = arith.constant dense<0.000000e+00> : vector<32xf32>
    %74 = vector.multi_reduction <add>, %69, %cst_39 [1] : vector<32x32xf32> to vector<32xf32>
    %75 = vector.shape_cast %74 : vector<32xf32> to vector<32x1xf32>
    %cst_40 = arith.constant 3.200000e+01 : f32
    %76 = vector.broadcast %cst_40 : f32 to vector<32x1xf32>
    %77 = arith.divf %75, %76 : vector<32x1xf32>
    %78 = vector.broadcast %77 : vector<32x1xf32> to vector<32x32xf32>
    %79 = arith.subf %69, %78 : vector<32x32xf32>
    %80 = arith.mulf %79, %79 : vector<32x32xf32>
    %cst_41 = arith.constant dense<0.000000e+00> : vector<32xf32>
    %81 = vector.multi_reduction <add>, %80, %cst_41 [1] : vector<32x32xf32> to vector<32xf32>
    %82 = vector.shape_cast %81 : vector<32xf32> to vector<32x1xf32>
    %cst_42 = arith.constant 3.200000e+01 : f32
    %83 = vector.broadcast %cst_42 : f32 to vector<32x1xf32>
    %84 = arith.divf %82, %83 : vector<32x1xf32>
    %cst_43 = arith.constant 9.99999974E-6 : f32
    %85 = vector.broadcast %cst_43 : f32 to vector<32x1xf32>
    %86 = arith.addf %84, %85 : vector<32x1xf32>
    %87 = math.rsqrt %86 : vector<32x1xf32>
    %88 = vector.broadcast %87 : vector<32x1xf32> to vector<32x32xf32>
    %89 = arith.mulf %79, %88 : vector<32x32xf32>
    %90 = vector.broadcast %71 : vector<1x32xf32> to vector<32x32xf32>
    %91 = arith.mulf %89, %90 : vector<32x32xf32>
    %92 = vector.broadcast %73 : vector<1x32xf32> to vector<32x32xf32>
    %93 = arith.addf %91, %92 : vector<32x32xf32>
    %c0_44 = arith.constant 0 : index
    %c0_45 = arith.constant 0 : index
    %c0_46 = arith.constant 0 : index
    %94 = vector.load %arg9[%c0_44, %c0_45, %c0_46] : memref<3x32x32xbf16, #tpu.memory_space<vmem>>, vector<1x32x32xbf16>
    %95 = vector.shape_cast %94 : vector<1x32x32xbf16> to vector<32x32xbf16>
    %96 = arith.truncf %93 : vector<32x32xf32> to vector<32x32xbf16>
    %cst_47 = arith.constant dense<0.000000e+00> : vector<32x32xf32>
    %97 = tpu.matmul %96, %95, %cst_47 {dimension_numbers = #tpu.dot_dimension_numbers<[1], [0], [0], [1], [0, 0, 1, 1], [], []>} : vector<32x32xbf16>, vector<32x32xbf16>, vector<32x32xf32> -> vector<32x32xf32>
    %c0_48 = arith.constant 0 : index
    %c0_49 = arith.constant 0 : index
    %c0_50 = arith.constant 0 : index
    %98 = vector.load %arg10[%c0_48, %c0_49, %c0_50] : memref<3x1x32xf32, #tpu.memory_space<vmem>>, vector<1x1x32xf32>
    %99 = vector.shape_cast %98 : vector<1x1x32xf32> to vector<1x32xf32>
    %100 = vector.broadcast %99 : vector<1x32xf32> to vector<32x32xf32>
    %101 = arith.addf %97, %100 : vector<32x32xf32>
    %c1_51 = arith.constant 1 : index
    %c0_52 = arith.constant 0 : index
    %c0_53 = arith.constant 0 : index
    %c0_54 = arith.constant 0 : index
    %102 = vector.load %arg6[%c1_51, %c0_52, %c0_53, %c0_54] : memref<3x3x1x32xf32, #tpu.memory_space<vmem>>, vector<1x1x1x32xf32>
    %103 = vector.shape_cast %102 : vector<1x1x1x32xf32> to vector<1x32xf32>
    %104 = vector.broadcast %103 : vector<1x32xf32> to vector<32x32xf32>
    %105 = arith.mulf %40, %104 : vector<32x32xf32>
    %c1_55 = arith.constant 1 : index
    %c1_56 = arith.constant 1 : index
    %c0_57 = arith.constant 0 : index
    %c0_58 = arith.constant 0 : index
    %106 = vector.load %arg6[%c1_55, %c1_56, %c0_57, %c0_58] : memref<3x3x1x32xf32, #tpu.memory_space<vmem>>, vector<1x1x1x32xf32>
    %107 = vector.shape_cast %106 : vector<1x1x1x32xf32> to vector<1x32xf32>
    %108 = vector.broadcast %107 : vector<1x32xf32> to vector<32x32xf32>
    %109 = arith.mulf %27, %108 : vector<32x32xf32>
    %110 = arith.addf %105, %109 : vector<32x32xf32>
    %c1_59 = arith.constant 1 : index
    %c2_60 = arith.constant 2 : index
    %c0_61 = arith.constant 0 : index
    %c0_62 = arith.constant 0 : index
    %111 = vector.load %arg6[%c1_59, %c2_60, %c0_61, %c0_62] : memref<3x3x1x32xf32, #tpu.memory_space<vmem>>, vector<1x1x1x32xf32>
    %112 = vector.shape_cast %111 : vector<1x1x1x32xf32> to vector<1x32xf32>
    %113 = vector.broadcast %112 : vector<1x32xf32> to vector<32x32xf32>
    %114 = arith.mulf %53, %113 : vector<32x32xf32>
    %115 = arith.addf %110, %114 : vector<32x32xf32>
    %116 = vector.broadcast %3 : vector<32x1xf32> to vector<32x32xf32>
    %117 = arith.mulf %115, %116 : vector<32x32xf32>
    %c1_63 = arith.constant 1 : index
    %c0_64 = arith.constant 0 : index
    %c0_65 = arith.constant 0 : index
    %118 = vector.load %arg7[%c1_63, %c0_64, %c0_65] : memref<3x1x32xf32, #tpu.memory_space<vmem>>, vector<1x1x32xf32>
    %119 = vector.shape_cast %118 : vector<1x1x32xf32> to vector<1x32xf32>
    %c1_66 = arith.constant 1 : index
    %c0_67 = arith.constant 0 : index
    %c0_68 = arith.constant 0 : index
    %120 = vector.load %arg8[%c1_66, %c0_67, %c0_68] : memref<3x1x32xf32, #tpu.memory_space<vmem>>, vector<1x1x32xf32>
    %121 = vector.shape_cast %120 : vector<1x1x32xf32> to vector<1x32xf32>
    %cst_69 = arith.constant dense<0.000000e+00> : vector<32xf32>
    %122 = vector.multi_reduction <add>, %117, %cst_69 [1] : vector<32x32xf32> to vector<32xf32>
    %123 = vector.shape_cast %122 : vector<32xf32> to vector<32x1xf32>
    %cst_70 = arith.constant 3.200000e+01 : f32
    %124 = vector.broadcast %cst_70 : f32 to vector<32x1xf32>
    %125 = arith.divf %123, %124 : vector<32x1xf32>
    %126 = vector.broadcast %125 : vector<32x1xf32> to vector<32x32xf32>
    %127 = arith.subf %117, %126 : vector<32x32xf32>
    %128 = arith.mulf %127, %127 : vector<32x32xf32>
    %cst_71 = arith.constant dense<0.000000e+00> : vector<32xf32>
    %129 = vector.multi_reduction <add>, %128, %cst_71 [1] : vector<32x32xf32> to vector<32xf32>
    %130 = vector.shape_cast %129 : vector<32xf32> to vector<32x1xf32>
    %cst_72 = arith.constant 3.200000e+01 : f32
    %131 = vector.broadcast %cst_72 : f32 to vector<32x1xf32>
    %132 = arith.divf %130, %131 : vector<32x1xf32>
    %cst_73 = arith.constant 9.99999974E-6 : f32
    %133 = vector.broadcast %cst_73 : f32 to vector<32x1xf32>
    %134 = arith.addf %132, %133 : vector<32x1xf32>
    %135 = math.rsqrt %134 : vector<32x1xf32>
    %136 = vector.broadcast %135 : vector<32x1xf32> to vector<32x32xf32>
    %137 = arith.mulf %127, %136 : vector<32x32xf32>
    %138 = vector.broadcast %119 : vector<1x32xf32> to vector<32x32xf32>
    %139 = arith.mulf %137, %138 : vector<32x32xf32>
    %140 = vector.broadcast %121 : vector<1x32xf32> to vector<32x32xf32>
    %141 = arith.addf %139, %140 : vector<32x32xf32>
    %c1_74 = arith.constant 1 : index
    %c0_75 = arith.constant 0 : index
    %c0_76 = arith.constant 0 : index
    %142 = vector.load %arg9[%c1_74, %c0_75, %c0_76] : memref<3x32x32xbf16, #tpu.memory_space<vmem>>, vector<1x32x32xbf16>
    %143 = vector.shape_cast %142 : vector<1x32x32xbf16> to vector<32x32xbf16>
    %144 = arith.truncf %141 : vector<32x32xf32> to vector<32x32xbf16>
    %cst_77 = arith.constant dense<0.000000e+00> : vector<32x32xf32>
    %145 = tpu.matmul %144, %143, %cst_77 {dimension_numbers = #tpu.dot_dimension_numbers<[1], [0], [0], [1], [0, 0, 1, 1], [], []>} : vector<32x32xbf16>, vector<32x32xbf16>, vector<32x32xf32> -> vector<32x32xf32>
    %c1_78 = arith.constant 1 : index
    %c0_79 = arith.constant 0 : index
    %c0_80 = arith.constant 0 : index
    %146 = vector.load %arg10[%c1_78, %c0_79, %c0_80] : memref<3x1x32xf32, #tpu.memory_space<vmem>>, vector<1x1x32xf32>
    %147 = vector.shape_cast %146 : vector<1x1x32xf32> to vector<1x32xf32>
    %148 = vector.broadcast %147 : vector<1x32xf32> to vector<32x32xf32>
    %149 = arith.addf %145, %148 : vector<32x32xf32>
    %c2_81 = arith.constant 2 : index
    %c0_82 = arith.constant 0 : index
    %c0_83 = arith.constant 0 : index
    %c0_84 = arith.constant 0 : index
    %150 = vector.load %arg6[%c2_81, %c0_82, %c0_83, %c0_84] : memref<3x3x1x32xf32, #tpu.memory_space<vmem>>, vector<1x1x1x32xf32>
    %151 = vector.shape_cast %150 : vector<1x1x1x32xf32> to vector<1x32xf32>
    %152 = vector.broadcast %151 : vector<1x32xf32> to vector<32x32xf32>
    %153 = arith.mulf %40, %152 : vector<32x32xf32>
    %c2_85 = arith.constant 2 : index
    %c1_86 = arith.constant 1 : index
    %c0_87 = arith.constant 0 : index
    %c0_88 = arith.constant 0 : index
    %154 = vector.load %arg6[%c2_85, %c1_86, %c0_87, %c0_88] : memref<3x3x1x32xf32, #tpu.memory_space<vmem>>, vector<1x1x1x32xf32>
    %155 = vector.shape_cast %154 : vector<1x1x1x32xf32> to vector<1x32xf32>
    %156 = vector.broadcast %155 : vector<1x32xf32> to vector<32x32xf32>
    %157 = arith.mulf %27, %156 : vector<32x32xf32>
    %158 = arith.addf %153, %157 : vector<32x32xf32>
    %c2_89 = arith.constant 2 : index
    %c2_90 = arith.constant 2 : index
    %c0_91 = arith.constant 0 : index
    %c0_92 = arith.constant 0 : index
    %159 = vector.load %arg6[%c2_89, %c2_90, %c0_91, %c0_92] : memref<3x3x1x32xf32, #tpu.memory_space<vmem>>, vector<1x1x1x32xf32>
    %160 = vector.shape_cast %159 : vector<1x1x1x32xf32> to vector<1x32xf32>
    %161 = vector.broadcast %160 : vector<1x32xf32> to vector<32x32xf32>
    %162 = arith.mulf %53, %161 : vector<32x32xf32>
    %163 = arith.addf %158, %162 : vector<32x32xf32>
    %164 = vector.broadcast %3 : vector<32x1xf32> to vector<32x32xf32>
    %165 = arith.mulf %163, %164 : vector<32x32xf32>
    %c2_93 = arith.constant 2 : index
    %c0_94 = arith.constant 0 : index
    %c0_95 = arith.constant 0 : index
    %166 = vector.load %arg7[%c2_93, %c0_94, %c0_95] : memref<3x1x32xf32, #tpu.memory_space<vmem>>, vector<1x1x32xf32>
    %167 = vector.shape_cast %166 : vector<1x1x32xf32> to vector<1x32xf32>
    %c2_96 = arith.constant 2 : index
    %c0_97 = arith.constant 0 : index
    %c0_98 = arith.constant 0 : index
    %168 = vector.load %arg8[%c2_96, %c0_97, %c0_98] : memref<3x1x32xf32, #tpu.memory_space<vmem>>, vector<1x1x32xf32>
    %169 = vector.shape_cast %168 : vector<1x1x32xf32> to vector<1x32xf32>
    %cst_99 = arith.constant dense<0.000000e+00> : vector<32xf32>
    %170 = vector.multi_reduction <add>, %165, %cst_99 [1] : vector<32x32xf32> to vector<32xf32>
    %171 = vector.shape_cast %170 : vector<32xf32> to vector<32x1xf32>
    %cst_100 = arith.constant 3.200000e+01 : f32
    %172 = vector.broadcast %cst_100 : f32 to vector<32x1xf32>
    %173 = arith.divf %171, %172 : vector<32x1xf32>
    %174 = vector.broadcast %173 : vector<32x1xf32> to vector<32x32xf32>
    %175 = arith.subf %165, %174 : vector<32x32xf32>
    %176 = arith.mulf %175, %175 : vector<32x32xf32>
    %cst_101 = arith.constant dense<0.000000e+00> : vector<32xf32>
    %177 = vector.multi_reduction <add>, %176, %cst_101 [1] : vector<32x32xf32> to vector<32xf32>
    %178 = vector.shape_cast %177 : vector<32xf32> to vector<32x1xf32>
    %cst_102 = arith.constant 3.200000e+01 : f32
    %179 = vector.broadcast %cst_102 : f32 to vector<32x1xf32>
    %180 = arith.divf %178, %179 : vector<32x1xf32>
    %cst_103 = arith.constant 9.99999974E-6 : f32
    %181 = vector.broadcast %cst_103 : f32 to vector<32x1xf32>
    %182 = arith.addf %180, %181 : vector<32x1xf32>
    %183 = math.rsqrt %182 : vector<32x1xf32>
    %184 = vector.broadcast %183 : vector<32x1xf32> to vector<32x32xf32>
    %185 = arith.mulf %175, %184 : vector<32x32xf32>
    %186 = vector.broadcast %167 : vector<1x32xf32> to vector<32x32xf32>
    %187 = arith.mulf %185, %186 : vector<32x32xf32>
    %188 = vector.broadcast %169 : vector<1x32xf32> to vector<32x32xf32>
    %189 = arith.addf %187, %188 : vector<32x32xf32>
    %c2_104 = arith.constant 2 : index
    %c0_105 = arith.constant 0 : index
    %c0_106 = arith.constant 0 : index
    %190 = vector.load %arg9[%c2_104, %c0_105, %c0_106] : memref<3x32x32xbf16, #tpu.memory_space<vmem>>, vector<1x32x32xbf16>
    %191 = vector.shape_cast %190 : vector<1x32x32xbf16> to vector<32x32xbf16>
    %192 = arith.truncf %189 : vector<32x32xf32> to vector<32x32xbf16>
    %cst_107 = arith.constant dense<0.000000e+00> : vector<32x32xf32>
    %193 = tpu.matmul %192, %191, %cst_107 {dimension_numbers = #tpu.dot_dimension_numbers<[1], [0], [0], [1], [0, 0, 1, 1], [], []>} : vector<32x32xbf16>, vector<32x32xbf16>, vector<32x32xf32> -> vector<32x32xf32>
    %c2_108 = arith.constant 2 : index
    %c0_109 = arith.constant 0 : index
    %c0_110 = arith.constant 0 : index
    %194 = vector.load %arg10[%c2_108, %c0_109, %c0_110] : memref<3x1x32xf32, #tpu.memory_space<vmem>>, vector<1x1x32xf32>
    %195 = vector.shape_cast %194 : vector<1x1x32xf32> to vector<1x32xf32>
    %196 = vector.broadcast %195 : vector<1x32xf32> to vector<32x32xf32>
    %197 = arith.addf %193, %196 : vector<32x32xf32>
    %198 = tpu.iota {dimensions = array<i32: 1>} : vector<1x32xi32>
    %199 = vector.broadcast %3 : vector<32x1xf32> to vector<32x32xf32>
    %200 = arith.mulf %197, %199 : vector<32x32xf32>
    %cst_111 = arith.constant 1.000000e+00 : f32
    %201 = vector.broadcast %cst_111 : f32 to vector<1x32xf32>
    %202 = arith.subf %201, %5 : vector<1x32xf32>
    %cst_112 = arith.constant -1.000000e+30 : f32
    %203 = vector.broadcast %cst_112 : f32 to vector<1x32xf32>
    %204 = arith.mulf %202, %203 : vector<1x32xf32>
    %cst_113 = arith.constant 0.000000e+00 : f32
    %205 = vector.broadcast %cst_113 : f32 to vector<32x32xf32>
    %c0_i32_114 = arith.constant 0 : i32
    %206 = vector.broadcast %c0_i32_114 : i32 to vector<1x32xi32>
    %207 = arith.cmpi sge, %198, %206 : vector<1x32xi32>
    %c8_i32 = arith.constant 8 : i32
    %208 = vector.broadcast %c8_i32 : i32 to vector<1x32xi32>
    %209 = arith.cmpi slt, %198, %208 : vector<1x32xi32>
    %210 = arith.andi %207, %209 : vector<1x32xi1>
    %cst_115 = arith.constant 0.000000e+00 : f32
    %211 = vector.shape_cast %210 : vector<1x32xi1> to vector<1x32xi1>
    %212 = vector.broadcast %211 : vector<1x32xi1> to vector<32x32xi1>
    %213 = vector.broadcast %cst_115 : f32 to vector<32x32xf32>
    %214 = arith.select %212, %101, %213 : vector<32x32xi1>, vector<32x32xf32>
    %cst_116 = arith.constant 0.000000e+00 : f32
    %215 = vector.shape_cast %210 : vector<1x32xi1> to vector<1x32xi1>
    %216 = vector.broadcast %215 : vector<1x32xi1> to vector<32x32xi1>
    %217 = vector.broadcast %cst_116 : f32 to vector<32x32xf32>
    %218 = arith.select %216, %149, %217 : vector<32x32xi1>, vector<32x32xf32>
    %219 = arith.truncf %214 : vector<32x32xf32> to vector<32x32xbf16>
    %220 = arith.truncf %218 : vector<32x32xf32> to vector<32x32xbf16>
    %cst_117 = arith.constant dense<0.000000e+00> : vector<32x32xf32>
    %221 = tpu.matmul %219, %220, %cst_117 {dimension_numbers = #tpu.dot_dimension_numbers<[1], [1], [0], [0], [0, 0, 1, 0], [], []>} : vector<32x32xbf16>, vector<32x32xbf16>, vector<32x32xf32> -> vector<32x32xf32>
    %222 = vector.broadcast %204 : vector<1x32xf32> to vector<32x32xf32>
    %223 = arith.addf %221, %222 : vector<32x32xf32>
    %cst_118 = arith.constant dense<0xFF800000> : vector<32xf32>
    %224 = vector.multi_reduction <maximumf>, %223, %cst_118 [1] : vector<32x32xf32> to vector<32xf32>
    %225 = vector.shape_cast %224 : vector<32xf32> to vector<32x1xf32>
    %226 = vector.broadcast %225 : vector<32x1xf32> to vector<32x32xf32>
    %227 = arith.subf %223, %226 : vector<32x32xf32>
    %228 = math.exp %227 : vector<32x32xf32>
    %cst_119 = arith.constant dense<0.000000e+00> : vector<32xf32>
    %229 = vector.multi_reduction <add>, %228, %cst_119 [1] : vector<32x32xf32> to vector<32xf32>
    %230 = vector.shape_cast %229 : vector<32xf32> to vector<32x1xf32>
    %231 = tpu.reciprocal %230 {approx = true} : vector<32x1xf32> -> vector<32x1xf32>
    %232 = vector.broadcast %231 : vector<32x1xf32> to vector<32x32xf32>
    %233 = arith.mulf %228, %232 : vector<32x32xf32>
    %cst_120 = arith.constant 0.000000e+00 : f32
    %234 = vector.shape_cast %210 : vector<1x32xi1> to vector<1x32xi1>
    %235 = vector.broadcast %234 : vector<1x32xi1> to vector<32x32xi1>
    %236 = vector.broadcast %cst_120 : f32 to vector<32x32xf32>
    %237 = arith.select %235, %200, %236 : vector<32x32xi1>, vector<32x32xf32>
    %238 = arith.truncf %233 : vector<32x32xf32> to vector<32x32xbf16>
    %239 = arith.truncf %237 : vector<32x32xf32> to vector<32x32xbf16>
    %cst_121 = arith.constant dense<0.000000e+00> : vector<32x32xf32>
    %240 = tpu.matmul %238, %239, %cst_121 {dimension_numbers = #tpu.dot_dimension_numbers<[1], [0], [0], [1], [0, 0, 1, 1], [], []>} : vector<32x32xbf16>, vector<32x32xbf16>, vector<32x32xf32> -> vector<32x32xf32>
    %241 = arith.addf %205, %240 : vector<32x32xf32>
    %c8_i32_122 = arith.constant 8 : i32
    %242 = vector.broadcast %c8_i32_122 : i32 to vector<1x32xi32>
    %243 = arith.cmpi sge, %198, %242 : vector<1x32xi32>
    %c16_i32 = arith.constant 16 : i32
    %244 = vector.broadcast %c16_i32 : i32 to vector<1x32xi32>
    %245 = arith.cmpi slt, %198, %244 : vector<1x32xi32>
    %246 = arith.andi %243, %245 : vector<1x32xi1>
    %cst_123 = arith.constant 0.000000e+00 : f32
    %247 = vector.shape_cast %246 : vector<1x32xi1> to vector<1x32xi1>
    %248 = vector.broadcast %247 : vector<1x32xi1> to vector<32x32xi1>
    %249 = vector.broadcast %cst_123 : f32 to vector<32x32xf32>
    %250 = arith.select %248, %101, %249 : vector<32x32xi1>, vector<32x32xf32>
    %cst_124 = arith.constant 0.000000e+00 : f32
    %251 = vector.shape_cast %246 : vector<1x32xi1> to vector<1x32xi1>
    %252 = vector.broadcast %251 : vector<1x32xi1> to vector<32x32xi1>
    %253 = vector.broadcast %cst_124 : f32 to vector<32x32xf32>
    %254 = arith.select %252, %149, %253 : vector<32x32xi1>, vector<32x32xf32>
    %255 = arith.truncf %250 : vector<32x32xf32> to vector<32x32xbf16>
    %256 = arith.truncf %254 : vector<32x32xf32> to vector<32x32xbf16>
    %cst_125 = arith.constant dense<0.000000e+00> : vector<32x32xf32>
    %257 = tpu.matmul %255, %256, %cst_125 {dimension_numbers = #tpu.dot_dimension_numbers<[1], [1], [0], [0], [0, 0, 1, 0], [], []>} : vector<32x32xbf16>, vector<32x32xbf16>, vector<32x32xf32> -> vector<32x32xf32>
    %258 = vector.broadcast %204 : vector<1x32xf32> to vector<32x32xf32>
    %259 = arith.addf %257, %258 : vector<32x32xf32>
    %cst_126 = arith.constant dense<0xFF800000> : vector<32xf32>
    %260 = vector.multi_reduction <maximumf>, %259, %cst_126 [1] : vector<32x32xf32> to vector<32xf32>
    %261 = vector.shape_cast %260 : vector<32xf32> to vector<32x1xf32>
    %262 = vector.broadcast %261 : vector<32x1xf32> to vector<32x32xf32>
    %263 = arith.subf %259, %262 : vector<32x32xf32>
    %264 = math.exp %263 : vector<32x32xf32>
    %cst_127 = arith.constant dense<0.000000e+00> : vector<32xf32>
    %265 = vector.multi_reduction <add>, %264, %cst_127 [1] : vector<32x32xf32> to vector<32xf32>
    %266 = vector.shape_cast %265 : vector<32xf32> to vector<32x1xf32>
    %267 = tpu.reciprocal %266 {approx = true} : vector<32x1xf32> -> vector<32x1xf32>
    %268 = vector.broadcast %267 : vector<32x1xf32> to vector<32x32xf32>
    %269 = arith.mulf %264, %268 : vector<32x32xf32>
    %cst_128 = arith.constant 0.000000e+00 : f32
    %270 = vector.shape_cast %246 : vector<1x32xi1> to vector<1x32xi1>
    %271 = vector.broadcast %270 : vector<1x32xi1> to vector<32x32xi1>
    %272 = vector.broadcast %cst_128 : f32 to vector<32x32xf32>
    %273 = arith.select %271, %200, %272 : vector<32x32xi1>, vector<32x32xf32>
    %274 = arith.truncf %269 : vector<32x32xf32> to vector<32x32xbf16>
    %275 = arith.truncf %273 : vector<32x32xf32> to vector<32x32xbf16>
    %cst_129 = arith.constant dense<0.000000e+00> : vector<32x32xf32>
    %276 = tpu.matmul %274, %275, %cst_129 {dimension_numbers = #tpu.dot_dimension_numbers<[1], [0], [0], [1], [0, 0, 1, 1], [], []>} : vector<32x32xbf16>, vector<32x32xbf16>, vector<32x32xf32> -> vector<32x32xf32>
    %277 = arith.addf %241, %276 : vector<32x32xf32>
    %c16_i32_130 = arith.constant 16 : i32
    %278 = vector.broadcast %c16_i32_130 : i32 to vector<1x32xi32>
    %279 = arith.cmpi sge, %198, %278 : vector<1x32xi32>
    %c24_i32 = arith.constant 24 : i32
    %280 = vector.broadcast %c24_i32 : i32 to vector<1x32xi32>
    %281 = arith.cmpi slt, %198, %280 : vector<1x32xi32>
    %282 = arith.andi %279, %281 : vector<1x32xi1>
    %cst_131 = arith.constant 0.000000e+00 : f32
    %283 = vector.shape_cast %282 : vector<1x32xi1> to vector<1x32xi1>
    %284 = vector.broadcast %283 : vector<1x32xi1> to vector<32x32xi1>
    %285 = vector.broadcast %cst_131 : f32 to vector<32x32xf32>
    %286 = arith.select %284, %101, %285 : vector<32x32xi1>, vector<32x32xf32>
    %cst_132 = arith.constant 0.000000e+00 : f32
    %287 = vector.shape_cast %282 : vector<1x32xi1> to vector<1x32xi1>
    %288 = vector.broadcast %287 : vector<1x32xi1> to vector<32x32xi1>
    %289 = vector.broadcast %cst_132 : f32 to vector<32x32xf32>
    %290 = arith.select %288, %149, %289 : vector<32x32xi1>, vector<32x32xf32>
    %291 = arith.truncf %286 : vector<32x32xf32> to vector<32x32xbf16>
    %292 = arith.truncf %290 : vector<32x32xf32> to vector<32x32xbf16>
    %cst_133 = arith.constant dense<0.000000e+00> : vector<32x32xf32>
    %293 = tpu.matmul %291, %292, %cst_133 {dimension_numbers = #tpu.dot_dimension_numbers<[1], [1], [0], [0], [0, 0, 1, 0], [], []>} : vector<32x32xbf16>, vector<32x32xbf16>, vector<32x32xf32> -> vector<32x32xf32>
    %294 = vector.broadcast %204 : vector<1x32xf32> to vector<32x32xf32>
    %295 = arith.addf %293, %294 : vector<32x32xf32>
    %cst_134 = arith.constant dense<0xFF800000> : vector<32xf32>
    %296 = vector.multi_reduction <maximumf>, %295, %cst_134 [1] : vector<32x32xf32> to vector<32xf32>
    %297 = vector.shape_cast %296 : vector<32xf32> to vector<32x1xf32>
    %298 = vector.broadcast %297 : vector<32x1xf32> to vector<32x32xf32>
    %299 = arith.subf %295, %298 : vector<32x32xf32>
    %300 = math.exp %299 : vector<32x32xf32>
    %cst_135 = arith.constant dense<0.000000e+00> : vector<32xf32>
    %301 = vector.multi_reduction <add>, %300, %cst_135 [1] : vector<32x32xf32> to vector<32xf32>
    %302 = vector.shape_cast %301 : vector<32xf32> to vector<32x1xf32>
    %303 = tpu.reciprocal %302 {approx = true} : vector<32x1xf32> -> vector<32x1xf32>
    %304 = vector.broadcast %303 : vector<32x1xf32> to vector<32x32xf32>
    %305 = arith.mulf %300, %304 : vector<32x32xf32>
    %cst_136 = arith.constant 0.000000e+00 : f32
    %306 = vector.shape_cast %282 : vector<1x32xi1> to vector<1x32xi1>
    %307 = vector.broadcast %306 : vector<1x32xi1> to vector<32x32xi1>
    %308 = vector.broadcast %cst_136 : f32 to vector<32x32xf32>
    %309 = arith.select %307, %200, %308 : vector<32x32xi1>, vector<32x32xf32>
    %310 = arith.truncf %305 : vector<32x32xf32> to vector<32x32xbf16>
    %311 = arith.truncf %309 : vector<32x32xf32> to vector<32x32xbf16>
    %cst_137 = arith.constant dense<0.000000e+00> : vector<32x32xf32>
    %312 = tpu.matmul %310, %311, %cst_137 {dimension_numbers = #tpu.dot_dimension_numbers<[1], [0], [0], [1], [0, 0, 1, 1], [], []>} : vector<32x32xbf16>, vector<32x32xbf16>, vector<32x32xf32> -> vector<32x32xf32>
    %313 = arith.addf %277, %312 : vector<32x32xf32>
    %c24_i32_138 = arith.constant 24 : i32
    %314 = vector.broadcast %c24_i32_138 : i32 to vector<1x32xi32>
    %315 = arith.cmpi sge, %198, %314 : vector<1x32xi32>
    %c32_i32_139 = arith.constant 32 : i32
    %316 = vector.broadcast %c32_i32_139 : i32 to vector<1x32xi32>
    %317 = arith.cmpi slt, %198, %316 : vector<1x32xi32>
    %318 = arith.andi %315, %317 : vector<1x32xi1>
    %cst_140 = arith.constant 0.000000e+00 : f32
    %319 = vector.shape_cast %318 : vector<1x32xi1> to vector<1x32xi1>
    %320 = vector.broadcast %319 : vector<1x32xi1> to vector<32x32xi1>
    %321 = vector.broadcast %cst_140 : f32 to vector<32x32xf32>
    %322 = arith.select %320, %101, %321 : vector<32x32xi1>, vector<32x32xf32>
    %cst_141 = arith.constant 0.000000e+00 : f32
    %323 = vector.shape_cast %318 : vector<1x32xi1> to vector<1x32xi1>
    %324 = vector.broadcast %323 : vector<1x32xi1> to vector<32x32xi1>
    %325 = vector.broadcast %cst_141 : f32 to vector<32x32xf32>
    %326 = arith.select %324, %149, %325 : vector<32x32xi1>, vector<32x32xf32>
    %327 = arith.truncf %322 : vector<32x32xf32> to vector<32x32xbf16>
    %328 = arith.truncf %326 : vector<32x32xf32> to vector<32x32xbf16>
    %cst_142 = arith.constant dense<0.000000e+00> : vector<32x32xf32>
    %329 = tpu.matmul %327, %328, %cst_142 {dimension_numbers = #tpu.dot_dimension_numbers<[1], [1], [0], [0], [0, 0, 1, 0], [], []>} : vector<32x32xbf16>, vector<32x32xbf16>, vector<32x32xf32> -> vector<32x32xf32>
    %330 = vector.broadcast %204 : vector<1x32xf32> to vector<32x32xf32>
    %331 = arith.addf %329, %330 : vector<32x32xf32>
    %cst_143 = arith.constant dense<0xFF800000> : vector<32xf32>
    %332 = vector.multi_reduction <maximumf>, %331, %cst_143 [1] : vector<32x32xf32> to vector<32xf32>
    %333 = vector.shape_cast %332 : vector<32xf32> to vector<32x1xf32>
    %334 = vector.broadcast %333 : vector<32x1xf32> to vector<32x32xf32>
    %335 = arith.subf %331, %334 : vector<32x32xf32>
    %336 = math.exp %335 : vector<32x32xf32>
    %cst_144 = arith.constant dense<0.000000e+00> : vector<32xf32>
    %337 = vector.multi_reduction <add>, %336, %cst_144 [1] : vector<32x32xf32> to vector<32xf32>
    %338 = vector.shape_cast %337 : vector<32xf32> to vector<32x1xf32>
    %339 = tpu.reciprocal %338 {approx = true} : vector<32x1xf32> -> vector<32x1xf32>
    %340 = vector.broadcast %339 : vector<32x1xf32> to vector<32x32xf32>
    %341 = arith.mulf %336, %340 : vector<32x32xf32>
    %cst_145 = arith.constant 0.000000e+00 : f32
    %342 = vector.shape_cast %318 : vector<1x32xi1> to vector<1x32xi1>
    %343 = vector.broadcast %342 : vector<1x32xi1> to vector<32x32xi1>
    %344 = vector.broadcast %cst_145 : f32 to vector<32x32xf32>
    %345 = arith.select %343, %200, %344 : vector<32x32xi1>, vector<32x32xf32>
    %346 = arith.truncf %341 : vector<32x32xf32> to vector<32x32xbf16>
    %347 = arith.truncf %345 : vector<32x32xf32> to vector<32x32xbf16>
    %cst_146 = arith.constant dense<0.000000e+00> : vector<32x32xf32>
    %348 = tpu.matmul %346, %347, %cst_146 {dimension_numbers = #tpu.dot_dimension_numbers<[1], [0], [0], [1], [0, 0, 1, 1], [], []>} : vector<32x32xbf16>, vector<32x32xbf16>, vector<32x32xf32> -> vector<32x32xf32>
    %349 = arith.addf %313, %348 : vector<32x32xf32>
    %c0_147 = arith.constant 0 : index
    %c0_148 = arith.constant 0 : index
    %350 = vector.load %arg11[%c0_147, %c0_148] : memref<32x32xbf16, #tpu.memory_space<vmem>>, vector<32x32xbf16>
    %351 = arith.truncf %349 : vector<32x32xf32> to vector<32x32xbf16>
    %cst_149 = arith.constant dense<0.000000e+00> : vector<32x32xf32>
    %352 = tpu.matmul %351, %350, %cst_149 {dimension_numbers = #tpu.dot_dimension_numbers<[1], [0], [0], [1], [0, 0, 1, 1], [], []>} : vector<32x32xbf16>, vector<32x32xbf16>, vector<32x32xf32> -> vector<32x32xf32>
    %c0_150 = arith.constant 0 : index
    %c0_151 = arith.constant 0 : index
    %353 = vector.load %arg12[%c0_150, %c0_151] : memref<1x32xf32, #tpu.memory_space<vmem>>, vector<1x32xf32>
    %354 = vector.broadcast %353 : vector<1x32xf32> to vector<32x32xf32>
    %355 = arith.addf %352, %354 : vector<32x32xf32>
    %356 = vector.broadcast %3 : vector<32x1xf32> to vector<32x32xf32>
    %357 = arith.mulf %355, %356 : vector<32x32xf32>
    %358 = vector.broadcast %3 : vector<32x1xf32> to vector<32x32xf32>
    %359 = arith.mulf %1, %358 : vector<32x32xf32>
    %360 = arith.addf %359, %357 : vector<32x32xf32>
    %c0_152 = arith.constant 0 : index
    %c0_153 = arith.constant 0 : index
    %361 = vector.load %arg13[%c0_152, %c0_153] : memref<1x32xf32, #tpu.memory_space<vmem>>, vector<1x32xf32>
    %c0_154 = arith.constant 0 : index
    %c0_155 = arith.constant 0 : index
    %362 = vector.load %arg14[%c0_154, %c0_155] : memref<1x32xf32, #tpu.memory_space<vmem>>, vector<1x32xf32>
    %cst_156 = arith.constant dense<0.000000e+00> : vector<32xf32>
    %363 = vector.multi_reduction <add>, %360, %cst_156 [1] : vector<32x32xf32> to vector<32xf32>
    %364 = vector.shape_cast %363 : vector<32xf32> to vector<32x1xf32>
    %cst_157 = arith.constant 3.200000e+01 : f32
    %365 = vector.broadcast %cst_157 : f32 to vector<32x1xf32>
    %366 = arith.divf %364, %365 : vector<32x1xf32>
    %367 = vector.broadcast %366 : vector<32x1xf32> to vector<32x32xf32>
    %368 = arith.subf %360, %367 : vector<32x32xf32>
    %369 = arith.mulf %368, %368 : vector<32x32xf32>
    %cst_158 = arith.constant dense<0.000000e+00> : vector<32xf32>
    %370 = vector.multi_reduction <add>, %369, %cst_158 [1] : vector<32x32xf32> to vector<32xf32>
    %371 = vector.shape_cast %370 : vector<32xf32> to vector<32x1xf32>
    %cst_159 = arith.constant 3.200000e+01 : f32
    %372 = vector.broadcast %cst_159 : f32 to vector<32x1xf32>
    %373 = arith.divf %371, %372 : vector<32x1xf32>
    %cst_160 = arith.constant 9.99999974E-6 : f32
    %374 = vector.broadcast %cst_160 : f32 to vector<32x1xf32>
    %375 = arith.addf %373, %374 : vector<32x1xf32>
    %376 = math.rsqrt %375 : vector<32x1xf32>
    %377 = vector.broadcast %376 : vector<32x1xf32> to vector<32x32xf32>
    %378 = arith.mulf %368, %377 : vector<32x32xf32>
    %379 = vector.broadcast %361 : vector<1x32xf32> to vector<32x32xf32>
    %380 = arith.mulf %378, %379 : vector<32x32xf32>
    %381 = vector.broadcast %362 : vector<1x32xf32> to vector<32x32xf32>
    %382 = arith.addf %380, %381 : vector<32x32xf32>
    %c0_161 = arith.constant 0 : index
    %c0_162 = arith.constant 0 : index
    %383 = vector.load %arg15[%c0_161, %c0_162] : memref<32x128xbf16, #tpu.memory_space<vmem>>, vector<32x128xbf16>
    %384 = arith.truncf %382 : vector<32x32xf32> to vector<32x32xbf16>
    %cst_163 = arith.constant dense<0.000000e+00> : vector<32x128xf32>
    %385 = tpu.matmul %384, %383, %cst_163 {dimension_numbers = #tpu.dot_dimension_numbers<[1], [0], [0], [1], [0, 0, 1, 1], [], []>} : vector<32x32xbf16>, vector<32x128xbf16>, vector<32x128xf32> -> vector<32x128xf32>
    %c0_164 = arith.constant 0 : index
    %c0_165 = arith.constant 0 : index
    %386 = vector.load %arg16[%c0_164, %c0_165] : memref<1x128xf32, #tpu.memory_space<vmem>>, vector<1x128xf32>
    %387 = vector.broadcast %386 : vector<1x128xf32> to vector<32x128xf32>
    %388 = arith.addf %385, %387 : vector<32x128xf32>
    %cst_166 = arith.constant 5.000000e-01 : f32
    %389 = vector.broadcast %cst_166 : f32 to vector<32x128xf32>
    %390 = arith.mulf %389, %388 : vector<32x128xf32>
    %391 = arith.mulf %388, %388 : vector<32x128xf32>
    %392 = arith.mulf %391, %388 : vector<32x128xf32>
    %cst_167 = arith.constant 4.471500e-02 : f32
    %393 = vector.broadcast %cst_167 : f32 to vector<32x128xf32>
    %394 = arith.mulf %393, %392 : vector<32x128xf32>
    %395 = arith.addf %388, %394 : vector<32x128xf32>
    %cst_168 = arith.constant 0.797884583 : f32
    %396 = vector.broadcast %cst_168 : f32 to vector<32x128xf32>
    %397 = arith.mulf %396, %395 : vector<32x128xf32>
    %398 = math.tanh %397 : vector<32x128xf32>
    %cst_169 = arith.constant 1.000000e+00 : f32
    %399 = vector.broadcast %cst_169 : f32 to vector<32x128xf32>
    %400 = arith.addf %399, %398 : vector<32x128xf32>
    %401 = arith.mulf %390, %400 : vector<32x128xf32>
    %c0_170 = arith.constant 0 : index
    %c0_171 = arith.constant 0 : index
    %402 = vector.load %arg17[%c0_170, %c0_171] : memref<128x32xbf16, #tpu.memory_space<vmem>>, vector<128x32xbf16>
    %403 = arith.truncf %401 : vector<32x128xf32> to vector<32x128xbf16>
    %cst_172 = arith.constant dense<0.000000e+00> : vector<32x32xf32>
    %404 = tpu.matmul %403, %402, %cst_172 {dimension_numbers = #tpu.dot_dimension_numbers<[1], [0], [0], [1], [0, 0, 1, 1], [], []>} : vector<32x128xbf16>, vector<128x32xbf16>, vector<32x32xf32> -> vector<32x32xf32>
    %c0_173 = arith.constant 0 : index
    %c0_174 = arith.constant 0 : index
    %405 = vector.load %arg18[%c0_173, %c0_174] : memref<1x32xf32, #tpu.memory_space<vmem>>, vector<1x32xf32>
    %406 = vector.broadcast %405 : vector<1x32xf32> to vector<32x32xf32>
    %407 = arith.addf %404, %406 : vector<32x32xf32>
    %408 = vector.broadcast %3 : vector<32x1xf32> to vector<32x32xf32>
    %409 = arith.mulf %407, %408 : vector<32x32xf32>
    %410 = arith.addf %360, %409 : vector<32x32xf32>
    %c0_175 = arith.constant 0 : index
    %c0_176 = arith.constant 0 : index
    %c0_177 = arith.constant 0 : index
    %411 = vector.load %arg19[%c0_175, %c0_176, %c0_177] : memref<1x32x32xf32, #tpu.memory_space<vmem>>, vector<1x32x32xf32>
    %412 = vector.shape_cast %411 : vector<1x32x32xf32> to vector<32x32xf32>
    %413 = vector.shape_cast %410 : vector<32x32xf32> to vector<1x32x32xf32>
    tpu.vector_store %arg19[%c0_175, %c0_176, %c0_177], %413 {strides = array<i32>} : memref<1x32x32xf32, #tpu.memory_space<vmem>>, vector<1x32x32xf32>,
    return
  }
  func.func @transform_0(%arg0: i32) -> (i32, i32, i32) {
    %c0_i32 = arith.constant 0 : i32
    %c0_i32_0 = arith.constant 0 : i32
    %c0_i32_1 = arith.constant 0 : i32
    return %arg0, %c0_i32, %c0_i32_0 : i32, i32, i32
  }
  func.func @transform_1(%arg0: i32) -> (i32, i32, i32) {
    %c0_i32 = arith.constant 0 : i32
    %c0_i32_0 = arith.constant 0 : i32
    %c0_i32_1 = arith.constant 0 : i32
    return %arg0, %c0_i32, %c0_i32_0 : i32, i32, i32
  }
  func.func @transform_2(%arg0: i32) -> (i32, i32, i32) {
    %c0_i32 = arith.constant 0 : i32
    %c0_i32_0 = arith.constant 0 : i32
    %c0_i32_1 = arith.constant 0 : i32
    return %arg0, %c0_i32, %c0_i32_0 : i32, i32, i32
  }
  func.func @transform_3(%arg0: i32) -> (i32, i32) {
    %c0_i32 = arith.constant 0 : i32
    %c0_i32_0 = arith.constant 0 : i32
    %c0_i32_1 = arith.constant 0 : i32
    return %c0_i32, %c0_i32_0 : i32, i32
  }
  func.func @transform_4(%arg0: i32) -> (i32, i32) {
    %c0_i32 = arith.constant 0 : i32
    %c0_i32_0 = arith.constant 0 : i32
    %c0_i32_1 = arith.constant 0 : i32
    return %c0_i32, %c0_i32_0 : i32, i32
  }
  func.func @transform_5(%arg0: i32) -> (i32, i32, i32, i32) {
    %c0_i32 = arith.constant 0 : i32
    %c0_i32_0 = arith.constant 0 : i32
    %c0_i32_1 = arith.constant 0 : i32
    %c0_i32_2 = arith.constant 0 : i32
    %c0_i32_3 = arith.constant 0 : i32
    return %c0_i32, %c0_i32_0, %c0_i32_1, %c0_i32_2 : i32, i32, i32, i32
  }
  func.func @transform_6(%arg0: i32) -> (i32, i32, i32) {
    %c0_i32 = arith.constant 0 : i32
    %c0_i32_0 = arith.constant 0 : i32
    %c0_i32_1 = arith.constant 0 : i32
    %c0_i32_2 = arith.constant 0 : i32
    return %c0_i32, %c0_i32_0, %c0_i32_1 : i32, i32, i32
  }
  func.func @transform_7(%arg0: i32) -> (i32, i32, i32) {
    %c0_i32 = arith.constant 0 : i32
    %c0_i32_0 = arith.constant 0 : i32
    %c0_i32_1 = arith.constant 0 : i32
    %c0_i32_2 = arith.constant 0 : i32
    return %c0_i32, %c0_i32_0, %c0_i32_1 : i32, i32, i32
  }
  func.func @transform_8(%arg0: i32) -> (i32, i32, i32) {
    %c0_i32 = arith.constant 0 : i32
    %c0_i32_0 = arith.constant 0 : i32
    %c0_i32_1 = arith.constant 0 : i32
    %c0_i32_2 = arith.constant 0 : i32
    return %c0_i32, %c0_i32_0, %c0_i32_1 : i32, i32, i32
  }
  func.func @transform_9(%arg0: i32) -> (i32, i32, i32) {
    %c0_i32 = arith.constant 0 : i32
    %c0_i32_0 = arith.constant 0 : i32
    %c0_i32_1 = arith.constant 0 : i32
    %c0_i32_2 = arith.constant 0 : i32
    return %c0_i32, %c0_i32_0, %c0_i32_1 : i32, i32, i32
  }
  func.func @transform_10(%arg0: i32) -> (i32, i32) {
    %c0_i32 = arith.constant 0 : i32
    %c0_i32_0 = arith.constant 0 : i32
    %c0_i32_1 = arith.constant 0 : i32
    return %c0_i32, %c0_i32_0 : i32, i32
  }
  func.func @transform_11(%arg0: i32) -> (i32, i32) {
    %c0_i32 = arith.constant 0 : i32
    %c0_i32_0 = arith.constant 0 : i32
    %c0_i32_1 = arith.constant 0 : i32
    return %c0_i32, %c0_i32_0 : i32, i32
  }
  func.func @transform_12(%arg0: i32) -> (i32, i32) {
    %c0_i32 = arith.constant 0 : i32
    %c0_i32_0 = arith.constant 0 : i32
    %c0_i32_1 = arith.constant 0 : i32
    return %c0_i32, %c0_i32_0 : i32, i32
  }
  func.func @transform_13(%arg0: i32) -> (i32, i32) {
    %c0_i32 = arith.constant 0 : i32
    %c0_i32_0 = arith.constant 0 : i32
    %c0_i32_1 = arith.constant 0 : i32
    return %c0_i32, %c0_i32_0 : i32, i32
  }
  func.func @transform_14(%arg0: i32) -> (i32, i32) {
    %c0_i32 = arith.constant 0 : i32
    %c0_i32_0 = arith.constant 0 : i32
    %c0_i32_1 = arith.constant 0 : i32
    return %c0_i32, %c0_i32_0 : i32, i32
  }
  func.func @transform_15(%arg0: i32) -> (i32, i32) {
    %c0_i32 = arith.constant 0 : i32
    %c0_i32_0 = arith.constant 0 : i32
    %c0_i32_1 = arith.constant 0 : i32
    return %c0_i32, %c0_i32_0 : i32, i32
  }
  func.func @transform_16(%arg0: i32) -> (i32, i32) {
    %c0_i32 = arith.constant 0 : i32
    %c0_i32_0 = arith.constant 0 : i32
    %c0_i32_1 = arith.constant 0 : i32
    return %c0_i32, %c0_i32_0 : i32, i32
  }
  func.func @transform_17(%arg0: i32) -> (i32, i32) {
    %c0_i32 = arith.constant 0 : i32
    %c0_i32_0 = arith.constant 0 : i32
    %c0_i32_1 = arith.constant 0 : i32
    return %c0_i32, %c0_i32_0 : i32, i32
  }
  func.func @transform_18(%arg0: i32) -> (i32, i32, i32) {
    %c0_i32 = arith.constant 0 : i32
    %c0_i32_0 = arith.constant 0 : i32
    %c0_i32_1 = arith.constant 0 : i32
    return %arg0, %c0_i32, %c0_i32_0 : i32, i32, i32
  }
}

module attributes {stable_mosaic.version = 11 : i64} {
  func.func @_tf_block_s2_kernel(%arg0: i32, %arg1: memref<1x16x32xf32, #tpu.memory_space<vmem>>, %arg2: memref<1x16x32xf32, #tpu.memory_space<vmem>>, %arg3: memref<1x16x1xf32, #tpu.memory_space<vmem>>, %arg4: memref<1x1x16xf32, #tpu.memory_space<vmem>>, %arg5: memref<1x32xf32, #tpu.memory_space<vmem>>, %arg6: memref<1x32xf32, #tpu.memory_space<vmem>>, %arg7: memref<3x3x1x32xf32, #tpu.memory_space<vmem>>, %arg8: memref<3x1x32xf32, #tpu.memory_space<vmem>>, %arg9: memref<3x1x32xf32, #tpu.memory_space<vmem>>, %arg10: memref<3x32x32xbf16, #tpu.memory_space<vmem>>, %arg11: memref<3x1x32xf32, #tpu.memory_space<vmem>>, %arg12: memref<32x32xbf16, #tpu.memory_space<vmem>>, %arg13: memref<1x32xf32, #tpu.memory_space<vmem>>, %arg14: memref<1x32xf32, #tpu.memory_space<vmem>>, %arg15: memref<1x32xf32, #tpu.memory_space<vmem>>, %arg16: memref<32x128xbf16, #tpu.memory_space<vmem>>, %arg17: memref<1x128xf32, #tpu.memory_space<vmem>>, %arg18: memref<128x32xbf16, #tpu.memory_space<vmem>>, %arg19: memref<1x32xf32, #tpu.memory_space<vmem>>, %arg20: memref<1x16x32xf32, #tpu.memory_space<vmem>>) attributes {dimension_semantics = [#tpu.dimension_semantics<parallel>], iteration_bounds = array<i64: 2>, scalar_prefetch = 0 : i64, scratch_operands = 0 : i64, tpu.core_type = #tpu.core_type<tc>, window_params = [{transform_indices = @transform_0, window_bounds = array<i64: 1, 16, 32>}, {transform_indices = @transform_1, window_bounds = array<i64: 1, 16, 32>}, {transform_indices = @transform_2, window_bounds = array<i64: 1, 16, 1>}, {transform_indices = @transform_3, window_bounds = array<i64: 1, 1, 16>}, {pipeline_mode = #tpu.pipeline_mode<synchronous>, transform_indices = @transform_4, window_bounds = array<i64: 1, 32>}, {pipeline_mode = #tpu.pipeline_mode<synchronous>, transform_indices = @transform_5, window_bounds = array<i64: 1, 32>}, {pipeline_mode = #tpu.pipeline_mode<synchronous>, transform_indices = @transform_6, window_bounds = array<i64: 3, 3, 1, 32>}, {pipeline_mode = #tpu.pipeline_mode<synchronous>, transform_indices = @transform_7, window_bounds = array<i64: 3, 1, 32>}, {pipeline_mode = #tpu.pipeline_mode<synchronous>, transform_indices = @transform_8, window_bounds = array<i64: 3, 1, 32>}, {pipeline_mode = #tpu.pipeline_mode<synchronous>, transform_indices = @transform_9, window_bounds = array<i64: 3, 32, 32>}, {pipeline_mode = #tpu.pipeline_mode<synchronous>, transform_indices = @transform_10, window_bounds = array<i64: 3, 1, 32>}, {pipeline_mode = #tpu.pipeline_mode<synchronous>, transform_indices = @transform_11, window_bounds = array<i64: 32, 32>}, {pipeline_mode = #tpu.pipeline_mode<synchronous>, transform_indices = @transform_12, window_bounds = array<i64: 1, 32>}, {pipeline_mode = #tpu.pipeline_mode<synchronous>, transform_indices = @transform_13, window_bounds = array<i64: 1, 32>}, {pipeline_mode = #tpu.pipeline_mode<synchronous>, transform_indices = @transform_14, window_bounds = array<i64: 1, 32>}, {pipeline_mode = #tpu.pipeline_mode<synchronous>, transform_indices = @transform_15, window_bounds = array<i64: 32, 128>}, {pipeline_mode = #tpu.pipeline_mode<synchronous>, transform_indices = @transform_16, window_bounds = array<i64: 1, 128>}, {pipeline_mode = #tpu.pipeline_mode<synchronous>, transform_indices = @transform_17, window_bounds = array<i64: 128, 32>}, {pipeline_mode = #tpu.pipeline_mode<synchronous>, transform_indices = @transform_18, window_bounds = array<i64: 1, 32>}, {transform_indices = @transform_19, window_bounds = array<i64: 1, 16, 32>}]} {
    %c0 = arith.constant 0 : index
    %c0_0 = arith.constant 0 : index
    %c0_1 = arith.constant 0 : index
    %0 = vector.load %arg1[%c0, %c0_0, %c0_1] : memref<1x16x32xf32, #tpu.memory_space<vmem>>, vector<1x16x32xf32>
    %1 = vector.shape_cast %0 : vector<1x16x32xf32> to vector<16x32xf32>
    %c0_2 = arith.constant 0 : index
    %c0_3 = arith.constant 0 : index
    %c0_4 = arith.constant 0 : index
    %2 = vector.load %arg2[%c0_2, %c0_3, %c0_4] : memref<1x16x32xf32, #tpu.memory_space<vmem>>, vector<1x16x32xf32>
    %3 = vector.shape_cast %2 : vector<1x16x32xf32> to vector<16x32xf32>
    %c0_5 = arith.constant 0 : index
    %c0_6 = arith.constant 0 : index
    %c0_7 = arith.constant 0 : index
    %4 = vector.load %arg3[%c0_5, %c0_6, %c0_7] : memref<1x16x1xf32, #tpu.memory_space<vmem>>, vector<1x16x1xf32>
    %5 = vector.shape_cast %4 : vector<1x16x1xf32> to vector<16x1xf32>
    %c0_8 = arith.constant 0 : index
    %c0_9 = arith.constant 0 : index
    %c0_10 = arith.constant 0 : index
    %6 = vector.load %arg4[%c0_8, %c0_9, %c0_10] : memref<1x1x16xf32, #tpu.memory_space<vmem>>, vector<1x1x16xf32>
    %7 = vector.shape_cast %6 : vector<1x1x16xf32> to vector<1x16xf32>
    %c0_11 = arith.constant 0 : index
    %c0_12 = arith.constant 0 : index
    %8 = vector.load %arg5[%c0_11, %c0_12] : memref<1x32xf32, #tpu.memory_space<vmem>>, vector<1x32xf32>
    %c0_13 = arith.constant 0 : index
    %c0_14 = arith.constant 0 : index
    %9 = vector.load %arg6[%c0_13, %c0_14] : memref<1x32xf32, #tpu.memory_space<vmem>>, vector<1x32xf32>
    %cst = arith.constant dense<0.000000e+00> : vector<16xf32>
    %10 = vector.multi_reduction <add>, %1, %cst [1] : vector<16x32xf32> to vector<16xf32>
    %11 = vector.shape_cast %10 : vector<16xf32> to vector<16x1xf32>
    %cst_15 = arith.constant 3.200000e+01 : f32
    %12 = vector.broadcast %cst_15 : f32 to vector<16x1xf32>
    %13 = arith.divf %11, %12 : vector<16x1xf32>
    %14 = vector.broadcast %13 : vector<16x1xf32> to vector<16x32xf32>
    %15 = arith.subf %1, %14 : vector<16x32xf32>
    %16 = arith.mulf %15, %15 : vector<16x32xf32>
    %cst_16 = arith.constant dense<0.000000e+00> : vector<16xf32>
    %17 = vector.multi_reduction <add>, %16, %cst_16 [1] : vector<16x32xf32> to vector<16xf32>
    %18 = vector.shape_cast %17 : vector<16xf32> to vector<16x1xf32>
    %cst_17 = arith.constant 3.200000e+01 : f32
    %19 = vector.broadcast %cst_17 : f32 to vector<16x1xf32>
    %20 = arith.divf %18, %19 : vector<16x1xf32>
    %cst_18 = arith.constant 9.99999974E-6 : f32
    %21 = vector.broadcast %cst_18 : f32 to vector<16x1xf32>
    %22 = arith.addf %20, %21 : vector<16x1xf32>
    %23 = math.rsqrt %22 : vector<16x1xf32>
    %24 = vector.broadcast %23 : vector<16x1xf32> to vector<16x32xf32>
    %25 = arith.mulf %15, %24 : vector<16x32xf32>
    %26 = vector.broadcast %8 : vector<1x32xf32> to vector<16x32xf32>
    %27 = arith.mulf %25, %26 : vector<16x32xf32>
    %28 = vector.broadcast %9 : vector<1x32xf32> to vector<16x32xf32>
    %29 = arith.addf %27, %28 : vector<16x32xf32>
    %cst_19 = arith.constant dense<0.000000e+00> : vector<16xf32>
    %30 = vector.multi_reduction <add>, %3, %cst_19 [1] : vector<16x32xf32> to vector<16xf32>
    %31 = vector.shape_cast %30 : vector<16xf32> to vector<16x1xf32>
    %cst_20 = arith.constant 3.200000e+01 : f32
    %32 = vector.broadcast %cst_20 : f32 to vector<16x1xf32>
    %33 = arith.divf %31, %32 : vector<16x1xf32>
    %34 = vector.broadcast %33 : vector<16x1xf32> to vector<16x32xf32>
    %35 = arith.subf %3, %34 : vector<16x32xf32>
    %36 = arith.mulf %35, %35 : vector<16x32xf32>
    %cst_21 = arith.constant dense<0.000000e+00> : vector<16xf32>
    %37 = vector.multi_reduction <add>, %36, %cst_21 [1] : vector<16x32xf32> to vector<16xf32>
    %38 = vector.shape_cast %37 : vector<16xf32> to vector<16x1xf32>
    %cst_22 = arith.constant 3.200000e+01 : f32
    %39 = vector.broadcast %cst_22 : f32 to vector<16x1xf32>
    %40 = arith.divf %38, %39 : vector<16x1xf32>
    %cst_23 = arith.constant 9.99999974E-6 : f32
    %41 = vector.broadcast %cst_23 : f32 to vector<16x1xf32>
    %42 = arith.addf %40, %41 : vector<16x1xf32>
    %43 = math.rsqrt %42 : vector<16x1xf32>
    %44 = vector.broadcast %43 : vector<16x1xf32> to vector<16x32xf32>
    %45 = arith.mulf %35, %44 : vector<16x32xf32>
    %46 = vector.broadcast %8 : vector<1x32xf32> to vector<16x32xf32>
    %47 = arith.mulf %45, %46 : vector<16x32xf32>
    %48 = vector.broadcast %9 : vector<1x32xf32> to vector<16x32xf32>
    %49 = arith.addf %47, %48 : vector<16x32xf32>
    %c1_i32 = arith.constant 1 : i32
    %50 = tpu.dynamic_rotate %3 by %c1_i32 dim 0 : vector<16x32xf32>, i32 -> vector<16x32xf32>
    %51 = tpu.iota {dimensions = array<i32: 0>} : vector<16x32xi32>
    %c-1_i32 = arith.constant -1 : i32
    %52 = vector.broadcast %c-1_i32 : i32 to vector<16x32xi32>
    %53 = arith.addi %51, %52 : vector<16x32xi32>
    %c0_i32 = arith.constant 0 : i32
    %54 = vector.broadcast %c0_i32 : i32 to vector<16x32xi32>
    %55 = arith.cmpi sge, %53, %54 : vector<16x32xi32>
    %c-1_i32_24 = arith.constant -1 : i32
    %56 = vector.broadcast %c-1_i32_24 : i32 to vector<16x32xi32>
    %57 = arith.addi %51, %56 : vector<16x32xi32>
    %c16_i32 = arith.constant 16 : i32
    %58 = vector.broadcast %c16_i32 : i32 to vector<16x32xi32>
    %59 = arith.cmpi slt, %57, %58 : vector<16x32xi32>
    %60 = arith.andi %55, %59 : vector<16x32xi1>
    %cst_25 = arith.constant -1.000000e+30 : f32
    %61 = vector.broadcast %cst_25 : f32 to vector<16x32xf32>
    %62 = arith.select %60, %50, %61 : vector<16x32xi1>, vector<16x32xf32>
    %63 = arith.maximumf %62, %1 : vector<16x32xf32>
    %64 = arith.maximumf %63, %3 : vector<16x32xf32>
    %c1_i32_26 = arith.constant 1 : i32
    %65 = tpu.dynamic_rotate %49 by %c1_i32_26 dim 0 : vector<16x32xf32>, i32 -> vector<16x32xf32>
    %66 = tpu.iota {dimensions = array<i32: 0>} : vector<16x32xi32>
    %c-1_i32_27 = arith.constant -1 : i32
    %67 = vector.broadcast %c-1_i32_27 : i32 to vector<16x32xi32>
    %68 = arith.addi %66, %67 : vector<16x32xi32>
    %c0_i32_28 = arith.constant 0 : i32
    %69 = vector.broadcast %c0_i32_28 : i32 to vector<16x32xi32>
    %70 = arith.cmpi sge, %68, %69 : vector<16x32xi32>
    %c-1_i32_29 = arith.constant -1 : i32
    %71 = vector.broadcast %c-1_i32_29 : i32 to vector<16x32xi32>
    %72 = arith.addi %66, %71 : vector<16x32xi32>
    %c16_i32_30 = arith.constant 16 : i32
    %73 = vector.broadcast %c16_i32_30 : i32 to vector<16x32xi32>
    %74 = arith.cmpi slt, %72, %73 : vector<16x32xi32>
    %75 = arith.andi %70, %74 : vector<16x32xi1>
    %cst_31 = arith.constant 0.000000e+00 : f32
    %76 = vector.broadcast %cst_31 : f32 to vector<16x32xf32>
    %77 = arith.select %75, %65, %76 : vector<16x32xi1>, vector<16x32xf32>
    %c0_32 = arith.constant 0 : index
    %c0_33 = arith.constant 0 : index
    %c0_34 = arith.constant 0 : index
    %c0_35 = arith.constant 0 : index
    %78 = vector.load %arg7[%c0_32, %c0_33, %c0_34, %c0_35] : memref<3x3x1x32xf32, #tpu.memory_space<vmem>>, vector<1x1x1x32xf32>
    %79 = vector.shape_cast %78 : vector<1x1x1x32xf32> to vector<1x32xf32>
    %80 = vector.broadcast %79 : vector<1x32xf32> to vector<16x32xf32>
    %81 = arith.mulf %77, %80 : vector<16x32xf32>
    %c0_36 = arith.constant 0 : index
    %c1 = arith.constant 1 : index
    %c0_37 = arith.constant 0 : index
    %c0_38 = arith.constant 0 : index
    %82 = vector.load %arg7[%c0_36, %c1, %c0_37, %c0_38] : memref<3x3x1x32xf32, #tpu.memory_space<vmem>>, vector<1x1x1x32xf32>
    %83 = vector.shape_cast %82 : vector<1x1x1x32xf32> to vector<1x32xf32>
    %84 = vector.broadcast %83 : vector<1x32xf32> to vector<16x32xf32>
    %85 = arith.mulf %29, %84 : vector<16x32xf32>
    %86 = arith.addf %81, %85 : vector<16x32xf32>
    %c0_39 = arith.constant 0 : index
    %c2 = arith.constant 2 : index
    %c0_40 = arith.constant 0 : index
    %c0_41 = arith.constant 0 : index
    %87 = vector.load %arg7[%c0_39, %c2, %c0_40, %c0_41] : memref<3x3x1x32xf32, #tpu.memory_space<vmem>>, vector<1x1x1x32xf32>
    %88 = vector.shape_cast %87 : vector<1x1x1x32xf32> to vector<1x32xf32>
    %89 = vector.broadcast %88 : vector<1x32xf32> to vector<16x32xf32>
    %90 = arith.mulf %49, %89 : vector<16x32xf32>
    %91 = arith.addf %86, %90 : vector<16x32xf32>
    %92 = vector.broadcast %5 : vector<16x1xf32> to vector<16x32xf32>
    %93 = arith.mulf %91, %92 : vector<16x32xf32>
    %c0_42 = arith.constant 0 : index
    %c0_43 = arith.constant 0 : index
    %c0_44 = arith.constant 0 : index
    %94 = vector.load %arg8[%c0_42, %c0_43, %c0_44] : memref<3x1x32xf32, #tpu.memory_space<vmem>>, vector<1x1x32xf32>
    %95 = vector.shape_cast %94 : vector<1x1x32xf32> to vector<1x32xf32>
    %c0_45 = arith.constant 0 : index
    %c0_46 = arith.constant 0 : index
    %c0_47 = arith.constant 0 : index
    %96 = vector.load %arg9[%c0_45, %c0_46, %c0_47] : memref<3x1x32xf32, #tpu.memory_space<vmem>>, vector<1x1x32xf32>
    %97 = vector.shape_cast %96 : vector<1x1x32xf32> to vector<1x32xf32>
    %cst_48 = arith.constant dense<0.000000e+00> : vector<16xf32>
    %98 = vector.multi_reduction <add>, %93, %cst_48 [1] : vector<16x32xf32> to vector<16xf32>
    %99 = vector.shape_cast %98 : vector<16xf32> to vector<16x1xf32>
    %cst_49 = arith.constant 3.200000e+01 : f32
    %100 = vector.broadcast %cst_49 : f32 to vector<16x1xf32>
    %101 = arith.divf %99, %100 : vector<16x1xf32>
    %102 = vector.broadcast %101 : vector<16x1xf32> to vector<16x32xf32>
    %103 = arith.subf %93, %102 : vector<16x32xf32>
    %104 = arith.mulf %103, %103 : vector<16x32xf32>
    %cst_50 = arith.constant dense<0.000000e+00> : vector<16xf32>
    %105 = vector.multi_reduction <add>, %104, %cst_50 [1] : vector<16x32xf32> to vector<16xf32>
    %106 = vector.shape_cast %105 : vector<16xf32> to vector<16x1xf32>
    %cst_51 = arith.constant 3.200000e+01 : f32
    %107 = vector.broadcast %cst_51 : f32 to vector<16x1xf32>
    %108 = arith.divf %106, %107 : vector<16x1xf32>
    %cst_52 = arith.constant 9.99999974E-6 : f32
    %109 = vector.broadcast %cst_52 : f32 to vector<16x1xf32>
    %110 = arith.addf %108, %109 : vector<16x1xf32>
    %111 = math.rsqrt %110 : vector<16x1xf32>
    %112 = vector.broadcast %111 : vector<16x1xf32> to vector<16x32xf32>
    %113 = arith.mulf %103, %112 : vector<16x32xf32>
    %114 = vector.broadcast %95 : vector<1x32xf32> to vector<16x32xf32>
    %115 = arith.mulf %113, %114 : vector<16x32xf32>
    %116 = vector.broadcast %97 : vector<1x32xf32> to vector<16x32xf32>
    %117 = arith.addf %115, %116 : vector<16x32xf32>
    %c0_53 = arith.constant 0 : index
    %c0_54 = arith.constant 0 : index
    %c0_55 = arith.constant 0 : index
    %118 = vector.load %arg10[%c0_53, %c0_54, %c0_55] : memref<3x32x32xbf16, #tpu.memory_space<vmem>>, vector<1x32x32xbf16>
    %119 = vector.shape_cast %118 : vector<1x32x32xbf16> to vector<32x32xbf16>
    %120 = arith.truncf %117 : vector<16x32xf32> to vector<16x32xbf16>
    %cst_56 = arith.constant dense<0.000000e+00> : vector<16x32xf32>
    %121 = tpu.matmul %120, %119, %cst_56 {dimension_numbers = #tpu.dot_dimension_numbers<[1], [0], [0], [1], [0, 0, 1, 1], [], []>} : vector<16x32xbf16>, vector<32x32xbf16>, vector<16x32xf32> -> vector<16x32xf32>
    %c0_57 = arith.constant 0 : index
    %c0_58 = arith.constant 0 : index
    %c0_59 = arith.constant 0 : index
    %122 = vector.load %arg11[%c0_57, %c0_58, %c0_59] : memref<3x1x32xf32, #tpu.memory_space<vmem>>, vector<1x1x32xf32>
    %123 = vector.shape_cast %122 : vector<1x1x32xf32> to vector<1x32xf32>
    %124 = vector.broadcast %123 : vector<1x32xf32> to vector<16x32xf32>
    %125 = arith.addf %121, %124 : vector<16x32xf32>
    %c1_60 = arith.constant 1 : index
    %c0_61 = arith.constant 0 : index
    %c0_62 = arith.constant 0 : index
    %c0_63 = arith.constant 0 : index
    %126 = vector.load %arg7[%c1_60, %c0_61, %c0_62, %c0_63] : memref<3x3x1x32xf32, #tpu.memory_space<vmem>>, vector<1x1x1x32xf32>
    %127 = vector.shape_cast %126 : vector<1x1x1x32xf32> to vector<1x32xf32>
    %128 = vector.broadcast %127 : vector<1x32xf32> to vector<16x32xf32>
    %129 = arith.mulf %77, %128 : vector<16x32xf32>
    %c1_64 = arith.constant 1 : index
    %c1_65 = arith.constant 1 : index
    %c0_66 = arith.constant 0 : index
    %c0_67 = arith.constant 0 : index
    %130 = vector.load %arg7[%c1_64, %c1_65, %c0_66, %c0_67] : memref<3x3x1x32xf32, #tpu.memory_space<vmem>>, vector<1x1x1x32xf32>
    %131 = vector.shape_cast %130 : vector<1x1x1x32xf32> to vector<1x32xf32>
    %132 = vector.broadcast %131 : vector<1x32xf32> to vector<16x32xf32>
    %133 = arith.mulf %29, %132 : vector<16x32xf32>
    %134 = arith.addf %129, %133 : vector<16x32xf32>
    %c1_68 = arith.constant 1 : index
    %c2_69 = arith.constant 2 : index
    %c0_70 = arith.constant 0 : index
    %c0_71 = arith.constant 0 : index
    %135 = vector.load %arg7[%c1_68, %c2_69, %c0_70, %c0_71] : memref<3x3x1x32xf32, #tpu.memory_space<vmem>>, vector<1x1x1x32xf32>
    %136 = vector.shape_cast %135 : vector<1x1x1x32xf32> to vector<1x32xf32>
    %137 = vector.broadcast %136 : vector<1x32xf32> to vector<16x32xf32>
    %138 = arith.mulf %49, %137 : vector<16x32xf32>
    %139 = arith.addf %134, %138 : vector<16x32xf32>
    %140 = vector.broadcast %5 : vector<16x1xf32> to vector<16x32xf32>
    %141 = arith.mulf %139, %140 : vector<16x32xf32>
    %c1_72 = arith.constant 1 : index
    %c0_73 = arith.constant 0 : index
    %c0_74 = arith.constant 0 : index
    %142 = vector.load %arg8[%c1_72, %c0_73, %c0_74] : memref<3x1x32xf32, #tpu.memory_space<vmem>>, vector<1x1x32xf32>
    %143 = vector.shape_cast %142 : vector<1x1x32xf32> to vector<1x32xf32>
    %c1_75 = arith.constant 1 : index
    %c0_76 = arith.constant 0 : index
    %c0_77 = arith.constant 0 : index
    %144 = vector.load %arg9[%c1_75, %c0_76, %c0_77] : memref<3x1x32xf32, #tpu.memory_space<vmem>>, vector<1x1x32xf32>
    %145 = vector.shape_cast %144 : vector<1x1x32xf32> to vector<1x32xf32>
    %cst_78 = arith.constant dense<0.000000e+00> : vector<16xf32>
    %146 = vector.multi_reduction <add>, %141, %cst_78 [1] : vector<16x32xf32> to vector<16xf32>
    %147 = vector.shape_cast %146 : vector<16xf32> to vector<16x1xf32>
    %cst_79 = arith.constant 3.200000e+01 : f32
    %148 = vector.broadcast %cst_79 : f32 to vector<16x1xf32>
    %149 = arith.divf %147, %148 : vector<16x1xf32>
    %150 = vector.broadcast %149 : vector<16x1xf32> to vector<16x32xf32>
    %151 = arith.subf %141, %150 : vector<16x32xf32>
    %152 = arith.mulf %151, %151 : vector<16x32xf32>
    %cst_80 = arith.constant dense<0.000000e+00> : vector<16xf32>
    %153 = vector.multi_reduction <add>, %152, %cst_80 [1] : vector<16x32xf32> to vector<16xf32>
    %154 = vector.shape_cast %153 : vector<16xf32> to vector<16x1xf32>
    %cst_81 = arith.constant 3.200000e+01 : f32
    %155 = vector.broadcast %cst_81 : f32 to vector<16x1xf32>
    %156 = arith.divf %154, %155 : vector<16x1xf32>
    %cst_82 = arith.constant 9.99999974E-6 : f32
    %157 = vector.broadcast %cst_82 : f32 to vector<16x1xf32>
    %158 = arith.addf %156, %157 : vector<16x1xf32>
    %159 = math.rsqrt %158 : vector<16x1xf32>
    %160 = vector.broadcast %159 : vector<16x1xf32> to vector<16x32xf32>
    %161 = arith.mulf %151, %160 : vector<16x32xf32>
    %162 = vector.broadcast %143 : vector<1x32xf32> to vector<16x32xf32>
    %163 = arith.mulf %161, %162 : vector<16x32xf32>
    %164 = vector.broadcast %145 : vector<1x32xf32> to vector<16x32xf32>
    %165 = arith.addf %163, %164 : vector<16x32xf32>
    %c1_83 = arith.constant 1 : index
    %c0_84 = arith.constant 0 : index
    %c0_85 = arith.constant 0 : index
    %166 = vector.load %arg10[%c1_83, %c0_84, %c0_85] : memref<3x32x32xbf16, #tpu.memory_space<vmem>>, vector<1x32x32xbf16>
    %167 = vector.shape_cast %166 : vector<1x32x32xbf16> to vector<32x32xbf16>
    %168 = arith.truncf %165 : vector<16x32xf32> to vector<16x32xbf16>
    %cst_86 = arith.constant dense<0.000000e+00> : vector<16x32xf32>
    %169 = tpu.matmul %168, %167, %cst_86 {dimension_numbers = #tpu.dot_dimension_numbers<[1], [0], [0], [1], [0, 0, 1, 1], [], []>} : vector<16x32xbf16>, vector<32x32xbf16>, vector<16x32xf32> -> vector<16x32xf32>
    %c1_87 = arith.constant 1 : index
    %c0_88 = arith.constant 0 : index
    %c0_89 = arith.constant 0 : index
    %170 = vector.load %arg11[%c1_87, %c0_88, %c0_89] : memref<3x1x32xf32, #tpu.memory_space<vmem>>, vector<1x1x32xf32>
    %171 = vector.shape_cast %170 : vector<1x1x32xf32> to vector<1x32xf32>
    %172 = vector.broadcast %171 : vector<1x32xf32> to vector<16x32xf32>
    %173 = arith.addf %169, %172 : vector<16x32xf32>
    %c2_90 = arith.constant 2 : index
    %c0_91 = arith.constant 0 : index
    %c0_92 = arith.constant 0 : index
    %c0_93 = arith.constant 0 : index
    %174 = vector.load %arg7[%c2_90, %c0_91, %c0_92, %c0_93] : memref<3x3x1x32xf32, #tpu.memory_space<vmem>>, vector<1x1x1x32xf32>
    %175 = vector.shape_cast %174 : vector<1x1x1x32xf32> to vector<1x32xf32>
    %176 = vector.broadcast %175 : vector<1x32xf32> to vector<16x32xf32>
    %177 = arith.mulf %77, %176 : vector<16x32xf32>
    %c2_94 = arith.constant 2 : index
    %c1_95 = arith.constant 1 : index
    %c0_96 = arith.constant 0 : index
    %c0_97 = arith.constant 0 : index
    %178 = vector.load %arg7[%c2_94, %c1_95, %c0_96, %c0_97] : memref<3x3x1x32xf32, #tpu.memory_space<vmem>>, vector<1x1x1x32xf32>
    %179 = vector.shape_cast %178 : vector<1x1x1x32xf32> to vector<1x32xf32>
    %180 = vector.broadcast %179 : vector<1x32xf32> to vector<16x32xf32>
    %181 = arith.mulf %29, %180 : vector<16x32xf32>
    %182 = arith.addf %177, %181 : vector<16x32xf32>
    %c2_98 = arith.constant 2 : index
    %c2_99 = arith.constant 2 : index
    %c0_100 = arith.constant 0 : index
    %c0_101 = arith.constant 0 : index
    %183 = vector.load %arg7[%c2_98, %c2_99, %c0_100, %c0_101] : memref<3x3x1x32xf32, #tpu.memory_space<vmem>>, vector<1x1x1x32xf32>
    %184 = vector.shape_cast %183 : vector<1x1x1x32xf32> to vector<1x32xf32>
    %185 = vector.broadcast %184 : vector<1x32xf32> to vector<16x32xf32>
    %186 = arith.mulf %49, %185 : vector<16x32xf32>
    %187 = arith.addf %182, %186 : vector<16x32xf32>
    %188 = vector.broadcast %5 : vector<16x1xf32> to vector<16x32xf32>
    %189 = arith.mulf %187, %188 : vector<16x32xf32>
    %c2_102 = arith.constant 2 : index
    %c0_103 = arith.constant 0 : index
    %c0_104 = arith.constant 0 : index
    %190 = vector.load %arg8[%c2_102, %c0_103, %c0_104] : memref<3x1x32xf32, #tpu.memory_space<vmem>>, vector<1x1x32xf32>
    %191 = vector.shape_cast %190 : vector<1x1x32xf32> to vector<1x32xf32>
    %c2_105 = arith.constant 2 : index
    %c0_106 = arith.constant 0 : index
    %c0_107 = arith.constant 0 : index
    %192 = vector.load %arg9[%c2_105, %c0_106, %c0_107] : memref<3x1x32xf32, #tpu.memory_space<vmem>>, vector<1x1x32xf32>
    %193 = vector.shape_cast %192 : vector<1x1x32xf32> to vector<1x32xf32>
    %cst_108 = arith.constant dense<0.000000e+00> : vector<16xf32>
    %194 = vector.multi_reduction <add>, %189, %cst_108 [1] : vector<16x32xf32> to vector<16xf32>
    %195 = vector.shape_cast %194 : vector<16xf32> to vector<16x1xf32>
    %cst_109 = arith.constant 3.200000e+01 : f32
    %196 = vector.broadcast %cst_109 : f32 to vector<16x1xf32>
    %197 = arith.divf %195, %196 : vector<16x1xf32>
    %198 = vector.broadcast %197 : vector<16x1xf32> to vector<16x32xf32>
    %199 = arith.subf %189, %198 : vector<16x32xf32>
    %200 = arith.mulf %199, %199 : vector<16x32xf32>
    %cst_110 = arith.constant dense<0.000000e+00> : vector<16xf32>
    %201 = vector.multi_reduction <add>, %200, %cst_110 [1] : vector<16x32xf32> to vector<16xf32>
    %202 = vector.shape_cast %201 : vector<16xf32> to vector<16x1xf32>
    %cst_111 = arith.constant 3.200000e+01 : f32
    %203 = vector.broadcast %cst_111 : f32 to vector<16x1xf32>
    %204 = arith.divf %202, %203 : vector<16x1xf32>
    %cst_112 = arith.constant 9.99999974E-6 : f32
    %205 = vector.broadcast %cst_112 : f32 to vector<16x1xf32>
    %206 = arith.addf %204, %205 : vector<16x1xf32>
    %207 = math.rsqrt %206 : vector<16x1xf32>
    %208 = vector.broadcast %207 : vector<16x1xf32> to vector<16x32xf32>
    %209 = arith.mulf %199, %208 : vector<16x32xf32>
    %210 = vector.broadcast %191 : vector<1x32xf32> to vector<16x32xf32>
    %211 = arith.mulf %209, %210 : vector<16x32xf32>
    %212 = vector.broadcast %193 : vector<1x32xf32> to vector<16x32xf32>
    %213 = arith.addf %211, %212 : vector<16x32xf32>
    %c2_113 = arith.constant 2 : index
    %c0_114 = arith.constant 0 : index
    %c0_115 = arith.constant 0 : index
    %214 = vector.load %arg10[%c2_113, %c0_114, %c0_115] : memref<3x32x32xbf16, #tpu.memory_space<vmem>>, vector<1x32x32xbf16>
    %215 = vector.shape_cast %214 : vector<1x32x32xbf16> to vector<32x32xbf16>
    %216 = arith.truncf %213 : vector<16x32xf32> to vector<16x32xbf16>
    %cst_116 = arith.constant dense<0.000000e+00> : vector<16x32xf32>
    %217 = tpu.matmul %216, %215, %cst_116 {dimension_numbers = #tpu.dot_dimension_numbers<[1], [0], [0], [1], [0, 0, 1, 1], [], []>} : vector<16x32xbf16>, vector<32x32xbf16>, vector<16x32xf32> -> vector<16x32xf32>
    %c2_117 = arith.constant 2 : index
    %c0_118 = arith.constant 0 : index
    %c0_119 = arith.constant 0 : index
    %218 = vector.load %arg11[%c2_117, %c0_118, %c0_119] : memref<3x1x32xf32, #tpu.memory_space<vmem>>, vector<1x1x32xf32>
    %219 = vector.shape_cast %218 : vector<1x1x32xf32> to vector<1x32xf32>
    %220 = vector.broadcast %219 : vector<1x32xf32> to vector<16x32xf32>
    %221 = arith.addf %217, %220 : vector<16x32xf32>
    %222 = tpu.iota {dimensions = array<i32: 1>} : vector<1x32xi32>
    %223 = vector.broadcast %5 : vector<16x1xf32> to vector<16x32xf32>
    %224 = arith.mulf %221, %223 : vector<16x32xf32>
    %cst_120 = arith.constant 1.000000e+00 : f32
    %225 = vector.broadcast %cst_120 : f32 to vector<1x16xf32>
    %226 = arith.subf %225, %7 : vector<1x16xf32>
    %cst_121 = arith.constant -1.000000e+30 : f32
    %227 = vector.broadcast %cst_121 : f32 to vector<1x16xf32>
    %228 = arith.mulf %226, %227 : vector<1x16xf32>
    %cst_122 = arith.constant 0.000000e+00 : f32
    %229 = vector.broadcast %cst_122 : f32 to vector<16x32xf32>
    %c0_i32_123 = arith.constant 0 : i32
    %230 = vector.broadcast %c0_i32_123 : i32 to vector<1x32xi32>
    %231 = arith.cmpi sge, %222, %230 : vector<1x32xi32>
    %c8_i32 = arith.constant 8 : i32
    %232 = vector.broadcast %c8_i32 : i32 to vector<1x32xi32>
    %233 = arith.cmpi slt, %222, %232 : vector<1x32xi32>
    %234 = arith.andi %231, %233 : vector<1x32xi1>
    %cst_124 = arith.constant 0.000000e+00 : f32
    %235 = vector.shape_cast %234 : vector<1x32xi1> to vector<1x32xi1>
    %236 = vector.broadcast %235 : vector<1x32xi1> to vector<16x32xi1>
    %237 = vector.broadcast %cst_124 : f32 to vector<16x32xf32>
    %238 = arith.select %236, %125, %237 : vector<16x32xi1>, vector<16x32xf32>
    %cst_125 = arith.constant 0.000000e+00 : f32
    %239 = vector.shape_cast %234 : vector<1x32xi1> to vector<1x32xi1>
    %240 = vector.broadcast %239 : vector<1x32xi1> to vector<16x32xi1>
    %241 = vector.broadcast %cst_125 : f32 to vector<16x32xf32>
    %242 = arith.select %240, %173, %241 : vector<16x32xi1>, vector<16x32xf32>
    %243 = arith.truncf %238 : vector<16x32xf32> to vector<16x32xbf16>
    %244 = arith.truncf %242 : vector<16x32xf32> to vector<16x32xbf16>
    %cst_126 = arith.constant dense<0.000000e+00> : vector<16x16xf32>
    %245 = tpu.matmul %243, %244, %cst_126 {dimension_numbers = #tpu.dot_dimension_numbers<[1], [1], [0], [0], [0, 0, 1, 0], [], []>} : vector<16x32xbf16>, vector<16x32xbf16>, vector<16x16xf32> -> vector<16x16xf32>
    %246 = vector.broadcast %228 : vector<1x16xf32> to vector<16x16xf32>
    %247 = arith.addf %245, %246 : vector<16x16xf32>
    %cst_127 = arith.constant dense<0xFF800000> : vector<16xf32>
    %248 = vector.multi_reduction <maximumf>, %247, %cst_127 [1] : vector<16x16xf32> to vector<16xf32>
    %249 = vector.shape_cast %248 : vector<16xf32> to vector<16x1xf32>
    %250 = vector.broadcast %249 : vector<16x1xf32> to vector<16x16xf32>
    %251 = arith.subf %247, %250 : vector<16x16xf32>
    %252 = math.exp %251 : vector<16x16xf32>
    %cst_128 = arith.constant dense<0.000000e+00> : vector<16xf32>
    %253 = vector.multi_reduction <add>, %252, %cst_128 [1] : vector<16x16xf32> to vector<16xf32>
    %254 = vector.shape_cast %253 : vector<16xf32> to vector<16x1xf32>
    %255 = tpu.reciprocal %254 {approx = true} : vector<16x1xf32> -> vector<16x1xf32>
    %256 = vector.broadcast %255 : vector<16x1xf32> to vector<16x16xf32>
    %257 = arith.mulf %252, %256 : vector<16x16xf32>
    %cst_129 = arith.constant 0.000000e+00 : f32
    %258 = vector.shape_cast %234 : vector<1x32xi1> to vector<1x32xi1>
    %259 = vector.broadcast %258 : vector<1x32xi1> to vector<16x32xi1>
    %260 = vector.broadcast %cst_129 : f32 to vector<16x32xf32>
    %261 = arith.select %259, %224, %260 : vector<16x32xi1>, vector<16x32xf32>
    %262 = arith.truncf %257 : vector<16x16xf32> to vector<16x16xbf16>
    %263 = arith.truncf %261 : vector<16x32xf32> to vector<16x32xbf16>
    %cst_130 = arith.constant dense<0.000000e+00> : vector<16x32xf32>
    %264 = tpu.matmul %262, %263, %cst_130 {dimension_numbers = #tpu.dot_dimension_numbers<[1], [0], [0], [1], [0, 0, 1, 1], [], []>} : vector<16x16xbf16>, vector<16x32xbf16>, vector<16x32xf32> -> vector<16x32xf32>
    %265 = arith.addf %229, %264 : vector<16x32xf32>
    %c8_i32_131 = arith.constant 8 : i32
    %266 = vector.broadcast %c8_i32_131 : i32 to vector<1x32xi32>
    %267 = arith.cmpi sge, %222, %266 : vector<1x32xi32>
    %c16_i32_132 = arith.constant 16 : i32
    %268 = vector.broadcast %c16_i32_132 : i32 to vector<1x32xi32>
    %269 = arith.cmpi slt, %222, %268 : vector<1x32xi32>
    %270 = arith.andi %267, %269 : vector<1x32xi1>
    %cst_133 = arith.constant 0.000000e+00 : f32
    %271 = vector.shape_cast %270 : vector<1x32xi1> to vector<1x32xi1>
    %272 = vector.broadcast %271 : vector<1x32xi1> to vector<16x32xi1>
    %273 = vector.broadcast %cst_133 : f32 to vector<16x32xf32>
    %274 = arith.select %272, %125, %273 : vector<16x32xi1>, vector<16x32xf32>
    %cst_134 = arith.constant 0.000000e+00 : f32
    %275 = vector.shape_cast %270 : vector<1x32xi1> to vector<1x32xi1>
    %276 = vector.broadcast %275 : vector<1x32xi1> to vector<16x32xi1>
    %277 = vector.broadcast %cst_134 : f32 to vector<16x32xf32>
    %278 = arith.select %276, %173, %277 : vector<16x32xi1>, vector<16x32xf32>
    %279 = arith.truncf %274 : vector<16x32xf32> to vector<16x32xbf16>
    %280 = arith.truncf %278 : vector<16x32xf32> to vector<16x32xbf16>
    %cst_135 = arith.constant dense<0.000000e+00> : vector<16x16xf32>
    %281 = tpu.matmul %279, %280, %cst_135 {dimension_numbers = #tpu.dot_dimension_numbers<[1], [1], [0], [0], [0, 0, 1, 0], [], []>} : vector<16x32xbf16>, vector<16x32xbf16>, vector<16x16xf32> -> vector<16x16xf32>
    %282 = vector.broadcast %228 : vector<1x16xf32> to vector<16x16xf32>
    %283 = arith.addf %281, %282 : vector<16x16xf32>
    %cst_136 = arith.constant dense<0xFF800000> : vector<16xf32>
    %284 = vector.multi_reduction <maximumf>, %283, %cst_136 [1] : vector<16x16xf32> to vector<16xf32>
    %285 = vector.shape_cast %284 : vector<16xf32> to vector<16x1xf32>
    %286 = vector.broadcast %285 : vector<16x1xf32> to vector<16x16xf32>
    %287 = arith.subf %283, %286 : vector<16x16xf32>
    %288 = math.exp %287 : vector<16x16xf32>
    %cst_137 = arith.constant dense<0.000000e+00> : vector<16xf32>
    %289 = vector.multi_reduction <add>, %288, %cst_137 [1] : vector<16x16xf32> to vector<16xf32>
    %290 = vector.shape_cast %289 : vector<16xf32> to vector<16x1xf32>
    %291 = tpu.reciprocal %290 {approx = true} : vector<16x1xf32> -> vector<16x1xf32>
    %292 = vector.broadcast %291 : vector<16x1xf32> to vector<16x16xf32>
    %293 = arith.mulf %288, %292 : vector<16x16xf32>
    %cst_138 = arith.constant 0.000000e+00 : f32
    %294 = vector.shape_cast %270 : vector<1x32xi1> to vector<1x32xi1>
    %295 = vector.broadcast %294 : vector<1x32xi1> to vector<16x32xi1>
    %296 = vector.broadcast %cst_138 : f32 to vector<16x32xf32>
    %297 = arith.select %295, %224, %296 : vector<16x32xi1>, vector<16x32xf32>
    %298 = arith.truncf %293 : vector<16x16xf32> to vector<16x16xbf16>
    %299 = arith.truncf %297 : vector<16x32xf32> to vector<16x32xbf16>
    %cst_139 = arith.constant dense<0.000000e+00> : vector<16x32xf32>
    %300 = tpu.matmul %298, %299, %cst_139 {dimension_numbers = #tpu.dot_dimension_numbers<[1], [0], [0], [1], [0, 0, 1, 1], [], []>} : vector<16x16xbf16>, vector<16x32xbf16>, vector<16x32xf32> -> vector<16x32xf32>
    %301 = arith.addf %265, %300 : vector<16x32xf32>
    %c16_i32_140 = arith.constant 16 : i32
    %302 = vector.broadcast %c16_i32_140 : i32 to vector<1x32xi32>
    %303 = arith.cmpi sge, %222, %302 : vector<1x32xi32>
    %c24_i32 = arith.constant 24 : i32
    %304 = vector.broadcast %c24_i32 : i32 to vector<1x32xi32>
    %305 = arith.cmpi slt, %222, %304 : vector<1x32xi32>
    %306 = arith.andi %303, %305 : vector<1x32xi1>
    %cst_141 = arith.constant 0.000000e+00 : f32
    %307 = vector.shape_cast %306 : vector<1x32xi1> to vector<1x32xi1>
    %308 = vector.broadcast %307 : vector<1x32xi1> to vector<16x32xi1>
    %309 = vector.broadcast %cst_141 : f32 to vector<16x32xf32>
    %310 = arith.select %308, %125, %309 : vector<16x32xi1>, vector<16x32xf32>
    %cst_142 = arith.constant 0.000000e+00 : f32
    %311 = vector.shape_cast %306 : vector<1x32xi1> to vector<1x32xi1>
    %312 = vector.broadcast %311 : vector<1x32xi1> to vector<16x32xi1>
    %313 = vector.broadcast %cst_142 : f32 to vector<16x32xf32>
    %314 = arith.select %312, %173, %313 : vector<16x32xi1>, vector<16x32xf32>
    %315 = arith.truncf %310 : vector<16x32xf32> to vector<16x32xbf16>
    %316 = arith.truncf %314 : vector<16x32xf32> to vector<16x32xbf16>
    %cst_143 = arith.constant dense<0.000000e+00> : vector<16x16xf32>
    %317 = tpu.matmul %315, %316, %cst_143 {dimension_numbers = #tpu.dot_dimension_numbers<[1], [1], [0], [0], [0, 0, 1, 0], [], []>} : vector<16x32xbf16>, vector<16x32xbf16>, vector<16x16xf32> -> vector<16x16xf32>
    %318 = vector.broadcast %228 : vector<1x16xf32> to vector<16x16xf32>
    %319 = arith.addf %317, %318 : vector<16x16xf32>
    %cst_144 = arith.constant dense<0xFF800000> : vector<16xf32>
    %320 = vector.multi_reduction <maximumf>, %319, %cst_144 [1] : vector<16x16xf32> to vector<16xf32>
    %321 = vector.shape_cast %320 : vector<16xf32> to vector<16x1xf32>
    %322 = vector.broadcast %321 : vector<16x1xf32> to vector<16x16xf32>
    %323 = arith.subf %319, %322 : vector<16x16xf32>
    %324 = math.exp %323 : vector<16x16xf32>
    %cst_145 = arith.constant dense<0.000000e+00> : vector<16xf32>
    %325 = vector.multi_reduction <add>, %324, %cst_145 [1] : vector<16x16xf32> to vector<16xf32>
    %326 = vector.shape_cast %325 : vector<16xf32> to vector<16x1xf32>
    %327 = tpu.reciprocal %326 {approx = true} : vector<16x1xf32> -> vector<16x1xf32>
    %328 = vector.broadcast %327 : vector<16x1xf32> to vector<16x16xf32>
    %329 = arith.mulf %324, %328 : vector<16x16xf32>
    %cst_146 = arith.constant 0.000000e+00 : f32
    %330 = vector.shape_cast %306 : vector<1x32xi1> to vector<1x32xi1>
    %331 = vector.broadcast %330 : vector<1x32xi1> to vector<16x32xi1>
    %332 = vector.broadcast %cst_146 : f32 to vector<16x32xf32>
    %333 = arith.select %331, %224, %332 : vector<16x32xi1>, vector<16x32xf32>
    %334 = arith.truncf %329 : vector<16x16xf32> to vector<16x16xbf16>
    %335 = arith.truncf %333 : vector<16x32xf32> to vector<16x32xbf16>
    %cst_147 = arith.constant dense<0.000000e+00> : vector<16x32xf32>
    %336 = tpu.matmul %334, %335, %cst_147 {dimension_numbers = #tpu.dot_dimension_numbers<[1], [0], [0], [1], [0, 0, 1, 1], [], []>} : vector<16x16xbf16>, vector<16x32xbf16>, vector<16x32xf32> -> vector<16x32xf32>
    %337 = arith.addf %301, %336 : vector<16x32xf32>
    %c24_i32_148 = arith.constant 24 : i32
    %338 = vector.broadcast %c24_i32_148 : i32 to vector<1x32xi32>
    %339 = arith.cmpi sge, %222, %338 : vector<1x32xi32>
    %c32_i32 = arith.constant 32 : i32
    %340 = vector.broadcast %c32_i32 : i32 to vector<1x32xi32>
    %341 = arith.cmpi slt, %222, %340 : vector<1x32xi32>
    %342 = arith.andi %339, %341 : vector<1x32xi1>
    %cst_149 = arith.constant 0.000000e+00 : f32
    %343 = vector.shape_cast %342 : vector<1x32xi1> to vector<1x32xi1>
    %344 = vector.broadcast %343 : vector<1x32xi1> to vector<16x32xi1>
    %345 = vector.broadcast %cst_149 : f32 to vector<16x32xf32>
    %346 = arith.select %344, %125, %345 : vector<16x32xi1>, vector<16x32xf32>
    %cst_150 = arith.constant 0.000000e+00 : f32
    %347 = vector.shape_cast %342 : vector<1x32xi1> to vector<1x32xi1>
    %348 = vector.broadcast %347 : vector<1x32xi1> to vector<16x32xi1>
    %349 = vector.broadcast %cst_150 : f32 to vector<16x32xf32>
    %350 = arith.select %348, %173, %349 : vector<16x32xi1>, vector<16x32xf32>
    %351 = arith.truncf %346 : vector<16x32xf32> to vector<16x32xbf16>
    %352 = arith.truncf %350 : vector<16x32xf32> to vector<16x32xbf16>
    %cst_151 = arith.constant dense<0.000000e+00> : vector<16x16xf32>
    %353 = tpu.matmul %351, %352, %cst_151 {dimension_numbers = #tpu.dot_dimension_numbers<[1], [1], [0], [0], [0, 0, 1, 0], [], []>} : vector<16x32xbf16>, vector<16x32xbf16>, vector<16x16xf32> -> vector<16x16xf32>
    %354 = vector.broadcast %228 : vector<1x16xf32> to vector<16x16xf32>
    %355 = arith.addf %353, %354 : vector<16x16xf32>
    %cst_152 = arith.constant dense<0xFF800000> : vector<16xf32>
    %356 = vector.multi_reduction <maximumf>, %355, %cst_152 [1] : vector<16x16xf32> to vector<16xf32>
    %357 = vector.shape_cast %356 : vector<16xf32> to vector<16x1xf32>
    %358 = vector.broadcast %357 : vector<16x1xf32> to vector<16x16xf32>
    %359 = arith.subf %355, %358 : vector<16x16xf32>
    %360 = math.exp %359 : vector<16x16xf32>
    %cst_153 = arith.constant dense<0.000000e+00> : vector<16xf32>
    %361 = vector.multi_reduction <add>, %360, %cst_153 [1] : vector<16x16xf32> to vector<16xf32>
    %362 = vector.shape_cast %361 : vector<16xf32> to vector<16x1xf32>
    %363 = tpu.reciprocal %362 {approx = true} : vector<16x1xf32> -> vector<16x1xf32>
    %364 = vector.broadcast %363 : vector<16x1xf32> to vector<16x16xf32>
    %365 = arith.mulf %360, %364 : vector<16x16xf32>
    %cst_154 = arith.constant 0.000000e+00 : f32
    %366 = vector.shape_cast %342 : vector<1x32xi1> to vector<1x32xi1>
    %367 = vector.broadcast %366 : vector<1x32xi1> to vector<16x32xi1>
    %368 = vector.broadcast %cst_154 : f32 to vector<16x32xf32>
    %369 = arith.select %367, %224, %368 : vector<16x32xi1>, vector<16x32xf32>
    %370 = arith.truncf %365 : vector<16x16xf32> to vector<16x16xbf16>
    %371 = arith.truncf %369 : vector<16x32xf32> to vector<16x32xbf16>
    %cst_155 = arith.constant dense<0.000000e+00> : vector<16x32xf32>
    %372 = tpu.matmul %370, %371, %cst_155 {dimension_numbers = #tpu.dot_dimension_numbers<[1], [0], [0], [1], [0, 0, 1, 1], [], []>} : vector<16x16xbf16>, vector<16x32xbf16>, vector<16x32xf32> -> vector<16x32xf32>
    %373 = arith.addf %337, %372 : vector<16x32xf32>
    %c0_156 = arith.constant 0 : index
    %c0_157 = arith.constant 0 : index
    %374 = vector.load %arg12[%c0_156, %c0_157] : memref<32x32xbf16, #tpu.memory_space<vmem>>, vector<32x32xbf16>
    %375 = arith.truncf %373 : vector<16x32xf32> to vector<16x32xbf16>
    %cst_158 = arith.constant dense<0.000000e+00> : vector<16x32xf32>
    %376 = tpu.matmul %375, %374, %cst_158 {dimension_numbers = #tpu.dot_dimension_numbers<[1], [0], [0], [1], [0, 0, 1, 1], [], []>} : vector<16x32xbf16>, vector<32x32xbf16>, vector<16x32xf32> -> vector<16x32xf32>
    %c0_159 = arith.constant 0 : index
    %c0_160 = arith.constant 0 : index
    %377 = vector.load %arg13[%c0_159, %c0_160] : memref<1x32xf32, #tpu.memory_space<vmem>>, vector<1x32xf32>
    %378 = vector.broadcast %377 : vector<1x32xf32> to vector<16x32xf32>
    %379 = arith.addf %376, %378 : vector<16x32xf32>
    %380 = vector.broadcast %5 : vector<16x1xf32> to vector<16x32xf32>
    %381 = arith.mulf %379, %380 : vector<16x32xf32>
    %382 = vector.broadcast %5 : vector<16x1xf32> to vector<16x32xf32>
    %383 = arith.mulf %64, %382 : vector<16x32xf32>
    %384 = arith.addf %383, %381 : vector<16x32xf32>
    %c0_161 = arith.constant 0 : index
    %c0_162 = arith.constant 0 : index
    %385 = vector.load %arg14[%c0_161, %c0_162] : memref<1x32xf32, #tpu.memory_space<vmem>>, vector<1x32xf32>
    %c0_163 = arith.constant 0 : index
    %c0_164 = arith.constant 0 : index
    %386 = vector.load %arg15[%c0_163, %c0_164] : memref<1x32xf32, #tpu.memory_space<vmem>>, vector<1x32xf32>
    %cst_165 = arith.constant dense<0.000000e+00> : vector<16xf32>
    %387 = vector.multi_reduction <add>, %384, %cst_165 [1] : vector<16x32xf32> to vector<16xf32>
    %388 = vector.shape_cast %387 : vector<16xf32> to vector<16x1xf32>
    %cst_166 = arith.constant 3.200000e+01 : f32
    %389 = vector.broadcast %cst_166 : f32 to vector<16x1xf32>
    %390 = arith.divf %388, %389 : vector<16x1xf32>
    %391 = vector.broadcast %390 : vector<16x1xf32> to vector<16x32xf32>
    %392 = arith.subf %384, %391 : vector<16x32xf32>
    %393 = arith.mulf %392, %392 : vector<16x32xf32>
    %cst_167 = arith.constant dense<0.000000e+00> : vector<16xf32>
    %394 = vector.multi_reduction <add>, %393, %cst_167 [1] : vector<16x32xf32> to vector<16xf32>
    %395 = vector.shape_cast %394 : vector<16xf32> to vector<16x1xf32>
    %cst_168 = arith.constant 3.200000e+01 : f32
    %396 = vector.broadcast %cst_168 : f32 to vector<16x1xf32>
    %397 = arith.divf %395, %396 : vector<16x1xf32>
    %cst_169 = arith.constant 9.99999974E-6 : f32
    %398 = vector.broadcast %cst_169 : f32 to vector<16x1xf32>
    %399 = arith.addf %397, %398 : vector<16x1xf32>
    %400 = math.rsqrt %399 : vector<16x1xf32>
    %401 = vector.broadcast %400 : vector<16x1xf32> to vector<16x32xf32>
    %402 = arith.mulf %392, %401 : vector<16x32xf32>
    %403 = vector.broadcast %385 : vector<1x32xf32> to vector<16x32xf32>
    %404 = arith.mulf %402, %403 : vector<16x32xf32>
    %405 = vector.broadcast %386 : vector<1x32xf32> to vector<16x32xf32>
    %406 = arith.addf %404, %405 : vector<16x32xf32>
    %c0_170 = arith.constant 0 : index
    %c0_171 = arith.constant 0 : index
    %407 = vector.load %arg16[%c0_170, %c0_171] : memref<32x128xbf16, #tpu.memory_space<vmem>>, vector<32x128xbf16>
    %408 = arith.truncf %406 : vector<16x32xf32> to vector<16x32xbf16>
    %cst_172 = arith.constant dense<0.000000e+00> : vector<16x128xf32>
    %409 = tpu.matmul %408, %407, %cst_172 {dimension_numbers = #tpu.dot_dimension_numbers<[1], [0], [0], [1], [0, 0, 1, 1], [], []>} : vector<16x32xbf16>, vector<32x128xbf16>, vector<16x128xf32> -> vector<16x128xf32>
    %c0_173 = arith.constant 0 : index
    %c0_174 = arith.constant 0 : index
    %410 = vector.load %arg17[%c0_173, %c0_174] : memref<1x128xf32, #tpu.memory_space<vmem>>, vector<1x128xf32>
    %411 = vector.broadcast %410 : vector<1x128xf32> to vector<16x128xf32>
    %412 = arith.addf %409, %411 : vector<16x128xf32>
    %cst_175 = arith.constant 5.000000e-01 : f32
    %413 = vector.broadcast %cst_175 : f32 to vector<16x128xf32>
    %414 = arith.mulf %413, %412 : vector<16x128xf32>
    %415 = arith.mulf %412, %412 : vector<16x128xf32>
    %416 = arith.mulf %415, %412 : vector<16x128xf32>
    %cst_176 = arith.constant 4.471500e-02 : f32
    %417 = vector.broadcast %cst_176 : f32 to vector<16x128xf32>
    %418 = arith.mulf %417, %416 : vector<16x128xf32>
    %419 = arith.addf %412, %418 : vector<16x128xf32>
    %cst_177 = arith.constant 0.797884583 : f32
    %420 = vector.broadcast %cst_177 : f32 to vector<16x128xf32>
    %421 = arith.mulf %420, %419 : vector<16x128xf32>
    %422 = math.tanh %421 : vector<16x128xf32>
    %cst_178 = arith.constant 1.000000e+00 : f32
    %423 = vector.broadcast %cst_178 : f32 to vector<16x128xf32>
    %424 = arith.addf %423, %422 : vector<16x128xf32>
    %425 = arith.mulf %414, %424 : vector<16x128xf32>
    %c0_179 = arith.constant 0 : index
    %c0_180 = arith.constant 0 : index
    %426 = vector.load %arg18[%c0_179, %c0_180] : memref<128x32xbf16, #tpu.memory_space<vmem>>, vector<128x32xbf16>
    %427 = arith.truncf %425 : vector<16x128xf32> to vector<16x128xbf16>
    %cst_181 = arith.constant dense<0.000000e+00> : vector<16x32xf32>
    %428 = tpu.matmul %427, %426, %cst_181 {dimension_numbers = #tpu.dot_dimension_numbers<[1], [0], [0], [1], [0, 0, 1, 1], [], []>} : vector<16x128xbf16>, vector<128x32xbf16>, vector<16x32xf32> -> vector<16x32xf32>
    %c0_182 = arith.constant 0 : index
    %c0_183 = arith.constant 0 : index
    %429 = vector.load %arg19[%c0_182, %c0_183] : memref<1x32xf32, #tpu.memory_space<vmem>>, vector<1x32xf32>
    %430 = vector.broadcast %429 : vector<1x32xf32> to vector<16x32xf32>
    %431 = arith.addf %428, %430 : vector<16x32xf32>
    %432 = vector.broadcast %5 : vector<16x1xf32> to vector<16x32xf32>
    %433 = arith.mulf %431, %432 : vector<16x32xf32>
    %434 = arith.addf %384, %433 : vector<16x32xf32>
    %c0_184 = arith.constant 0 : index
    %c0_185 = arith.constant 0 : index
    %c0_186 = arith.constant 0 : index
    %435 = vector.load %arg20[%c0_184, %c0_185, %c0_186] : memref<1x16x32xf32, #tpu.memory_space<vmem>>, vector<1x16x32xf32>
    %436 = vector.shape_cast %435 : vector<1x16x32xf32> to vector<16x32xf32>
    %437 = vector.shape_cast %434 : vector<16x32xf32> to vector<1x16x32xf32>
    tpu.vector_store %arg20[%c0_184, %c0_185, %c0_186], %437 {strides = array<i32>} : memref<1x16x32xf32, #tpu.memory_space<vmem>>, vector<1x16x32xf32>,
    return
  }
  func.func @transform_0(%arg0: i32) -> (i32, i32, i32) {
    %c0_i32 = arith.constant 0 : i32
    %c0_i32_0 = arith.constant 0 : i32
    %c0_i32_1 = arith.constant 0 : i32
    return %arg0, %c0_i32, %c0_i32_0 : i32, i32, i32
  }
  func.func @transform_1(%arg0: i32) -> (i32, i32, i32) {
    %c0_i32 = arith.constant 0 : i32
    %c0_i32_0 = arith.constant 0 : i32
    %c0_i32_1 = arith.constant 0 : i32
    return %arg0, %c0_i32, %c0_i32_0 : i32, i32, i32
  }
  func.func @transform_2(%arg0: i32) -> (i32, i32, i32) {
    %c0_i32 = arith.constant 0 : i32
    %c0_i32_0 = arith.constant 0 : i32
    %c0_i32_1 = arith.constant 0 : i32
    return %arg0, %c0_i32, %c0_i32_0 : i32, i32, i32
  }
  func.func @transform_3(%arg0: i32) -> (i32, i32, i32) {
    %c0_i32 = arith.constant 0 : i32
    %c0_i32_0 = arith.constant 0 : i32
    %c0_i32_1 = arith.constant 0 : i32
    return %arg0, %c0_i32, %c0_i32_0 : i32, i32, i32
  }
  func.func @transform_4(%arg0: i32) -> (i32, i32) {
    %c0_i32 = arith.constant 0 : i32
    %c0_i32_0 = arith.constant 0 : i32
    %c0_i32_1 = arith.constant 0 : i32
    return %c0_i32, %c0_i32_0 : i32, i32
  }
  func.func @transform_5(%arg0: i32) -> (i32, i32) {
    %c0_i32 = arith.constant 0 : i32
    %c0_i32_0 = arith.constant 0 : i32
    %c0_i32_1 = arith.constant 0 : i32
    return %c0_i32, %c0_i32_0 : i32, i32
  }
  func.func @transform_6(%arg0: i32) -> (i32, i32, i32, i32) {
    %c0_i32 = arith.constant 0 : i32
    %c0_i32_0 = arith.constant 0 : i32
    %c0_i32_1 = arith.constant 0 : i32
    %c0_i32_2 = arith.constant 0 : i32
    %c0_i32_3 = arith.constant 0 : i32
    return %c0_i32, %c0_i32_0, %c0_i32_1, %c0_i32_2 : i32, i32, i32, i32
  }
  func.func @transform_7(%arg0: i32) -> (i32, i32, i32) {
    %c0_i32 = arith.constant 0 : i32
    %c0_i32_0 = arith.constant 0 : i32
    %c0_i32_1 = arith.constant 0 : i32
    %c0_i32_2 = arith.constant 0 : i32
    return %c0_i32, %c0_i32_0, %c0_i32_1 : i32, i32, i32
  }
  func.func @transform_8(%arg0: i32) -> (i32, i32, i32) {
    %c0_i32 = arith.constant 0 : i32
    %c0_i32_0 = arith.constant 0 : i32
    %c0_i32_1 = arith.constant 0 : i32
    %c0_i32_2 = arith.constant 0 : i32
    return %c0_i32, %c0_i32_0, %c0_i32_1 : i32, i32, i32
  }
  func.func @transform_9(%arg0: i32) -> (i32, i32, i32) {
    %c0_i32 = arith.constant 0 : i32
    %c0_i32_0 = arith.constant 0 : i32
    %c0_i32_1 = arith.constant 0 : i32
    %c0_i32_2 = arith.constant 0 : i32
    return %c0_i32, %c0_i32_0, %c0_i32_1 : i32, i32, i32
  }
  func.func @transform_10(%arg0: i32) -> (i32, i32, i32) {
    %c0_i32 = arith.constant 0 : i32
    %c0_i32_0 = arith.constant 0 : i32
    %c0_i32_1 = arith.constant 0 : i32
    %c0_i32_2 = arith.constant 0 : i32
    return %c0_i32, %c0_i32_0, %c0_i32_1 : i32, i32, i32
  }
  func.func @transform_11(%arg0: i32) -> (i32, i32) {
    %c0_i32 = arith.constant 0 : i32
    %c0_i32_0 = arith.constant 0 : i32
    %c0_i32_1 = arith.constant 0 : i32
    return %c0_i32, %c0_i32_0 : i32, i32
  }
  func.func @transform_12(%arg0: i32) -> (i32, i32) {
    %c0_i32 = arith.constant 0 : i32
    %c0_i32_0 = arith.constant 0 : i32
    %c0_i32_1 = arith.constant 0 : i32
    return %c0_i32, %c0_i32_0 : i32, i32
  }
  func.func @transform_13(%arg0: i32) -> (i32, i32) {
    %c0_i32 = arith.constant 0 : i32
    %c0_i32_0 = arith.constant 0 : i32
    %c0_i32_1 = arith.constant 0 : i32
    return %c0_i32, %c0_i32_0 : i32, i32
  }
  func.func @transform_14(%arg0: i32) -> (i32, i32) {
    %c0_i32 = arith.constant 0 : i32
    %c0_i32_0 = arith.constant 0 : i32
    %c0_i32_1 = arith.constant 0 : i32
    return %c0_i32, %c0_i32_0 : i32, i32
  }
  func.func @transform_15(%arg0: i32) -> (i32, i32) {
    %c0_i32 = arith.constant 0 : i32
    %c0_i32_0 = arith.constant 0 : i32
    %c0_i32_1 = arith.constant 0 : i32
    return %c0_i32, %c0_i32_0 : i32, i32
  }
  func.func @transform_16(%arg0: i32) -> (i32, i32) {
    %c0_i32 = arith.constant 0 : i32
    %c0_i32_0 = arith.constant 0 : i32
    %c0_i32_1 = arith.constant 0 : i32
    return %c0_i32, %c0_i32_0 : i32, i32
  }
  func.func @transform_17(%arg0: i32) -> (i32, i32) {
    %c0_i32 = arith.constant 0 : i32
    %c0_i32_0 = arith.constant 0 : i32
    %c0_i32_1 = arith.constant 0 : i32
    return %c0_i32, %c0_i32_0 : i32, i32
  }
  func.func @transform_18(%arg0: i32) -> (i32, i32) {
    %c0_i32 = arith.constant 0 : i32
    %c0_i32_0 = arith.constant 0 : i32
    %c0_i32_1 = arith.constant 0 : i32
    return %c0_i32, %c0_i32_0 : i32, i32
  }
  func.func @transform_19(%arg0: i32) -> (i32, i32, i32) {
    %c0_i32 = arith.constant 0 : i32
    %c0_i32_0 = arith.constant 0 : i32
    %c0_i32_1 = arith.constant 0 : i32
    return %arg0, %c0_i32, %c0_i32_0 : i32, i32, i32
  }
}

module attributes {stable_mosaic.version = 11 : i64} {
  func.func @_tf_block_s2_kernel(%arg0: i32, %arg1: memref<1x8x32xf32, #tpu.memory_space<vmem>>, %arg2: memref<1x8x32xf32, #tpu.memory_space<vmem>>, %arg3: memref<1x8x1xf32, #tpu.memory_space<vmem>>, %arg4: memref<1x1x8xf32, #tpu.memory_space<vmem>>, %arg5: memref<1x32xf32, #tpu.memory_space<vmem>>, %arg6: memref<1x32xf32, #tpu.memory_space<vmem>>, %arg7: memref<3x3x1x32xf32, #tpu.memory_space<vmem>>, %arg8: memref<3x1x32xf32, #tpu.memory_space<vmem>>, %arg9: memref<3x1x32xf32, #tpu.memory_space<vmem>>, %arg10: memref<3x32x32xbf16, #tpu.memory_space<vmem>>, %arg11: memref<3x1x32xf32, #tpu.memory_space<vmem>>, %arg12: memref<32x32xbf16, #tpu.memory_space<vmem>>, %arg13: memref<1x32xf32, #tpu.memory_space<vmem>>, %arg14: memref<1x32xf32, #tpu.memory_space<vmem>>, %arg15: memref<1x32xf32, #tpu.memory_space<vmem>>, %arg16: memref<32x128xbf16, #tpu.memory_space<vmem>>, %arg17: memref<1x128xf32, #tpu.memory_space<vmem>>, %arg18: memref<128x32xbf16, #tpu.memory_space<vmem>>, %arg19: memref<1x32xf32, #tpu.memory_space<vmem>>, %arg20: memref<1x8x32xf32, #tpu.memory_space<vmem>>) attributes {dimension_semantics = [#tpu.dimension_semantics<parallel>], iteration_bounds = array<i64: 2>, scalar_prefetch = 0 : i64, scratch_operands = 0 : i64, tpu.core_type = #tpu.core_type<tc>, window_params = [{transform_indices = @transform_0, window_bounds = array<i64: 1, 8, 32>}, {transform_indices = @transform_1, window_bounds = array<i64: 1, 8, 32>}, {transform_indices = @transform_2, window_bounds = array<i64: 1, 8, 1>}, {transform_indices = @transform_3, window_bounds = array<i64: 1, 1, 8>}, {pipeline_mode = #tpu.pipeline_mode<synchronous>, transform_indices = @transform_4, window_bounds = array<i64: 1, 32>}, {pipeline_mode = #tpu.pipeline_mode<synchronous>, transform_indices = @transform_5, window_bounds = array<i64: 1, 32>}, {pipeline_mode = #tpu.pipeline_mode<synchronous>, transform_indices = @transform_6, window_bounds = array<i64: 3, 3, 1, 32>}, {pipeline_mode = #tpu.pipeline_mode<synchronous>, transform_indices = @transform_7, window_bounds = array<i64: 3, 1, 32>}, {pipeline_mode = #tpu.pipeline_mode<synchronous>, transform_indices = @transform_8, window_bounds = array<i64: 3, 1, 32>}, {pipeline_mode = #tpu.pipeline_mode<synchronous>, transform_indices = @transform_9, window_bounds = array<i64: 3, 32, 32>}, {pipeline_mode = #tpu.pipeline_mode<synchronous>, transform_indices = @transform_10, window_bounds = array<i64: 3, 1, 32>}, {pipeline_mode = #tpu.pipeline_mode<synchronous>, transform_indices = @transform_11, window_bounds = array<i64: 32, 32>}, {pipeline_mode = #tpu.pipeline_mode<synchronous>, transform_indices = @transform_12, window_bounds = array<i64: 1, 32>}, {pipeline_mode = #tpu.pipeline_mode<synchronous>, transform_indices = @transform_13, window_bounds = array<i64: 1, 32>}, {pipeline_mode = #tpu.pipeline_mode<synchronous>, transform_indices = @transform_14, window_bounds = array<i64: 1, 32>}, {pipeline_mode = #tpu.pipeline_mode<synchronous>, transform_indices = @transform_15, window_bounds = array<i64: 32, 128>}, {pipeline_mode = #tpu.pipeline_mode<synchronous>, transform_indices = @transform_16, window_bounds = array<i64: 1, 128>}, {pipeline_mode = #tpu.pipeline_mode<synchronous>, transform_indices = @transform_17, window_bounds = array<i64: 128, 32>}, {pipeline_mode = #tpu.pipeline_mode<synchronous>, transform_indices = @transform_18, window_bounds = array<i64: 1, 32>}, {transform_indices = @transform_19, window_bounds = array<i64: 1, 8, 32>}]} {
    %c0 = arith.constant 0 : index
    %c0_0 = arith.constant 0 : index
    %c0_1 = arith.constant 0 : index
    %0 = vector.load %arg1[%c0, %c0_0, %c0_1] : memref<1x8x32xf32, #tpu.memory_space<vmem>>, vector<1x8x32xf32>
    %1 = vector.shape_cast %0 : vector<1x8x32xf32> to vector<8x32xf32>
    %c0_2 = arith.constant 0 : index
    %c0_3 = arith.constant 0 : index
    %c0_4 = arith.constant 0 : index
    %2 = vector.load %arg2[%c0_2, %c0_3, %c0_4] : memref<1x8x32xf32, #tpu.memory_space<vmem>>, vector<1x8x32xf32>
    %3 = vector.shape_cast %2 : vector<1x8x32xf32> to vector<8x32xf32>
    %c0_5 = arith.constant 0 : index
    %c0_6 = arith.constant 0 : index
    %c0_7 = arith.constant 0 : index
    %4 = vector.load %arg3[%c0_5, %c0_6, %c0_7] : memref<1x8x1xf32, #tpu.memory_space<vmem>>, vector<1x8x1xf32>
    %5 = vector.shape_cast %4 : vector<1x8x1xf32> to vector<8x1xf32>
    %c0_8 = arith.constant 0 : index
    %c0_9 = arith.constant 0 : index
    %c0_10 = arith.constant 0 : index
    %6 = vector.load %arg4[%c0_8, %c0_9, %c0_10] : memref<1x1x8xf32, #tpu.memory_space<vmem>>, vector<1x1x8xf32>
    %7 = vector.shape_cast %6 : vector<1x1x8xf32> to vector<1x8xf32>
    %c0_11 = arith.constant 0 : index
    %c0_12 = arith.constant 0 : index
    %8 = vector.load %arg5[%c0_11, %c0_12] : memref<1x32xf32, #tpu.memory_space<vmem>>, vector<1x32xf32>
    %c0_13 = arith.constant 0 : index
    %c0_14 = arith.constant 0 : index
    %9 = vector.load %arg6[%c0_13, %c0_14] : memref<1x32xf32, #tpu.memory_space<vmem>>, vector<1x32xf32>
    %cst = arith.constant dense<0.000000e+00> : vector<8xf32>
    %10 = vector.multi_reduction <add>, %1, %cst [1] : vector<8x32xf32> to vector<8xf32>
    %11 = vector.shape_cast %10 : vector<8xf32> to vector<8x1xf32>
    %cst_15 = arith.constant 3.200000e+01 : f32
    %12 = vector.broadcast %cst_15 : f32 to vector<8x1xf32>
    %13 = arith.divf %11, %12 : vector<8x1xf32>
    %14 = vector.broadcast %13 : vector<8x1xf32> to vector<8x32xf32>
    %15 = arith.subf %1, %14 : vector<8x32xf32>
    %16 = arith.mulf %15, %15 : vector<8x32xf32>
    %cst_16 = arith.constant dense<0.000000e+00> : vector<8xf32>
    %17 = vector.multi_reduction <add>, %16, %cst_16 [1] : vector<8x32xf32> to vector<8xf32>
    %18 = vector.shape_cast %17 : vector<8xf32> to vector<8x1xf32>
    %cst_17 = arith.constant 3.200000e+01 : f32
    %19 = vector.broadcast %cst_17 : f32 to vector<8x1xf32>
    %20 = arith.divf %18, %19 : vector<8x1xf32>
    %cst_18 = arith.constant 9.99999974E-6 : f32
    %21 = vector.broadcast %cst_18 : f32 to vector<8x1xf32>
    %22 = arith.addf %20, %21 : vector<8x1xf32>
    %23 = math.rsqrt %22 : vector<8x1xf32>
    %24 = vector.broadcast %23 : vector<8x1xf32> to vector<8x32xf32>
    %25 = arith.mulf %15, %24 : vector<8x32xf32>
    %26 = vector.broadcast %8 : vector<1x32xf32> to vector<8x32xf32>
    %27 = arith.mulf %25, %26 : vector<8x32xf32>
    %28 = vector.broadcast %9 : vector<1x32xf32> to vector<8x32xf32>
    %29 = arith.addf %27, %28 : vector<8x32xf32>
    %cst_19 = arith.constant dense<0.000000e+00> : vector<8xf32>
    %30 = vector.multi_reduction <add>, %3, %cst_19 [1] : vector<8x32xf32> to vector<8xf32>
    %31 = vector.shape_cast %30 : vector<8xf32> to vector<8x1xf32>
    %cst_20 = arith.constant 3.200000e+01 : f32
    %32 = vector.broadcast %cst_20 : f32 to vector<8x1xf32>
    %33 = arith.divf %31, %32 : vector<8x1xf32>
    %34 = vector.broadcast %33 : vector<8x1xf32> to vector<8x32xf32>
    %35 = arith.subf %3, %34 : vector<8x32xf32>
    %36 = arith.mulf %35, %35 : vector<8x32xf32>
    %cst_21 = arith.constant dense<0.000000e+00> : vector<8xf32>
    %37 = vector.multi_reduction <add>, %36, %cst_21 [1] : vector<8x32xf32> to vector<8xf32>
    %38 = vector.shape_cast %37 : vector<8xf32> to vector<8x1xf32>
    %cst_22 = arith.constant 3.200000e+01 : f32
    %39 = vector.broadcast %cst_22 : f32 to vector<8x1xf32>
    %40 = arith.divf %38, %39 : vector<8x1xf32>
    %cst_23 = arith.constant 9.99999974E-6 : f32
    %41 = vector.broadcast %cst_23 : f32 to vector<8x1xf32>
    %42 = arith.addf %40, %41 : vector<8x1xf32>
    %43 = math.rsqrt %42 : vector<8x1xf32>
    %44 = vector.broadcast %43 : vector<8x1xf32> to vector<8x32xf32>
    %45 = arith.mulf %35, %44 : vector<8x32xf32>
    %46 = vector.broadcast %8 : vector<1x32xf32> to vector<8x32xf32>
    %47 = arith.mulf %45, %46 : vector<8x32xf32>
    %48 = vector.broadcast %9 : vector<1x32xf32> to vector<8x32xf32>
    %49 = arith.addf %47, %48 : vector<8x32xf32>
    %c1_i32 = arith.constant 1 : i32
    %50 = tpu.dynamic_rotate %3 by %c1_i32 dim 0 : vector<8x32xf32>, i32 -> vector<8x32xf32>
    %51 = tpu.iota {dimensions = array<i32: 0>} : vector<8x32xi32>
    %c-1_i32 = arith.constant -1 : i32
    %52 = vector.broadcast %c-1_i32 : i32 to vector<8x32xi32>
    %53 = arith.addi %51, %52 : vector<8x32xi32>
    %c0_i32 = arith.constant 0 : i32
    %54 = vector.broadcast %c0_i32 : i32 to vector<8x32xi32>
    %55 = arith.cmpi sge, %53, %54 : vector<8x32xi32>
    %c-1_i32_24 = arith.constant -1 : i32
    %56 = vector.broadcast %c-1_i32_24 : i32 to vector<8x32xi32>
    %57 = arith.addi %51, %56 : vector<8x32xi32>
    %c8_i32 = arith.constant 8 : i32
    %58 = vector.broadcast %c8_i32 : i32 to vector<8x32xi32>
    %59 = arith.cmpi slt, %57, %58 : vector<8x32xi32>
    %60 = arith.andi %55, %59 : vector<8x32xi1>
    %cst_25 = arith.constant -1.000000e+30 : f32
    %61 = vector.broadcast %cst_25 : f32 to vector<8x32xf32>
    %62 = arith.select %60, %50, %61 : vector<8x32xi1>, vector<8x32xf32>
    %63 = arith.maximumf %62, %1 : vector<8x32xf32>
    %64 = arith.maximumf %63, %3 : vector<8x32xf32>
    %c1_i32_26 = arith.constant 1 : i32
    %65 = tpu.dynamic_rotate %49 by %c1_i32_26 dim 0 : vector<8x32xf32>, i32 -> vector<8x32xf32>
    %66 = tpu.iota {dimensions = array<i32: 0>} : vector<8x32xi32>
    %c-1_i32_27 = arith.constant -1 : i32
    %67 = vector.broadcast %c-1_i32_27 : i32 to vector<8x32xi32>
    %68 = arith.addi %66, %67 : vector<8x32xi32>
    %c0_i32_28 = arith.constant 0 : i32
    %69 = vector.broadcast %c0_i32_28 : i32 to vector<8x32xi32>
    %70 = arith.cmpi sge, %68, %69 : vector<8x32xi32>
    %c-1_i32_29 = arith.constant -1 : i32
    %71 = vector.broadcast %c-1_i32_29 : i32 to vector<8x32xi32>
    %72 = arith.addi %66, %71 : vector<8x32xi32>
    %c8_i32_30 = arith.constant 8 : i32
    %73 = vector.broadcast %c8_i32_30 : i32 to vector<8x32xi32>
    %74 = arith.cmpi slt, %72, %73 : vector<8x32xi32>
    %75 = arith.andi %70, %74 : vector<8x32xi1>
    %cst_31 = arith.constant 0.000000e+00 : f32
    %76 = vector.broadcast %cst_31 : f32 to vector<8x32xf32>
    %77 = arith.select %75, %65, %76 : vector<8x32xi1>, vector<8x32xf32>
    %c0_32 = arith.constant 0 : index
    %c0_33 = arith.constant 0 : index
    %c0_34 = arith.constant 0 : index
    %c0_35 = arith.constant 0 : index
    %78 = vector.load %arg7[%c0_32, %c0_33, %c0_34, %c0_35] : memref<3x3x1x32xf32, #tpu.memory_space<vmem>>, vector<1x1x1x32xf32>
    %79 = vector.shape_cast %78 : vector<1x1x1x32xf32> to vector<1x32xf32>
    %80 = vector.broadcast %79 : vector<1x32xf32> to vector<8x32xf32>
    %81 = arith.mulf %77, %80 : vector<8x32xf32>
    %c0_36 = arith.constant 0 : index
    %c1 = arith.constant 1 : index
    %c0_37 = arith.constant 0 : index
    %c0_38 = arith.constant 0 : index
    %82 = vector.load %arg7[%c0_36, %c1, %c0_37, %c0_38] : memref<3x3x1x32xf32, #tpu.memory_space<vmem>>, vector<1x1x1x32xf32>
    %83 = vector.shape_cast %82 : vector<1x1x1x32xf32> to vector<1x32xf32>
    %84 = vector.broadcast %83 : vector<1x32xf32> to vector<8x32xf32>
    %85 = arith.mulf %29, %84 : vector<8x32xf32>
    %86 = arith.addf %81, %85 : vector<8x32xf32>
    %c0_39 = arith.constant 0 : index
    %c2 = arith.constant 2 : index
    %c0_40 = arith.constant 0 : index
    %c0_41 = arith.constant 0 : index
    %87 = vector.load %arg7[%c0_39, %c2, %c0_40, %c0_41] : memref<3x3x1x32xf32, #tpu.memory_space<vmem>>, vector<1x1x1x32xf32>
    %88 = vector.shape_cast %87 : vector<1x1x1x32xf32> to vector<1x32xf32>
    %89 = vector.broadcast %88 : vector<1x32xf32> to vector<8x32xf32>
    %90 = arith.mulf %49, %89 : vector<8x32xf32>
    %91 = arith.addf %86, %90 : vector<8x32xf32>
    %92 = vector.broadcast %5 : vector<8x1xf32> to vector<8x32xf32>
    %93 = arith.mulf %91, %92 : vector<8x32xf32>
    %c0_42 = arith.constant 0 : index
    %c0_43 = arith.constant 0 : index
    %c0_44 = arith.constant 0 : index
    %94 = vector.load %arg8[%c0_42, %c0_43, %c0_44] : memref<3x1x32xf32, #tpu.memory_space<vmem>>, vector<1x1x32xf32>
    %95 = vector.shape_cast %94 : vector<1x1x32xf32> to vector<1x32xf32>
    %c0_45 = arith.constant 0 : index
    %c0_46 = arith.constant 0 : index
    %c0_47 = arith.constant 0 : index
    %96 = vector.load %arg9[%c0_45, %c0_46, %c0_47] : memref<3x1x32xf32, #tpu.memory_space<vmem>>, vector<1x1x32xf32>
    %97 = vector.shape_cast %96 : vector<1x1x32xf32> to vector<1x32xf32>
    %cst_48 = arith.constant dense<0.000000e+00> : vector<8xf32>
    %98 = vector.multi_reduction <add>, %93, %cst_48 [1] : vector<8x32xf32> to vector<8xf32>
    %99 = vector.shape_cast %98 : vector<8xf32> to vector<8x1xf32>
    %cst_49 = arith.constant 3.200000e+01 : f32
    %100 = vector.broadcast %cst_49 : f32 to vector<8x1xf32>
    %101 = arith.divf %99, %100 : vector<8x1xf32>
    %102 = vector.broadcast %101 : vector<8x1xf32> to vector<8x32xf32>
    %103 = arith.subf %93, %102 : vector<8x32xf32>
    %104 = arith.mulf %103, %103 : vector<8x32xf32>
    %cst_50 = arith.constant dense<0.000000e+00> : vector<8xf32>
    %105 = vector.multi_reduction <add>, %104, %cst_50 [1] : vector<8x32xf32> to vector<8xf32>
    %106 = vector.shape_cast %105 : vector<8xf32> to vector<8x1xf32>
    %cst_51 = arith.constant 3.200000e+01 : f32
    %107 = vector.broadcast %cst_51 : f32 to vector<8x1xf32>
    %108 = arith.divf %106, %107 : vector<8x1xf32>
    %cst_52 = arith.constant 9.99999974E-6 : f32
    %109 = vector.broadcast %cst_52 : f32 to vector<8x1xf32>
    %110 = arith.addf %108, %109 : vector<8x1xf32>
    %111 = math.rsqrt %110 : vector<8x1xf32>
    %112 = vector.broadcast %111 : vector<8x1xf32> to vector<8x32xf32>
    %113 = arith.mulf %103, %112 : vector<8x32xf32>
    %114 = vector.broadcast %95 : vector<1x32xf32> to vector<8x32xf32>
    %115 = arith.mulf %113, %114 : vector<8x32xf32>
    %116 = vector.broadcast %97 : vector<1x32xf32> to vector<8x32xf32>
    %117 = arith.addf %115, %116 : vector<8x32xf32>
    %c0_53 = arith.constant 0 : index
    %c0_54 = arith.constant 0 : index
    %c0_55 = arith.constant 0 : index
    %118 = vector.load %arg10[%c0_53, %c0_54, %c0_55] : memref<3x32x32xbf16, #tpu.memory_space<vmem>>, vector<1x32x32xbf16>
    %119 = vector.shape_cast %118 : vector<1x32x32xbf16> to vector<32x32xbf16>
    %120 = arith.truncf %117 : vector<8x32xf32> to vector<8x32xbf16>
    %cst_56 = arith.constant dense<0.000000e+00> : vector<8x32xf32>
    %121 = tpu.matmul %120, %119, %cst_56 {dimension_numbers = #tpu.dot_dimension_numbers<[1], [0], [0], [1], [0, 0, 1, 1], [], []>} : vector<8x32xbf16>, vector<32x32xbf16>, vector<8x32xf32> -> vector<8x32xf32>
    %c0_57 = arith.constant 0 : index
    %c0_58 = arith.constant 0 : index
    %c0_59 = arith.constant 0 : index
    %122 = vector.load %arg11[%c0_57, %c0_58, %c0_59] : memref<3x1x32xf32, #tpu.memory_space<vmem>>, vector<1x1x32xf32>
    %123 = vector.shape_cast %122 : vector<1x1x32xf32> to vector<1x32xf32>
    %124 = vector.broadcast %123 : vector<1x32xf32> to vector<8x32xf32>
    %125 = arith.addf %121, %124 : vector<8x32xf32>
    %c1_60 = arith.constant 1 : index
    %c0_61 = arith.constant 0 : index
    %c0_62 = arith.constant 0 : index
    %c0_63 = arith.constant 0 : index
    %126 = vector.load %arg7[%c1_60, %c0_61, %c0_62, %c0_63] : memref<3x3x1x32xf32, #tpu.memory_space<vmem>>, vector<1x1x1x32xf32>
    %127 = vector.shape_cast %126 : vector<1x1x1x32xf32> to vector<1x32xf32>
    %128 = vector.broadcast %127 : vector<1x32xf32> to vector<8x32xf32>
    %129 = arith.mulf %77, %128 : vector<8x32xf32>
    %c1_64 = arith.constant 1 : index
    %c1_65 = arith.constant 1 : index
    %c0_66 = arith.constant 0 : index
    %c0_67 = arith.constant 0 : index
    %130 = vector.load %arg7[%c1_64, %c1_65, %c0_66, %c0_67] : memref<3x3x1x32xf32, #tpu.memory_space<vmem>>, vector<1x1x1x32xf32>
    %131 = vector.shape_cast %130 : vector<1x1x1x32xf32> to vector<1x32xf32>
    %132 = vector.broadcast %131 : vector<1x32xf32> to vector<8x32xf32>
    %133 = arith.mulf %29, %132 : vector<8x32xf32>
    %134 = arith.addf %129, %133 : vector<8x32xf32>
    %c1_68 = arith.constant 1 : index
    %c2_69 = arith.constant 2 : index
    %c0_70 = arith.constant 0 : index
    %c0_71 = arith.constant 0 : index
    %135 = vector.load %arg7[%c1_68, %c2_69, %c0_70, %c0_71] : memref<3x3x1x32xf32, #tpu.memory_space<vmem>>, vector<1x1x1x32xf32>
    %136 = vector.shape_cast %135 : vector<1x1x1x32xf32> to vector<1x32xf32>
    %137 = vector.broadcast %136 : vector<1x32xf32> to vector<8x32xf32>
    %138 = arith.mulf %49, %137 : vector<8x32xf32>
    %139 = arith.addf %134, %138 : vector<8x32xf32>
    %140 = vector.broadcast %5 : vector<8x1xf32> to vector<8x32xf32>
    %141 = arith.mulf %139, %140 : vector<8x32xf32>
    %c1_72 = arith.constant 1 : index
    %c0_73 = arith.constant 0 : index
    %c0_74 = arith.constant 0 : index
    %142 = vector.load %arg8[%c1_72, %c0_73, %c0_74] : memref<3x1x32xf32, #tpu.memory_space<vmem>>, vector<1x1x32xf32>
    %143 = vector.shape_cast %142 : vector<1x1x32xf32> to vector<1x32xf32>
    %c1_75 = arith.constant 1 : index
    %c0_76 = arith.constant 0 : index
    %c0_77 = arith.constant 0 : index
    %144 = vector.load %arg9[%c1_75, %c0_76, %c0_77] : memref<3x1x32xf32, #tpu.memory_space<vmem>>, vector<1x1x32xf32>
    %145 = vector.shape_cast %144 : vector<1x1x32xf32> to vector<1x32xf32>
    %cst_78 = arith.constant dense<0.000000e+00> : vector<8xf32>
    %146 = vector.multi_reduction <add>, %141, %cst_78 [1] : vector<8x32xf32> to vector<8xf32>
    %147 = vector.shape_cast %146 : vector<8xf32> to vector<8x1xf32>
    %cst_79 = arith.constant 3.200000e+01 : f32
    %148 = vector.broadcast %cst_79 : f32 to vector<8x1xf32>
    %149 = arith.divf %147, %148 : vector<8x1xf32>
    %150 = vector.broadcast %149 : vector<8x1xf32> to vector<8x32xf32>
    %151 = arith.subf %141, %150 : vector<8x32xf32>
    %152 = arith.mulf %151, %151 : vector<8x32xf32>
    %cst_80 = arith.constant dense<0.000000e+00> : vector<8xf32>
    %153 = vector.multi_reduction <add>, %152, %cst_80 [1] : vector<8x32xf32> to vector<8xf32>
    %154 = vector.shape_cast %153 : vector<8xf32> to vector<8x1xf32>
    %cst_81 = arith.constant 3.200000e+01 : f32
    %155 = vector.broadcast %cst_81 : f32 to vector<8x1xf32>
    %156 = arith.divf %154, %155 : vector<8x1xf32>
    %cst_82 = arith.constant 9.99999974E-6 : f32
    %157 = vector.broadcast %cst_82 : f32 to vector<8x1xf32>
    %158 = arith.addf %156, %157 : vector<8x1xf32>
    %159 = math.rsqrt %158 : vector<8x1xf32>
    %160 = vector.broadcast %159 : vector<8x1xf32> to vector<8x32xf32>
    %161 = arith.mulf %151, %160 : vector<8x32xf32>
    %162 = vector.broadcast %143 : vector<1x32xf32> to vector<8x32xf32>
    %163 = arith.mulf %161, %162 : vector<8x32xf32>
    %164 = vector.broadcast %145 : vector<1x32xf32> to vector<8x32xf32>
    %165 = arith.addf %163, %164 : vector<8x32xf32>
    %c1_83 = arith.constant 1 : index
    %c0_84 = arith.constant 0 : index
    %c0_85 = arith.constant 0 : index
    %166 = vector.load %arg10[%c1_83, %c0_84, %c0_85] : memref<3x32x32xbf16, #tpu.memory_space<vmem>>, vector<1x32x32xbf16>
    %167 = vector.shape_cast %166 : vector<1x32x32xbf16> to vector<32x32xbf16>
    %168 = arith.truncf %165 : vector<8x32xf32> to vector<8x32xbf16>
    %cst_86 = arith.constant dense<0.000000e+00> : vector<8x32xf32>
    %169 = tpu.matmul %168, %167, %cst_86 {dimension_numbers = #tpu.dot_dimension_numbers<[1], [0], [0], [1], [0, 0, 1, 1], [], []>} : vector<8x32xbf16>, vector<32x32xbf16>, vector<8x32xf32> -> vector<8x32xf32>
    %c1_87 = arith.constant 1 : index
    %c0_88 = arith.constant 0 : index
    %c0_89 = arith.constant 0 : index
    %170 = vector.load %arg11[%c1_87, %c0_88, %c0_89] : memref<3x1x32xf32, #tpu.memory_space<vmem>>, vector<1x1x32xf32>
    %171 = vector.shape_cast %170 : vector<1x1x32xf32> to vector<1x32xf32>
    %172 = vector.broadcast %171 : vector<1x32xf32> to vector<8x32xf32>
    %173 = arith.addf %169, %172 : vector<8x32xf32>
    %c2_90 = arith.constant 2 : index
    %c0_91 = arith.constant 0 : index
    %c0_92 = arith.constant 0 : index
    %c0_93 = arith.constant 0 : index
    %174 = vector.load %arg7[%c2_90, %c0_91, %c0_92, %c0_93] : memref<3x3x1x32xf32, #tpu.memory_space<vmem>>, vector<1x1x1x32xf32>
    %175 = vector.shape_cast %174 : vector<1x1x1x32xf32> to vector<1x32xf32>
    %176 = vector.broadcast %175 : vector<1x32xf32> to vector<8x32xf32>
    %177 = arith.mulf %77, %176 : vector<8x32xf32>
    %c2_94 = arith.constant 2 : index
    %c1_95 = arith.constant 1 : index
    %c0_96 = arith.constant 0 : index
    %c0_97 = arith.constant 0 : index
    %178 = vector.load %arg7[%c2_94, %c1_95, %c0_96, %c0_97] : memref<3x3x1x32xf32, #tpu.memory_space<vmem>>, vector<1x1x1x32xf32>
    %179 = vector.shape_cast %178 : vector<1x1x1x32xf32> to vector<1x32xf32>
    %180 = vector.broadcast %179 : vector<1x32xf32> to vector<8x32xf32>
    %181 = arith.mulf %29, %180 : vector<8x32xf32>
    %182 = arith.addf %177, %181 : vector<8x32xf32>
    %c2_98 = arith.constant 2 : index
    %c2_99 = arith.constant 2 : index
    %c0_100 = arith.constant 0 : index
    %c0_101 = arith.constant 0 : index
    %183 = vector.load %arg7[%c2_98, %c2_99, %c0_100, %c0_101] : memref<3x3x1x32xf32, #tpu.memory_space<vmem>>, vector<1x1x1x32xf32>
    %184 = vector.shape_cast %183 : vector<1x1x1x32xf32> to vector<1x32xf32>
    %185 = vector.broadcast %184 : vector<1x32xf32> to vector<8x32xf32>
    %186 = arith.mulf %49, %185 : vector<8x32xf32>
    %187 = arith.addf %182, %186 : vector<8x32xf32>
    %188 = vector.broadcast %5 : vector<8x1xf32> to vector<8x32xf32>
    %189 = arith.mulf %187, %188 : vector<8x32xf32>
    %c2_102 = arith.constant 2 : index
    %c0_103 = arith.constant 0 : index
    %c0_104 = arith.constant 0 : index
    %190 = vector.load %arg8[%c2_102, %c0_103, %c0_104] : memref<3x1x32xf32, #tpu.memory_space<vmem>>, vector<1x1x32xf32>
    %191 = vector.shape_cast %190 : vector<1x1x32xf32> to vector<1x32xf32>
    %c2_105 = arith.constant 2 : index
    %c0_106 = arith.constant 0 : index
    %c0_107 = arith.constant 0 : index
    %192 = vector.load %arg9[%c2_105, %c0_106, %c0_107] : memref<3x1x32xf32, #tpu.memory_space<vmem>>, vector<1x1x32xf32>
    %193 = vector.shape_cast %192 : vector<1x1x32xf32> to vector<1x32xf32>
    %cst_108 = arith.constant dense<0.000000e+00> : vector<8xf32>
    %194 = vector.multi_reduction <add>, %189, %cst_108 [1] : vector<8x32xf32> to vector<8xf32>
    %195 = vector.shape_cast %194 : vector<8xf32> to vector<8x1xf32>
    %cst_109 = arith.constant 3.200000e+01 : f32
    %196 = vector.broadcast %cst_109 : f32 to vector<8x1xf32>
    %197 = arith.divf %195, %196 : vector<8x1xf32>
    %198 = vector.broadcast %197 : vector<8x1xf32> to vector<8x32xf32>
    %199 = arith.subf %189, %198 : vector<8x32xf32>
    %200 = arith.mulf %199, %199 : vector<8x32xf32>
    %cst_110 = arith.constant dense<0.000000e+00> : vector<8xf32>
    %201 = vector.multi_reduction <add>, %200, %cst_110 [1] : vector<8x32xf32> to vector<8xf32>
    %202 = vector.shape_cast %201 : vector<8xf32> to vector<8x1xf32>
    %cst_111 = arith.constant 3.200000e+01 : f32
    %203 = vector.broadcast %cst_111 : f32 to vector<8x1xf32>
    %204 = arith.divf %202, %203 : vector<8x1xf32>
    %cst_112 = arith.constant 9.99999974E-6 : f32
    %205 = vector.broadcast %cst_112 : f32 to vector<8x1xf32>
    %206 = arith.addf %204, %205 : vector<8x1xf32>
    %207 = math.rsqrt %206 : vector<8x1xf32>
    %208 = vector.broadcast %207 : vector<8x1xf32> to vector<8x32xf32>
    %209 = arith.mulf %199, %208 : vector<8x32xf32>
    %210 = vector.broadcast %191 : vector<1x32xf32> to vector<8x32xf32>
    %211 = arith.mulf %209, %210 : vector<8x32xf32>
    %212 = vector.broadcast %193 : vector<1x32xf32> to vector<8x32xf32>
    %213 = arith.addf %211, %212 : vector<8x32xf32>
    %c2_113 = arith.constant 2 : index
    %c0_114 = arith.constant 0 : index
    %c0_115 = arith.constant 0 : index
    %214 = vector.load %arg10[%c2_113, %c0_114, %c0_115] : memref<3x32x32xbf16, #tpu.memory_space<vmem>>, vector<1x32x32xbf16>
    %215 = vector.shape_cast %214 : vector<1x32x32xbf16> to vector<32x32xbf16>
    %216 = arith.truncf %213 : vector<8x32xf32> to vector<8x32xbf16>
    %cst_116 = arith.constant dense<0.000000e+00> : vector<8x32xf32>
    %217 = tpu.matmul %216, %215, %cst_116 {dimension_numbers = #tpu.dot_dimension_numbers<[1], [0], [0], [1], [0, 0, 1, 1], [], []>} : vector<8x32xbf16>, vector<32x32xbf16>, vector<8x32xf32> -> vector<8x32xf32>
    %c2_117 = arith.constant 2 : index
    %c0_118 = arith.constant 0 : index
    %c0_119 = arith.constant 0 : index
    %218 = vector.load %arg11[%c2_117, %c0_118, %c0_119] : memref<3x1x32xf32, #tpu.memory_space<vmem>>, vector<1x1x32xf32>
    %219 = vector.shape_cast %218 : vector<1x1x32xf32> to vector<1x32xf32>
    %220 = vector.broadcast %219 : vector<1x32xf32> to vector<8x32xf32>
    %221 = arith.addf %217, %220 : vector<8x32xf32>
    %222 = tpu.iota {dimensions = array<i32: 1>} : vector<1x32xi32>
    %223 = vector.broadcast %5 : vector<8x1xf32> to vector<8x32xf32>
    %224 = arith.mulf %221, %223 : vector<8x32xf32>
    %cst_120 = arith.constant 1.000000e+00 : f32
    %225 = vector.broadcast %cst_120 : f32 to vector<1x8xf32>
    %226 = arith.subf %225, %7 : vector<1x8xf32>
    %cst_121 = arith.constant -1.000000e+30 : f32
    %227 = vector.broadcast %cst_121 : f32 to vector<1x8xf32>
    %228 = arith.mulf %226, %227 : vector<1x8xf32>
    %cst_122 = arith.constant 0.000000e+00 : f32
    %229 = vector.broadcast %cst_122 : f32 to vector<8x32xf32>
    %c0_i32_123 = arith.constant 0 : i32
    %230 = vector.broadcast %c0_i32_123 : i32 to vector<1x32xi32>
    %231 = arith.cmpi sge, %222, %230 : vector<1x32xi32>
    %c8_i32_124 = arith.constant 8 : i32
    %232 = vector.broadcast %c8_i32_124 : i32 to vector<1x32xi32>
    %233 = arith.cmpi slt, %222, %232 : vector<1x32xi32>
    %234 = arith.andi %231, %233 : vector<1x32xi1>
    %cst_125 = arith.constant 0.000000e+00 : f32
    %235 = vector.shape_cast %234 : vector<1x32xi1> to vector<1x32xi1>
    %236 = vector.broadcast %235 : vector<1x32xi1> to vector<8x32xi1>
    %237 = vector.broadcast %cst_125 : f32 to vector<8x32xf32>
    %238 = arith.select %236, %125, %237 : vector<8x32xi1>, vector<8x32xf32>
    %cst_126 = arith.constant 0.000000e+00 : f32
    %239 = vector.shape_cast %234 : vector<1x32xi1> to vector<1x32xi1>
    %240 = vector.broadcast %239 : vector<1x32xi1> to vector<8x32xi1>
    %241 = vector.broadcast %cst_126 : f32 to vector<8x32xf32>
    %242 = arith.select %240, %173, %241 : vector<8x32xi1>, vector<8x32xf32>
    %243 = arith.truncf %238 : vector<8x32xf32> to vector<8x32xbf16>
    %244 = arith.truncf %242 : vector<8x32xf32> to vector<8x32xbf16>
    %cst_127 = arith.constant dense<0.000000e+00> : vector<8x8xf32>
    %245 = tpu.matmul %243, %244, %cst_127 {dimension_numbers = #tpu.dot_dimension_numbers<[1], [1], [0], [0], [0, 0, 1, 0], [], []>} : vector<8x32xbf16>, vector<8x32xbf16>, vector<8x8xf32> -> vector<8x8xf32>
    %246 = vector.broadcast %228 : vector<1x8xf32> to vector<8x8xf32>
    %247 = arith.addf %245, %246 : vector<8x8xf32>
    %cst_128 = arith.constant dense<0xFF800000> : vector<8xf32>
    %248 = vector.multi_reduction <maximumf>, %247, %cst_128 [1] : vector<8x8xf32> to vector<8xf32>
    %249 = vector.shape_cast %248 : vector<8xf32> to vector<8x1xf32>
    %250 = vector.broadcast %249 : vector<8x1xf32> to vector<8x8xf32>
    %251 = arith.subf %247, %250 : vector<8x8xf32>
    %252 = math.exp %251 : vector<8x8xf32>
    %cst_129 = arith.constant dense<0.000000e+00> : vector<8xf32>
    %253 = vector.multi_reduction <add>, %252, %cst_129 [1] : vector<8x8xf32> to vector<8xf32>
    %254 = vector.shape_cast %253 : vector<8xf32> to vector<8x1xf32>
    %255 = tpu.reciprocal %254 {approx = true} : vector<8x1xf32> -> vector<8x1xf32>
    %256 = vector.broadcast %255 : vector<8x1xf32> to vector<8x8xf32>
    %257 = arith.mulf %252, %256 : vector<8x8xf32>
    %cst_130 = arith.constant 0.000000e+00 : f32
    %258 = vector.shape_cast %234 : vector<1x32xi1> to vector<1x32xi1>
    %259 = vector.broadcast %258 : vector<1x32xi1> to vector<8x32xi1>
    %260 = vector.broadcast %cst_130 : f32 to vector<8x32xf32>
    %261 = arith.select %259, %224, %260 : vector<8x32xi1>, vector<8x32xf32>
    %262 = arith.truncf %257 : vector<8x8xf32> to vector<8x8xbf16>
    %263 = arith.truncf %261 : vector<8x32xf32> to vector<8x32xbf16>
    %cst_131 = arith.constant dense<0.000000e+00> : vector<8x32xf32>
    %264 = tpu.matmul %262, %263, %cst_131 {dimension_numbers = #tpu.dot_dimension_numbers<[1], [0], [0], [1], [0, 0, 1, 1], [], []>} : vector<8x8xbf16>, vector<8x32xbf16>, vector<8x32xf32> -> vector<8x32xf32>
    %265 = arith.addf %229, %264 : vector<8x32xf32>
    %c8_i32_132 = arith.constant 8 : i32
    %266 = vector.broadcast %c8_i32_132 : i32 to vector<1x32xi32>
    %267 = arith.cmpi sge, %222, %266 : vector<1x32xi32>
    %c16_i32 = arith.constant 16 : i32
    %268 = vector.broadcast %c16_i32 : i32 to vector<1x32xi32>
    %269 = arith.cmpi slt, %222, %268 : vector<1x32xi32>
    %270 = arith.andi %267, %269 : vector<1x32xi1>
    %cst_133 = arith.constant 0.000000e+00 : f32
    %271 = vector.shape_cast %270 : vector<1x32xi1> to vector<1x32xi1>
    %272 = vector.broadcast %271 : vector<1x32xi1> to vector<8x32xi1>
    %273 = vector.broadcast %cst_133 : f32 to vector<8x32xf32>
    %274 = arith.select %272, %125, %273 : vector<8x32xi1>, vector<8x32xf32>
    %cst_134 = arith.constant 0.000000e+00 : f32
    %275 = vector.shape_cast %270 : vector<1x32xi1> to vector<1x32xi1>
    %276 = vector.broadcast %275 : vector<1x32xi1> to vector<8x32xi1>
    %277 = vector.broadcast %cst_134 : f32 to vector<8x32xf32>
    %278 = arith.select %276, %173, %277 : vector<8x32xi1>, vector<8x32xf32>
    %279 = arith.truncf %274 : vector<8x32xf32> to vector<8x32xbf16>
    %280 = arith.truncf %278 : vector<8x32xf32> to vector<8x32xbf16>
    %cst_135 = arith.constant dense<0.000000e+00> : vector<8x8xf32>
    %281 = tpu.matmul %279, %280, %cst_135 {dimension_numbers = #tpu.dot_dimension_numbers<[1], [1], [0], [0], [0, 0, 1, 0], [], []>} : vector<8x32xbf16>, vector<8x32xbf16>, vector<8x8xf32> -> vector<8x8xf32>
    %282 = vector.broadcast %228 : vector<1x8xf32> to vector<8x8xf32>
    %283 = arith.addf %281, %282 : vector<8x8xf32>
    %cst_136 = arith.constant dense<0xFF800000> : vector<8xf32>
    %284 = vector.multi_reduction <maximumf>, %283, %cst_136 [1] : vector<8x8xf32> to vector<8xf32>
    %285 = vector.shape_cast %284 : vector<8xf32> to vector<8x1xf32>
    %286 = vector.broadcast %285 : vector<8x1xf32> to vector<8x8xf32>
    %287 = arith.subf %283, %286 : vector<8x8xf32>
    %288 = math.exp %287 : vector<8x8xf32>
    %cst_137 = arith.constant dense<0.000000e+00> : vector<8xf32>
    %289 = vector.multi_reduction <add>, %288, %cst_137 [1] : vector<8x8xf32> to vector<8xf32>
    %290 = vector.shape_cast %289 : vector<8xf32> to vector<8x1xf32>
    %291 = tpu.reciprocal %290 {approx = true} : vector<8x1xf32> -> vector<8x1xf32>
    %292 = vector.broadcast %291 : vector<8x1xf32> to vector<8x8xf32>
    %293 = arith.mulf %288, %292 : vector<8x8xf32>
    %cst_138 = arith.constant 0.000000e+00 : f32
    %294 = vector.shape_cast %270 : vector<1x32xi1> to vector<1x32xi1>
    %295 = vector.broadcast %294 : vector<1x32xi1> to vector<8x32xi1>
    %296 = vector.broadcast %cst_138 : f32 to vector<8x32xf32>
    %297 = arith.select %295, %224, %296 : vector<8x32xi1>, vector<8x32xf32>
    %298 = arith.truncf %293 : vector<8x8xf32> to vector<8x8xbf16>
    %299 = arith.truncf %297 : vector<8x32xf32> to vector<8x32xbf16>
    %cst_139 = arith.constant dense<0.000000e+00> : vector<8x32xf32>
    %300 = tpu.matmul %298, %299, %cst_139 {dimension_numbers = #tpu.dot_dimension_numbers<[1], [0], [0], [1], [0, 0, 1, 1], [], []>} : vector<8x8xbf16>, vector<8x32xbf16>, vector<8x32xf32> -> vector<8x32xf32>
    %301 = arith.addf %265, %300 : vector<8x32xf32>
    %c16_i32_140 = arith.constant 16 : i32
    %302 = vector.broadcast %c16_i32_140 : i32 to vector<1x32xi32>
    %303 = arith.cmpi sge, %222, %302 : vector<1x32xi32>
    %c24_i32 = arith.constant 24 : i32
    %304 = vector.broadcast %c24_i32 : i32 to vector<1x32xi32>
    %305 = arith.cmpi slt, %222, %304 : vector<1x32xi32>
    %306 = arith.andi %303, %305 : vector<1x32xi1>
    %cst_141 = arith.constant 0.000000e+00 : f32
    %307 = vector.shape_cast %306 : vector<1x32xi1> to vector<1x32xi1>
    %308 = vector.broadcast %307 : vector<1x32xi1> to vector<8x32xi1>
    %309 = vector.broadcast %cst_141 : f32 to vector<8x32xf32>
    %310 = arith.select %308, %125, %309 : vector<8x32xi1>, vector<8x32xf32>
    %cst_142 = arith.constant 0.000000e+00 : f32
    %311 = vector.shape_cast %306 : vector<1x32xi1> to vector<1x32xi1>
    %312 = vector.broadcast %311 : vector<1x32xi1> to vector<8x32xi1>
    %313 = vector.broadcast %cst_142 : f32 to vector<8x32xf32>
    %314 = arith.select %312, %173, %313 : vector<8x32xi1>, vector<8x32xf32>
    %315 = arith.truncf %310 : vector<8x32xf32> to vector<8x32xbf16>
    %316 = arith.truncf %314 : vector<8x32xf32> to vector<8x32xbf16>
    %cst_143 = arith.constant dense<0.000000e+00> : vector<8x8xf32>
    %317 = tpu.matmul %315, %316, %cst_143 {dimension_numbers = #tpu.dot_dimension_numbers<[1], [1], [0], [0], [0, 0, 1, 0], [], []>} : vector<8x32xbf16>, vector<8x32xbf16>, vector<8x8xf32> -> vector<8x8xf32>
    %318 = vector.broadcast %228 : vector<1x8xf32> to vector<8x8xf32>
    %319 = arith.addf %317, %318 : vector<8x8xf32>
    %cst_144 = arith.constant dense<0xFF800000> : vector<8xf32>
    %320 = vector.multi_reduction <maximumf>, %319, %cst_144 [1] : vector<8x8xf32> to vector<8xf32>
    %321 = vector.shape_cast %320 : vector<8xf32> to vector<8x1xf32>
    %322 = vector.broadcast %321 : vector<8x1xf32> to vector<8x8xf32>
    %323 = arith.subf %319, %322 : vector<8x8xf32>
    %324 = math.exp %323 : vector<8x8xf32>
    %cst_145 = arith.constant dense<0.000000e+00> : vector<8xf32>
    %325 = vector.multi_reduction <add>, %324, %cst_145 [1] : vector<8x8xf32> to vector<8xf32>
    %326 = vector.shape_cast %325 : vector<8xf32> to vector<8x1xf32>
    %327 = tpu.reciprocal %326 {approx = true} : vector<8x1xf32> -> vector<8x1xf32>
    %328 = vector.broadcast %327 : vector<8x1xf32> to vector<8x8xf32>
    %329 = arith.mulf %324, %328 : vector<8x8xf32>
    %cst_146 = arith.constant 0.000000e+00 : f32
    %330 = vector.shape_cast %306 : vector<1x32xi1> to vector<1x32xi1>
    %331 = vector.broadcast %330 : vector<1x32xi1> to vector<8x32xi1>
    %332 = vector.broadcast %cst_146 : f32 to vector<8x32xf32>
    %333 = arith.select %331, %224, %332 : vector<8x32xi1>, vector<8x32xf32>
    %334 = arith.truncf %329 : vector<8x8xf32> to vector<8x8xbf16>
    %335 = arith.truncf %333 : vector<8x32xf32> to vector<8x32xbf16>
    %cst_147 = arith.constant dense<0.000000e+00> : vector<8x32xf32>
    %336 = tpu.matmul %334, %335, %cst_147 {dimension_numbers = #tpu.dot_dimension_numbers<[1], [0], [0], [1], [0, 0, 1, 1], [], []>} : vector<8x8xbf16>, vector<8x32xbf16>, vector<8x32xf32> -> vector<8x32xf32>
    %337 = arith.addf %301, %336 : vector<8x32xf32>
    %c24_i32_148 = arith.constant 24 : i32
    %338 = vector.broadcast %c24_i32_148 : i32 to vector<1x32xi32>
    %339 = arith.cmpi sge, %222, %338 : vector<1x32xi32>
    %c32_i32 = arith.constant 32 : i32
    %340 = vector.broadcast %c32_i32 : i32 to vector<1x32xi32>
    %341 = arith.cmpi slt, %222, %340 : vector<1x32xi32>
    %342 = arith.andi %339, %341 : vector<1x32xi1>
    %cst_149 = arith.constant 0.000000e+00 : f32
    %343 = vector.shape_cast %342 : vector<1x32xi1> to vector<1x32xi1>
    %344 = vector.broadcast %343 : vector<1x32xi1> to vector<8x32xi1>
    %345 = vector.broadcast %cst_149 : f32 to vector<8x32xf32>
    %346 = arith.select %344, %125, %345 : vector<8x32xi1>, vector<8x32xf32>
    %cst_150 = arith.constant 0.000000e+00 : f32
    %347 = vector.shape_cast %342 : vector<1x32xi1> to vector<1x32xi1>
    %348 = vector.broadcast %347 : vector<1x32xi1> to vector<8x32xi1>
    %349 = vector.broadcast %cst_150 : f32 to vector<8x32xf32>
    %350 = arith.select %348, %173, %349 : vector<8x32xi1>, vector<8x32xf32>
    %351 = arith.truncf %346 : vector<8x32xf32> to vector<8x32xbf16>
    %352 = arith.truncf %350 : vector<8x32xf32> to vector<8x32xbf16>
    %cst_151 = arith.constant dense<0.000000e+00> : vector<8x8xf32>
    %353 = tpu.matmul %351, %352, %cst_151 {dimension_numbers = #tpu.dot_dimension_numbers<[1], [1], [0], [0], [0, 0, 1, 0], [], []>} : vector<8x32xbf16>, vector<8x32xbf16>, vector<8x8xf32> -> vector<8x8xf32>
    %354 = vector.broadcast %228 : vector<1x8xf32> to vector<8x8xf32>
    %355 = arith.addf %353, %354 : vector<8x8xf32>
    %cst_152 = arith.constant dense<0xFF800000> : vector<8xf32>
    %356 = vector.multi_reduction <maximumf>, %355, %cst_152 [1] : vector<8x8xf32> to vector<8xf32>
    %357 = vector.shape_cast %356 : vector<8xf32> to vector<8x1xf32>
    %358 = vector.broadcast %357 : vector<8x1xf32> to vector<8x8xf32>
    %359 = arith.subf %355, %358 : vector<8x8xf32>
    %360 = math.exp %359 : vector<8x8xf32>
    %cst_153 = arith.constant dense<0.000000e+00> : vector<8xf32>
    %361 = vector.multi_reduction <add>, %360, %cst_153 [1] : vector<8x8xf32> to vector<8xf32>
    %362 = vector.shape_cast %361 : vector<8xf32> to vector<8x1xf32>
    %363 = tpu.reciprocal %362 {approx = true} : vector<8x1xf32> -> vector<8x1xf32>
    %364 = vector.broadcast %363 : vector<8x1xf32> to vector<8x8xf32>
    %365 = arith.mulf %360, %364 : vector<8x8xf32>
    %cst_154 = arith.constant 0.000000e+00 : f32
    %366 = vector.shape_cast %342 : vector<1x32xi1> to vector<1x32xi1>
    %367 = vector.broadcast %366 : vector<1x32xi1> to vector<8x32xi1>
    %368 = vector.broadcast %cst_154 : f32 to vector<8x32xf32>
    %369 = arith.select %367, %224, %368 : vector<8x32xi1>, vector<8x32xf32>
    %370 = arith.truncf %365 : vector<8x8xf32> to vector<8x8xbf16>
    %371 = arith.truncf %369 : vector<8x32xf32> to vector<8x32xbf16>
    %cst_155 = arith.constant dense<0.000000e+00> : vector<8x32xf32>
    %372 = tpu.matmul %370, %371, %cst_155 {dimension_numbers = #tpu.dot_dimension_numbers<[1], [0], [0], [1], [0, 0, 1, 1], [], []>} : vector<8x8xbf16>, vector<8x32xbf16>, vector<8x32xf32> -> vector<8x32xf32>
    %373 = arith.addf %337, %372 : vector<8x32xf32>
    %c0_156 = arith.constant 0 : index
    %c0_157 = arith.constant 0 : index
    %374 = vector.load %arg12[%c0_156, %c0_157] : memref<32x32xbf16, #tpu.memory_space<vmem>>, vector<32x32xbf16>
    %375 = arith.truncf %373 : vector<8x32xf32> to vector<8x32xbf16>
    %cst_158 = arith.constant dense<0.000000e+00> : vector<8x32xf32>
    %376 = tpu.matmul %375, %374, %cst_158 {dimension_numbers = #tpu.dot_dimension_numbers<[1], [0], [0], [1], [0, 0, 1, 1], [], []>} : vector<8x32xbf16>, vector<32x32xbf16>, vector<8x32xf32> -> vector<8x32xf32>
    %c0_159 = arith.constant 0 : index
    %c0_160 = arith.constant 0 : index
    %377 = vector.load %arg13[%c0_159, %c0_160] : memref<1x32xf32, #tpu.memory_space<vmem>>, vector<1x32xf32>
    %378 = vector.broadcast %377 : vector<1x32xf32> to vector<8x32xf32>
    %379 = arith.addf %376, %378 : vector<8x32xf32>
    %380 = vector.broadcast %5 : vector<8x1xf32> to vector<8x32xf32>
    %381 = arith.mulf %379, %380 : vector<8x32xf32>
    %382 = vector.broadcast %5 : vector<8x1xf32> to vector<8x32xf32>
    %383 = arith.mulf %64, %382 : vector<8x32xf32>
    %384 = arith.addf %383, %381 : vector<8x32xf32>
    %c0_161 = arith.constant 0 : index
    %c0_162 = arith.constant 0 : index
    %385 = vector.load %arg14[%c0_161, %c0_162] : memref<1x32xf32, #tpu.memory_space<vmem>>, vector<1x32xf32>
    %c0_163 = arith.constant 0 : index
    %c0_164 = arith.constant 0 : index
    %386 = vector.load %arg15[%c0_163, %c0_164] : memref<1x32xf32, #tpu.memory_space<vmem>>, vector<1x32xf32>
    %cst_165 = arith.constant dense<0.000000e+00> : vector<8xf32>
    %387 = vector.multi_reduction <add>, %384, %cst_165 [1] : vector<8x32xf32> to vector<8xf32>
    %388 = vector.shape_cast %387 : vector<8xf32> to vector<8x1xf32>
    %cst_166 = arith.constant 3.200000e+01 : f32
    %389 = vector.broadcast %cst_166 : f32 to vector<8x1xf32>
    %390 = arith.divf %388, %389 : vector<8x1xf32>
    %391 = vector.broadcast %390 : vector<8x1xf32> to vector<8x32xf32>
    %392 = arith.subf %384, %391 : vector<8x32xf32>
    %393 = arith.mulf %392, %392 : vector<8x32xf32>
    %cst_167 = arith.constant dense<0.000000e+00> : vector<8xf32>
    %394 = vector.multi_reduction <add>, %393, %cst_167 [1] : vector<8x32xf32> to vector<8xf32>
    %395 = vector.shape_cast %394 : vector<8xf32> to vector<8x1xf32>
    %cst_168 = arith.constant 3.200000e+01 : f32
    %396 = vector.broadcast %cst_168 : f32 to vector<8x1xf32>
    %397 = arith.divf %395, %396 : vector<8x1xf32>
    %cst_169 = arith.constant 9.99999974E-6 : f32
    %398 = vector.broadcast %cst_169 : f32 to vector<8x1xf32>
    %399 = arith.addf %397, %398 : vector<8x1xf32>
    %400 = math.rsqrt %399 : vector<8x1xf32>
    %401 = vector.broadcast %400 : vector<8x1xf32> to vector<8x32xf32>
    %402 = arith.mulf %392, %401 : vector<8x32xf32>
    %403 = vector.broadcast %385 : vector<1x32xf32> to vector<8x32xf32>
    %404 = arith.mulf %402, %403 : vector<8x32xf32>
    %405 = vector.broadcast %386 : vector<1x32xf32> to vector<8x32xf32>
    %406 = arith.addf %404, %405 : vector<8x32xf32>
    %c0_170 = arith.constant 0 : index
    %c0_171 = arith.constant 0 : index
    %407 = vector.load %arg16[%c0_170, %c0_171] : memref<32x128xbf16, #tpu.memory_space<vmem>>, vector<32x128xbf16>
    %408 = arith.truncf %406 : vector<8x32xf32> to vector<8x32xbf16>
    %cst_172 = arith.constant dense<0.000000e+00> : vector<8x128xf32>
    %409 = tpu.matmul %408, %407, %cst_172 {dimension_numbers = #tpu.dot_dimension_numbers<[1], [0], [0], [1], [0, 0, 1, 1], [], []>} : vector<8x32xbf16>, vector<32x128xbf16>, vector<8x128xf32> -> vector<8x128xf32>
    %c0_173 = arith.constant 0 : index
    %c0_174 = arith.constant 0 : index
    %410 = vector.load %arg17[%c0_173, %c0_174] : memref<1x128xf32, #tpu.memory_space<vmem>>, vector<1x128xf32>
    %411 = vector.broadcast %410 : vector<1x128xf32> to vector<8x128xf32>
    %412 = arith.addf %409, %411 : vector<8x128xf32>
    %cst_175 = arith.constant 5.000000e-01 : f32
    %413 = vector.broadcast %cst_175 : f32 to vector<8x128xf32>
    %414 = arith.mulf %413, %412 : vector<8x128xf32>
    %415 = arith.mulf %412, %412 : vector<8x128xf32>
    %416 = arith.mulf %415, %412 : vector<8x128xf32>
    %cst_176 = arith.constant 4.471500e-02 : f32
    %417 = vector.broadcast %cst_176 : f32 to vector<8x128xf32>
    %418 = arith.mulf %417, %416 : vector<8x128xf32>
    %419 = arith.addf %412, %418 : vector<8x128xf32>
    %cst_177 = arith.constant 0.797884583 : f32
    %420 = vector.broadcast %cst_177 : f32 to vector<8x128xf32>
    %421 = arith.mulf %420, %419 : vector<8x128xf32>
    %422 = math.tanh %421 : vector<8x128xf32>
    %cst_178 = arith.constant 1.000000e+00 : f32
    %423 = vector.broadcast %cst_178 : f32 to vector<8x128xf32>
    %424 = arith.addf %423, %422 : vector<8x128xf32>
    %425 = arith.mulf %414, %424 : vector<8x128xf32>
    %c0_179 = arith.constant 0 : index
    %c0_180 = arith.constant 0 : index
    %426 = vector.load %arg18[%c0_179, %c0_180] : memref<128x32xbf16, #tpu.memory_space<vmem>>, vector<128x32xbf16>
    %427 = arith.truncf %425 : vector<8x128xf32> to vector<8x128xbf16>
    %cst_181 = arith.constant dense<0.000000e+00> : vector<8x32xf32>
    %428 = tpu.matmul %427, %426, %cst_181 {dimension_numbers = #tpu.dot_dimension_numbers<[1], [0], [0], [1], [0, 0, 1, 1], [], []>} : vector<8x128xbf16>, vector<128x32xbf16>, vector<8x32xf32> -> vector<8x32xf32>
    %c0_182 = arith.constant 0 : index
    %c0_183 = arith.constant 0 : index
    %429 = vector.load %arg19[%c0_182, %c0_183] : memref<1x32xf32, #tpu.memory_space<vmem>>, vector<1x32xf32>
    %430 = vector.broadcast %429 : vector<1x32xf32> to vector<8x32xf32>
    %431 = arith.addf %428, %430 : vector<8x32xf32>
    %432 = vector.broadcast %5 : vector<8x1xf32> to vector<8x32xf32>
    %433 = arith.mulf %431, %432 : vector<8x32xf32>
    %434 = arith.addf %384, %433 : vector<8x32xf32>
    %c0_184 = arith.constant 0 : index
    %c0_185 = arith.constant 0 : index
    %c0_186 = arith.constant 0 : index
    %435 = vector.load %arg20[%c0_184, %c0_185, %c0_186] : memref<1x8x32xf32, #tpu.memory_space<vmem>>, vector<1x8x32xf32>
    %436 = vector.shape_cast %435 : vector<1x8x32xf32> to vector<8x32xf32>
    %437 = vector.shape_cast %434 : vector<8x32xf32> to vector<1x8x32xf32>
    tpu.vector_store %arg20[%c0_184, %c0_185, %c0_186], %437 {strides = array<i32>} : memref<1x8x32xf32, #tpu.memory_space<vmem>>, vector<1x8x32xf32>,
    return
  }
  func.func @transform_0(%arg0: i32) -> (i32, i32, i32) {
    %c0_i32 = arith.constant 0 : i32
    %c0_i32_0 = arith.constant 0 : i32
    %c0_i32_1 = arith.constant 0 : i32
    return %arg0, %c0_i32, %c0_i32_0 : i32, i32, i32
  }
  func.func @transform_1(%arg0: i32) -> (i32, i32, i32) {
    %c0_i32 = arith.constant 0 : i32
    %c0_i32_0 = arith.constant 0 : i32
    %c0_i32_1 = arith.constant 0 : i32
    return %arg0, %c0_i32, %c0_i32_0 : i32, i32, i32
  }
  func.func @transform_2(%arg0: i32) -> (i32, i32, i32) {
    %c0_i32 = arith.constant 0 : i32
    %c0_i32_0 = arith.constant 0 : i32
    %c0_i32_1 = arith.constant 0 : i32
    return %arg0, %c0_i32, %c0_i32_0 : i32, i32, i32
  }
  func.func @transform_3(%arg0: i32) -> (i32, i32, i32) {
    %c0_i32 = arith.constant 0 : i32
    %c0_i32_0 = arith.constant 0 : i32
    %c0_i32_1 = arith.constant 0 : i32
    return %arg0, %c0_i32, %c0_i32_0 : i32, i32, i32
  }
  func.func @transform_4(%arg0: i32) -> (i32, i32) {
    %c0_i32 = arith.constant 0 : i32
    %c0_i32_0 = arith.constant 0 : i32
    %c0_i32_1 = arith.constant 0 : i32
    return %c0_i32, %c0_i32_0 : i32, i32
  }
  func.func @transform_5(%arg0: i32) -> (i32, i32) {
    %c0_i32 = arith.constant 0 : i32
    %c0_i32_0 = arith.constant 0 : i32
    %c0_i32_1 = arith.constant 0 : i32
    return %c0_i32, %c0_i32_0 : i32, i32
  }
  func.func @transform_6(%arg0: i32) -> (i32, i32, i32, i32) {
    %c0_i32 = arith.constant 0 : i32
    %c0_i32_0 = arith.constant 0 : i32
    %c0_i32_1 = arith.constant 0 : i32
    %c0_i32_2 = arith.constant 0 : i32
    %c0_i32_3 = arith.constant 0 : i32
    return %c0_i32, %c0_i32_0, %c0_i32_1, %c0_i32_2 : i32, i32, i32, i32
  }
  func.func @transform_7(%arg0: i32) -> (i32, i32, i32) {
    %c0_i32 = arith.constant 0 : i32
    %c0_i32_0 = arith.constant 0 : i32
    %c0_i32_1 = arith.constant 0 : i32
    %c0_i32_2 = arith.constant 0 : i32
    return %c0_i32, %c0_i32_0, %c0_i32_1 : i32, i32, i32
  }
  func.func @transform_8(%arg0: i32) -> (i32, i32, i32) {
    %c0_i32 = arith.constant 0 : i32
    %c0_i32_0 = arith.constant 0 : i32
    %c0_i32_1 = arith.constant 0 : i32
    %c0_i32_2 = arith.constant 0 : i32
    return %c0_i32, %c0_i32_0, %c0_i32_1 : i32, i32, i32
  }
  func.func @transform_9(%arg0: i32) -> (i32, i32, i32) {
    %c0_i32 = arith.constant 0 : i32
    %c0_i32_0 = arith.constant 0 : i32
    %c0_i32_1 = arith.constant 0 : i32
    %c0_i32_2 = arith.constant 0 : i32
    return %c0_i32, %c0_i32_0, %c0_i32_1 : i32, i32, i32
  }
  func.func @transform_10(%arg0: i32) -> (i32, i32, i32) {
    %c0_i32 = arith.constant 0 : i32
    %c0_i32_0 = arith.constant 0 : i32
    %c0_i32_1 = arith.constant 0 : i32
    %c0_i32_2 = arith.constant 0 : i32
    return %c0_i32, %c0_i32_0, %c0_i32_1 : i32, i32, i32
  }
  func.func @transform_11(%arg0: i32) -> (i32, i32) {
    %c0_i32 = arith.constant 0 : i32
    %c0_i32_0 = arith.constant 0 : i32
    %c0_i32_1 = arith.constant 0 : i32
    return %c0_i32, %c0_i32_0 : i32, i32
  }
  func.func @transform_12(%arg0: i32) -> (i32, i32) {
    %c0_i32 = arith.constant 0 : i32
    %c0_i32_0 = arith.constant 0 : i32
    %c0_i32_1 = arith.constant 0 : i32
    return %c0_i32, %c0_i32_0 : i32, i32
  }
  func.func @transform_13(%arg0: i32) -> (i32, i32) {
    %c0_i32 = arith.constant 0 : i32
    %c0_i32_0 = arith.constant 0 : i32
    %c0_i32_1 = arith.constant 0 : i32
    return %c0_i32, %c0_i32_0 : i32, i32
  }
  func.func @transform_14(%arg0: i32) -> (i32, i32) {
    %c0_i32 = arith.constant 0 : i32
    %c0_i32_0 = arith.constant 0 : i32
    %c0_i32_1 = arith.constant 0 : i32
    return %c0_i32, %c0_i32_0 : i32, i32
  }
  func.func @transform_15(%arg0: i32) -> (i32, i32) {
    %c0_i32 = arith.constant 0 : i32
    %c0_i32_0 = arith.constant 0 : i32
    %c0_i32_1 = arith.constant 0 : i32
    return %c0_i32, %c0_i32_0 : i32, i32
  }
  func.func @transform_16(%arg0: i32) -> (i32, i32) {
    %c0_i32 = arith.constant 0 : i32
    %c0_i32_0 = arith.constant 0 : i32
    %c0_i32_1 = arith.constant 0 : i32
    return %c0_i32, %c0_i32_0 : i32, i32
  }
  func.func @transform_17(%arg0: i32) -> (i32, i32) {
    %c0_i32 = arith.constant 0 : i32
    %c0_i32_0 = arith.constant 0 : i32
    %c0_i32_1 = arith.constant 0 : i32
    return %c0_i32, %c0_i32_0 : i32, i32
  }
  func.func @transform_18(%arg0: i32) -> (i32, i32) {
    %c0_i32 = arith.constant 0 : i32
    %c0_i32_0 = arith.constant 0 : i32
    %c0_i32_1 = arith.constant 0 : i32
    return %c0_i32, %c0_i32_0 : i32, i32
  }
  func.func @transform_19(%arg0: i32) -> (i32, i32, i32) {
    %c0_i32 = arith.constant 0 : i32
    %c0_i32_0 = arith.constant 0 : i32
    %c0_i32_1 = arith.constant 0 : i32
    return %arg0, %c0_i32, %c0_i32_0 : i32, i32, i32
  }
}

</mosaic_0001>

<bundles_post_ra>
// kernel: fwd.5
= control target key start
LH: loop header
LB: loop body
LE: loop exit
PB: predicated region body
PF: predicated region fallthrough
CT: control target
= control target key end

     0   :  { %s1103_s21 = smov 0   ;;  %s1247_s0 = inlined_call_operand.vmem [shape: f32[2,32,8], index: 0, kind: input, shape index: {}]   ;;  %s1248_s1 = inlined_call_operand.vmem [shape: f32[2,32,1], index: 1, kind: input, shape index: {}]   ;;  %s1249_s2 = inlined_call_operand.vmem [shape: bf16[3,8,32], index: 2, kind: input, shape index: {}]   ;;  %s1250_s3 = inlined_call_operand.vmem [shape: f32[1,32], index: 3, kind: input, shape index: {}]   ;;  %s1251_s4 = inlined_call_operand.vmem [shape: bf16[3,32,32], index: 4, kind: input, shape index: {}]   ;;  %s1252_s5 = inlined_call_operand.vmem [shape: f32[1,32], index: 5, kind: input, shape index: {}]   ;;  %s1253_s6 = inlined_call_operand.vmem [shape: f32[2,32,32], index: 6, kind: output, shape index: {}]  }
   0x1 LB: > { %s914_s22 = sadd.s32 4294967295, %s1065_s21   ;;  %p918_p0 = scmp.ge.s32.totalorder %s1065_s21, 1  ;;  %s1065_s21 = sphi %s1103_s21, %s16_s21  }
   0x2   : > { %p222_p1 = scmp.lt.s32.totalorder %s1065_s21, 3 }
   0x4   : > { %p223_p2 = pnand %p918_p0, %p222_p1 }
   0x5   : > { %v925_v0 = vld [vmem:[%s1249_s2 + $0x4] sm:$0xf] (!%p223_p2)  ;;  %vm329_vm0 = vcmask (!%p223_p2), 1043456   ;;  %p257_p3 = scmp.lt.s32.totalorder (!%p223_p2), %s914_s22, 1  ;;  %v285_v1 = vlaneseq (!%p223_p2)  ;;  %v315_v3 = vld [vmem:[%s1249_s2] sm:$0xf] (!%p223_p2) }
   0x6   : > { %226 = sbr.rel (%p223_p2) target bundleno = 514 (0x202), region = 44  ;;  %1039 = vmatprep.subr.msk.bf16.mxu0 (!%p223_p2), %vm329_vm0, %v925_v0  ;;  %v331_v2 = vsel (!%p223_p2), %vm329_vm0, %v925_v0, 0  ;;  %v1067_v4 = vmov (!%p223_p2), 0   ;;  %vm322_vm1 = vcmask (!%p223_p2), 64512   ;;  %v389_v18 = vsel (!%p223_p2), %vm329_vm0, %v315_v3, 0  ;;  %v1053_v44 = vld [vmem:[%s1251_s4 + $0x10] sm:$0xff] (!%p223_p2)  }
   0x7   : > { %1051 = vset.pattern.permute.xlu0 (!%p223_p2), %v1067_v4  ;;  %982 = vmatpush3.bf16.msra.mxu0 (!%p223_p2), %v331_v2  ;;  %v1119_v5 = vshrl.u32 (!%p223_p2), %v285_v1, 7  ;;  %v930_v19 = vld [vmem:[%s1249_s2 + $0x8] sm:$0xf] (!%p223_p2)  ;;  %v1054_v45 = vld [vmem:[%s1251_s4 + $0x18] sm:$0xff] (!%p223_p2)   ;;  %v1055_v46 = vld [vmem:[%s1251_s4] sm:$0xff] (!%p223_p2)   ;;  %vm611_vm6 = vcmask (!%p223_p2), 261120  }
   0x8   : > { %1052 = vset.pattern.permute.xlu1 (!%p223_p2), %v1067_v4  ;;  %1040 = vmatprep.subr.msk.bf16.mxu0 (!%p223_p2), %vm329_vm0, %v315_v3  ;;  %v480_v38 = vsel (!%p223_p2), %vm329_vm0, %v930_v19, 0  ;;  %v933_v48 = vld [vmem:[%s1250_s3] ss:$0 sm:$0xff] (!%p223_p2) }
   0x9   : > { %v1125_v6 = vadd.s32 (!%p223_p2), 4294967295, %v1119_v5  ;;  %vm287_vm2 = vcmp.lt.s32.totalorder (!%p223_p2), %v1119_v5, 1  ;;  %vm444_vm4 = vcmp.lt.s32.totalorder (!%p223_p2), %v1119_v5, 7  ;;  %v294_v34 = vadd.s32 (!%p223_p2), 24, %v1119_v5  ;;  %999 = vmatprep.subr.bf16.mxu1 (!%p223_p2), %v1053_v44  ;;  %v1058_v5 = vld [vmem:[%s1251_s4 + $0x28] sm:$0xff] (!%p223_p2)  }
   0xa   : > { %1000 = vmatpush3.bf16.msra.mxu1 (!%p223_p2), %v1053_v44 }
   0xb   : > { %vm299_vm3 = vcmp.ge.s32.totalorder (!%p223_p2), %v1125_v6, 0  ;;  %v1162_v39 = vadd.s32 (!%p223_p2), 1, %v294_v34  ;;  %1001 = vmatprep.subr.bf16.mxu1 (!%p223_p2), %v1054_v45  ;;  %v1057_v6 = vld [vmem:[%s1251_s4 + $0x20] sm:$0xff] (!%p223_p2)  }
   0xd   : > { %s1255_s22 = smov (!%p257_p3, %s914_s22), 1  ;;  %vm460_vm5 = vcmp.lt.s32.totalorder %v1162_v39, 32 }
   0xe   : > { %s1122_s27 = sshll.u32 %s1255_s22, 5  ;;  %1002 = vmatpush3.bf16.msra.mxu1 %v1054_v45 }
   0xf   : > { %s261_s30 = scalar_lea.vmem %s1247_s0, %s1122_s27  ;;  %s266_s9 = scalar_lea.vmem %s1248_s1, %s1122_s27  ;;  %1007 = vmatprep.subr.bf16.mxu1 %v1055_v46 }
  0x10   : > { %v273_v7 = vld [vmem:[%s261_s30] sm:$0xff]  ;;  %v274_v8 = vld [vmem:[%s261_s30 + $0x8] sm:$0xff]  ;;  %v275_v9 = vld [vmem:[%s261_s30 + $0x10] sm:$0xff]  ;;  %s271_s8 = scalar_lea.vmem %s1253_s6, %s1122_s27 }
  0x11   : > { %v281_v10 = vrot.slane %v273_v7, 7  ;;  %v282_v11 = vrot.slane %v274_v8, 7  ;;  %v320_v12 = vpack.c.bf16 %v274_v8, %v273_v7  ;;  %v276_v13 = vld [vmem:[%s261_s30 + $0x18] sm:$0xff]  ;;  %v277_v14 = vld [vmem:[%s266_s9] sm:$0xff]  ;;  %v279_v15 = vld [vmem:[%s266_s9 + $0x10] sm:$0xff]  ;;  %v283_v24 = vrot.slane %v275_v9, 7 }
  0x12   : > { %v284_v16 = vrot.slane %v276_v13, 7  ;;  %v321_v17 = vpack.c.bf16 %v276_v13, %v275_v9  ;;  %548 = vperm.xlu0 %1051, %v277_v14   ;;  %558 = vperm.xlu1 %1052, %v279_v15   ;;  %v278_v21 = vld [vmem:[%s266_s9 + $0x8] sm:$0xff]  ;;  %v280_v22 = vld [vmem:[%s266_s9 + $0x18] sm:$0xff]  ;;  %v440_v26 = vrot.slane %v273_v7, 1  ;;  %v441_v27 = vrot.slane %v274_v8, 1 }
  0x13   : > { %983 = vmatprep.mubr.msk.bf16.mxu0 %vm322_vm1, %v320_v12  ;;  %v290_v20 = vsel %vm287_vm2, %v281_v10, %v282_v11  ;;  %v442_v28 = vrot.slane %v275_v9, 1  ;;  %v289_v31 = vsel %vm287_vm2, %v282_v11, %v283_v24  ;;  %v443_v37 = vrot.slane %v276_v13, 1 }
  0x14   : > { %984 = vmatmul.mubr.msk.bf16.vlgmr.msra.gmra.mrb[0].mxu0 %vm322_vm1, %v321_v17  ;;  %v291_v23 = vsel %vm287_vm2, %v284_v16, %v281_v10  ;;  %v288_v30 = vsel %vm287_vm2, %v283_v24, %v284_v16  ;;  %v447_v33 = vsel %vm444_vm4, %v440_v26, %v441_v27 }
  0x15   : > { %988 = vmatpush3.bf16.msra.mxu0 %v389_v18  ;;  %v311_v25 = vsel %vm299_vm3, %v291_v23, 0.0  ;;  %v446_v32 = vsel %vm444_vm4, %v441_v27, %v442_v28  ;;  %v317_v35 = vpack.c.bf16 %v288_v30, %v289_v31  ;;  %v448_v40 = vsel %vm444_vm4, %v443_v37, %v440_v26  ;;  %v954_v31 = vld [vmem:[%s1252_s5] ss:$0 sm:$0xff] }
  0x16   : > { %v316_v29 = vpack.c.bf16 %v290_v20, %v311_v25  ;;  %1041 = vmatprep.subr.msk.bf16.mxu0 %vm329_vm0, %v930_v19  ;;  %553 = vperm.xlu0 %1051, %v278_v21   ;;  %v471_v36 = vpack.c.bf16 %v446_v32, %v447_v33  ;;  %v445_v41 = vsel %vm444_vm4, %v442_v28, %v443_v37  ;;  %v468_v42 = vsel %vm460_vm5, %v448_v40, 0.0  ;;  %v1056_v20 = vld [vmem:[%s1251_s4 + $0x8] sm:$0xff]  }
  0x17   : > { %563 = vperm.xlu1 %1052, %v280_v22   ;;  %v472_v43 = vpack.c.bf16 %v468_v42, %v445_v41 }
  0x18   : > { %989 = vmatprep.mubr.msk.bf16.mxu0 %vm322_vm1, %v316_v29 }
  0x20   : > { %990 = vmatmul.mubr.msk.bf16.vlgmr.msra.gmra.mrb[0].mxu0 %vm322_vm1, %v317_v35 }
  0x21   : > { %994 = vmatpush3.bf16.msra.mxu0 %v480_v38  ;;  %995 = vmatprep.mubr.msk.bf16.mxu0 %vm322_vm1, %v471_v36 }
  0x2c   : > { %996 = vmatmul.mubr.msk.bf16.vlgmr.msra.gmra.mrb[0].mxu0 %vm322_vm1, %v472_v43 }
  0x91   : > { %v1183_v47 = vpop.permute.xlu1 %558  ;;  %v1188_v49 = vpop.permute.xlu0 %548 }
  0x95   : > { %v554_v62 = vpop.permute.xlu0 %553 }
  0x96   : > { %v1192_v59 = vpop.permute.xlu1 %563 }
  0xff   : > { %v997_v50 = vpop.f32.mrb[0].mxu0 }
 0x100   : > { %v544_v51 = vadd.f32 %v997_v50, %v933_v48  ;;  %v516_v52 = vpop.f32.mrb[1].mxu0 }
 0x101   : > { %v542_v53 = vadd.f32 %v933_v48, %v516_v52  ;;  %v998_v54 = vpop.f32.mrb[2].mxu0 }
 0x102   : > { %v568_v55 = vmul.f32 %v1183_v47, %v544_v51  ;;  %v545_v56 = vadd.f32 %v998_v54, %v933_v48  ;;  %v519_v57 = vpop.f32.mrb[3].mxu0 }
 0x103   : > { %v566_v58 = vmul.f32 %v1188_v49, %v542_v53  ;;  %v543_v60 = vadd.f32 %v933_v48, %v519_v57 }
 0x104   : > { %v572_v61 = vmax.f32 %v568_v55, 0.0  ;;  %v569_v63 = vmul.f32 %v1192_v59, %v545_v56 }
 0x105   : > { %v570_v0 = vmax.f32 %v566_v58, 0.0  ;;  %v567_v1 = vmul.f32 %v554_v62, %v543_v60 }
 0x106   : > { %v573_v2 = vmax.f32 %v569_v63, 0.0  ;;  %v576_v3 = vrot.slane %v572_v61, 7  ;;  %v736_v9 = vrot.slane %v572_v61, 1 }
 0x107   : > { %v574_v4 = vrot.slane %v570_v0, 7  ;;  %v734_v7 = vrot.slane %v570_v0, 1  ;;  %v571_v8 = vmax.f32 %v567_v1, 0.0 }
 0x108   : > { %v577_v10 = vrot.slane %v573_v2, 7  ;;  %v737_v11 = vrot.slane %v573_v2, 1  ;;  %v598_v12 = vpack.c.bf16 %v573_v2, %v572_v61 }
 0x109   : > { %v575_v13 = vrot.slane %v571_v8, 7  ;;  %v735_v14 = vrot.slane %v571_v8, 1  ;;  %v597_v15 = vpack.c.bf16 %v571_v8, %v570_v0 }
 0x10a   : > { %v578_v16 = vsel %vm287_vm2, %v576_v3, %v577_v10  ;;  %v738_v17 = vsel %vm444_vm4, %v736_v9, %v737_v11  ;;  %v741_v18 = vsel %vm444_vm4, %v737_v11, %v734_v7  ;;  %v581_v19 = vsel %vm287_vm2, %v577_v10, %v574_v4 }
 0x10b   : > { %v579_v21 = vsel %vm287_vm2, %v575_v13, %v576_v3  ;;  %1003 = vmatprep.mubr.msk.bf16.mxu1 %vm611_vm6, %v597_v15  ;;  %v580_v22 = vsel %vm287_vm2, %v574_v4, %v575_v13  ;;  %v582_v23 = vsel %vm299_vm3, %v581_v19, 0.0  ;;  %v739_v24 = vsel %vm444_vm4, %v735_v14, %v736_v9 }
 0x10c   : > { %1004 = vmatmul.mubr.msk.bf16.vlgmr.msra.gmra.mrb[0].mxu1 %vm611_vm6, %v598_v12  ;;  %v590_v25 = vpack.c.bf16 %v580_v22, %v582_v23  ;;  %v591_v26 = vpack.c.bf16 %v578_v16, %v579_v21  ;;  %v740_v27 = vsel %vm444_vm4, %v734_v7, %v735_v14  ;;  %v745_v28 = vsel %vm460_vm5, %v741_v18, 0.0 }
 0x10d   : > { %1008 = vmatpush3.bf16.msra.mxu1 %v1055_v46  ;;  %v751_v29 = vpack.c.bf16 %v739_v24, %v740_v27  ;;  %v752_v30 = vpack.c.bf16 %v745_v28, %v738_v17 }
 0x10e   : > { %1011 = vmatprep.mubr.msk.bf16.mxu1 %vm611_vm6, %v590_v25  ;;  %1009 = vmatprep.subr.bf16.mxu1 %v1056_v20 }
 0x111   : > { %1010 = vmatpush3.bf16.msra.mxu1 %v1056_v20 }
 0x112   : > { %1015 = vmatprep.subr.bf16.mxu1 %v1057_v6 }
 0x118   : > { %1012 = vmatmul.mubr.msk.bf16.vlgmr.msra.gmra.mrb[0].mxu1 %vm611_vm6, %v591_v26 }
 0x119   : > { %1016 = vmatpush3.bf16.msra.mxu1 %v1057_v6  ;;  %1019 = vmatprep.mubr.msk.bf16.mxu1 %vm611_vm6, %v751_v29 }
 0x11a   : > { %1017 = vmatprep.subr.bf16.mxu1 %v1058_v5 }
 0x11d   : > { %1018 = vmatpush3.bf16.msra.mxu1 %v1058_v5 }
 0x124   : > { %1020 = vmatmul.mubr.msk.bf16.vlgmr.msra.gmra.mrb[0].mxu1 %vm611_vm6, %v752_v30 }
 0x1f7   : > { %v1021_v32 = vpop.f32.mrb[0].mxu1 }
 0x1f8   : > { %v833_v33 = vadd.f32 %v1021_v32, %v954_v31  ;;  %v805_v34 = vpop.f32.mrb[1].mxu1 }
 0x1f9   : > { %v831_v35 = vadd.f32 %v954_v31, %v805_v34  ;;  %v1022_v36 = vpop.f32.mrb[2].mxu1 }
 0x1fa   : > { %v837_v37 = vmul.f32 %v833_v33, %v1183_v47  ;;  %v834_v38 = vadd.f32 %v1022_v36, %v954_v31  ;;  %v808_v39 = vpop.f32.mrb[3].mxu1 }
 0x1fb   : > { %v835_v40 = vmul.f32 %v831_v35, %v1188_v49  ;;  %v832_v41 = vadd.f32 %v954_v31, %v808_v39 }
 0x1fc   : > { %v841_v42 = vmax.f32 %v837_v37, 0.0  ;;  %v838_v43 = vmul.f32 %v834_v38, %v1192_v59 }
 0x1fd   : > { %v839_v44 = vmax.f32 %v835_v40, 0.0  ;;  %v836_v45 = vmul.f32 %v832_v41, %v554_v62 }
 0x1fe   : > { %845 = vst.msk [vmem:[%s271_s8 + $0x10] sm:$0xff] %vm611_vm6, %v841_v42  ;;  %v842_v46 = vmax.f32 %v838_v43, 0.0 }
 0x1ff   : > { %843 = vst.msk [vmem:[%s271_s8] sm:$0xff] %vm611_vm6, %v839_v44  ;;  %v840_v47 = vmax.f32 %v836_v45, 0.0 }
 0x200   : > { %846 = vst.msk [vmem:[%s271_s8 + $0x18] sm:$0xff] %vm611_vm6, %v842_v46 }
 0x201   : > { %844 = vst.msk [vmem:[%s271_s8 + $0x8] sm:$0xff] %vm611_vm6, %v840_v47 }
 0x202 PF: > { %s16_s21 = sadd.s32 1, %s1065_s21  }
 0x203   : > { %p13_p4 = scmp.ge.s32.totalorder %s16_s21, 4  }
 0x205   :  { %15 = sbr.rel (!%p13_p4) target bundleno = 1 (0x1), region = 81 }

// kernel: fwd.8
= control target key start
LH: loop header
LB: loop body
LE: loop exit
PB: predicated region body
PF: predicated region fallthrough
CT: control target
= control target key end

     0   :  { %s3072_s0 = inlined_call_operand.vmem [shape: f32[2,16,32], index: 0, kind: input, shape index: {}]   ;;  %s3073_s1 = inlined_call_operand.vmem [shape: f32[2,16,32], index: 1, kind: input, shape index: {}]   ;;  %s3074_s2 = inlined_call_operand.vmem [shape: f32[2,16,1], index: 2, kind: input, shape index: {}]   ;;  %s3075_s3 = inlined_call_operand.vmem [shape: f32[2,1,16], index: 3, kind: input, shape index: {}]   ;;  %s3076_s4 = inlined_call_operand.vmem [shape: f32[1,32], index: 4, kind: input, shape index: {}]   ;;  %s3077_s5 = inlined_call_operand.vmem [shape: f32[1,32], index: 5, kind: input, shape index: {}]   ;;  %s3078_s6 = inlined_call_operand.vmem [shape: f32[3,3,1,32], index: 6, kind: input, shape index: {}]   ;;  %s3079_s7 = inlined_call_operand.vmem [shape: f32[3,1,32], index: 7, kind: input, shape index: {}]   ;;  %s3080_s8 = inlined_call_operand.vmem [shape: f32[3,1,32], index: 8, kind: input, shape index: {}]   ;;  %s3081_s9 = inlined_call_operand.vmem [shape: bf16[3,32,32], index: 9, kind: input, shape index: {}]   ;;  %s3082_s10 = inlined_call_operand.vmem [shape: f32[3,1,32], index: 10, kind: input, shape index: {}]   ;;  %s3083_s11 = inlined_call_operand.vmem [shape: bf16[32,32], index: 11, kind: input, shape index: {}]   ;;  %s3084_s12 = inlined_call_operand.vmem [shape: f32[1,32], index: 12, kind: input, shape index: {}]   ;;  %s3085_s13 = inlined_call_operand.vmem [shape: f32[1,32], index: 13, kind: input, shape index: {}]   ;;  %s3086_s14 = inlined_call_operand.vmem [shape: f32[1,32], index: 14, kind: input, shape index: {}]   ;;  %s3087_s15 = inlined_call_operand.vmem [shape: bf16[32,128], index: 15, kind: input, shape index: {}]   ;;  %s3088_s16 = inlined_call_operand.vmem [shape: f32[1,128], index: 16, kind: input, shape index: {}]   ;;  %s3089_s17 = inlined_call_operand.vmem [shape: bf16[128,32], index: 17, kind: input, shape index: {}]   ;;  %s3090_s18 = inlined_call_operand.vmem [shape: f32[1,32], index: 18, kind: input, shape index: {}]   ;;  %s3091_s19 = inlined_call_operand.vmem [shape: f32[2,16,32], index: 19, kind: output, shape index: {}]  }
   0x1   :  { %3092 = sst [smem:[#allocation2_spill]] %s3072_s0  ;;  %s2645_s0 = smov 0  }
   0x2   :  { %3093 = sst [smem:[#allocation3_spill]] %s3073_s1 }
   0x3   :  { %3094 = sst [smem:[#allocation4_spill]] %s3074_s2 }
   0x4   :  { %3095 = sst [smem:[#allocation5_spill]] %s3075_s3 }
   0x5 LB: > { %s2170_s30 = sadd.s32 4294967295, %s2540_s0   ;;  %p2174_p0 = scmp.ge.s32.totalorder %s2540_s0, 1  ;;  %s2540_s0 = sphi %s2645_s0, %s29_s0  }
   0x6   : > { %p565_p1 = scmp.lt.s32.totalorder %s2540_s0, 3 }
   0x8   : > { %p566_p2 = pnand %p2174_p0, %p565_p1 }
   0x9   : > { %p634_p3 = scmp.lt.s32.totalorder (!%p566_p2), %s2170_s30, 1  ;;  %v743_v0 = vlaneseq (!%p566_p2)  ;;  %s3096_s22 = sld [smem:[#allocation5_spill]] (!%p566_p2)  ;;  %vm667_vm0 = vcmask (!%p566_p2), 261120   ;;  %v2542_v15 = vmov (!%p566_p2), 0   ;;  %v2183_v51 = vld [vmem:[%s3076_s4] ss:$0 sm:$0xff] (!%p566_p2) }
   0xa   : > { %569 = sbr.rel (%p566_p2) target bundleno = 2687 (0xa7f), region = 96  ;;  %s3097_s25 = sld [smem:[#allocation3_spill]] (!%p566_p2)  ;;  %2451 = vset.pattern.permute.xlu1 (!%p566_p2), %v2542_v15  ;;  %2450 = vset.pattern.permute.xlu0 (!%p566_p2), %v2542_v15  ;;  %v2184_v58 = vld [vmem:[%s3077_s5] ss:$0 sm:$0xff] (!%p566_p2)  ;;  %vm2544_vm3 = vmmov (!%p566_p2), 0   ;;  %vm1300_vm15 = vcmask (!%p566_p2), 130048  }
   0xb   : > { %v2659_v1 = vshrl.u32 (!%p566_p2), %v743_v0, 7  ;;  %s3098_s28 = sld [smem:[#allocation2_spill]] (!%p566_p2)  ;;  %s3099_s1 = sld [smem:[#allocation4_spill]] (!%p566_p2)  ;;  %v2185_v15 = vld [vmem:[%s3078_s6] ss:$0 sm:$0xff] (!%p566_p2) }
   0xd   : > { %v1250_v7 = vsub.s32 (!%p566_p2), 0, %v2659_v1  ;;  %v2696_v56 = vadd.s32 (!%p566_p2), 4294967295, %v2659_v1  ;;  %vm745_vm1 = vcmp.lt.s32.totalorder (!%p566_p2), %v2659_v1, 1 }
   0xf   : > { %vm751_vm2 = vcmp.ge.s32.totalorder (!%p566_p2), %v2696_v56, 0 }
  0x11   : > { %s3107_s30 = smov (!%p634_p3, %s2170_s30), 1 }
  0x12   : > { %s2653_s20 = sshll.u32 %s3107_s30, 4  ;;  %s651_s2 = scalar_lea.vmem %s3096_s22, %s3107_s30 }
  0x13   : > { %s2665_s3 = scalar_lea.vmem %s3097_s25, %s2653_s20  ;;  %v664_v2 = vld [vmem:[%s651_s2] sm:$0x1]  ;;  %s2671_s29 = scalar_lea.vmem %s3098_s28, %s2653_s20 }
  0x14   : > { %v660_v3 = vld [vmem:[%s2665_s3] sm:$0xff]  ;;  %v1234_v4 = vsub.f32 1.0, %v664_v2  ;;  %v661_v5 = vld [vmem:[%s2665_s3 + $0x8] sm:$0xff]  ;;  %s648_s22 = scalar_lea.vmem %s3099_s1, %s2653_s20  ;;  %s656_s27 = scalar_lea.vmem %s3091_s19, %s2653_s20 }
  0x15   : > { %v658_v6 = vld [vmem:[%s2671_s29] sm:$0xff]  ;;  %v711_v8 = vsel %vm667_vm0, %v660_v3, 0.0  ;;  %v659_v9 = vld [vmem:[%s2671_s29 + $0x8] sm:$0xff]  ;;  %v714_v11 = vsel %vm667_vm0, %v661_v5, 0.0 }
  0x16   : > { %v1235_v10 = vmul.f32 -1e+30, %v1234_v4  ;;  %712 = vadd.xlane.f32.xlu0 %v711_v8  ;;  %v668_v12 = vsel %vm667_vm0, %v658_v6, 0.0  ;;  %v671_v14 = vsel %vm667_vm0, %v659_v9, 0.0  ;;  %v663_v36 = vld [vmem:[%s648_s22 + $0x8] sm:$0xff]  ;;  %v662_v37 = vld [vmem:[%s648_s22] sm:$0xff] }
  0x17   : > { %669 = vadd.xlane.f32.xlu1 %v668_v12 }
  0x18   : > { %v2681_v13 = vrot.slane %v1235_v10, %v1250_v7  ;;  %v2201_v7 = vld [vmem:[%s3078_s6 + $0x5] ss:$0 sm:$0xff]  ;;  %v2218_v10 = vld [vmem:[%s3078_s6 + $0x7] ss:$0 sm:$0xff] }
  0x1a   : > { %715 = vadd.xlane.f32.xlu0 %v714_v11  ;;  %v2220_v11 = vld [vmem:[%s3078_s6 + $0x8] ss:$0 sm:$0xff] }
  0x1b   : > { %672 = vadd.xlane.f32.xlu1 %v671_v14 }
  0xa3   : > { %v713_v16 = vpop.xlane.xlu0 %712 }
  0xa4   : > { %v717_v17 = vmul.f32 0.03125, %v713_v16  ;;  %v670_v18 = vpop.xlane.xlu1 %669  ;;  %v2197_v16 = vld [vmem:[%s3078_s6 + $0x3] ss:$0 sm:$0xff] }
  0xa5   : > { %v675_v19 = vmul.f32 0.03125, %v670_v18 }
  0xa6   : > { %v719_v20 = vsub.f32 %v660_v3, %v717_v17 }
  0xa7   : > { %v716_v21 = vpop.xlane.xlu0 %715  ;;  %v677_v22 = vsub.f32 %v658_v6, %v675_v19  ;;  %v2189_v6 = vld [vmem:[%s3078_s6 + $0x2] ss:$0 sm:$0xff] }
  0xa8   : > { %v718_v23 = vmul.f32 0.03125, %v716_v21  ;;  %v721_v24 = vmul.f32 %v719_v20, %v719_v20  ;;  %v673_v25 = vpop.xlane.xlu1 %672 }
  0xa9   : > { %v676_v26 = vmul.f32 0.03125, %v673_v25  ;;  %v679_v27 = vmul.f32 %v677_v22, %v677_v22 }
  0xaa   : > { %v720_v28 = vsub.f32 %v661_v5, %v718_v23  ;;  %v723_v29 = vsel %vm667_vm0, %v721_v24, 0.0  ;;  %v2187_v5 = vld [vmem:[%s3078_s6 + $0x1] ss:$0 sm:$0xff] }
  0xab   : > { %724 = vadd.xlane.f32.xlu0 %v723_v29  ;;  %v678_v30 = vsub.f32 %v659_v9, %v676_v26  ;;  %v681_v32 = vsel %vm667_vm0, %v679_v27, 0.0  ;;  %v2199_v9 = vld [vmem:[%s3078_s6 + $0x4] ss:$0 sm:$0xff] }
  0xac   : > { %v722_v31 = vmul.f32 %v720_v28, %v720_v28 }
  0xad   : > { %v680_v33 = vmul.f32 %v678_v30, %v678_v30 }
  0xae   : > { %v726_v34 = vsel %vm667_vm0, %v722_v31, 0.0 }
  0xaf   : > { %727 = vadd.xlane.f32.xlu1 %v726_v34  ;;  %682 = vadd.xlane.f32.xlu0 %v681_v32  ;;  %v684_v35 = vsel %vm667_vm0, %v680_v33, 0.0 }
  0xb3   : > { %685 = vadd.xlane.f32.xlu1 %v684_v35 }
  0xc4   : > { %809 = vperm.xlu1 %2451, %v663_v36  }
  0xc5   : > { %804 = vperm.xlu0 %2450, %v662_v37  }
 0x138   : > { %v725_v38 = vpop.xlane.xlu0 %724 }
 0x139   : > { %v729_v39 = vmul.f32 0.03125, %v725_v38 }
 0x13b   : > { %v731_v40 = vadd.f32 1e-05, %v729_v39 }
 0x13c   : > { %v683_v41 = vpop.xlane.xlu0 %682  ;;  %v728_v42 = vpop.xlane.xlu1 %727 }
 0x13d   : > { %2470 = vrsqrt.f32 %v731_v40  ;;  %v687_v43 = vmul.f32 0.03125, %v683_v41  ;;  %v730_v44 = vmul.f32 0.03125, %v728_v42 }
 0x13f   : > { %v689_v45 = vadd.f32 1e-05, %v687_v43  ;;  %v732_v46 = vadd.f32 1e-05, %v730_v44 }
 0x140   : > { %v686_v47 = vpop.xlane.xlu1 %685 }
 0x141   : > { %2472 = vrsqrt.f32 %v689_v45  ;;  %v688_v48 = vmul.f32 0.03125, %v686_v47 }
 0x142   : > { %2474 = vrsqrt.f32 %v732_v46 }
 0x143   : > { %v690_v49 = vadd.f32 1e-05, %v688_v48 }
 0x144   : > { %v2736_v39 = vpop.permute.xlu1 %809  ;;  %v2738_v44 = vpop.permute.xlu0 %804 }
 0x145   : > { %2476 = vrsqrt.f32 %v690_v49 }
 0x147   : > { %v2471_v50 = vpop.eup %2470 }
 0x148   : > { %v735_v52 = vmul.f32 %v2471_v50, %v719_v20 }
 0x14a   : > { %v737_v54 = vmul.f32 %v2183_v51, %v735_v52 }
 0x14b   : > { %v2473_v53 = vpop.eup %2472 }
 0x14c   : > { %v2475_v55 = vpop.eup %2474  ;;  %v693_v57 = vmul.f32 %v2473_v53, %v677_v22  ;;  %v739_v63 = vadd.f32 %v2184_v58, %v737_v54  ;;  %v2216_v22 = vld [vmem:[%s3078_s6 + $0x6] ss:$0 sm:$0xff] }
 0x14d   : > { %v736_v59 = vmul.f32 %v2475_v55, %v720_v28 }
 0x14e   : > { %v701_v60 = vmul.f32 %v2183_v51, %v693_v57  ;;  %v763_v12 = vrot.slane %v739_v63, 7  ;;  %v798_v19 = vmul.f32 %v2189_v6, %v739_v63  ;;  %v956_v21 = vmul.f32 %v2201_v7, %v739_v63 }
 0x14f   : > { %v2477_v61 = vpop.eup %2476  ;;  %v738_v62 = vmul.f32 %v2183_v51, %v736_v59  ;;  %v1108_v43 = vmul.f32 %v2220_v11, %v739_v63 }
 0x150   : > { %v694_v2 = vmul.f32 %v2477_v61, %v678_v30  ;;  %v709_v3 = vadd.f32 %v2184_v58, %v701_v60 }
 0x151   : > { %v740_v4 = vadd.f32 %v2184_v58, %v738_v62 }
 0x152   : > { %v702_v8 = vmul.f32 %v2183_v51, %v694_v2  ;;  %v786_v18 = vmul.f32 %v2187_v5, %v709_v3  ;;  %v944_v25 = vmul.f32 %v2199_v9, %v709_v3  ;;  %v1096_v26 = vmul.f32 %v2218_v10, %v709_v3 }
 0x153   : > { %v764_v14 = vrot.slane %v740_v4, 7  ;;  %v1109_v17 = vmul.f32 %v2220_v11, %v740_v4  ;;  %v799_v36 = vmul.f32 %v2189_v6, %v740_v4  ;;  %v957_v54 = vmul.f32 %v2201_v7, %v740_v4 }
 0x154   : > { %v710_v20 = vadd.f32 %v2184_v58, %v702_v8 }
 0x155   : > { %v766_v23 = vsel %vm745_vm1, %v764_v14, %v763_v12  ;;  %v765_v24 = vsel %vm745_vm1, %v763_v12, %v764_v14 }
 0x156   : > { %v767_v27 = vsel %vm751_vm2, %v766_v23, 0.0  ;;  %v777_v28 = vmul.f32 %v2185_v15, %v765_v24  ;;  %v787_v29 = vmul.f32 %v2187_v5, %v710_v20  ;;  %v935_v30 = vmul.f32 %v2197_v16, %v765_v24 }
 0x157   : > { %v776_v31 = vmul.f32 %v2185_v15, %v767_v27  ;;  %v934_v32 = vmul.f32 %v2197_v16, %v767_v27  ;;  %v1086_v33 = vmul.f32 %v2216_v22, %v767_v27  ;;  %v945_v34 = vmul.f32 %v2199_v9, %v710_v20 }
 0x158   : > { %v789_v35 = vadd.f32 %v787_v29, %v777_v28  ;;  %v1087_v37 = vmul.f32 %v2216_v22, %v765_v24  ;;  %v1097_v38 = vmul.f32 %v2218_v10, %v710_v20 }
 0x159   : > { %v788_v40 = vadd.f32 %v786_v18, %v776_v31  ;;  %v946_v41 = vadd.f32 %v944_v25, %v934_v32  ;;  %v1098_v42 = vadd.f32 %v1096_v26, %v1086_v33  ;;  %v947_v50 = vadd.f32 %v945_v34, %v935_v30  ;;  %v2452_v31 = vld [vmem:[%s3081_s9] sm:$0xff]   ;;  %v2453_v33 = vld [vmem:[%s3081_s9 + $0x8] sm:$0xff]  }
 0x15a   : > { %v801_v45 = vadd.f32 %v799_v36, %v789_v35  ;;  %v1099_v46 = vadd.f32 %v1097_v38, %v1087_v37  ;;  %v2543_v32 = vmov 0.0  }
 0x15b   : > { %v800_v47 = vadd.f32 %v798_v19, %v788_v40  ;;  %v958_v48 = vadd.f32 %v956_v21, %v946_v41  ;;  %v1110_v49 = vadd.f32 %v1108_v43, %v1098_v42  ;;  %v959_v60 = vadd.f32 %v957_v54, %v947_v50  ;;  %2319 = vmatprep.subr.bf16.mxu0 %v2543_v32 }
 0x15c   : > { %v813_v51 = vmul.f32 %v2736_v39, %v801_v45  ;;  %v1111_v52 = vadd.f32 %v1109_v17, %v1099_v46  ;;  %2343 = vmatprep.subr.bf16.mxu1 %v2543_v32  ;;  %2320 = vmatpush3.bf16.msra.mxu0 %v2452_v31 }
 0x15d   : > { %v812_v53 = vmul.f32 %v2738_v44, %v800_v47  ;;  %v1112_v57 = vmul.f32 %v1110_v49, %v2738_v44  ;;  %v960_v59 = vmul.f32 %v958_v48, %v2738_v44  ;;  %v961_v63 = vmul.f32 %v959_v60, %v2736_v39  ;;  %2321 = vmatprep.subr.bf16.mxu0 %v2543_v32 }
 0x15e   : > { %v819_v55 = vsel %vm667_vm0, %v813_v51, 0.0  ;;  %v1113_v29 = vmul.f32 %v1111_v52, %v2736_v39  ;;  %2323 = vmatprep.mubr.msk.bf16.mxu0 %vm2544_vm3, %v2543_v32  ;;  %2345 = vmatprep.mubr.msk.bf16.mxu1 %vm2544_vm3, %v2543_v32  ;;  %v2190_v52 = vld [vmem:[%s3079_s7] ss:$0 sm:$0xff] }
 0x15f   : > { %v816_v58 = vsel %vm667_vm0, %v812_v53, 0.0  ;;  %820 = vadd.xlane.f32.xlu0 %v819_v55  ;;  %v1118_v61 = vsel %vm667_vm0, %v1112_v57, 0.0  ;;  %v966_v62 = vsel %vm667_vm0, %v960_v59, 0.0  ;;  %v969_v2 = vsel %vm667_vm0, %v961_v63, 0.0 }
 0x160   : > { %817 = vadd.xlane.f32.xlu1 %v816_v58  ;;  %v1121_v30 = vsel %vm667_vm0, %v1113_v29, 0.0  ;;  %2322 = vmatpush3.bf16.msra.mxu0 %v2453_v33  ;;  %v2224_v33 = vld [vmem:[%s3080_s8 + $0x2] ss:$0 sm:$0xff] }
 0x161   : > { %2327 = vmatprep.subr.bf16.mxu0 %v2543_v32 }
 0x163   : > { %1119 = vadd.xlane.f32.xlu0 %v1118_v61 }
 0x164   : > { %967 = vadd.xlane.f32.xlu1 %v966_v62 }
 0x168   : > { %970 = vadd.xlane.f32.xlu1 %v969_v2  ;;  %v2204_v2 = vld [vmem:[%s3079_s7 + $0x1] ss:$0 sm:$0xff] }
 0x1ec   : > { %v821_v3 = vpop.xlane.xlu0 %820 }
 0x1ed   : > { %v823_v4 = vmul.f32 0.03125, %v821_v3  ;;  %v818_v5 = vpop.xlane.xlu1 %817 }
 0x1ee   : > { %v822_v6 = vmul.f32 0.03125, %v818_v5  ;;  %v2454_v5 = vld [vmem:[%s3081_s9 + $0x10] sm:$0xff]  }
 0x1ef   : > { %v825_v7 = vsub.f32 %v813_v51, %v823_v4 }
 0x1f0   : > { %v2750_v8 = vsub.f32 %v812_v53, %v822_v6  ;;  %v1120_v9 = vpop.xlane.xlu0 %1119 }
 0x1f1   : > { %v1124_v10 = vmul.f32 0.03125, %v1120_v9  ;;  %v968_v11 = vpop.xlane.xlu1 %967  ;;  %v827_v12 = vmul.f32 %v825_v7, %v825_v7 }
 0x1f2   : > { %v972_v14 = vmul.f32 0.03125, %v968_v11  ;;  %v826_v17 = vmul.f32 %v2750_v8, %v2750_v8 }
 0x1f3   : > { %v2752_v15 = vsub.f32 %v1112_v57, %v1124_v10  ;;  %v831_v16 = vsel %vm667_vm0, %v827_v12, 0.0  ;;  %v2205_v10 = vld [vmem:[%s3080_s8 + $0x1] ss:$0 sm:$0xff]  ;;  %v2455_v12 = vld [vmem:[%s3081_s9 + $0x18] sm:$0xff]  }
 0x1f4   : > { %v974_v18 = vsub.f32 %v960_v59, %v972_v14  ;;  %832 = vadd.xlane.f32.xlu1 %v831_v16  ;;  %v828_v23 = vsel %vm667_vm0, %v826_v17, 0.0  ;;  %v2191_v59 = vld [vmem:[%s3080_s8] ss:$0 sm:$0xff] }
 0x1f5   : > { %v971_v19 = vpop.xlane.xlu1 %970  ;;  %v1128_v20 = vmul.f32 %v2752_v15, %v2752_v15 }
 0x1f6   : > { %v973_v21 = vmul.f32 0.03125, %v971_v19  ;;  %v976_v24 = vmul.f32 %v974_v18, %v974_v18  ;;  %v2457_v19 = vld [vmem:[%s3081_s9 + $0x28] sm:$0xff]  }
 0x1f7   : > { %v1130_v22 = vsel %vm667_vm0, %v1128_v20, 0.0 }
 0x1f8   : > { %v975_v25 = vsub.f32 %v961_v63, %v973_v21  ;;  %1131 = vadd.xlane.f32.xlu0 %v1130_v22  ;;  %829 = vadd.xlane.f32.xlu1 %v828_v23  ;;  %v978_v26 = vsel %vm667_vm0, %v976_v24, 0.0 }
 0x1fa   : > { %v977_v27 = vmul.f32 %v975_v25, %v975_v25 }
 0x1fc   : > { %979 = vadd.xlane.f32.xlu1 %v978_v26  ;;  %v981_v28 = vsel %vm667_vm0, %v977_v27, 0.0 }
 0x200   : > { %982 = vadd.xlane.f32.xlu1 %v981_v28  ;;  %v2223_v28 = vld [vmem:[%s3079_s7 + $0x2] ss:$0 sm:$0xff] }
 0x204   : > { %1122 = vadd.xlane.f32.xlu1 %v1121_v30 }
 0x281   : > { %v833_v34 = vpop.xlane.xlu1 %832 }
 0x282   : > { %v835_v35 = vmul.f32 0.03125, %v833_v34 }
 0x284   : > { %v837_v36 = vadd.f32 1e-05, %v835_v35 }
 0x285   : > { %v830_v37 = vpop.xlane.xlu1 %829  ;;  %v1132_v20 = vpop.xlane.xlu0 %1131 }
 0x286   : > { %2478 = vrsqrt.f32 %v837_v36  ;;  %v834_v38 = vmul.f32 0.03125, %v830_v37  ;;  %v1136_v21 = vmul.f32 0.03125, %v1132_v20 }
 0x288   : > { %v836_v40 = vadd.f32 1e-05, %v834_v38  ;;  %v1138_v22 = vadd.f32 1e-05, %v1136_v21  ;;  %v2192_v38 = vld [vmem:[%s3082_s10] ss:$0 sm:$0xff] }
 0x289   : > { %v980_v41 = vpop.xlane.xlu1 %979 }
 0x28a   : > { %v984_v42 = vmul.f32 0.03125, %v980_v41  ;;  %2480 = vrsqrt.f32 %v836_v40 }
 0x28c   : > { %v986_v43 = vadd.f32 1e-05, %v984_v42 }
 0x28d   : > { %v983_v45 = vpop.xlane.xlu1 %982 }
 0x28e   : > { %2482 = vrsqrt.f32 %v986_v43  ;;  %v985_v46 = vmul.f32 0.03125, %v983_v45  ;;  %v2459_v43 = vld [vmem:[%s3083_s11 + $0x8] sm:$0xff]  }
 0x290   : > { %v2479_v47 = vpop.eup %2478  ;;  %v987_v48 = vadd.f32 1e-05, %v985_v46 }
 0x291   : > { %v1123_v49 = vpop.xlane.xlu1 %1122  ;;  %v841_v50 = vmul.f32 %v2479_v47, %v825_v7 }
 0x292   : > { %2484 = vrsqrt.f32 %v987_v48  ;;  %v1125_v51 = vmul.f32 0.03125, %v1123_v49 }
 0x293   : > { %v849_v58 = vmul.f32 %v2190_v52, %v841_v50  ;;  %2486 = vrsqrt.f32 %v1138_v22 }
 0x294   : > { %v1127_v53 = vsub.f32 %v1113_v29, %v1125_v51  ;;  %v2481_v54 = vpop.eup %2480 }
 0x295   : > { %v840_v55 = vmul.f32 %v2481_v54, %v2750_v8  ;;  %v857_v4 = vadd.f32 %v2191_v59, %v849_v58 }
 0x296   : > { %v1129_v57 = vmul.f32 %v1127_v53, %v1127_v53 }
 0x297   : > { %v848_v62 = vmul.f32 %v2190_v52, %v840_v55 }
 0x298   : > { %v2483_v60 = vpop.eup %2482  ;;  %v1133_v61 = vsel %vm667_vm0, %v1129_v57, 0.0 }
 0x299   : > { %v990_v63 = vmul.f32 %v2483_v60, %v974_v18  ;;  %1134 = vadd.xlane.f32.xlu1 %v1133_v61  ;;  %v856_v3 = vadd.f32 %v2191_v59, %v848_v62  ;;  %v2456_v18 = vld [vmem:[%s3081_s9 + $0x20] sm:$0xff]  }
 0x29a   : > { %v2211_v61 = vld [vmem:[%s3082_s10 + $0x1] ss:$0 sm:$0xff] }
 0x29b   : > { %v862_v7 = vpack.c.bf16 %v857_v4, %v856_v3  ;;  %v998_v8 = vmul.f32 %v2204_v2, %v990_v63 }
 0x29c   : > { %v2485_v6 = vpop.eup %2484 }
 0x29d   : > { %v991_v9 = vmul.f32 %v2485_v6, %v975_v25  ;;  %2324 = vmatmul.mubr.msk.bf16.vlgmr.msra.gmra.mrb[0].mxu0 %vm667_vm0, %v862_v7  ;;  %v1006_v14 = vadd.f32 %v2205_v10, %v998_v8  ;;  %v2487_v26 = vpop.eup %2486 }
 0x29e   : > { %2328 = vmatpush3.bf16.msra.mxu0 %v2454_v5  ;;  %2331 = vmatprep.mubr.msk.bf16.mxu0 %vm2544_vm3, %v2543_v32  ;;  %v1142_v27 = vmul.f32 %v2487_v26, %v2752_v15  ;;  %v2826_v15 = vand.u32 127, %v743_v0 }
 0x29f   : > { %v999_v11 = vmul.f32 %v2204_v2, %v991_v9  ;;  %2329 = vmatprep.subr.bf16.mxu0 %v2543_v32 }
 0x2a0   : > { %v1150_v30 = vmul.f32 %v2223_v28, %v1142_v27  ;;  %vm1327_vm4 = vcmp.ge.s32.totalorder %v2826_v15, 8  ;;  %vm1328_vm5 = vcmp.lt.s32.totalorder %v2826_v15, 16  ;;  %vm1499_vm6 = vcmp.ge.s32.totalorder %v2826_v15, 16 }
 0x2a1   : > { %v1007_v16 = vadd.f32 %v2205_v10, %v999_v11  ;;  %vm1500_vm7 = vcmp.lt.s32.totalorder %v2826_v15, 24  ;;  %vm1629_vm8 = vcmp.ge.s32.totalorder %v2826_v15, 24  ;;  %vm1630_vm9 = vcmp.lt.s32.totalorder %v2826_v15, 32  ;;  %vm2837_vm10 = vmand %vm1327_vm4, %vm1328_vm5 }
 0x2a2   : > { %2330 = vmatpush3.bf16.msra.mxu0 %v2455_v12  ;;  %v1158_v35 = vadd.f32 %v2224_v33, %v1150_v30  ;;  %vm2841_vm11 = vmand %vm1499_vm6, %vm1500_vm7  ;;  %vm1237_vm13 = vcmp.lt.s32.totalorder %v2826_v15, 8 }
 0x2a3   : > { %v1013_v17 = vpack.c.bf16 %v1007_v16, %v1006_v14  ;;  %2335 = vmatprep.subr.bf16.mxu0 %v2543_v32  ;;  %vm2845_vm12 = vmand %vm1629_vm8, %vm1630_vm9 }
 0x2a4   : > { %vm2236_vm14 = vmpackc.low %vm2837_vm10, %vm2837_vm10 }
 0x2a5   : > { %2332 = vmatmul.mubr.msk.bf16.vlgmr.msra.gmra.mrb[4].mxu0 %vm667_vm0, %v1013_v17  ;;  %vm2240_vm4 = vmpackc.low %vm1237_vm13, %vm1237_vm13 }
 0x2a6   : > { %2339 = vmatprep.mubr.msk.bf16.mxu0 %vm2544_vm3, %v2543_v32  ;;  %2336 = vmatpush3.bf16.msra.mxu0 %v2456_v18  ;;  %vm2245_vm5 = vmpackc.low %vm2841_vm11, %vm2841_vm11 }
 0x2a7   : > { %2337 = vmatprep.subr.bf16.mxu0 %v2543_v32  ;;  %vm2250_vm6 = vmpackc.low %vm2845_vm12, %vm2845_vm12 }
 0x2aa   : > { %2338 = vmatpush3.bf16.msra.mxu0 %v2457_v19 }
 0x2ab   : > { %2349 = vmatprep.subr.bf16.mxu0 %v2543_v32 }
 0x326   : > { %v1135_v23 = vpop.xlane.xlu1 %1134 }
 0x327   : > { %v1137_v24 = vmul.f32 0.03125, %v1135_v23 }
 0x329   : > { %v1139_v25 = vadd.f32 1e-05, %v1137_v24 }
 0x32b   : > { %2488 = vrsqrt.f32 %v1139_v25  ;;  %v2230_v25 = vld [vmem:[%s3082_s10 + $0x2] ss:$0 sm:$0xff] }
 0x335   : > { %v2489_v29 = vpop.eup %2488 }
 0x336   : > { %v1143_v31 = vmul.f32 %v2489_v29, %v1127_v53 }
 0x338   : > { %v1151_v34 = vmul.f32 %v2223_v28, %v1143_v31 }
 0x33a   : > { %v1159_v36 = vadd.f32 %v2224_v33, %v1151_v34 }
 0x33c   : > { %v1165_v37 = vpack.c.bf16 %v1159_v36, %v1158_v35 }
 0x33e   : > { %2340 = vmatmul.mubr.msk.bf16.vlgmr.msra.gmra.mrb[8].mxu0 %vm667_vm0, %v1165_v37 }
 0x33f   : > { %2351 = vmatprep.mubr.msk.bf16.mxu0 %vm2544_vm3, %v2543_v32 }
 0x370   : > { %v919_v0 = vpop.f32.mrb[0].mxu0 }
 0x371   : > { %v920_v42 = vadd.f32 %v2192_v38, %v919_v0  ;;  %v2325_v45 = vpop.f32.mrb[1].mxu0 }
 0x372   : > { %v922_v46 = vpop.f32.mrb[2].mxu0 }
 0x373   : > { %v1332_v47 = vsel %vm2837_vm10, %v920_v42, 0.0  ;;  %v923_v48 = vadd.f32 %v2192_v38, %v922_v46  ;;  %v2326_v49 = vpop.f32.mrb[3].mxu0  ;;  %v1504_v50 = vsel %vm2841_vm11, %v920_v42, 0.0  ;;  %v1634_v51 = vsel %vm2845_vm12, %v920_v42, 0.0 }
 0x374   : > { %v1241_v52 = vsel %vm1237_vm13, %v920_v42, 0.0 }
 0x375   : > { %v1333_v53 = vsel %vm2837_vm10, %v923_v48, 0.0  ;;  %v1505_v54 = vsel %vm2841_vm11, %v923_v48, 0.0  ;;  %v1635_v55 = vsel %vm2845_vm12, %v923_v48, 0.0  ;;  %v1242_v57 = vsel %vm1237_vm13, %v923_v48, 0.0 }
 0x376   : > { %v1336_v58 = vpack.c.bf16 %v1333_v53, %v1332_v47  ;;  %v1508_v59 = vpack.c.bf16 %v1505_v54, %v1504_v50  ;;  %v1638_v60 = vpack.c.bf16 %v1635_v55, %v1634_v51  ;;  %v1245_v62 = vpack.c.bf16 %v1242_v57, %v1241_v52 }
 0x378   : > { %v1071_v63 = vpop.f32.mrb[4].mxu0 }
 0x379   : > { %v1072_v2 = vadd.f32 %v2211_v61, %v1071_v63  ;;  %v2333_v3 = vpop.f32.mrb[5].mxu0 }
 0x37a   : > { %v1074_v4 = vpop.f32.mrb[6].mxu0 }
 0x37b   : > { %v1075_v5 = vadd.f32 %v2211_v61, %v1074_v4  ;;  %v2334_v6 = vpop.f32.mrb[7].mxu0  ;;  %v1334_v7 = vsel %vm2837_vm10, %v1072_v2, 0.0  ;;  %v1243_v8 = vsel %vm1237_vm13, %v1072_v2, 0.0  ;;  %v1506_v9 = vsel %vm2841_vm11, %v1072_v2, 0.0 }
 0x37c   : > { %v1636_v10 = vsel %vm2845_vm12, %v1072_v2, 0.0 }
 0x37d   : > { %v1244_v11 = vsel %vm1237_vm13, %v1075_v5, 0.0  ;;  %v1335_v12 = vsel %vm2837_vm10, %v1075_v5, 0.0  ;;  %v1507_v14 = vsel %vm2841_vm11, %v1075_v5, 0.0  ;;  %v1637_v16 = vsel %vm2845_vm12, %v1075_v5, 0.0 }
 0x37e   : > { %v1246_v17 = vpack.c.bf16 %v1244_v11, %v1243_v8  ;;  %v1337_v18 = vpack.c.bf16 %v1335_v12, %v1334_v7  ;;  %v1509_v19 = vpack.c.bf16 %v1507_v14, %v1506_v9  ;;  %v1639_v20 = vpack.c.bf16 %v1637_v16, %v1636_v10 }
 0x380   : > { %v1257_v21 = vsel %vm667_vm0, %v1246_v17, 0  ;;  %v1342_v22 = vsel %vm667_vm0, %v1337_v18, 0  ;;  %v1514_v23 = vsel %vm667_vm0, %v1509_v19, 0  ;;  %v1644_v24 = vsel %vm667_vm0, %v1639_v20, 0 }
 0x381   : > { %2344 = vmatpush3.bf16.xpose.msra.mxu1 %v1257_v21  ;;  %2350 = vmatpush3.bf16.xpose.msra.mxu0 %v1342_v22 }
 0x382   : > { %2367 = vmatprep.subr.bf16.mxu0 %v2543_v32  ;;  %2355 = vmatprep.subr.bf16.mxu1 %v2543_v32 }
 0x388   : > { %2346 = vmatmul.mubr.msk.bf16.vlgmr.msra.gmra.mrb[0].mxu1 %vm667_vm0, %v1245_v62  ;;  %2352 = vmatmul.mubr.msk.bf16.vlgmr.msra.gmra.mrb[12].mxu0 %vm667_vm0, %v1336_v58 }
 0x389   : > { %2368 = vmatpush3.bf16.xpose.msra.mxu0 %v1514_v23  ;;  %2369 = vmatprep.mubr.msk.bf16.mxu0 %vm2544_vm3, %v2543_v32 }
 0x38a   : > { %2379 = vmatprep.subr.bf16.mxu0 %v2543_v32  ;;  %2357 = vmatprep.mubr.msk.bf16.mxu1 %vm2544_vm3, %v2543_v32 }
 0x390   : > { %2370 = vmatmul.mubr.msk.bf16.vlgmr.msra.gmra.mrb[16].mxu0 %vm667_vm0, %v1508_v59 }
 0x391   : > { %2380 = vmatpush3.bf16.xpose.msra.mxu0 %v1644_v24  ;;  %2381 = vmatprep.mubr.msk.bf16.mxu0 %vm2544_vm3, %v2543_v32 }
 0x392   : > { %2391 = vmatprep.subr.bf16.mxu0 %v2543_v32 }
 0x398   : > { %2382 = vmatmul.mubr.msk.bf16.vlgmr.msra.gmra.mrb[20].mxu0 %vm667_vm0, %v1638_v60 }
 0x399   : > { %2395 = vmatprep.mubr.msk.bf16.mxu0 %vm2544_vm3, %v2543_v32 }
 0x411   : > { %v1223_v26 = vpop.f32.mrb[8].mxu0 }
 0x412   : > { %v1224_v27 = vadd.f32 %v2230_v25, %v1223_v26  ;;  %v2341_v28 = vpop.f32.mrb[9].mxu0 }
 0x413   : > { %v1226_v29 = vpop.f32.mrb[10].mxu0 }
 0x414   : > { %v1227_v30 = vadd.f32 %v2230_v25, %v1226_v29  ;;  %v2342_v31 = vpop.f32.mrb[11].mxu0  ;;  %v1232_v33 = vmul.f32 %v1224_v27, %v2738_v44 }
 0x416   : > { %v1233_v34 = vmul.f32 %v1227_v30, %v2736_v39 }
 0x418   : > { %v2913_v35 = vpack.c.bf16 %v1233_v34, %v1232_v33 }
 0x41a   : > { %2356 = vmatpush3.bf16.msk.msra.mxu1 %vm2236_vm14, %v2913_v35 }
 0x41b   : > { %2361 = vmatprep.subr.bf16.mxu1 %v2543_v32 }
 0x45b   : > { %v1293_v36 = vpop.f32.mrb[0].mxu1  ;;  %v1378_v37 = vpop.f32.mrb[12].mxu0 }
 0x45c   : > { %v1294_v38 = vadd.f32 %v1293_v36, %v2681_v13  ;;  %v1379_v0 = vadd.f32 %v1378_v37, %v2681_v13  ;;  %v2347_v42 = vpop.f32.mrb[1].mxu1  ;;  %v2353_v45 = vpop.f32.mrb[13].mxu0 }
 0x45d   : > { %v1296_v46 = vpop.f32.mrb[2].mxu1  ;;  %v1381_v47 = vpop.f32.mrb[14].mxu0 }
 0x45e   : > { %v1297_v40 = vadd.f32 %v1296_v46, %v2681_v13  ;;  %v1382_v48 = vadd.f32 %v1381_v47, %v2681_v13  ;;  %v2348_v49 = vpop.f32.mrb[3].mxu1  ;;  %v2354_v50 = vpop.f32.mrb[15].mxu0  ;;  %v1385_v51 = vsel %vm1300_vm15, %v1379_v0, -inf  ;;  %v1301_v53 = vsel %vm1300_vm15, %v1294_v38, -inf }
 0x45f   : > { %1386 = vmax.xlane.f32.xlu0 %v1385_v51 }
 0x460   : > { %v1388_v52 = vsel %vm1300_vm15, %v1382_v48, -inf  ;;  %v1304_v58 = vsel %vm1300_vm15, %v1297_v40, -inf }
 0x461   : > { %1389 = vmax.xlane.f32.xlu1 %v1388_v52 }
 0x463   : > { %1302 = vmax.xlane.f32.xlu0 %v1301_v53  ;;  %v1550_v54 = vpop.f32.mrb[16].mxu0 }
 0x464   : > { %v1551_v55 = vadd.f32 %v1550_v54, %v2681_v13  ;;  %v2371_v57 = vpop.f32.mrb[17].mxu0 }
 0x465   : > { %1305 = vmax.xlane.f32.xlu1 %v1304_v58  ;;  %v1553_v59 = vpop.f32.mrb[18].mxu0  ;;  %v2458_v57 = vld [vmem:[%s3083_s11] sm:$0xff]  }
 0x466   : > { %v1554_v60 = vadd.f32 %v1553_v59, %v2681_v13  ;;  %v2372_v61 = vpop.f32.mrb[19].mxu0  ;;  %v1557_v62 = vsel %vm1300_vm15, %v1551_v55, -inf  ;;  %2392 = vmatpush3.bf16.msra.mxu0 %v2458_v57 }
 0x467   : > { %1558 = vmax.xlane.f32.xlu0 %v1557_v62  ;;  %2393 = vmatprep.subr.bf16.mxu0 %v2543_v32 }
 0x468   : > { %v1560_v63 = vsel %vm1300_vm15, %v1554_v60, -inf }
 0x469   : > { %1561 = vmax.xlane.f32.xlu1 %v1560_v63 }
 0x46a   : > { %2394 = vmatpush3.bf16.msra.mxu0 %v2459_v43 }
 0x46b   : > { %v1680_v2 = vpop.f32.mrb[20].mxu0  ;;  %2399 = vmatprep.subr.bf16.mxu0 %v2543_v32 }
 0x46c   : > { %v1681_v3 = vadd.f32 %v1680_v2, %v2681_v13  ;;  %v2383_v4 = vpop.f32.mrb[21].mxu0 }
 0x46d   : > { %v1683_v5 = vpop.f32.mrb[22].mxu0 }
 0x46e   : > { %v1684_v6 = vadd.f32 %v1683_v5, %v2681_v13  ;;  %v2384_v7 = vpop.f32.mrb[23].mxu0  ;;  %v1687_v8 = vsel %vm1300_vm15, %v1681_v3, -inf }
 0x46f   : > { %1688 = vmax.xlane.f32.xlu0 %v1687_v8 }
 0x470   : > { %v1690_v9 = vsel %vm1300_vm15, %v1684_v6, -inf }
 0x471   : > { %1691 = vmax.xlane.f32.xlu1 %v1690_v9 }
 0x4ec   : > { %v1387_v10 = vpop.xlane.xlu0 %1386 }
 0x4ed   : > { %v1391_v11 = vsub.f32 %v1379_v0, %v1387_v10 }
 0x4ee   : > { %v1390_v12 = vpop.xlane.xlu1 %1389 }
 0x4ef   : > { %v1393_v14 = vmul.f32 1.442695, %v1391_v11  ;;  %v1392_v16 = vsub.f32 %v1382_v48, %v1390_v12 }
 0x4f0   : > { %v1303_v17 = vpop.xlane.xlu0 %1302 }
 0x4f1   : > { %2490 = vpow2.f32 %v1393_v14  ;;  %v1395_v18 = vmul.f32 1.442695, %v1392_v16  ;;  %v1307_v19 = vsub.f32 %v1294_v38, %v1303_v17 }
 0x4f2   : > { %v1306_v20 = vpop.xlane.xlu1 %1305 }
 0x4f3   : > { %2492 = vpow2.f32 %v1395_v18  ;;  %v1309_v21 = vmul.f32 1.442695, %v1307_v19  ;;  %v1308_v13 = vsub.f32 %v1297_v40, %v1306_v20 }
 0x4f4   : > { %v1559_v22 = vpop.xlane.xlu0 %1558 }
 0x4f5   : > { %2494 = vpow2.f32 %v1309_v21  ;;  %v1311_v23 = vmul.f32 1.442695, %v1308_v13  ;;  %v1563_v24 = vsub.f32 %v1551_v55, %v1559_v22 }
 0x4f6   : > { %v1562_v25 = vpop.xlane.xlu1 %1561 }
 0x4f7   : > { %2496 = vpow2.f32 %v1311_v23  ;;  %v1565_v26 = vmul.f32 1.442695, %v1563_v24  ;;  %v1564_v27 = vsub.f32 %v1554_v60, %v1562_v25 }
 0x4f9   : > { %2498 = vpow2.f32 %v1565_v26  ;;  %v1567_v28 = vmul.f32 1.442695, %v1564_v27  ;;  %v2530_v27 = vld [vmem:[%s2665_s3] sm:$0xff] }
 0x4fb   : > { %v2491_v29 = vpop.eup %2490  ;;  %2500 = vpow2.f32 %v1567_v28  ;;  %v741_v28 = vrot.slane %v2530_v27, 7 }
 0x4fc   : > { %v1689_v30 = vpop.xlane.xlu0 %1688  ;;  %v1397_v31 = vsel %vm1300_vm15, %v2491_v29, 0.0 }
 0x4fd   : > { %v2493_v33 = vpop.eup %2492  ;;  %v1693_v34 = vsub.f32 %v1681_v3, %v1689_v30  ;;  %1398 = vadd.xlane.f32.xlu0 %v1397_v31 }
 0x4fe   : > { %v1692_v36 = vpop.xlane.xlu1 %1691  ;;  %v1400_v37 = vsel %vm1300_vm15, %v2493_v33, 0.0 }
 0x4ff   : > { %v2495_v38 = vpop.eup %2494  ;;  %v1695_v0 = vmul.f32 1.442695, %v1693_v34  ;;  %v1694_v42 = vsub.f32 %v1684_v6, %v1692_v36  ;;  %1401 = vadd.xlane.f32.xlu1 %v1400_v37  ;;  %v2532_v36 = vld [vmem:[%s2671_s29] sm:$0xff] }
 0x500   : > { %v1313_v45 = vsel %vm1300_vm15, %v2495_v38, 0.0 }
 0x501   : > { %v2497_v46 = vpop.eup %2496  ;;  %2502 = vpow2.f32 %v1695_v0  ;;  %v1697_v47 = vmul.f32 1.442695, %v1694_v42  ;;  %1314 = vadd.xlane.f32.xlu0 %v1313_v45  ;;  %v2254_v42 = vld [vmem:[%s3084_s12] ss:$0 sm:$0xff] }
 0x502   : > { %v1316_v40 = vsel %vm1300_vm15, %v2497_v46, 0.0 }
 0x503   : > { %v2499_v48 = vpop.eup %2498  ;;  %2504 = vpow2.f32 %v1697_v47  ;;  %1317 = vadd.xlane.f32.xlu1 %v1316_v40 }
 0x504   : > { %v1569_v49 = vsel %vm1300_vm15, %v2499_v48, 0.0 }
 0x505   : > { %v2501_v50 = vpop.eup %2500  ;;  %1570 = vadd.xlane.f32.xlu0 %v1569_v49 }
 0x506   : > { %v1572_v51 = vsel %vm1300_vm15, %v2501_v50, 0.0 }
 0x507   : > { %1573 = vadd.xlane.f32.xlu1 %v1572_v51 }
 0x50b   : > { %v2503_v52 = vpop.eup %2502 }
 0x50c   : > { %v1699_v53 = vsel %vm1300_vm15, %v2503_v52, 0.0 }
 0x50d   : > { %v2505_v54 = vpop.eup %2504  ;;  %1700 = vadd.xlane.f32.xlu0 %v1699_v53 }
 0x50e   : > { %v1702_v55 = vsel %vm1300_vm15, %v2505_v54, 0.0 }
 0x50f   : > { %1703 = vadd.xlane.f32.xlu1 %v1702_v55 }
 0x58a   : > { %v1399_v58 = vpop.xlane.xlu0 %1398 }
 0x58b   : > { %2506 = vrcp.f32 %v1399_v58 }
 0x58c   : > { %v1402_v59 = vpop.xlane.xlu1 %1401 }
 0x58d   : > { %2508 = vrcp.f32 %v1402_v59 }
 0x58e   : > { %v1315_v61 = vpop.xlane.xlu0 %1314 }
 0x590   : > { %v1318_v60 = vpop.xlane.xlu1 %1317 }
 0x591   : > { %2510 = vrcp.f32 %v1318_v60 }
 0x592   : > { %2512 = vrcp.f32 %v1315_v61  ;;  %v1571_v7 = vpop.xlane.xlu0 %1570 }
 0x594   : > { %v1574_v5 = vpop.xlane.xlu1 %1573 }
 0x595   : > { %v2507_v62 = vpop.eup %2506  ;;  %2514 = vrcp.f32 %v1574_v5 }
 0x596   : > { %v1405_v2 = vmul.f32 %v2507_v62, %v2491_v29  ;;  %2516 = vrcp.f32 %v1571_v7  ;;  %v2531_v29 = vld [vmem:[%s2665_s3 + $0x8] sm:$0xff]  ;;  %v2460_v7 = vld [vmem:[%s3087_s15] sm:$0xff]  }
 0x597   : > { %v2509_v63 = vpop.eup %2508  ;;  %v742_v30 = vrot.slane %v2531_v29, 7 }
 0x598   : > { %v1406_v3 = vmul.f32 %v2509_v63, %v2493_v33 }
 0x599   : > { %v747_v31 = vsel %vm745_vm1, %v742_v30, %v741_v28  ;;  %v746_v34 = vsel %vm745_vm1, %v741_v28, %v742_v30  ;;  %v2467_v28 = vld [vmem:[%s3089_s17 + $0x28] sm:$0xff]   ;;  %v2469_v30 = vld [vmem:[%s3089_s17 + $0x38] sm:$0xff]  }
 0x59a   : > { %v1409_v4 = vpack.c.bf16 %v1406_v3, %v1405_v2  ;;  %v1701_v14 = vpop.xlane.xlu0 %1700  ;;  %v757_v33 = vsel %vm751_vm2, %v747_v31, -1e+30  ;;  %v2260_v31 = vld [vmem:[%s3088_s16] ss:$0 sm:$0xff] }
 0x59b   : > { %v2511_v6 = vpop.eup %2510  ;;  %v759_v37 = vmax.f32 %v757_v33, %v2532_v36 }
 0x59c   : > { %2358 = vmatmul.mubr.msk.bf16.vlgmr.msra.gmra.mrb[4].mxu1 %vm1300_vm15, %v1409_v4  ;;  %v2513_v8 = vpop.eup %2512  ;;  %v1322_v9 = vmul.f32 %v2511_v6, %v2497_v46  ;;  %v1704_v11 = vpop.xlane.xlu1 %1703 }
 0x59d   : > { %2362 = vmatpush3.bf16.msk.msra.mxu1 %vm2240_vm4, %v2913_v35  ;;  %2363 = vmatprep.mubr.msk.bf16.mxu1 %vm2544_vm3, %v2543_v32  ;;  %v1321_v10 = vmul.f32 %v2513_v8, %v2495_v38  ;;  %2518 = vrcp.f32 %v1704_v11  ;;  %v2533_v38 = vld [vmem:[%s2671_s29 + $0x8] sm:$0xff]  ;;  %v761_v45 = vmax.f32 %v759_v37, %v2530_v27  ;;  %v2466_v27 = vld [vmem:[%s3089_s17 + $0x20] sm:$0xff]  }
 0x59e   : > { %2373 = vmatprep.subr.bf16.mxu1 %v2543_v32  ;;  %2520 = vrcp.f32 %v1701_v14  ;;  %v760_v0 = vmax.f32 %v746_v34, %v2533_v38  ;;  %v2461_v8 = vld [vmem:[%s3087_s15 + $0x8] sm:$0xff]  }
 0x59f   : > { %v1325_v15 = vpack.c.bf16 %v1322_v9, %v1321_v10  ;;  %v2515_v12 = vpop.eup %2514 }
 0x5a0   : > { %v2517_v16 = vpop.eup %2516  ;;  %v1578_v17 = vmul.f32 %v2515_v12, %v2501_v50  ;;  %v762_v47 = vmax.f32 %v760_v0, %v2531_v29  ;;  %v1829_v50 = vmul.f32 %v2738_v44, %v761_v45  ;;  %v2468_v29 = vld [vmem:[%s3089_s17 + $0x30] sm:$0xff]  }
 0x5a1   : > { %v1577_v18 = vmul.f32 %v2517_v16, %v2499_v48 }
 0x5a3   : > { %v1581_v41 = vpack.c.bf16 %v1578_v17, %v1577_v18  ;;  %v2258_v17 = vld [vmem:[%s3085_s13] ss:$0 sm:$0xff] }
 0x5a7   : > { %v2519_v19 = vpop.eup %2518 }
 0x5a8   : > { %2364 = vmatmul.mubr.msk.bf16.vlgmr.msra.gmra.mrb[4].mxu1 %vm1300_vm15, %v1325_v15  ;;  %v2521_v20 = vpop.eup %2520  ;;  %v1708_v21 = vmul.f32 %v2519_v19, %v2505_v54  ;;  %v1830_v54 = vmul.f32 %v2736_v39, %v762_v47 }
 0x5a9   : > { %2374 = vmatpush3.bf16.msk.msra.mxu1 %vm2245_vm5, %v2913_v35  ;;  %2375 = vmatprep.mubr.msk.bf16.mxu1 %vm2544_vm3, %v2543_v32  ;;  %v1707_v13 = vmul.f32 %v2521_v20, %v2503_v52 }
 0x5aa   : > { %2385 = vmatprep.subr.bf16.mxu1 %v2543_v32 }
 0x5ab   : > { %v1711_v22 = vpack.c.bf16 %v1708_v21, %v1707_v13  ;;  %v2259_v21 = vld [vmem:[%s3086_s14] ss:$0 sm:$0xff] }
 0x5b4   : > { %2376 = vmatmul.mubr.msk.bf16.vlgmr.msra.gmra.mrb[4].mxu1 %vm1300_vm15, %v1581_v41 }
 0x5b5   : > { %2386 = vmatpush3.bf16.msk.msra.mxu1 %vm2250_vm6, %v2913_v35  ;;  %2387 = vmatprep.mubr.msk.bf16.mxu1 %vm2544_vm3, %v2543_v32 }
 0x5b6   : > { %2407 = vmatprep.subr.bf16.mxu1 %v2543_v32 }
 0x5c0   : > { %2388 = vmatmul.mubr.msk.bf16.vlgmr.msra.gmra.mrb[4].mxu1 %vm1300_vm15, %v1711_v22 }
 0x5c1   : > { %2423 = vmatprep.mubr.msk.bf16.mxu1 %vm2544_vm3, %v2543_v32 }
 0x693   : > { %v1750_v35 = vpop.f32.mrb[4].mxu1 }
 0x694   : > { %v2389_v23 = vpop.f32.mrb[5].mxu1 }
 0x695   : > { %v1753_v24 = vpop.f32.mrb[6].mxu1  ;;  %v2462_v23 = vld [vmem:[%s3089_s17] sm:$0xff]  }
 0x696   : > { %v1763_v25 = vpack.c.bf16 %v1753_v24, %v1750_v35  ;;  %v2390_v26 = vpop.f32.mrb[7].mxu1  ;;  %2408 = vmatpush3.bf16.msra.mxu1 %v2462_v23  ;;  %v2463_v24 = vld [vmem:[%s3089_s17 + $0x8] sm:$0xff]  }
 0x697   : > { %2409 = vmatprep.subr.bf16.mxu1 %v2543_v32  ;;  %v2465_v26 = vld [vmem:[%s3089_s17 + $0x18] sm:$0xff]  }
 0x698   : > { %2396 = vmatmul.mubr.msk.bf16.vlgmr.msra.gmra.mrb[24].mxu0 %vm667_vm0, %v1763_v25  ;;  %v2464_v25 = vld [vmem:[%s3089_s17 + $0x10] sm:$0xff]  }
 0x699   : > { %2403 = vmatprep.mubr.msk.bf16.mxu0 %vm2544_vm3, %v2543_v32  ;;  %2400 = vmatpush3.bf16.msra.mxu0 %v2460_v7 }
 0x69a   : > { %2401 = vmatprep.subr.bf16.mxu0 %v2543_v32  ;;  %2410 = vmatpush3.bf16.msra.mxu1 %v2463_v24 }
 0x69b   : > { %2411 = vmatprep.subr.bf16.mxu1 %v2543_v32 }
 0x69d   : > { %2402 = vmatpush3.bf16.msra.mxu0 %v2461_v8 }
 0x69e   : > { %2412 = vmatpush3.bf16.msra.mxu1 %v2464_v25 }
 0x69f   : > { %2413 = vmatprep.subr.bf16.mxu1 %v2543_v32 }
 0x6a2   : > { %2414 = vmatpush3.bf16.msra.mxu1 %v2465_v26 }
 0x6a3   : > { %2415 = vmatprep.subr.bf16.mxu1 %v2543_v32 }
 0x6a6   : > { %2416 = vmatpush3.bf16.msra.mxu1 %v2466_v27 }
 0x6a7   : > { %2417 = vmatprep.subr.bf16.mxu1 %v2543_v32 }
 0x6aa   : > { %2418 = vmatpush3.bf16.msra.mxu1 %v2467_v28 }
 0x6ab   : > { %2419 = vmatprep.subr.bf16.mxu1 %v2543_v32 }
 0x6ae   : > { %2420 = vmatpush3.bf16.msra.mxu1 %v2468_v29 }
 0x6af   : > { %2421 = vmatprep.subr.bf16.mxu1 %v2543_v32 }
 0x6b2   : > { %2422 = vmatpush3.bf16.msra.mxu1 %v2469_v30 }
 0x76b   : > { %v1820_v46 = vpop.f32.mrb[24].mxu0 }
 0x76c   : > { %v1821_v40 = vadd.f32 %v2254_v42, %v1820_v46  ;;  %v2397_v48 = vpop.f32.mrb[25].mxu0 }
 0x76d   : > { %v1823_v49 = vpop.f32.mrb[26].mxu0 }
 0x76e   : > { %v1827_v56 = vmul.f32 %v1821_v40, %v2738_v44  ;;  %v1824_v1 = vadd.f32 %v2254_v42, %v1823_v49  ;;  %v2398_v51 = vpop.f32.mrb[27].mxu0 }
 0x770   : > { %v2994_v52 = vadd.f32 %v1829_v50, %v1827_v56  ;;  %v1828_v53 = vmul.f32 %v1824_v1, %v2736_v39 }
 0x772   : > { %v2998_v55 = vadd.f32 %v1830_v54, %v1828_v53  ;;  %v1835_v57 = vsel %vm667_vm0, %v2994_v52, 0.0 }
 0x773   : > { %1836 = vadd.xlane.f32.xlu0 %v1835_v57 }
 0x774   : > { %v1838_v58 = vsel %vm667_vm0, %v2998_v55, 0.0 }
 0x775   : > { %1839 = vadd.xlane.f32.xlu1 %v1838_v58 }
 0x800   : > { %v1837_v59 = vpop.xlane.xlu0 %1836 }
 0x801   : > { %v1841_v60 = vmul.f32 0.03125, %v1837_v59 }
 0x802   : > { %v1840_v61 = vpop.xlane.xlu1 %1839 }
 0x803   : > { %v1843_v62 = vsub.f32 %v2994_v52, %v1841_v60  ;;  %v1842_v63 = vmul.f32 0.03125, %v1840_v61 }
 0x805   : > { %v1844_v2 = vsub.f32 %v2998_v55, %v1842_v63  ;;  %v1845_v3 = vmul.f32 %v1843_v62, %v1843_v62 }
 0x807   : > { %v1847_v4 = vsel %vm667_vm0, %v1845_v3, 0.0  ;;  %v1846_v5 = vmul.f32 %v1844_v2, %v1844_v2 }
 0x808   : > { %1848 = vadd.xlane.f32.xlu0 %v1847_v4 }
 0x809   : > { %v1850_v6 = vsel %vm667_vm0, %v1846_v5, 0.0 }
 0x80a   : > { %1851 = vadd.xlane.f32.xlu1 %v1850_v6 }
 0x895   : > { %v1849_v9 = vpop.xlane.xlu0 %1848 }
 0x896   : > { %v1853_v10 = vmul.f32 0.03125, %v1849_v9 }
 0x897   : > { %v1852_v15 = vpop.xlane.xlu1 %1851 }
 0x898   : > { %v1855_v11 = vadd.f32 1e-05, %v1853_v10  ;;  %v1854_v12 = vmul.f32 0.03125, %v1852_v15 }
 0x89a   : > { %2522 = vrsqrt.f32 %v1855_v11  ;;  %v1856_v14 = vadd.f32 1e-05, %v1854_v12 }
 0x89c   : > { %2524 = vrsqrt.f32 %v1856_v14 }
 0x8a4   : > { %v2523_v16 = vpop.eup %2522 }
 0x8a5   : > { %v1859_v18 = vmul.f32 %v2523_v16, %v1843_v62  ;;  %v2264_v62 = vld [vmem:[%s3090_s18] ss:$0 sm:$0xff] }
 0x8a6   : > { %v2525_v41 = vpop.eup %2524 }
 0x8a7   : > { %v1867_v19 = vmul.f32 %v2258_v17, %v1859_v18  ;;  %v1860_v20 = vmul.f32 %v2525_v41, %v1844_v2 }
 0x8a9   : > { %v1868_v13 = vmul.f32 %v2258_v17, %v1860_v20  ;;  %v1875_v22 = vadd.f32 %v2259_v21, %v1867_v19 }
 0x8ab   : > { %v1876_v43 = vadd.f32 %v2259_v21, %v1868_v13 }
 0x8ad   : > { %v1881_v35 = vpack.c.bf16 %v1876_v43, %v1875_v22 }
 0x8af   : > { %2404 = vmatmul.mubr.msk.bf16.vlgmr.msra.gmra.mrb[28].mxu0 %vm667_vm0, %v1881_v35 }
 0x982   : > { %v1938_v33 = vpop.f32.mrb[28].mxu0 }
 0x983   : > { %v1939_v34 = vadd.f32 %v2260_v31, %v1938_v33  ;;  %v2405_v36 = vpop.f32.mrb[29].mxu0 }
 0x984   : > { %v1941_v37 = vpop.f32.mrb[30].mxu0 }
 0x985   : > { %v1947_v38 = vmul.f32 %v1939_v34, %v1939_v34  ;;  %v1942_v0 = vadd.f32 %v2260_v31, %v1941_v37  ;;  %v2406_v42 = vpop.f32.mrb[31].mxu0  ;;  %v1945_v54 = vmul.f32 0.5, %v1939_v34 }
 0x987   : > { %v1949_v45 = vmul.f32 %v1947_v38, %v1939_v34  ;;  %v1948_v46 = vmul.f32 %v1942_v0, %v1942_v0  ;;  %v1946_v57 = vmul.f32 0.5, %v1942_v0 }
 0x989   : > { %v1951_v47 = vmul.f32 0.044715, %v1949_v45  ;;  %v1950_v40 = vmul.f32 %v1948_v46, %v1942_v0 }
 0x98b   : > { %v1953_v48 = vadd.f32 %v1951_v47, %v1939_v34  ;;  %v1952_v49 = vmul.f32 0.044715, %v1950_v40 }
 0x98d   : > { %v1955_v56 = vmul.f32 0.7978846, %v1953_v48  ;;  %v1954_v32 = vadd.f32 %v1952_v49, %v1942_v0 }
 0x98f   : > { %2526 = vtanh.f32 %v1955_v56  ;;  %v1956_v50 = vmul.f32 0.7978846, %v1954_v32 }
 0x991   : > { %2528 = vtanh.f32 %v1956_v50 }
 0x999   : > { %v2527_v1 = vpop.eup %2526 }
 0x99a   : > { %v1959_v51 = vadd.f32 1.0, %v2527_v1 }
 0x99b   : > { %v2529_v53 = vpop.eup %2528 }
 0x99c   : > { %v1960_v58 = vadd.f32 1.0, %v2529_v53  ;;  %v1961_v59 = vmul.f32 %v1959_v51, %v1945_v54 }
 0x99e   : > { %v1962_v60 = vmul.f32 %v1960_v58, %v1946_v57 }
 0x9a0   : > { %v1979_v61 = vpack.c.bf16 %v1962_v60, %v1961_v59 }
 0x9a2   : > { %2424 = vmatmul.mubr.bf16.vlgmr.msra.gmra.mrb[8].mxu1 %v1979_v61 }
 0xa75   : > { %v2069_v63 = vpop.f32.mrb[8].mxu1 }
 0xa76   : > { %v2070_v2 = vadd.f32 %v2264_v62, %v2069_v63  ;;  %v2425_v3 = vpop.f32.mrb[9].mxu1 }
 0xa77   : > { %v2072_v4 = vpop.f32.mrb[10].mxu1 }
 0xa78   : > { %v2076_v5 = vmul.f32 %v2070_v2, %v2738_v44  ;;  %v2073_v6 = vadd.f32 %v2264_v62, %v2072_v4  ;;  %v2426_v7 = vpop.f32.mrb[11].mxu1 }
 0xa7a   : > { %v2078_v8 = vadd.f32 %v2076_v5, %v2994_v52  ;;  %v2077_v9 = vmul.f32 %v2073_v6, %v2736_v39 }
 0xa7c   : > { %2080 = vst.msk [vmem:[%s656_s27] sm:$0xff] %vm667_vm0, %v2078_v8  ;;  %v2079_v10 = vadd.f32 %v2077_v9, %v2998_v55 }
 0xa7e   : > { %2081 = vst.msk [vmem:[%s656_s27 + $0x8] sm:$0xff] %vm667_vm0, %v2079_v10 }
 0xa7f PF: > { %s29_s0 = sadd.s32 1, %s2540_s0  }
 0xa80   : > { %p26_p4 = scmp.ge.s32.totalorder %s29_s0, 4  }
 0xa82   :  { %28 = sbr.rel (!%p26_p4) target bundleno = 5 (0x5), region = 151 }

// kernel: fwd.6
= control target key start
LH: loop header
LB: loop body
LE: loop exit
PB: predicated region body
PF: predicated region fallthrough
CT: control target
= control target key end

     0   :  { %s3232_s27 = smov 0   ;;  %s4049_s0 = inlined_call_operand.vmem [shape: f32[2,32,32], index: 0, kind: input, shape index: {}]   ;;  %s4050_s1 = inlined_call_operand.vmem [shape: f32[2,32,1], index: 1, kind: input, shape index: {}]   ;;  %s4051_s2 = inlined_call_operand.vmem [shape: f32[2,1,32], index: 2, kind: input, shape index: {}]   ;;  %s4052_s3 = inlined_call_operand.vmem [shape: f32[1,32], index: 3, kind: input, shape index: {}]   ;;  %s4053_s4 = inlined_call_operand.vmem [shape: f32[1,32], index: 4, kind: input, shape index: {}]   ;;  %s4054_s5 = inlined_call_operand.vmem [shape: f32[3,3,1,32], index: 5, kind: input, shape index: {}]   ;;  %s4055_s6 = inlined_call_operand.vmem [shape: f32[3,1,32], index: 6, kind: input, shape index: {}]   ;;  %s4056_s7 = inlined_call_operand.vmem [shape: f32[3,1,32], index: 7, kind: input, shape index: {}]   ;;  %s4057_s8 = inlined_call_operand.vmem [shape: bf16[3,32,32], index: 8, kind: input, shape index: {}]   ;;  %s4058_s9 = inlined_call_operand.vmem [shape: f32[3,1,32], index: 9, kind: input, shape index: {}]   ;;  %s4059_s10 = inlined_call_operand.vmem [shape: bf16[32,32], index: 10, kind: input, shape index: {}]   ;;  %s4060_s11 = inlined_call_operand.vmem [shape: f32[1,32], index: 11, kind: input, shape index: {}]   ;;  %s4061_s12 = inlined_call_operand.vmem [shape: f32[1,32], index: 12, kind: input, shape index: {}]   ;;  %s4062_s13 = inlined_call_operand.vmem [shape: f32[1,32], index: 13, kind: input, shape index: {}]   ;;  %s4063_s14 = inlined_call_operand.vmem [shape: bf16[32,128], index: 14, kind: input, shape index: {}]   ;;  %s4064_s15 = inlined_call_operand.vmem [shape: f32[1,128], index: 15, kind: input, shape index: {}]   ;;  %s4065_s16 = inlined_call_operand.vmem [shape: bf16[128,32], index: 16, kind: input, shape index: {}]   ;;  %s4066_s17 = inlined_call_operand.vmem [shape: f32[1,32], index: 17, kind: input, shape index: {}]   ;;  %s4067_s18 = inlined_call_operand.vmem [shape: f32[2,32,32], index: 18, kind: output, shape index: {}]  }
   0x1   :  { %4068 = sst [smem:[#allocation2_spill]] %s4049_s0 }
   0x2   :  { %4069 = sst [smem:[#allocation3_spill]] %s4050_s1 }
   0x3   :  { %4070 = sst [smem:[#allocation4_spill]] %s4051_s2 }
   0x4 LB: > { %s2646_s28 = sadd.s32 4294967295, %s3134_s27   ;;  %p2650_p0 = scmp.ge.s32.totalorder %s3134_s27, 1  ;;  %s3134_s27 = sphi %s3232_s27, %s28_s27  }
   0x5   : > { %p530_p1 = scmp.lt.s32.totalorder %s3134_s27, 3 }
   0x7   : > { %p531_p2 = pnand %p2650_p0, %p530_p1 }
   0x8   : > { %p592_p3 = scmp.lt.s32.totalorder (!%p531_p2), %s2646_s28, 1  ;;  %vm622_vm0 = vcmask (!%p531_p2), 261120   ;;  %s4071_s19 = sld [smem:[#allocation2_spill]] (!%p531_p2)  ;;  %v3136_v8 = vmov (!%p531_p2), 0   ;;  %v2657_v43 = vld [vmem:[%s4052_s3] ss:$0 sm:$0xff] (!%p531_p2)  ;;  %v700_v44 = vlaneseq (!%p531_p2) }
   0x9   : > { %534 = sbr.rel (%p531_p2) target bundleno = 2771 (0xad3), region = 92  ;;  %2993 = vset.pattern.permute.xlu1 (!%p531_p2), %v3136_v8  ;;  %2992 = vset.pattern.permute.xlu0 (!%p531_p2), %v3136_v8  ;;  %s4072_s22 = sld [smem:[#allocation3_spill]] (!%p531_p2)  ;;  %v2658_v48 = vld [vmem:[%s4053_s4] ss:$0 sm:$0xff] (!%p531_p2) }
   0xa   : > { %v3278_v50 = vshrl.u32 (!%p531_p2), %v700_v44, 7 }
   0xc   : > { %v710_v55 = vadd.s32 (!%p531_p2), 4294967295, %v3278_v50  ;;  %vm702_vm1 = vcmp.lt.s32.totalorder (!%p531_p2), %v3278_v50, 1  ;;  %vm734_vm3 = vcmp.lt.s32.totalorder (!%p531_p2), %v3278_v50, 7 }
   0xe   : > { %vm714_vm2 = vcmp.ge.s32.totalorder (!%p531_p2), %v710_v55, 0 }
  0x10   : > { %s4087_s28 = smov (!%p592_p3, %s2646_s28), 1 }
  0x11   : > { %s3243_s29 = sshll.u32 %s4087_s28, 5 }
  0x12   : > { %s3249_s1 = scalar_lea.vmem %s4071_s19, %s3243_s29  ;;  %s601_s2 = scalar_lea.vmem %s4072_s22, %s3243_s29 }
  0x13   : > { %v611_v0 = vld [vmem:[%s3249_s1] sm:$0xff]  ;;  %v612_v1 = vld [vmem:[%s3249_s1 + $0x8] sm:$0xff]  ;;  %v614_v2 = vld [vmem:[%s3249_s1 + $0x18] sm:$0xff]  ;;  %s609_s22 = scalar_lea.vmem %s4067_s18, %s3243_s29 }
  0x14   : > { %v623_v3 = vsel %vm622_vm0, %v611_v0, 0.0  ;;  %v626_v4 = vsel %vm622_vm0, %v612_v1, 0.0  ;;  %v613_v5 = vld [vmem:[%s3249_s1 + $0x10] sm:$0xff]  ;;  %v632_v6 = vsel %vm622_vm0, %v614_v2, 0.0  ;;  %v616_v24 = vld [vmem:[%s601_s2 + $0x8] sm:$0xff]  ;;  %v615_v25 = vld [vmem:[%s601_s2] sm:$0xff] }
  0x15   : > { %624 = vadd.xlane.f32.xlu0 %v623_v3  ;;  %627 = vadd.xlane.f32.xlu1 %v626_v4  ;;  %v629_v7 = vsel %vm622_vm0, %v613_v5, 0.0  ;;  %v617_v31 = vld [vmem:[%s601_s2 + $0x10] sm:$0xff]  ;;  %v618_v32 = vld [vmem:[%s601_s2 + $0x18] sm:$0xff]  ;;  %v3301_v3 = vld [vmem:[%s4054_s5 + $0x6] ss:$0 sm:$0xff]  ;;  %s4081_s2 = sld [smem:[#allocation4_spill]] }
  0x16   : > { %v3306_v4 = vld [vmem:[%s4054_s5 + $0x7] ss:$0 sm:$0xff] }
  0x19   : > { %633 = vadd.xlane.f32.xlu0 %v632_v6  ;;  %630 = vadd.xlane.f32.xlu1 %v629_v7  ;;  %v3315_v6 = vld [vmem:[%s4054_s5 + $0x8] ss:$0 sm:$0xff] }
  0x1b   : > { %s604_s23 = scalar_lea.vmem %s4081_s2, %s4087_s28 }
  0xa2   : > { %v625_v9 = vpop.xlane.xlu0 %624  ;;  %v628_v10 = vpop.xlane.xlu1 %627 }
  0xa3   : > { %v636_v11 = vmul.f32 0.03125, %v625_v9  ;;  %v637_v12 = vmul.f32 0.03125, %v628_v10 }
  0xa5   : > { %v640_v13 = vsub.f32 %v611_v0, %v636_v11  ;;  %v641_v14 = vsub.f32 %v612_v1, %v637_v12 }
  0xa6   : > { %v634_v15 = vpop.xlane.xlu0 %633  ;;  %v631_v26 = vpop.xlane.xlu1 %630 }
  0xa7   : > { %v639_v16 = vmul.f32 0.03125, %v634_v15  ;;  %v644_v17 = vmul.f32 %v640_v13, %v640_v13  ;;  %v645_v18 = vmul.f32 %v641_v14, %v641_v14  ;;  %v638_v27 = vmul.f32 0.03125, %v631_v26  ;;  %v2661_v26 = vld [vmem:[%s4054_s5 + $0x1] ss:$0 sm:$0xff] }
  0xa9   : > { %v643_v19 = vsub.f32 %v614_v2, %v639_v16  ;;  %v648_v20 = vsel %vm622_vm0, %v644_v17, 0.0  ;;  %v651_v21 = vsel %vm622_vm0, %v645_v18, 0.0  ;;  %v3266_v28 = vsub.f32 %v613_v5, %v638_v27 }
  0xaa   : > { %649 = vadd.xlane.f32.xlu0 %v648_v20 }
  0xab   : > { %v647_v22 = vmul.f32 %v643_v19, %v643_v19  ;;  %v646_v29 = vmul.f32 %v3266_v28, %v3266_v28 }
  0xad   : > { %v657_v23 = vsel %vm622_vm0, %v647_v22, 0.0  ;;  %v654_v30 = vsel %vm622_vm0, %v646_v29, 0.0  ;;  %v2659_v22 = vld [vmem:[%s4054_s5] ss:$0 sm:$0xff] }
  0xae   : > { %652 = vadd.xlane.f32.xlu0 %v651_v21  ;;  %658 = vadd.xlane.f32.xlu1 %v657_v23 }
  0xbf   : > { %809 = vperm.xlu1 %2993, %v616_v24  }
  0xc4   : > { %804 = vperm.xlu0 %2992, %v615_v25  }
  0xe3   : > { %655 = vadd.xlane.f32.xlu1 %v654_v30 }
  0xf4   : > { %814 = vperm.xlu1 %2993, %v617_v31   ;;  %v3345_v31 = vld [vmem:[%s4054_s5 + $0x4] ss:$0 sm:$0xff] }
  0xf8   : > { %819 = vperm.xlu1 %2993, %v618_v32  }
 0x137   : > { %v650_v33 = vpop.xlane.xlu0 %649 }
 0x138   : > { %v660_v34 = vmul.f32 0.03125, %v650_v33 }
 0x13a   : > { %v664_v35 = vadd.f32 1e-05, %v660_v34 }
 0x13b   : > { %v659_v36 = vpop.xlane.xlu1 %658  ;;  %v653_v37 = vpop.xlane.xlu0 %652 }
 0x13c   : > { %3012 = vrsqrt.f32 %v664_v35  ;;  %v663_v38 = vmul.f32 0.03125, %v659_v36  ;;  %v661_v39 = vmul.f32 0.03125, %v653_v37 }
 0x13e   : > { %v667_v40 = vadd.f32 1e-05, %v663_v38  ;;  %v665_v41 = vadd.f32 1e-05, %v661_v39 }
 0x13f   : > { %v3328_v15 = vpop.permute.xlu1 %809 }
 0x140   : > { %3014 = vrsqrt.f32 %v667_v40 }
 0x141   : > { %3016 = vrsqrt.f32 %v665_v41 }
 0x146   : > { %v3013_v42 = vpop.eup %3012 }
 0x147   : > { %v672_v45 = vmul.f32 %v3013_v42, %v640_v13  ;;  %v2663_v42 = vld [vmem:[%s4054_s5 + $0x2] ss:$0 sm:$0xff] }
 0x149   : > { %v682_v46 = vmul.f32 %v2657_v43, %v672_v45 }
 0x14a   : > { %v3015_v47 = vpop.eup %3014 }
 0x14b   : > { %v3017_v49 = vpop.eup %3016  ;;  %v675_v51 = vmul.f32 %v3015_v47, %v643_v19  ;;  %v3280_v53 = vadd.f32 %v2658_v48, %v682_v46  ;;  %v709_v19 = vadd.s32 24, %v3278_v50  ;;  %v2672_v46 = vld [vmem:[%s4054_s5 + $0x3] ss:$0 sm:$0xff] }
 0x14c   : > { %v673_v52 = vmul.f32 %v3017_v49, %v641_v14 }
 0x14d   : > { %v685_v54 = vmul.f32 %v2657_v43, %v675_v51  ;;  %v696_v59 = vrot.slane %v3280_v53, 7  ;;  %v730_v1 = vrot.slane %v3280_v53, 1  ;;  %v1206_v10 = vmul.f32 %v3306_v4, %v3280_v53 }
 0x14e   : > { %v683_v56 = vmul.f32 %v2657_v43, %v673_v52  ;;  %v742_v24 = vadd.s32 1, %v709_v19  ;;  %v778_v32 = vmul.f32 %v2661_v26, %v3280_v53 }
 0x14f   : > { %v3283_v57 = vadd.f32 %v2658_v48, %v685_v54  ;;  %v2676_v54 = vld [vmem:[%s4054_s5 + $0x5] ss:$0 sm:$0xff] }
 0x150   : > { %v693_v58 = vadd.f32 %v2658_v48, %v683_v56  ;;  %vm750_vm4 = vcmp.lt.s32.totalorder %v742_v24, 32 }
 0x151   : > { %v699_v60 = vrot.slane %v3283_v57, 7  ;;  %v733_v23 = vrot.slane %v3283_v57, 1  ;;  %v781_v35 = vmul.f32 %v2661_v26, %v3283_v57 }
 0x152   : > { %v697_v61 = vrot.slane %v693_v58, 7  ;;  %v731_v62 = vrot.slane %v693_v58, 1  ;;  %v1207_v8 = vmul.f32 %v3306_v4, %v693_v58  ;;  %v1001_v36 = vmul.f32 %v3345_v31, %v693_v58 }
 0x153   : > { %v706_v63 = vsel %vm702_vm1, %v699_v60, %v696_v59  ;;  %v738_v30 = vsel %vm734_vm3, %v733_v23, %v730_v1 }
 0x154   : > { %v3293_v0 = vsel %vm702_vm1, %v696_v59, %v697_v61  ;;  %v3296_v2 = vsel %vm714_vm2, %v706_v63, 0.0  ;;  %v3310_v5 = vsel %vm734_vm3, %v730_v1, %v731_v62  ;;  %v3350_v39 = vsel %vm750_vm4, %v738_v30, 0.0 }
 0x155   : > { %v1195_v7 = vmul.f32 %v3301_v3, %v3293_v0  ;;  %v1194_v9 = vmul.f32 %v3301_v3, %v3296_v2  ;;  %v1222_v13 = vmul.f32 %v3315_v6, %v3310_v5  ;;  %v767_v27 = vmul.f32 %v2659_v22, %v3293_v0 }
 0x156   : > { %v766_v40 = vmul.f32 %v2659_v22, %v3296_v2  ;;  %v794_v19 = vmul.f32 %v2663_v42, %v3310_v5 }
 0x157   : > { %v1211_v11 = vadd.f32 %v1207_v8, %v1195_v7  ;;  %v1210_v12 = vadd.f32 %v1206_v10, %v1194_v9  ;;  %v797_v8 = vmul.f32 %v2663_v42, %v3350_v39 }
 0x158   : > { %v782_v9 = vadd.f32 %v778_v32, %v766_v40  ;;  %v3396_v32 = vpop.permute.xlu0 %804 }
 0x159   : > { %v3326_v14 = vadd.f32 %v1222_v13, %v1210_v12 }
 0x170   : > { %v656_v16 = vpop.xlane.xlu1 %655 }
 0x171   : > { %v662_v17 = vmul.f32 0.03125, %v656_v16 }
 0x173   : > { %v666_v18 = vadd.f32 1e-05, %v662_v17 }
 0x174   : > { %v3371_v55 = vpop.permute.xlu1 %814 }
 0x175   : > { %3018 = vrsqrt.f32 %v666_v18 }
 0x17f   : > { %v3019_v20 = vpop.eup %3018 }
 0x180   : > { %v674_v21 = vmul.f32 %v3019_v20, %v3266_v28  ;;  %v779_v28 = vmul.f32 %v2661_v26, %v693_v58 }
 0x182   : > { %v684_v25 = vmul.f32 %v2657_v43, %v674_v21  ;;  %v783_v37 = vadd.f32 %v779_v28, %v767_v27  ;;  %v1225_v21 = vmul.f32 %v3315_v6, %v3350_v39  ;;  %v988_v27 = vmul.f32 %v2672_v46, %v3296_v2 }
 0x184   : > { %v694_v29 = vadd.f32 %v2658_v48, %v684_v25  ;;  %v989_v25 = vmul.f32 %v2672_v46, %v3293_v0  ;;  %v1000_v0 = vmul.f32 %v3345_v31, %v3280_v53  ;;  %v1016_v53 = vmul.f32 %v2676_v54, %v3310_v5 }
 0x186   : > { %v732_v33 = vrot.slane %v694_v29, 1  ;;  %v698_v34 = vrot.slane %v694_v29, 7  ;;  %v780_v38 = vmul.f32 %v2661_v26, %v694_v29  ;;  %v1002_v52 = vmul.f32 %v3345_v31, %v694_v29  ;;  %v3390_v26 = vpop.permute.xlu1 %819 }
 0x187   : > { %v1208_v28 = vmul.f32 %v3306_v4, %v694_v29 }
 0x188   : > { %v736_v41 = vsel %vm734_vm3, %v731_v62, %v732_v33  ;;  %v704_v43 = vsel %vm702_vm1, %v697_v61, %v698_v34  ;;  %v735_v45 = vsel %vm734_vm3, %v732_v33, %v733_v23  ;;  %v703_v47 = vsel %vm702_vm1, %v698_v34, %v699_v60 }
 0x189   : > { %v795_v48 = vmul.f32 %v2663_v42, %v736_v41  ;;  %v768_v49 = vmul.f32 %v2659_v22, %v704_v43  ;;  %v990_v51 = vmul.f32 %v2672_v46, %v704_v43  ;;  %v796_v56 = vmul.f32 %v2663_v42, %v735_v45 }
 0x18a   : > { %v1018_v58 = vmul.f32 %v2676_v54, %v735_v45  ;;  %v769_v59 = vmul.f32 %v2659_v22, %v703_v47  ;;  %v1209_v61 = vmul.f32 %v3306_v4, %v3283_v57  ;;  %v1223_v1 = vmul.f32 %v3315_v6, %v736_v41 }
 0x18b   : > { %v799_v62 = vadd.f32 %v795_v48, %v783_v37  ;;  %v784_v63 = vadd.f32 %v780_v38, %v768_v49  ;;  %v1006_v60 = vadd.f32 %v1002_v52, %v990_v51  ;;  %v1197_v10 = vmul.f32 %v3301_v3, %v703_v47 }
 0x18c   : > { %v785_v7 = vadd.f32 %v781_v35, %v769_v59  ;;  %v3379_v17 = vadd.f32 %v1223_v1, %v1211_v11  ;;  %v798_v11 = vadd.f32 %v794_v19, %v782_v9  ;;  %v1017_v35 = vmul.f32 %v2676_v54, %v736_v41 }
 0x18d   : > { %v823_v12 = vmul.f32 %v3328_v15, %v799_v62  ;;  %v800_v13 = vadd.f32 %v796_v56, %v784_v63  ;;  %v1022_v16 = vadd.f32 %v1018_v58, %v1006_v60  ;;  %v1213_v20 = vadd.f32 %v1209_v61, %v1197_v10 }
 0x18e   : > { %v801_v18 = vadd.f32 %v797_v8, %v785_v7  ;;  %v1196_v37 = vmul.f32 %v3301_v3, %v704_v43  ;;  %v1005_v38 = vadd.f32 %v1001_v36, %v989_v25  ;;  %v1224_v4 = vmul.f32 %v3315_v6, %v735_v45 }
 0x18f   : > { %v831_v22 = vsel %vm622_vm0, %v823_v12, 0.0  ;;  %v824_v23 = vmul.f32 %v3371_v55, %v800_v13  ;;  %v3387_v24 = vmul.f32 %v1022_v16, %v3371_v55  ;;  %v3393_v30 = vadd.f32 %v1225_v21, %v1213_v20 }
 0x190   : > { %832 = vadd.xlane.f32.xlu0 %v831_v22  ;;  %v825_v34 = vmul.f32 %v3390_v26, %v801_v18  ;;  %v1212_v40 = vadd.f32 %v1208_v28, %v1196_v37  ;;  %v822_v29 = vmul.f32 %v3396_v32, %v798_v11  ;;  %v1004_v42 = vadd.f32 %v1000_v0, %v988_v27 }
 0x191   : > { %v834_v33 = vsel %vm622_vm0, %v824_v23, 0.0  ;;  %v1038_v2 = vsel %vm622_vm0, %v3387_v24, 0.0  ;;  %v1021_v41 = vadd.f32 %v1017_v35, %v1005_v38  ;;  %v991_v49 = vmul.f32 %v2672_v46, %v703_v47 }
 0x192   : > { %835 = vadd.xlane.f32.xlu1 %v834_v33  ;;  %v837_v48 = vsel %vm622_vm0, %v825_v34, 0.0  ;;  %v3408_v3 = vadd.f32 %v1224_v4, %v1212_v40  ;;  %v1003_v43 = vmul.f32 %v3345_v31, %v3283_v57  ;;  %v828_v36 = vsel %vm622_vm0, %v822_v29, 0.0 }
 0x193   : > { %v1025_v6 = vmul.f32 %v1021_v41, %v3328_v15  ;;  %v1020_v45 = vadd.f32 %v1016_v53, %v1004_v42  ;;  %v1019_v52 = vmul.f32 %v2676_v54, %v3350_v39  ;;  %v3468_v53 = vmul.f32 %v3326_v14, %v3396_v32 }
 0x194   : > { %1039 = vadd.xlane.f32.xlu0 %v1038_v2  ;;  %v1007_v51 = vadd.f32 %v1003_v43, %v991_v49  ;;  %v3464_v49 = vmul.f32 %v3379_v17, %v3328_v15  ;;  %v3480_v17 = vmul.f32 %v3408_v3, %v3371_v55  ;;  %v3495_v3 = vld [vmem:[%s4057_s8 + $0x10] sm:$0xff]  }
 0x195   : > { %v1035_v56 = vsel %vm622_vm0, %v1025_v6, 0.0  ;;  %v1024_v46 = vmul.f32 %v1020_v45, %v3396_v32 }
 0x196   : > { %838 = vadd.xlane.f32.xlu1 %v837_v48  ;;  %v1023_v47 = vadd.f32 %v1019_v52, %v1007_v51  ;;  %v1241_v43 = vsel %vm622_vm0, %v3464_v49, 0.0  ;;  %v1244_v45 = vsel %vm622_vm0, %v3480_v17, 0.0  ;;  %v2994_v51 = vld [vmem:[%s4057_s8] sm:$0xff]  }
 0x197   : > { %v1032_v5 = vsel %vm622_vm0, %v1024_v46, 0.0  ;;  %2839 = vmatprep.subr.bf16.mxu0 %v2994_v51 }
 0x198   : > { %v1027_v58 = vmul.f32 %v1023_v47, %v3390_v26  ;;  %2840 = vmatpush3.bf16.msra.mxu0 %v2994_v51 }
 0x19a   : > { %829 = vadd.xlane.f32.xlu1 %v828_v36  ;;  %v1041_v57 = vsel %vm622_vm0, %v1027_v58, 0.0  ;;  %v1238_v36 = vsel %vm622_vm0, %v3468_v53, 0.0 }
 0x19e   : > { %1036 = vadd.xlane.f32.xlu1 %v1035_v56 }
 0x1a2   : > { %1033 = vadd.xlane.f32.xlu1 %v1032_v5 }
 0x1a6   : > { %1042 = vadd.xlane.f32.xlu1 %v1041_v57 }
 0x21d   : > { %v833_v31 = vpop.xlane.xlu0 %832 }
 0x21e   : > { %v841_v59 = vmul.f32 0.03125, %v833_v31 }
 0x21f   : > { %v836_v61 = vpop.xlane.xlu1 %835 }
 0x220   : > { %v3421_v62 = vsub.f32 %v823_v12, %v841_v59  ;;  %v842_v1 = vmul.f32 0.03125, %v836_v61 }
 0x221   : > { %v1040_v18 = vpop.xlane.xlu0 %1039 }
 0x222   : > { %v849_v39 = vmul.f32 %v3421_v62, %v3421_v62  ;;  %v3430_v13 = vsub.f32 %v824_v23, %v842_v1  ;;  %v1046_v22 = vmul.f32 0.03125, %v1040_v18 }
 0x223   : > { %v839_v54 = vpop.xlane.xlu1 %838 }
 0x224   : > { %v843_v63 = vmul.f32 0.03125, %v839_v54  ;;  %v855_v60 = vsel %vm622_vm0, %v849_v39, 0.0  ;;  %v850_v23 = vmul.f32 %v3430_v13, %v3430_v13 }
 0x225   : > { %856 = vadd.xlane.f32.xlu1 %v855_v60 }
 0x226   : > { %v3426_v7 = vsub.f32 %v825_v34, %v843_v63  ;;  %v3445_v34 = vsub.f32 %v3387_v24, %v1046_v22  ;;  %v858_v37 = vsel %vm622_vm0, %v850_v23, 0.0  ;;  %v2664_v23 = vld [vmem:[%s4055_s6] ss:$0 sm:$0xff] }
 0x227   : > { %v830_v8 = vpop.xlane.xlu1 %829 }
 0x228   : > { %v840_v9 = vmul.f32 0.03125, %v830_v8  ;;  %v851_v10 = vmul.f32 %v3426_v7, %v3426_v7  ;;  %v1054_v24 = vmul.f32 %v3445_v34, %v3445_v34 }
 0x22a   : > { %v3432_v12 = vsub.f32 %v822_v29, %v840_v9  ;;  %v861_v16 = vsel %vm622_vm0, %v851_v10, 0.0  ;;  %v1062_v41 = vsel %vm622_vm0, %v1054_v24, 0.0  ;;  %v2665_v24 = vld [vmem:[%s4056_s7] ss:$0 sm:$0xff] }
 0x22b   : > { %v1037_v19 = vpop.xlane.xlu1 %1036  ;;  %862 = vadd.xlane.f32.xlu1 %v861_v16 }
 0x22c   : > { %v1045_v20 = vmul.f32 0.03125, %v1037_v19  ;;  %v848_v21 = vmul.f32 %v3432_v12, %v3432_v12 }
 0x22e   : > { %v3437_v25 = vsub.f32 %v1025_v6, %v1045_v20  ;;  %v852_v11 = vsel %vm622_vm0, %v848_v21, 0.0  ;;  %v3476_v6 = vmul.f32 %v3393_v30, %v3390_v26  ;;  %v2995_v30 = vld [vmem:[%s4057_s8 + $0x8] sm:$0xff]  }
 0x22f   : > { %853 = vadd.xlane.f32.xlu0 %v852_v11  ;;  %v1034_v27 = vpop.xlane.xlu1 %1033  ;;  %2841 = vmatprep.subr.bf16.mxu0 %v2995_v30 }
 0x230   : > { %v1044_v28 = vmul.f32 0.03125, %v1034_v27  ;;  %v1053_v33 = vmul.f32 %v3437_v25, %v3437_v25  ;;  %v1247_v14 = vsel %vm622_vm0, %v3476_v6, 0.0  ;;  %2842 = vmatpush3.bf16.msra.mxu0 %v2995_v30 }
 0x231   : > { %2847 = vmatprep.subr.bf16.mxu0 %v3495_v3 }
 0x232   : > { %v3447_v35 = vsub.f32 %v1024_v46, %v1044_v28  ;;  %v1059_v0 = vsel %vm622_vm0, %v1053_v33, 0.0 }
 0x233   : > { %859 = vadd.xlane.f32.xlu0 %v858_v37  ;;  %v1043_v2 = vpop.xlane.xlu1 %1042  ;;  %1060 = vadd.xlane.f32.xlu1 %v1059_v0 }
 0x234   : > { %v1047_v38 = vmul.f32 0.03125, %v1043_v2  ;;  %v1052_v40 = vmul.f32 %v3447_v35, %v3447_v35 }
 0x236   : > { %v3453_v4 = vsub.f32 %v1027_v58, %v1047_v38  ;;  %v1056_v29 = vsel %vm622_vm0, %v1052_v40, 0.0 }
 0x237   : > { %1057 = vadd.xlane.f32.xlu0 %v1056_v29 }
 0x238   : > { %v1055_v42 = vmul.f32 %v3453_v4, %v3453_v4 }
 0x23a   : > { %v1065_v48 = vsel %vm622_vm0, %v1055_v42, 0.0 }
 0x23b   : > { %1066 = vadd.xlane.f32.xlu1 %v1065_v48  ;;  %1063 = vadd.xlane.f32.xlu0 %v1062_v41 }
 0x23f   : > { %1242 = vadd.xlane.f32.xlu1 %v1241_v43  ;;  %1239 = vadd.xlane.f32.xlu0 %v1238_v36 }
 0x243   : > { %1248 = vadd.xlane.f32.xlu1 %v1247_v14  ;;  %1245 = vadd.xlane.f32.xlu0 %v1244_v45 }
 0x2b2   : > { %v857_v52 = vpop.xlane.xlu1 %856 }
 0x2b3   : > { %v865_v56 = vmul.f32 0.03125, %v857_v52 }
 0x2b5   : > { %v869_v46 = vadd.f32 1e-05, %v865_v56  ;;  %v2679_v56 = vld [vmem:[%s4055_s6 + $0x1] ss:$0 sm:$0xff] }
 0x2b7   : > { %3020 = vrsqrt.f32 %v869_v46 }
 0x2b8   : > { %v863_v47 = vpop.xlane.xlu1 %862 }
 0x2b9   : > { %v867_v5 = vmul.f32 0.03125, %v863_v47 }
 0x2bb   : > { %v871_v58 = vadd.f32 1e-05, %v867_v5 }
 0x2bc   : > { %v854_v57 = vpop.xlane.xlu0 %853 }
 0x2bd   : > { %v864_v31 = vmul.f32 0.03125, %v854_v57  ;;  %3022 = vrsqrt.f32 %v871_v58 }
 0x2bf   : > { %v868_v59 = vadd.f32 1e-05, %v864_v31 }
 0x2c0   : > { %v1061_v61 = vpop.xlane.xlu1 %1060  ;;  %v860_v39 = vpop.xlane.xlu0 %859 }
 0x2c1   : > { %3024 = vrsqrt.f32 %v868_v59  ;;  %v1069_v54 = vmul.f32 0.03125, %v1061_v61  ;;  %v866_v63 = vmul.f32 0.03125, %v860_v39  ;;  %v3021_v9 = vpop.eup %3020 }
 0x2c2   : > { %v877_v20 = vmul.f32 %v3021_v9, %v3421_v62 }
 0x2c3   : > { %v1073_v60 = vadd.f32 1e-05, %v1069_v54  ;;  %v870_v1 = vadd.f32 1e-05, %v866_v63 }
 0x2c4   : > { %v1058_v8 = vpop.xlane.xlu0 %1057  ;;  %v887_v40 = vmul.f32 %v2664_v23, %v877_v20 }
 0x2c5   : > { %3026 = vrsqrt.f32 %v1073_v60  ;;  %v1068_v10 = vmul.f32 0.03125, %v1058_v8  ;;  %v2680_v60 = vld [vmem:[%s4056_s7 + $0x1] ss:$0 sm:$0xff] }
 0x2c6   : > { %3028 = vrsqrt.f32 %v870_v1  ;;  %v897_v51 = vadd.f32 %v2665_v24, %v887_v40 }
 0x2c7   : > { %v1072_v16 = vadd.f32 1e-05, %v1068_v10  ;;  %v3023_v21 = vpop.eup %3022 }
 0x2c8   : > { %v1067_v18 = vpop.xlane.xlu1 %1066  ;;  %v1064_v19 = vpop.xlane.xlu0 %1063  ;;  %v879_v37 = vmul.f32 %v3023_v21, %v3426_v7 }
 0x2c9   : > { %3030 = vrsqrt.f32 %v1072_v16  ;;  %v1071_v22 = vmul.f32 0.03125, %v1067_v18  ;;  %v1070_v11 = vmul.f32 0.03125, %v1064_v19  ;;  %v2997_v16 = vld [vmem:[%s4057_s8 + $0x18] sm:$0xff]  }
 0x2ca   : > { %v889_v30 = vmul.f32 %v2664_v23, %v879_v37  ;;  %v2999_v37 = vld [vmem:[%s4057_s8 + $0x28] sm:$0xff]  }
 0x2cb   : > { %v3025_v27 = vpop.eup %3024  ;;  %v1075_v28 = vadd.f32 1e-05, %v1071_v22  ;;  %v1074_v33 = vadd.f32 1e-05, %v1070_v11 }
 0x2cc   : > { %v1243_v0 = vpop.xlane.xlu1 %1242  ;;  %v1240_v2 = vpop.xlane.xlu0 %1239  ;;  %v876_v38 = vmul.f32 %v3025_v27, %v3432_v12  ;;  %v899_v63 = vadd.f32 %v2665_v24, %v889_v30 }
 0x2cd   : > { %3032 = vrsqrt.f32 %v1075_v28  ;;  %v1251_v62 = vmul.f32 0.03125, %v1243_v0  ;;  %v1250_v29 = vmul.f32 0.03125, %v1240_v2 }
 0x2ce   : > { %3034 = vrsqrt.f32 %v1074_v33  ;;  %v886_v42 = vmul.f32 %v2664_v23, %v876_v38 }
 0x2cf   : > { %v3027_v48 = vpop.eup %3026  ;;  %v3508_v41 = vsub.f32 %v3464_v49, %v1251_v62  ;;  %v3511_v7 = vsub.f32 %v3468_v53, %v1250_v29 }
 0x2d0   : > { %v3029_v43 = vpop.eup %3028  ;;  %v1081_v12 = vmul.f32 %v3027_v48, %v3437_v25  ;;  %v1249_v36 = vpop.xlane.xlu1 %1248  ;;  %v896_v45 = vadd.f32 %v2665_v24, %v886_v42 }
 0x2d1   : > { %v1246_v14 = vpop.xlane.xlu0 %1245  ;;  %v878_v52 = vmul.f32 %v3029_v43, %v3430_v13  ;;  %v1253_v46 = vmul.f32 0.03125, %v1249_v36  ;;  %v1259_v53 = vmul.f32 %v3508_v41, %v3508_v41  ;;  %v1258_v25 = vmul.f32 %v3511_v7, %v3511_v7 }
 0x2d2   : > { %v1252_v49 = vmul.f32 0.03125, %v1246_v14  ;;  %v904_v47 = vpack.c.bf16 %v897_v51, %v896_v45  ;;  %v1091_v39 = vmul.f32 %v2679_v56, %v1081_v12  ;;  %v2699_v14 = vld [vmem:[%s4055_s6 + $0x2] ss:$0 sm:$0xff] }
 0x2d3   : > { %v3031_v5 = vpop.eup %3030  ;;  %v3523_v58 = vsub.f32 %v3476_v6, %v1253_v46  ;;  %v1265_v13 = vsel %vm622_vm0, %v1259_v53, 0.0  ;;  %v888_v31 = vmul.f32 %v2664_v23, %v878_v52  ;;  %v1262_v61 = vsel %vm622_vm0, %v1258_v25, 0.0  ;;  %v2700_v52 = vld [vmem:[%s4056_s7 + $0x2] ss:$0 sm:$0xff] }
 0x2d4   : > { %v3526_v57 = vsub.f32 %v3480_v17, %v1252_v49  ;;  %v1080_v59 = vmul.f32 %v3031_v5, %v3447_v35  ;;  %1266 = vadd.xlane.f32.xlu1 %v1265_v13  ;;  %2843 = vmatprep.mubr.msk.bf16.mxu0 %vm622_vm0, %v904_v47  ;;  %v1101_v21 = vadd.f32 %v2680_v60, %v1091_v39 }
 0x2d5   : > { %1263 = vadd.xlane.f32.xlu0 %v1262_v61  ;;  %v1261_v54 = vmul.f32 %v3523_v58, %v3523_v58  ;;  %v898_v6 = vadd.f32 %v2665_v24, %v888_v31 }
 0x2d6   : > { %v1260_v17 = vmul.f32 %v3526_v57, %v3526_v57  ;;  %v1090_v35 = vmul.f32 %v2679_v56, %v1080_v59 }
 0x2d7   : > { %v3033_v1 = vpop.eup %3032  ;;  %v1271_v8 = vsel %vm622_vm0, %v1261_v54, 0.0  ;;  %v905_v9 = vpack.c.bf16 %v899_v63, %v898_v6  ;;  %v3569_v54 = vand.u32 127, %v700_v44 }
 0x2d8   : > { %v1268_v10 = vsel %vm622_vm0, %v1260_v17, 0.0  ;;  %v3035_v18 = vpop.eup %3034  ;;  %v1083_v19 = vmul.f32 %v3033_v1, %v3453_v4  ;;  %1272 = vadd.xlane.f32.xlu1 %v1271_v8  ;;  %v1100_v20 = vadd.f32 %v2680_v60, %v1090_v35 }
 0x2d9   : > { %v1082_v22 = vmul.f32 %v3035_v18, %v3445_v34  ;;  %2844 = vmatmul.mubr.msk.bf16.vlgmr.msra.gmra.mrb[0].mxu0 %vm622_vm0, %v905_v9  ;;  %1269 = vadd.xlane.f32.xlu0 %v1268_v10  ;;  %v2998_v34 = vld [vmem:[%s4057_s8 + $0x20] sm:$0xff]   ;;  %vm1536_vm5 = vcmp.ge.s32.totalorder %v3569_v54, 8  ;;  %vm1537_vm6 = vcmp.lt.s32.totalorder %v3569_v54, 16  ;;  %vm1776_vm7 = vcmp.ge.s32.totalorder %v3569_v54, 16 }
 0x2da   : > { %v1093_v11 = vmul.f32 %v2679_v56, %v1083_v19  ;;  %2848 = vmatpush3.bf16.msra.mxu0 %v3495_v3  ;;  %v1109_v23 = vpack.c.bf16 %v1101_v21, %v1100_v20  ;;  %vm1777_vm8 = vcmp.lt.s32.totalorder %v3569_v54, 24  ;;  %vm1965_vm9 = vcmp.ge.s32.totalorder %v3569_v54, 24  ;;  %vm3580_vm11 = vmand %vm1536_vm5, %vm1537_vm6 }
 0x2db   : > { %v1092_v27 = vmul.f32 %v2679_v56, %v1082_v22  ;;  %2849 = vmatprep.subr.bf16.mxu0 %v2997_v16  ;;  %vm1966_vm10 = vcmp.lt.s32.totalorder %v3569_v54, 32  ;;  %vm3584_vm12 = vmand %vm1776_vm7, %vm1777_vm8  ;;  %vm1401_vm14 = vcmp.lt.s32.totalorder %v3569_v54, 8  ;;  %v1420_v54 = vsub.s32 0, %v3278_v50 }
 0x2dc   : > { %2851 = vmatprep.mubr.msk.bf16.mxu0 %vm622_vm0, %v1109_v23  ;;  %v1103_v28 = vadd.f32 %v2680_v60, %v1093_v11  ;;  %vm3588_vm13 = vmand %vm1965_vm9, %vm1966_vm10 }
 0x2dd   : > { %v1102_v33 = vadd.f32 %v2680_v60, %v1092_v27  ;;  %vm2715_vm15 = vmpackc.low %vm3580_vm11, %vm3580_vm11 }
 0x2de   : > { %2850 = vmatpush3.bf16.msra.mxu0 %v2997_v16  ;;  %vm3719_vm1 = vmpackc.low %vm1401_vm14, %vm1401_vm14 }
 0x2df   : > { %v1110_v4 = vpack.c.bf16 %v1103_v28, %v1102_v33  ;;  %2855 = vmatprep.subr.bf16.mxu0 %v2998_v34  ;;  %vm3885_vm2 = vmpackc.low %vm3584_vm12, %vm3584_vm12 }
 0x2e0   : > { %vm3911_vm3 = vmpackc.low %vm3588_vm13, %vm3588_vm13 }
 0x2e1   : > { %2852 = vmatmul.mubr.msk.bf16.vlgmr.msra.gmra.mrb[4].mxu0 %vm622_vm0, %v1110_v4 }
 0x2e2   : > { %2856 = vmatpush3.bf16.msra.mxu0 %v2998_v34 }
 0x2e3   : > { %2857 = vmatprep.subr.bf16.mxu0 %v2999_v37 }
 0x2e6   : > { %2858 = vmatpush3.bf16.msra.mxu0 %v2999_v37  ;;  %v2686_v37 = vld [vmem:[%s4058_s9 + $0x1] ss:$0 sm:$0xff] }
 0x361   : > { %v1267_v3 = vpop.xlane.xlu1 %1266 }
 0x362   : > { %v1275_v0 = vmul.f32 0.03125, %v1267_v3  ;;  %v1264_v2 = vpop.xlane.xlu0 %1263 }
 0x363   : > { %v1274_v38 = vmul.f32 0.03125, %v1264_v2 }
 0x364   : > { %v1279_v40 = vadd.f32 1e-05, %v1275_v0 }
 0x365   : > { %v1278_v62 = vadd.f32 1e-05, %v1274_v38  ;;  %v1273_v29 = vpop.xlane.xlu1 %1272 }
 0x366   : > { %3036 = vrsqrt.f32 %v1279_v40  ;;  %v1277_v24 = vmul.f32 0.03125, %v1273_v29  ;;  %v1270_v42 = vpop.xlane.xlu0 %1269 }
 0x367   : > { %3038 = vrsqrt.f32 %v1278_v62  ;;  %v1276_v48 = vmul.f32 0.03125, %v1270_v42 }
 0x368   : > { %v1281_v43 = vadd.f32 1e-05, %v1277_v24 }
 0x369   : > { %v1280_v12 = vadd.f32 1e-05, %v1276_v48 }
 0x36a   : > { %3040 = vrsqrt.f32 %v1281_v43 }
 0x36b   : > { %3042 = vrsqrt.f32 %v1280_v12 }
 0x370   : > { %v3037_v36 = vpop.eup %3036 }
 0x371   : > { %v3039_v45 = vpop.eup %3038  ;;  %v1287_v51 = vmul.f32 %v3037_v36, %v3508_v41 }
 0x372   : > { %v1286_v30 = vmul.f32 %v3039_v45, %v3511_v7 }
 0x373   : > { %v1297_v56 = vmul.f32 %v2699_v14, %v1287_v51 }
 0x374   : > { %v3041_v46 = vpop.eup %3040  ;;  %v1296_v49 = vmul.f32 %v2699_v14, %v1286_v30 }
 0x375   : > { %v3043_v53 = vpop.eup %3042  ;;  %v1289_v47 = vmul.f32 %v3041_v46, %v3523_v58  ;;  %v1307_v25 = vadd.f32 %v2700_v52, %v1297_v56  ;;  %v2666_v58 = vld [vmem:[%s4058_s9] ss:$0 sm:$0xff] }
 0x376   : > { %v1288_v5 = vmul.f32 %v3043_v53, %v3526_v57  ;;  %v1306_v13 = vadd.f32 %v2700_v52, %v1296_v49  ;;  %v619_v57 = vld [vmem:[%s604_s23] sm:$0x1] }
 0x377   : > { %v1299_v31 = vmul.f32 %v2699_v14, %v1289_v47 }
 0x378   : > { %v1298_v59 = vmul.f32 %v2699_v14, %v1288_v5  ;;  %v1315_v61 = vpack.c.bf16 %v1307_v25, %v1306_v13 }
 0x379   : > { %v1309_v41 = vadd.f32 %v2700_v52, %v1299_v31 }
 0x37a   : > { %2859 = vmatprep.mubr.msk.bf16.mxu0 %vm622_vm0, %v1315_v61  ;;  %v1308_v7 = vadd.f32 %v2700_v52, %v1298_v59 }
 0x37c   : > { %v1316_v39 = vpack.c.bf16 %v1309_v41, %v1308_v7 }
 0x37e   : > { %2860 = vmatmul.mubr.msk.bf16.vlgmr.msra.gmra.mrb[8].mxu0 %vm622_vm0, %v1316_v39 }
 0x3ac   : > { %v2845_v6 = vpop.f32.mrb[0].mxu0 }
 0x3ad   : > { %v974_v17 = vadd.f32 %v2845_v6, %v2666_v58  ;;  %v965_v60 = vpop.f32.mrb[1].mxu0 }
 0x3ae   : > { %v966_v35 = vadd.f32 %v2666_v58, %v965_v60  ;;  %v2846_v1 = vpop.f32.mrb[2].mxu0 }
 0x3af   : > { %v1543_v8 = vsel %vm3580_vm11, %v974_v17, 0.0  ;;  %v1783_v9 = vsel %vm3584_vm12, %v974_v17, 0.0  ;;  %v1972_v10 = vsel %vm3588_vm13, %v974_v17, 0.0  ;;  %v977_v16 = vadd.f32 %v2846_v1, %v2666_v58  ;;  %v968_v18 = vpop.f32.mrb[3].mxu0 }
 0x3b0   : > { %v969_v19 = vadd.f32 %v2666_v58, %v968_v18  ;;  %v1405_v20 = vsel %vm1401_vm14, %v966_v35, 0.0  ;;  %v1541_v21 = vsel %vm3580_vm11, %v966_v35, 0.0  ;;  %v3605_v22 = vsel %vm1401_vm14, %v974_v17, 0.0 }
 0x3b1   : > { %v1544_v11 = vsel %vm3580_vm11, %v977_v16, 0.0  ;;  %v1784_v23 = vsel %vm3584_vm12, %v977_v16, 0.0  ;;  %v1973_v27 = vsel %vm3588_vm13, %v977_v16, 0.0  ;;  %v3615_v28 = vsel %vm1401_vm14, %v977_v16, 0.0 }
 0x3b2   : > { %v3617_v33 = vpack.c.bf16 %v1544_v11, %v1543_v8  ;;  %v3619_v4 = vpack.c.bf16 %v1784_v23, %v1783_v9  ;;  %v3621_v34 = vpack.c.bf16 %v1973_v27, %v1972_v10  ;;  %v1406_v3 = vsel %vm1401_vm14, %v969_v19, 0.0 }
 0x3b3   : > { %v1413_v0 = vpack.c.bf16 %v1406_v3, %v1405_v20  ;;  %v1542_v2 = vsel %vm3580_vm11, %v969_v19, 0.0  ;;  %v1414_v38 = vpack.c.bf16 %v3615_v28, %v3605_v22  ;;  %v1781_v40 = vsel %vm3584_vm12, %v966_v35, 0.0 }
 0x3b4   : > { %v2853_v62 = vpop.f32.mrb[4].mxu0  ;;  %v1549_v29 = vpack.c.bf16 %v1542_v2, %v1541_v21  ;;  %v1782_v24 = vsel %vm3584_vm12, %v969_v19, 0.0  ;;  %v1970_v42 = vsel %vm3588_vm13, %v966_v35, 0.0  ;;  %v1971_v48 = vsel %vm3588_vm13, %v969_v19, 0.0 }
 0x3b5   : > { %v1180_v43 = vadd.f32 %v2853_v62, %v2686_v37  ;;  %v1171_v12 = vpop.f32.mrb[5].mxu0  ;;  %2867 = vmatprep.mubr.msk.bf16.mxu1 %vm622_vm0, %v1413_v0  ;;  %v1789_v36 = vpack.c.bf16 %v1782_v24, %v1781_v40  ;;  %v1978_v14 = vpack.c.bf16 %v1971_v48, %v1970_v42 }
 0x3b6   : > { %v1172_v45 = vadd.f32 %v2686_v37, %v1171_v12  ;;  %2875 = vmatprep.mubr.msk.bf16.mxu0 %vm622_vm0, %v1549_v29  ;;  %v2854_v51 = vpop.f32.mrb[6].mxu0 }
 0x3b7   : > { %v1183_v30 = vadd.f32 %v2854_v51, %v2686_v37  ;;  %v1174_v52 = vpop.f32.mrb[7].mxu0  ;;  %v1411_v56 = vsel %vm1401_vm14, %v1180_v43, 0.0  ;;  %v1547_v46 = vsel %vm3580_vm11, %v1180_v43, 0.0  ;;  %v1787_v25 = vsel %vm3584_vm12, %v1180_v43, 0.0 }
 0x3b8   : > { %v1175_v49 = vadd.f32 %v2686_v37, %v1174_v52  ;;  %v1409_v53 = vsel %vm1401_vm14, %v1172_v45, 0.0  ;;  %v1545_v47 = vsel %vm3580_vm11, %v1172_v45, 0.0  ;;  %v1785_v31 = vsel %vm3584_vm12, %v1172_v45, 0.0 }
 0x3b9   : > { %v1412_v5 = vsel %vm1401_vm14, %v1183_v30, 0.0  ;;  %v1548_v13 = vsel %vm3580_vm11, %v1183_v30, 0.0  ;;  %v1788_v59 = vsel %vm3584_vm12, %v1183_v30, 0.0  ;;  %v1974_v1 = vsel %vm3588_vm13, %v1172_v45, 0.0 }
 0x3ba   : > { %v1410_v61 = vsel %vm1401_vm14, %v1175_v49, 0.0  ;;  %v1546_v41 = vsel %vm3580_vm11, %v1175_v49, 0.0  ;;  %v1416_v7 = vpack.c.bf16 %v1412_v5, %v1411_v56  ;;  %v1552_v39 = vpack.c.bf16 %v1548_v13, %v1547_v46 }
 0x3bb   : > { %v1415_v58 = vpack.c.bf16 %v1410_v61, %v1409_v53  ;;  %v1551_v6 = vpack.c.bf16 %v1546_v41, %v1545_v47  ;;  %v1786_v17 = vsel %vm3584_vm12, %v1175_v49, 0.0  ;;  %v1792_v60 = vpack.c.bf16 %v1788_v59, %v1787_v25 }
 0x3bc   : > { %v1791_v35 = vpack.c.bf16 %v1786_v17, %v1785_v31  ;;  %v1975_v8 = vsel %vm3588_vm13, %v1175_v49, 0.0  ;;  %v1976_v18 = vsel %vm3588_vm13, %v1180_v43, 0.0  ;;  %v1977_v19 = vsel %vm3588_vm13, %v1183_v30, 0.0 }
 0x3bd   : > { %2975 = vmatprep.subr.msk.bf16.mxu1 %vm622_vm0, %v1415_v58  ;;  %2977 = vmatprep.subr.msk.bf16.mxu0 %vm622_vm0, %v1551_v6  ;;  %v1430_v9 = vsel %vm622_vm0, %v1415_v58, 0  ;;  %v1560_v10 = vsel %vm622_vm0, %v1551_v6, 0  ;;  %v1980_v16 = vpack.c.bf16 %v1975_v8, %v1974_v1  ;;  %v1981_v20 = vpack.c.bf16 %v1977_v19, %v1976_v18 }
 0x3be   : > { %2864 = vmatpush3.bf16.xpose.msra.mxu1 %v1430_v9  ;;  %2872 = vmatpush3.bf16.xpose.msra.mxu0 %v1560_v10  ;;  %v1433_v21 = vsel %vm622_vm0, %v1416_v7, 0  ;;  %v1563_v22 = vsel %vm622_vm0, %v1552_v39, 0  ;;  %v1800_v11 = vsel %vm622_vm0, %v1791_v35, 0  ;;  %v1803_v23 = vsel %vm622_vm0, %v1792_v60, 0 }
 0x3bf   : > { %2976 = vmatprep.subr.msk.bf16.mxu1 %vm622_vm0, %v1416_v7  ;;  %2978 = vmatprep.subr.msk.bf16.mxu0 %vm622_vm0, %v1552_v39  ;;  %v1989_v27 = vsel %vm622_vm0, %v1980_v16, 0  ;;  %v1992_v28 = vsel %vm622_vm0, %v1981_v20, 0 }
 0x3c6   : > { %2866 = vmatpush3.bf16.xpose.msra.mxu1 %v1433_v21  ;;  %2874 = vmatpush3.bf16.xpose.msra.mxu0 %v1563_v22 }
 0x3c7   : > { %2979 = vmatprep.subr.msk.bf16.mxu0 %vm622_vm0, %v1791_v35 }
 0x3cd   : > { %2868 = vmatmul.mubr.msk.bf16.vlgmr.msra.gmra.mrb[0].mxu1 %vm622_vm0, %v1414_v38  ;;  %2876 = vmatmul.mubr.msk.bf16.vlgmr.msra.gmra.mrb[12].mxu0 %vm622_vm0, %v3617_v33  ;;  %v2706_v33 = vld [vmem:[%s4058_s9 + $0x2] ss:$0 sm:$0xff] }
 0x3ce   : > { %2896 = vmatpush3.bf16.xpose.msra.mxu0 %v1800_v11  ;;  %2899 = vmatprep.mubr.msk.bf16.mxu0 %vm622_vm0, %v1789_v36  ;;  %v1398_v36 = vsub.f32 1.0, %v619_v57 }
 0x3cf   : > { %2980 = vmatprep.subr.msk.bf16.mxu0 %vm622_vm0, %v1792_v60 }
 0x3d6   : > { %2898 = vmatpush3.bf16.xpose.msra.mxu0 %v1803_v23 }
 0x3d7   : > { %2981 = vmatprep.subr.msk.bf16.mxu0 %vm622_vm0, %v1980_v16 }
 0x3dd   : > { %2900 = vmatmul.mubr.msk.bf16.vlgmr.msra.gmra.mrb[16].mxu0 %vm622_vm0, %v3619_v4 }
 0x3de   : > { %2912 = vmatpush3.bf16.xpose.msra.mxu0 %v1989_v27  ;;  %2915 = vmatprep.mubr.msk.bf16.mxu0 %vm622_vm0, %v1978_v14  ;;  %v1399_v14 = vmul.f32 -1e+30, %v1398_v36 }
 0x3df   : > { %2982 = vmatprep.subr.msk.bf16.mxu0 %vm622_vm0, %v1981_v20 }
 0x3e0   : > { %v1421_v45 = vrot.slane %v1399_v14, %v1420_v54 }
 0x3e6   : > { %2914 = vmatpush3.bf16.xpose.msra.mxu0 %v1992_v28 }
 0x3ed   : > { %2916 = vmatmul.mubr.msk.bf16.vlgmr.msra.gmra.mrb[20].mxu0 %vm622_vm0, %v3621_v34 }
 0x451   : > { %v2861_v37 = vpop.f32.mrb[8].mxu0 }
 0x452   : > { %v1386_v3 = vadd.f32 %v2861_v37, %v2706_v33  ;;  %v1377_v4 = vpop.f32.mrb[9].mxu0 }
 0x453   : > { %v1378_v0 = vadd.f32 %v2706_v33, %v1377_v4  ;;  %v2862_v2 = vpop.f32.mrb[10].mxu0 }
 0x454   : > { %v1389_v38 = vadd.f32 %v2862_v2, %v2706_v33  ;;  %v1380_v40 = vpop.f32.mrb[11].mxu0  ;;  %v1396_v29 = vmul.f32 %v1386_v3, %v3371_v55 }
 0x455   : > { %v1381_v62 = vadd.f32 %v2706_v33, %v1380_v40  ;;  %v1394_v42 = vmul.f32 %v1378_v0, %v3396_v32 }
 0x456   : > { %v1397_v24 = vmul.f32 %v1389_v38, %v3390_v26 }
 0x457   : > { %v1395_v34 = vmul.f32 %v1381_v62, %v3328_v15 }
 0x458   : > { %v3706_v48 = vpack.c.bf16 %v1397_v24, %v1396_v29 }
 0x459   : > { %v3711_v43 = vpack.c.bf16 %v1395_v34, %v1394_v42 }
 0x45b   : > { %2879 = vmatprep.subr.msk.bf16.mxu1 %vm2715_vm15, %v3711_v43 }
 0x45c   : > { %2880 = vmatpush3.bf16.msk.msra.mxu1 %vm2715_vm15, %v3711_v43 }
 0x45d   : > { %2881 = vmatprep.subr.msk.bf16.mxu1 %vm2715_vm15, %v3706_v48 }
 0x460   : > { %2882 = vmatpush3.bf16.msk.msra.mxu1 %vm2715_vm15, %v3706_v48 }
 0x461   : > { %2887 = vmatprep.subr.msk.bf16.mxu1 %vm3719_vm1, %v3711_v43 }
 0x4a0   : > { %v2869_v51 = vpop.f32.mrb[0].mxu1  ;;  %v2877_v30 = vpop.f32.mrb[12].mxu0 }
 0x4a1   : > { %v3732_v52 = vadd.f32 %v2869_v51, %v1421_v45  ;;  %v3734_v56 = vadd.f32 %v2877_v30, %v1421_v45  ;;  %v1469_v46 = vpop.f32.mrb[1].mxu1  ;;  %v1599_v49 = vpop.f32.mrb[13].mxu0 }
 0x4a2   : > { %v3736_v53 = vadd.f32 %v1469_v46, %v1421_v45  ;;  %v1600_v47 = vadd.f32 %v1599_v49, %v1421_v45  ;;  %v2870_v25 = vpop.f32.mrb[2].mxu1  ;;  %v2878_v5 = vpop.f32.mrb[14].mxu0 }
 0x4a3   : > { %v3738_v13 = vadd.f32 %v2870_v25, %v1421_v45  ;;  %v3740_v31 = vadd.f32 %v2878_v5, %v1421_v45  ;;  %v1472_v59 = vpop.f32.mrb[3].mxu1  ;;  %v1602_v50 = vpop.f32.mrb[15].mxu0  ;;  %v1620_v58 = vsel %vm622_vm0, %v3734_v56, -inf  ;;  %v1490_v1 = vsel %vm622_vm0, %v3732_v52, -inf }
 0x4a4   : > { %v3742_v61 = vadd.f32 %v1472_v59, %v1421_v45  ;;  %v1603_v41 = vadd.f32 %v1602_v50, %v1421_v45  ;;  %v1614_v7 = vsel %vm622_vm0, %v1600_v47, -inf  ;;  %v1484_v17 = vsel %vm622_vm0, %v3736_v53, -inf }
 0x4a5   : > { %1615 = vmax.xlane.f32.xlu0 %v1614_v7  ;;  %v1623_v6 = vsel %vm622_vm0, %v3740_v31, -inf  ;;  %v1493_v18 = vsel %vm622_vm0, %v3738_v13, -inf }
 0x4a6   : > { %v1617_v39 = vsel %vm622_vm0, %v1603_v41, -inf  ;;  %v1487_v60 = vsel %vm622_vm0, %v3742_v61, -inf }
 0x4a7   : > { %1618 = vmax.xlane.f32.xlu1 %v1617_v39 }
 0x4a9   : > { %1621 = vmax.xlane.f32.xlu0 %v1620_v58 }
 0x4ab   : > { %1624 = vmax.xlane.f32.xlu1 %v1623_v6 }
 0x4ad   : > { %1485 = vmax.xlane.f32.xlu0 %v1484_v17 }
 0x4af   : > { %1488 = vmax.xlane.f32.xlu1 %v1487_v60 }
 0x4b0   : > { %v2901_v35 = vpop.f32.mrb[16].mxu0 }
 0x4b1   : > { %v3756_v8 = vadd.f32 %v2901_v35, %v1421_v45  ;;  %v1839_v9 = vpop.f32.mrb[17].mxu0  ;;  %1491 = vmax.xlane.f32.xlu0 %v1490_v1 }
 0x4b2   : > { %v3758_v10 = vadd.f32 %v1839_v9, %v1421_v45  ;;  %v2902_v16 = vpop.f32.mrb[18].mxu0 }
 0x4b3   : > { %v3762_v19 = vadd.f32 %v2902_v16, %v1421_v45  ;;  %v1842_v20 = vpop.f32.mrb[19].mxu0  ;;  %1494 = vmax.xlane.f32.xlu1 %v1493_v18  ;;  %v1860_v23 = vsel %vm622_vm0, %v3756_v8, -inf }
 0x4b4   : > { %v3764_v21 = vadd.f32 %v1842_v20, %v1421_v45  ;;  %v1854_v22 = vsel %vm622_vm0, %v3758_v10, -inf }
 0x4b5   : > { %1855 = vmax.xlane.f32.xlu0 %v1854_v22  ;;  %v1863_v27 = vsel %vm622_vm0, %v3762_v19, -inf }
 0x4b6   : > { %v1857_v11 = vsel %vm622_vm0, %v3764_v21, -inf }
 0x4b7   : > { %1858 = vmax.xlane.f32.xlu1 %v1857_v11 }
 0x4b9   : > { %1861 = vmax.xlane.f32.xlu0 %v1860_v23 }
 0x4bb   : > { %1864 = vmax.xlane.f32.xlu1 %v1863_v27 }
 0x4c0   : > { %v2917_v28 = vpop.f32.mrb[20].mxu0 }
 0x4c1   : > { %v3774_v33 = vadd.f32 %v2917_v28, %v1421_v45  ;;  %v2028_v37 = vpop.f32.mrb[21].mxu0 }
 0x4c2   : > { %v3776_v3 = vadd.f32 %v2028_v37, %v1421_v45  ;;  %v2918_v4 = vpop.f32.mrb[22].mxu0 }
 0x4c3   : > { %v3778_v0 = vadd.f32 %v2918_v4, %v1421_v45  ;;  %v2031_v2 = vpop.f32.mrb[23].mxu0  ;;  %v2049_v29 = vsel %vm622_vm0, %v3774_v33, -inf }
 0x4c4   : > { %v3780_v38 = vadd.f32 %v2031_v2, %v1421_v45  ;;  %v2043_v40 = vsel %vm622_vm0, %v3776_v3, -inf }
 0x4c5   : > { %2044 = vmax.xlane.f32.xlu0 %v2043_v40  ;;  %v2052_v24 = vsel %vm622_vm0, %v3778_v0, -inf }
 0x4c6   : > { %v2046_v62 = vsel %vm622_vm0, %v3780_v38, -inf }
 0x4c7   : > { %2047 = vmax.xlane.f32.xlu1 %v2046_v62 }
 0x4c9   : > { %2050 = vmax.xlane.f32.xlu0 %v2049_v29 }
 0x4cb   : > { %2053 = vmax.xlane.f32.xlu1 %v2052_v24 }
 0x532   : > { %v1616_v42 = vpop.xlane.xlu0 %1615 }
 0x533   : > { %v1626_v34 = vsub.f32 %v1600_v47, %v1616_v42 }
 0x534   : > { %v1619_v57 = vpop.xlane.xlu1 %1618 }
 0x535   : > { %v1630_v36 = vmul.f32 1.442695, %v1626_v34  ;;  %v1627_v14 = vsub.f32 %v1603_v41, %v1619_v57 }
 0x536   : > { %v1622_v54 = vpop.xlane.xlu0 %1621 }
 0x537   : > { %3044 = vpow2.f32 %v1630_v36  ;;  %v1632_v45 = vmul.f32 1.442695, %v1627_v14  ;;  %v1628_v51 = vsub.f32 %v3734_v56, %v1622_v54 }
 0x538   : > { %v1625_v30 = vpop.xlane.xlu1 %1624 }
 0x539   : > { %3046 = vpow2.f32 %v1632_v45  ;;  %v1634_v46 = vmul.f32 1.442695, %v1628_v51  ;;  %v1629_v49 = vsub.f32 %v3740_v31, %v1625_v30 }
 0x53a   : > { %v1486_v25 = vpop.xlane.xlu0 %1485 }
 0x53b   : > { %3048 = vpow2.f32 %v1634_v46  ;;  %v1636_v5 = vmul.f32 1.442695, %v1629_v49  ;;  %v1496_v59 = vsub.f32 %v3736_v53, %v1486_v25 }
 0x53c   : > { %v1489_v50 = vpop.xlane.xlu1 %1488 }
 0x53d   : > { %3050 = vpow2.f32 %v1636_v5  ;;  %v1500_v47 = vmul.f32 1.442695, %v1496_v59  ;;  %v1497_v41 = vsub.f32 %v3742_v61, %v1489_v50 }
 0x53e   : > { %v1492_v7 = vpop.xlane.xlu0 %1491 }
 0x53f   : > { %3052 = vpow2.f32 %v1500_v47  ;;  %v1502_v39 = vmul.f32 1.442695, %v1497_v41  ;;  %v1498_v56 = vsub.f32 %v3732_v52, %v1492_v7 }
 0x540   : > { %v1495_v58 = vpop.xlane.xlu1 %1494 }
 0x541   : > { %v3795_v6 = vpop.eup %3044  ;;  %3054 = vpow2.f32 %v1502_v39  ;;  %v1504_v31 = vmul.f32 1.442695, %v1498_v56  ;;  %v1499_v17 = vsub.f32 %v3738_v13, %v1495_v58 }
 0x542   : > { %v1856_v60 = vpop.xlane.xlu0 %1855  ;;  %v1638_v53 = vsel %vm622_vm0, %v3795_v6, 0.0 }
 0x543   : > { %v3800_v35 = vpop.eup %3046  ;;  %3056 = vpow2.f32 %v1504_v31  ;;  %v1506_v61 = vmul.f32 1.442695, %v1499_v17  ;;  %v1866_v1 = vsub.f32 %v3758_v10, %v1856_v60  ;;  %1639 = vadd.xlane.f32.xlu0 %v1638_v53 }
 0x544   : > { %v1859_v9 = vpop.xlane.xlu1 %1858  ;;  %v1641_v52 = vsel %vm622_vm0, %v3800_v35, 0.0 }
 0x545   : > { %v3805_v16 = vpop.eup %3048  ;;  %3058 = vpow2.f32 %v1506_v61  ;;  %v1870_v18 = vmul.f32 1.442695, %v1866_v1  ;;  %v1867_v13 = vsub.f32 %v3764_v21, %v1859_v9  ;;  %1642 = vadd.xlane.f32.xlu1 %v1641_v52 }
 0x546   : > { %v1862_v20 = vpop.xlane.xlu0 %1861  ;;  %v1644_v22 = vsel %vm622_vm0, %v3805_v16, 0.0 }
 0x547   : > { %v3810_v11 = vpop.eup %3050  ;;  %3060 = vpow2.f32 %v1870_v18  ;;  %v1872_v10 = vmul.f32 1.442695, %v1867_v13  ;;  %v1868_v23 = vsub.f32 %v3756_v8, %v1862_v20  ;;  %1645 = vadd.xlane.f32.xlu0 %v1644_v22 }
 0x548   : > { %v1865_v27 = vpop.xlane.xlu1 %1864  ;;  %v1647_v28 = vsel %vm622_vm0, %v3810_v11, 0.0 }
 0x549   : > { %v3815_v37 = vpop.eup %3052  ;;  %3062 = vpow2.f32 %v1872_v10  ;;  %v1874_v21 = vmul.f32 1.442695, %v1868_v23  ;;  %v1869_v4 = vsub.f32 %v3762_v19, %v1865_v27  ;;  %1648 = vadd.xlane.f32.xlu1 %v1647_v28 }
 0x54a   : > { %v1508_v2 = vsel %vm622_vm0, %v3815_v37, 0.0 }
 0x54b   : > { %v3820_v40 = vpop.eup %3054  ;;  %3064 = vpow2.f32 %v1874_v21  ;;  %v1876_v62 = vmul.f32 1.442695, %v1869_v4  ;;  %1509 = vadd.xlane.f32.xlu0 %v1508_v2 }
 0x54c   : > { %v1511_v8 = vsel %vm622_vm0, %v3820_v40, 0.0 }
 0x54d   : > { %v3824_v29 = vpop.eup %3056  ;;  %3066 = vpow2.f32 %v1876_v62  ;;  %1512 = vadd.xlane.f32.xlu1 %v1511_v8 }
 0x54e   : > { %v1514_v24 = vsel %vm622_vm0, %v3824_v29, 0.0 }
 0x54f   : > { %v3828_v19 = vpop.eup %3058  ;;  %1515 = vadd.xlane.f32.xlu0 %v1514_v24 }
 0x550   : > { %v1517_v42 = vsel %vm622_vm0, %v3828_v19, 0.0 }
 0x551   : > { %v3832_v34 = vpop.eup %3060  ;;  %1518 = vadd.xlane.f32.xlu1 %v1517_v42 }
 0x552   : > { %v2045_v57 = vpop.xlane.xlu0 %2044  ;;  %v1878_v36 = vsel %vm622_vm0, %v3832_v34, 0.0 }
 0x553   : > { %v3836_v14 = vpop.eup %3062  ;;  %v2055_v54 = vsub.f32 %v3776_v3, %v2045_v57  ;;  %1879 = vadd.xlane.f32.xlu0 %v1878_v36 }
 0x554   : > { %v2048_v45 = vpop.xlane.xlu1 %2047  ;;  %v1881_v51 = vsel %vm622_vm0, %v3836_v14, 0.0 }
 0x555   : > { %v3841_v30 = vpop.eup %3064  ;;  %v2059_v46 = vmul.f32 1.442695, %v2055_v54  ;;  %v2056_v49 = vsub.f32 %v3780_v38, %v2048_v45  ;;  %1882 = vadd.xlane.f32.xlu1 %v1881_v51  ;;  %v3127_v51 = vld [vmem:[%s3249_s1 + $0x18] sm:$0xff] }
 0x556   : > { %v2051_v25 = vpop.xlane.xlu0 %2050  ;;  %v1884_v5 = vsel %vm622_vm0, %v3841_v30, 0.0 }
 0x557   : > { %v3846_v59 = vpop.eup %3066  ;;  %3068 = vpow2.f32 %v2059_v46  ;;  %v2061_v50 = vmul.f32 1.442695, %v2056_v49  ;;  %v2057_v3 = vsub.f32 %v3774_v33, %v2051_v25  ;;  %1885 = vadd.xlane.f32.xlu0 %v1884_v5 }
 0x558   : > { %v2054_v47 = vpop.xlane.xlu1 %2053  ;;  %v1887_v41 = vsel %vm622_vm0, %v3846_v59, 0.0 }
 0x559   : > { %3070 = vpow2.f32 %v2061_v50  ;;  %v2063_v7 = vmul.f32 1.442695, %v2057_v3  ;;  %v2058_v38 = vsub.f32 %v3778_v0, %v2054_v47  ;;  %1888 = vadd.xlane.f32.xlu1 %v1887_v41 }
 0x55b   : > { %3072 = vpow2.f32 %v2063_v7  ;;  %v2065_v39 = vmul.f32 1.442695, %v2058_v38 }
 0x55d   : > { %3074 = vpow2.f32 %v2065_v39 }
 0x561   : > { %v3852_v56 = vpop.eup %3068 }
 0x562   : > { %v2067_v58 = vsel %vm622_vm0, %v3852_v56, 0.0 }
 0x563   : > { %v3856_v31 = vpop.eup %3070  ;;  %2068 = vadd.xlane.f32.xlu0 %v2067_v58 }
 0x564   : > { %v2070_v33 = vsel %vm622_vm0, %v3856_v31, 0.0 }
 0x565   : > { %v3860_v17 = vpop.eup %3072  ;;  %2071 = vadd.xlane.f32.xlu1 %v2070_v33 }
 0x566   : > { %v2073_v0 = vsel %vm622_vm0, %v3860_v17, 0.0 }
 0x567   : > { %v3864_v60 = vpop.eup %3074  ;;  %2074 = vadd.xlane.f32.xlu0 %v2073_v0 }
 0x568   : > { %v2076_v53 = vsel %vm622_vm0, %v3864_v60, 0.0 }
 0x569   : > { %2077 = vadd.xlane.f32.xlu1 %v2076_v53 }
 0x5d0   : > { %v1640_v61 = vpop.xlane.xlu0 %1639 }
 0x5d1   : > { %3076 = vrcp.f32 %v1640_v61 }
 0x5d2   : > { %v1643_v1 = vpop.xlane.xlu1 %1642 }
 0x5d3   : > { %3078 = vrcp.f32 %v1643_v1 }
 0x5d4   : > { %v1646_v9 = vpop.xlane.xlu0 %1645 }
 0x5d5   : > { %3080 = vrcp.f32 %v1646_v9  ;;  %v3001_v9 = vld [vmem:[%s4059_s10 + $0x8] sm:$0xff]  }
 0x5d6   : > { %v1649_v52 = vpop.xlane.xlu1 %1648 }
 0x5d7   : > { %3082 = vrcp.f32 %v1649_v52 }
 0x5d8   : > { %v1510_v18 = vpop.xlane.xlu0 %1509 }
 0x5d9   : > { %3084 = vrcp.f32 %v1510_v18 }
 0x5da   : > { %v1513_v13 = vpop.xlane.xlu1 %1512 }
 0x5db   : > { %v3077_v20 = vpop.eup %3076  ;;  %3086 = vrcp.f32 %v1513_v13 }
 0x5dc   : > { %v1516_v22 = vpop.xlane.xlu0 %1515  ;;  %v1654_v27 = vmul.f32 %v3077_v20, %v3795_v6 }
 0x5dd   : > { %v3079_v10 = vpop.eup %3078 }
 0x5de   : > { %v1519_v23 = vpop.xlane.xlu1 %1518  ;;  %v1655_v28 = vmul.f32 %v3079_v10, %v3800_v35 }
 0x5df   : > { %v3081_v21 = vpop.eup %3080  ;;  %3088 = vrcp.f32 %v1519_v23 }
 0x5e0   : > { %3090 = vrcp.f32 %v1516_v22  ;;  %v1880_v4 = vpop.xlane.xlu0 %1879  ;;  %v1662_v2 = vpack.c.bf16 %v1655_v28, %v1654_v27  ;;  %v1656_v8 = vmul.f32 %v3081_v21, %v3805_v16 }
 0x5e1   : > { %v3083_v62 = vpop.eup %3082  ;;  %3092 = vrcp.f32 %v1880_v4 }
 0x5e2   : > { %v1657_v24 = vmul.f32 %v3083_v62, %v3810_v11  ;;  %v1883_v42 = vpop.xlane.xlu1 %1882  ;;  %2883 = vmatprep.mubr.msk.bf16.mxu1 %vm622_vm0, %v1662_v2 }
 0x5e3   : > { %v3085_v57 = vpop.eup %3084  ;;  %3094 = vrcp.f32 %v1883_v42 }
 0x5e4   : > { %v1663_v36 = vpack.c.bf16 %v1657_v24, %v1656_v8  ;;  %v1524_v35 = vmul.f32 %v3085_v57, %v3815_v37  ;;  %v3124_v8 = vld [vmem:[%s3249_s1] sm:$0xff]  ;;  %v3125_v57 = vld [vmem:[%s3249_s1 + $0x8] sm:$0xff] }
 0x5e5   : > { %v3087_v6 = vpop.eup %3086  ;;  %v2238_v24 = vmul.f32 %v3124_v8, %v3396_v32  ;;  %v2757_v8 = vld [vmem:[%s4062_s13] ss:$0 sm:$0xff] }
 0x5e6   : > { %2884 = vmatmul.mubr.msk.bf16.vlgmr.msra.gmra.mrb[4].mxu1 %vm622_vm0, %v1663_v36  ;;  %v1525_v54 = vmul.f32 %v3087_v6, %v3820_v40  ;;  %v1889_v16 = vpop.xlane.xlu1 %1888  ;;  %v1886_v40 = vpop.xlane.xlu0 %1885  ;;  %v2239_v36 = vmul.f32 %v3125_v57, %v3328_v15  ;;  %v3126_v6 = vld [vmem:[%s3249_s1 + $0x10] sm:$0xff] }
 0x5e7   : > { %2888 = vmatpush3.bf16.msk.msra.mxu1 %vm3719_vm1, %v3711_v43  ;;  %3096 = vrcp.f32 %v1889_v16 }
 0x5e8   : > { %2889 = vmatprep.subr.msk.bf16.mxu1 %vm3719_vm1, %v3706_v48  ;;  %v1532_v11 = vpack.c.bf16 %v1525_v54, %v1524_v35  ;;  %3098 = vrcp.f32 %v1886_v40  ;;  %v2240_v35 = vmul.f32 %v3126_v6, %v3371_v55 }
 0x5e9   : > { %v3089_v45 = vpop.eup %3088 }
 0x5ea   : > { %v3091_v37 = vpop.eup %3090  ;;  %2891 = vmatprep.mubr.msk.bf16.mxu1 %vm622_vm0, %v1532_v11  ;;  %v1527_v49 = vmul.f32 %v3089_v45, %v3828_v19 }
 0x5eb   : > { %v3093_v46 = vpop.eup %3092  ;;  %2890 = vmatpush3.bf16.msk.msra.mxu1 %vm3719_vm1, %v3706_v48  ;;  %v1526_v25 = vmul.f32 %v3091_v37, %v3824_v29  ;;  %v2241_v37 = vmul.f32 %v3127_v51, %v3390_v26 }
 0x5ec   : > { %2903 = vmatprep.subr.msk.bf16.mxu1 %vm3885_vm2, %v3711_v43  ;;  %v1894_v5 = vmul.f32 %v3093_v46, %v3832_v34 }
 0x5ed   : > { %v3095_v44 = vpop.eup %3094  ;;  %v1533_v47 = vpack.c.bf16 %v1527_v49, %v1526_v25 }
 0x5ee   : > { %v1895_v50 = vmul.f32 %v3095_v44, %v3836_v14 }
 0x5f0   : > { %v2069_v3 = vpop.xlane.xlu0 %2068  ;;  %v1902_v41 = vpack.c.bf16 %v1895_v50, %v1894_v5 }
 0x5f1   : > { %3100 = vrcp.f32 %v2069_v3  ;;  %v3097_v29 = vpop.eup %3096 }
 0x5f2   : > { %v2072_v12 = vpop.xlane.xlu1 %2071  ;;  %2892 = vmatmul.mubr.msk.bf16.vlgmr.msra.gmra.mrb[4].mxu1 %vm622_vm0, %v1533_v47  ;;  %v3099_v7 = vpop.eup %3098  ;;  %v1897_v38 = vmul.f32 %v3097_v29, %v3846_v59 }
 0x5f3   : > { %3102 = vrcp.f32 %v2072_v12  ;;  %2904 = vmatpush3.bf16.msk.msra.mxu1 %vm3885_vm2, %v3711_v43  ;;  %2907 = vmatprep.mubr.msk.bf16.mxu1 %vm622_vm0, %v1902_v41  ;;  %v1896_v63 = vmul.f32 %v3099_v7, %v3841_v30  ;;  %v3000_v30 = vld [vmem:[%s4059_s10] sm:$0xff]  }
 0x5f4   : > { %2905 = vmatprep.subr.msk.bf16.mxu1 %vm3885_vm2, %v3706_v48  ;;  %v2075_v34 = vpop.xlane.xlu0 %2074 }
 0x5f5   : > { %v1903_v58 = vpack.c.bf16 %v1897_v38, %v1896_v63 }
 0x5f6   : > { %v2078_v14 = vpop.xlane.xlu1 %2077 }
 0x5f7   : > { %3104 = vrcp.f32 %v2078_v14  ;;  %2906 = vmatpush3.bf16.msk.msra.mxu1 %vm3885_vm2, %v3706_v48 }
 0x5f8   : > { %2919 = vmatprep.subr.msk.bf16.mxu1 %vm3911_vm3, %v3711_v43  ;;  %3106 = vrcp.f32 %v2075_v34 }
 0x5fb   : > { %v3101_v39 = vpop.eup %3100 }
 0x5fc   : > { %v2083_v0 = vmul.f32 %v3101_v39, %v3852_v56 }
 0x5fd   : > { %v3103_v33 = vpop.eup %3102 }
 0x5fe   : > { %2908 = vmatmul.mubr.msk.bf16.vlgmr.msra.gmra.mrb[4].mxu1 %vm622_vm0, %v1903_v58  ;;  %v2084_v53 = vmul.f32 %v3103_v33, %v3856_v31 }
 0x5ff   : > { %2920 = vmatpush3.bf16.msk.msra.mxu1 %vm3911_vm3, %v3711_v43 }
 0x600   : > { %2921 = vmatprep.subr.msk.bf16.mxu1 %vm3911_vm3, %v3706_v48  ;;  %v2091_v59 = vpack.c.bf16 %v2084_v53, %v2083_v0 }
 0x601   : > { %v3105_v61 = vpop.eup %3104 }
 0x602   : > { %2923 = vmatprep.mubr.msk.bf16.mxu1 %vm622_vm0, %v2091_v59  ;;  %v3107_v1 = vpop.eup %3106  ;;  %v2086_v56 = vmul.f32 %v3105_v61, %v3864_v60 }
 0x603   : > { %2922 = vmatpush3.bf16.msk.msra.mxu1 %vm3911_vm3, %v3706_v48  ;;  %v2085_v43 = vmul.f32 %v3107_v1, %v3860_v17  ;;  %v2751_v17 = vld [vmem:[%s4060_s11] ss:$0 sm:$0xff] }
 0x604   : > { %2927 = vmatprep.subr.bf16.mxu1 %v3000_v30  ;;  %v3002_v1 = vld [vmem:[%s4063_s14] sm:$0xff]  }
 0x605   : > { %v2092_v31 = vpack.c.bf16 %v2086_v56, %v2085_v43  ;;  %v3003_v56 = vld [vmem:[%s4063_s14 + $0x8] sm:$0xff]   ;;  %2935 = vmatprep.subr.bf16.mxu0 %v3002_v1 }
 0x606   : > { %2936 = vmatpush3.bf16.msra.mxu0 %v3002_v1 }
 0x607   : > { %2937 = vmatprep.subr.bf16.mxu0 %v3003_v56 }
 0x60a   : > { %2924 = vmatmul.mubr.msk.bf16.vlgmr.msra.gmra.mrb[4].mxu1 %vm622_vm0, %v2092_v31  ;;  %2938 = vmatpush3.bf16.msra.mxu0 %v3003_v56 }
 0x60b   : > { %2928 = vmatpush3.bf16.msra.mxu1 %v3000_v30 }
 0x60c   : > { %2929 = vmatprep.subr.bf16.mxu1 %v3001_v9 }
 0x60f   : > { %2930 = vmatpush3.bf16.msra.mxu1 %v3001_v9 }
 0x6dd   : > { %v2925_v52 = vpop.f32.mrb[4].mxu1 }
 0x6de   : > { %v2135_v18 = vpop.f32.mrb[5].mxu1 }
 0x6df   : > { %v2926_v13 = vpop.f32.mrb[6].mxu1 }
 0x6e0   : > { %v2159_v48 = vpack.c.bf16 %v2926_v13, %v2925_v52  ;;  %v2138_v20 = vpop.f32.mrb[7].mxu1 }
 0x6e1   : > { %v2158_v60 = vpack.c.bf16 %v2138_v20, %v2135_v18 }
 0x6e3   : > { %2931 = vmatprep.mubr.msk.bf16.mxu1 %vm622_vm0, %v2158_v60 }
 0x6e4   : > { %2932 = vmatmul.mubr.msk.bf16.vlgmr.msra.gmra.mrb[8].mxu1 %vm622_vm0, %v2159_v48 }
 0x7b7   : > { %v2933_v22 = vpop.f32.mrb[8].mxu1 }
 0x7b8   : > { %v2228_v10 = vadd.f32 %v2933_v22, %v2751_v17  ;;  %v2219_v23 = vpop.f32.mrb[9].mxu1 }
 0x7b9   : > { %v2220_v27 = vadd.f32 %v2751_v17, %v2219_v23  ;;  %v2934_v28 = vpop.f32.mrb[10].mxu1 }
 0x7ba   : > { %v2231_v21 = vadd.f32 %v2934_v28, %v2751_v17  ;;  %v2222_v4 = vpop.f32.mrb[11].mxu1  ;;  %v2236_v2 = vmul.f32 %v2228_v10, %v3371_v55 }
 0x7bb   : > { %v2234_v62 = vmul.f32 %v2220_v27, %v3396_v32  ;;  %v2223_v42 = vadd.f32 %v2751_v17, %v2222_v4  ;;  %v2756_v27 = vld [vmem:[%s4061_s12] ss:$0 sm:$0xff] }
 0x7bc   : > { %v2237_v16 = vmul.f32 %v2231_v21, %v3390_v26  ;;  %v3962_v45 = vadd.f32 %v2240_v35, %v2236_v2 }
 0x7bd   : > { %v3958_v54 = vadd.f32 %v2238_v24, %v2234_v62  ;;  %v2235_v11 = vmul.f32 %v2223_v42, %v3328_v15 }
 0x7be   : > { %v3970_v49 = vadd.f32 %v2241_v37, %v2237_v16  ;;  %v2254_v25 = vsel %vm622_vm0, %v3962_v45, 0.0 }
 0x7bf   : > { %v3966_v40 = vadd.f32 %v2239_v36, %v2235_v11  ;;  %v2248_v46 = vsel %vm622_vm0, %v3958_v54, 0.0 }
 0x7c0   : > { %2249 = vadd.xlane.f32.xlu0 %v2248_v46  ;;  %v2257_v5 = vsel %vm622_vm0, %v3970_v49, 0.0 }
 0x7c1   : > { %v2251_v44 = vsel %vm622_vm0, %v3966_v40, 0.0 }
 0x7c2   : > { %2252 = vadd.xlane.f32.xlu1 %v2251_v44 }
 0x7c4   : > { %2255 = vadd.xlane.f32.xlu0 %v2254_v25  ;;  %v3004_v25 = vld [vmem:[%s4065_s16] sm:$0xff]  }
 0x7c5   : > { %2943 = vmatprep.subr.bf16.mxu1 %v3004_v25 }
 0x7c6   : > { %2258 = vadd.xlane.f32.xlu1 %v2257_v5  ;;  %2944 = vmatpush3.bf16.msra.mxu1 %v3004_v25  ;;  %v3005_v5 = vld [vmem:[%s4065_s16 + $0x8] sm:$0xff]  }
 0x7c7   : > { %2945 = vmatprep.subr.bf16.mxu1 %v3005_v5 }
 0x7ca   : > { %2946 = vmatpush3.bf16.msra.mxu1 %v3005_v5 }
 0x84d   : > { %v2250_v50 = vpop.xlane.xlu0 %2249 }
 0x84e   : > { %v2260_v3 = vmul.f32 0.03125, %v2250_v50  ;;  %v3006_v50 = vld [vmem:[%s4065_s16 + $0x10] sm:$0xff]  }
 0x84f   : > { %v2253_v47 = vpop.xlane.xlu1 %2252  ;;  %2947 = vmatprep.subr.bf16.mxu1 %v3006_v50 }
 0x850   : > { %v2264_v41 = vsub.f32 %v3958_v54, %v2260_v3  ;;  %v2261_v12 = vmul.f32 0.03125, %v2253_v47  ;;  %v3007_v3 = vld [vmem:[%s4065_s16 + $0x18] sm:$0xff]   ;;  %2948 = vmatpush3.bf16.msra.mxu1 %v3006_v50  ;;  %v3008_v47 = vld [vmem:[%s4065_s16 + $0x20] sm:$0xff]  }
 0x851   : > { %v2256_v29 = vpop.xlane.xlu0 %2255  ;;  %2949 = vmatprep.subr.bf16.mxu1 %v3007_v3 }
 0x852   : > { %v2265_v19 = vsub.f32 %v3966_v40, %v2261_v12  ;;  %v2262_v34 = vmul.f32 0.03125, %v2256_v29  ;;  %v2268_v14 = vmul.f32 %v2264_v41, %v2264_v41  ;;  %v3010_v12 = vld [vmem:[%s4065_s16 + $0x30] sm:$0xff]   ;;  %v3011_v29 = vld [vmem:[%s4065_s16 + $0x38] sm:$0xff]  }
 0x853   : > { %v2259_v7 = vpop.xlane.xlu1 %2258 }
 0x854   : > { %v2266_v38 = vsub.f32 %v3962_v45, %v2262_v34  ;;  %v2263_v63 = vmul.f32 0.03125, %v2259_v7  ;;  %v2272_v39 = vsel %vm622_vm0, %v2268_v14, 0.0  ;;  %v2269_v58 = vmul.f32 %v2265_v19, %v2265_v19  ;;  %2950 = vmatpush3.bf16.msra.mxu1 %v3007_v3 }
 0x855   : > { %2273 = vadd.xlane.f32.xlu0 %v2272_v39  ;;  %2951 = vmatprep.subr.bf16.mxu1 %v3008_v47 }
 0x856   : > { %v2267_v33 = vsub.f32 %v3970_v49, %v2263_v63  ;;  %v2275_v0 = vsel %vm622_vm0, %v2269_v58, 0.0  ;;  %v2270_v53 = vmul.f32 %v2266_v38, %v2266_v38 }
 0x857   : > { %2276 = vadd.xlane.f32.xlu1 %v2275_v0 }
 0x858   : > { %v2278_v59 = vsel %vm622_vm0, %v2270_v53, 0.0  ;;  %v2271_v30 = vmul.f32 %v2267_v33, %v2267_v33  ;;  %2952 = vmatpush3.bf16.msra.mxu1 %v3008_v47 }
 0x859   : > { %2279 = vadd.xlane.f32.xlu0 %v2278_v59 }
 0x85a   : > { %v2281_v61 = vsel %vm622_vm0, %v2271_v30, 0.0 }
 0x85b   : > { %2282 = vadd.xlane.f32.xlu1 %v2281_v61 }
 0x8e2   : > { %v2274_v43 = vpop.xlane.xlu0 %2273 }
 0x8e3   : > { %v2284_v31 = vmul.f32 0.03125, %v2274_v43 }
 0x8e4   : > { %v2277_v9 = vpop.xlane.xlu1 %2276 }
 0x8e5   : > { %v2288_v52 = vadd.f32 1e-05, %v2284_v31  ;;  %v2285_v18 = vmul.f32 0.03125, %v2277_v9 }
 0x8e6   : > { %v2280_v13 = vpop.xlane.xlu0 %2279 }
 0x8e7   : > { %3108 = vrsqrt.f32 %v2288_v52  ;;  %v2289_v48 = vadd.f32 1e-05, %v2285_v18  ;;  %v2286_v20 = vmul.f32 0.03125, %v2280_v13 }
 0x8e8   : > { %v2283_v60 = vpop.xlane.xlu1 %2282 }
 0x8e9   : > { %3110 = vrsqrt.f32 %v2289_v48  ;;  %v2290_v17 = vadd.f32 1e-05, %v2286_v20  ;;  %v2287_v22 = vmul.f32 0.03125, %v2283_v60 }
 0x8eb   : > { %3112 = vrsqrt.f32 %v2290_v17  ;;  %v2291_v10 = vadd.f32 1e-05, %v2287_v22 }
 0x8ed   : > { %3114 = vrsqrt.f32 %v2291_v10 }
 0x8f1   : > { %v3109_v23 = vpop.eup %3108 }
 0x8f2   : > { %v2296_v28 = vmul.f32 %v3109_v23, %v2264_v41  ;;  %v3009_v41 = vld [vmem:[%s4065_s16 + $0x28] sm:$0xff]  }
 0x8f3   : > { %v3111_v21 = vpop.eup %3110  ;;  %2953 = vmatprep.subr.bf16.mxu1 %v3009_v41 }
 0x8f4   : > { %v2297_v4 = vmul.f32 %v3111_v21, %v2265_v19  ;;  %v2306_v2 = vmul.f32 %v2756_v27, %v2296_v28  ;;  %2954 = vmatpush3.bf16.msra.mxu1 %v3009_v41  ;;  %v2758_v19 = vld [vmem:[%s4064_s15] ss:$0 sm:$0xff] }
 0x8f5   : > { %v3113_v62 = vpop.eup %3112  ;;  %2955 = vmatprep.subr.bf16.mxu1 %v3010_v12 }
 0x8f6   : > { %v2298_v24 = vmul.f32 %v3113_v62, %v2266_v38  ;;  %v2307_v42 = vmul.f32 %v2756_v27, %v2297_v4  ;;  %v2316_v35 = vadd.f32 %v2757_v8, %v2306_v2 }
 0x8f7   : > { %v3115_v57 = vpop.eup %3114 }
 0x8f8   : > { %v2308_v36 = vmul.f32 %v2756_v27, %v2298_v24  ;;  %v2299_v6 = vmul.f32 %v3115_v57, %v2267_v33  ;;  %v2317_v16 = vadd.f32 %v2757_v8, %v2307_v42  ;;  %2956 = vmatpush3.bf16.msra.mxu1 %v3010_v12 }
 0x8f9   : > { %2957 = vmatprep.subr.bf16.mxu1 %v3011_v29 }
 0x8fa   : > { %v2309_v11 = vmul.f32 %v2756_v27, %v2299_v6  ;;  %v2324_v51 = vpack.c.bf16 %v2317_v16, %v2316_v35  ;;  %v2318_v37 = vadd.f32 %v2757_v8, %v2308_v36 }
 0x8fc   : > { %2939 = vmatprep.mubr.msk.bf16.mxu0 %vm622_vm0, %v2324_v51  ;;  %v2319_v46 = vadd.f32 %v2757_v8, %v2309_v11  ;;  %2958 = vmatpush3.bf16.msra.mxu1 %v3011_v29 }
 0x8fe   : > { %v2325_v44 = vpack.c.bf16 %v2319_v46, %v2318_v37 }
 0x900   : > { %2940 = vmatmul.mubr.msk.bf16.vlgmr.msra.gmra.mrb[24].mxu0 %vm622_vm0, %v2325_v44  ;;  %v2763_v44 = vld [vmem:[%s4066_s17] ss:$0 sm:$0xff] }
 0x9d3   : > { %v2941_v34 = vpop.f32.mrb[24].mxu0 }
 0x9d4   : > { %v2394_v14 = vadd.f32 %v2941_v34, %v2758_v19  ;;  %v2385_v7 = vpop.f32.mrb[25].mxu0 }
 0x9d5   : > { %v2386_v38 = vadd.f32 %v2758_v19, %v2385_v7  ;;  %v2942_v63 = vpop.f32.mrb[26].mxu0 }
 0x9d6   : > { %v2406_v39 = vmul.f32 %v2394_v14, %v2394_v14  ;;  %v2397_v58 = vadd.f32 %v2942_v63, %v2758_v19  ;;  %v2388_v33 = vpop.f32.mrb[27].mxu0  ;;  %v2402_v8 = vmul.f32 0.5, %v2394_v14 }
 0x9d7   : > { %v2404_v0 = vmul.f32 %v2386_v38, %v2386_v38  ;;  %v2389_v53 = vadd.f32 %v2758_v19, %v2388_v33  ;;  %v2400_v57 = vmul.f32 0.5, %v2386_v38 }
 0x9d8   : > { %v2410_v59 = vmul.f32 %v2406_v39, %v2394_v14  ;;  %v2407_v30 = vmul.f32 %v2397_v58, %v2397_v58  ;;  %v2403_v24 = vmul.f32 0.5, %v2397_v58 }
 0x9d9   : > { %v2408_v61 = vmul.f32 %v2404_v0, %v2386_v38  ;;  %v2405_v1 = vmul.f32 %v2389_v53, %v2389_v53  ;;  %v2401_v36 = vmul.f32 0.5, %v2389_v53 }
 0x9da   : > { %v2414_v56 = vmul.f32 0.044715, %v2410_v59  ;;  %v2411_v43 = vmul.f32 %v2407_v30, %v2397_v58 }
 0x9db   : > { %v2412_v31 = vmul.f32 0.044715, %v2408_v61  ;;  %v2409_v9 = vmul.f32 %v2405_v1, %v2389_v53 }
 0x9dc   : > { %v2418_v52 = vadd.f32 %v2414_v56, %v2394_v14  ;;  %v2415_v18 = vmul.f32 0.044715, %v2411_v43 }
 0x9dd   : > { %v2416_v13 = vadd.f32 %v2412_v31, %v2386_v38  ;;  %v2413_v48 = vmul.f32 0.044715, %v2409_v9 }
 0x9de   : > { %v2422_v20 = vmul.f32 0.7978846, %v2418_v52  ;;  %v2419_v60 = vadd.f32 %v2415_v18, %v2397_v58 }
 0x9df   : > { %v2420_v17 = vmul.f32 0.7978846, %v2416_v13  ;;  %v2417_v22 = vadd.f32 %v2413_v48, %v2389_v53 }
 0x9e0   : > { %3116 = vtanh.f32 %v2422_v20  ;;  %v2423_v10 = vmul.f32 0.7978846, %v2419_v60 }
 0x9e1   : > { %3118 = vtanh.f32 %v2420_v17  ;;  %v2421_v23 = vmul.f32 0.7978846, %v2417_v22 }
 0x9e2   : > { %3120 = vtanh.f32 %v2423_v10 }
 0x9e3   : > { %3122 = vtanh.f32 %v2421_v23 }
 0x9ea   : > { %v3117_v27 = vpop.eup %3116 }
 0x9eb   : > { %v3119_v28 = vpop.eup %3118  ;;  %v2430_v21 = vadd.f32 1.0, %v3117_v27 }
 0x9ec   : > { %v3121_v4 = vpop.eup %3120  ;;  %v2428_v2 = vadd.f32 1.0, %v3119_v28 }
 0x9ed   : > { %v3123_v62 = vpop.eup %3122  ;;  %v2431_v42 = vadd.f32 1.0, %v3121_v4  ;;  %v2434_v35 = vmul.f32 %v2430_v21, %v2402_v8 }
 0x9ee   : > { %v2429_v6 = vadd.f32 1.0, %v3123_v62  ;;  %v2432_v11 = vmul.f32 %v2428_v2, %v2400_v57 }
 0x9ef   : > { %v2435_v16 = vmul.f32 %v2431_v42, %v2403_v24 }
 0x9f0   : > { %v2433_v51 = vmul.f32 %v2429_v6, %v2401_v36 }
 0x9f1   : > { %v2453_v37 = vpack.c.bf16 %v2435_v16, %v2434_v35 }
 0x9f2   : > { %v2452_v46 = vpack.c.bf16 %v2433_v51, %v2432_v11 }
 0x9f4   : > { %2959 = vmatprep.mubr.bf16.mxu1 %v2452_v46 }
 0x9f5   : > { %2960 = vmatmul.mubr.bf16.vlgmr.msra.gmra.mrb[12].mxu1 %v2453_v37 }
 0xac8   : > { %v2961_v25 = vpop.f32.mrb[12].mxu1 }
 0xac9   : > { %v2552_v5 = vadd.f32 %v2961_v25, %v2763_v44  ;;  %v2543_v50 = vpop.f32.mrb[13].mxu1 }
 0xaca   : > { %v2544_v3 = vadd.f32 %v2763_v44, %v2543_v50  ;;  %v2962_v47 = vpop.f32.mrb[14].mxu1 }
 0xacb   : > { %v2560_v41 = vmul.f32 %v2552_v5, %v3371_v55  ;;  %v2555_v12 = vadd.f32 %v2962_v47, %v2763_v44  ;;  %v2546_v29 = vpop.f32.mrb[15].mxu1 }
 0xacc   : > { %v2558_v19 = vmul.f32 %v2544_v3, %v3396_v32  ;;  %v2547_v34 = vadd.f32 %v2763_v44, %v2546_v29 }
 0xacd   : > { %v2564_v14 = vadd.f32 %v2560_v41, %v3962_v45  ;;  %v2561_v7 = vmul.f32 %v2555_v12, %v3390_v26 }
 0xace   : > { %v2562_v38 = vadd.f32 %v2558_v19, %v3958_v54  ;;  %v2559_v63 = vmul.f32 %v2547_v34, %v3328_v15 }
 0xacf   : > { %2568 = vst.msk [vmem:[%s609_s22 + $0x10] sm:$0xff] %vm622_vm0, %v2564_v14  ;;  %v2565_v55 = vadd.f32 %v2561_v7, %v3970_v49 }
 0xad0   : > { %2566 = vst.msk [vmem:[%s609_s22] sm:$0xff] %vm622_vm0, %v2562_v38  ;;  %v2563_v39 = vadd.f32 %v2559_v63, %v3966_v40 }
 0xad1   : > { %2569 = vst.msk [vmem:[%s609_s22 + $0x18] sm:$0xff] %vm622_vm0, %v2565_v55 }
 0xad2   : > { %2567 = vst.msk [vmem:[%s609_s22 + $0x8] sm:$0xff] %vm622_vm0, %v2563_v39 }
 0xad3 PF: > { %s28_s27 = sadd.s32 1, %s3134_s27  }
 0xad4   : > { %p25_p4 = scmp.ge.s32.totalorder %s28_s27, 4  }
 0xad6   :  { %27 = sbr.rel (!%p25_p4) target bundleno = 4 (0x4), region = 144 }

// kernel: fwd.9
= control target key start
LH: loop header
LB: loop body
LE: loop exit
PB: predicated region body
PF: predicated region fallthrough
CT: control target
= control target key end

     0   :  { %s2905_s0 = inlined_call_operand.vmem [shape: f32[2,8,32], index: 0, kind: input, shape index: {}]   ;;  %s2906_s1 = inlined_call_operand.vmem [shape: f32[2,8,32], index: 1, kind: input, shape index: {}]   ;;  %s2907_s2 = inlined_call_operand.vmem [shape: f32[2,8,1], index: 2, kind: input, shape index: {}]   ;;  %s2908_s3 = inlined_call_operand.vmem [shape: f32[2,1,8], index: 3, kind: input, shape index: {}]   ;;  %s2909_s4 = inlined_call_operand.vmem [shape: f32[1,32], index: 4, kind: input, shape index: {}]   ;;  %s2910_s5 = inlined_call_operand.vmem [shape: f32[1,32], index: 5, kind: input, shape index: {}]   ;;  %s2911_s6 = inlined_call_operand.vmem [shape: f32[3,3,1,32], index: 6, kind: input, shape index: {}]   ;;  %s2912_s7 = inlined_call_operand.vmem [shape: f32[3,1,32], index: 7, kind: input, shape index: {}]   ;;  %s2913_s8 = inlined_call_operand.vmem [shape: f32[3,1,32], index: 8, kind: input, shape index: {}]   ;;  %s2914_s9 = inlined_call_operand.vmem [shape: bf16[3,32,32], index: 9, kind: input, shape index: {}]   ;;  %s2915_s10 = inlined_call_operand.vmem [shape: f32[3,1,32], index: 10, kind: input, shape index: {}]   ;;  %s2916_s11 = inlined_call_operand.vmem [shape: bf16[32,32], index: 11, kind: input, shape index: {}]   ;;  %s2917_s12 = inlined_call_operand.vmem [shape: f32[1,32], index: 12, kind: input, shape index: {}]   ;;  %s2918_s13 = inlined_call_operand.vmem [shape: f32[1,32], index: 13, kind: input, shape index: {}]   ;;  %s2919_s14 = inlined_call_operand.vmem [shape: f32[1,32], index: 14, kind: input, shape index: {}]   ;;  %s2920_s15 = inlined_call_operand.vmem [shape: bf16[32,128], index: 15, kind: input, shape index: {}]   ;;  %s2921_s16 = inlined_call_operand.vmem [shape: f32[1,128], index: 16, kind: input, shape index: {}]   ;;  %s2922_s17 = inlined_call_operand.vmem [shape: bf16[128,32], index: 17, kind: input, shape index: {}]   ;;  %s2923_s18 = inlined_call_operand.vmem [shape: f32[1,32], index: 18, kind: input, shape index: {}]   ;;  %s2924_s19 = inlined_call_operand.hbm [shape: f32[2,8,32], index: 19, kind: output, shape index: {}]  }
   0x1   :  { %2931 = sst [smem:[#allocation11_spill]] %s2905_s0 }
   0x2   :  { %2932 = sst [smem:[#allocation12_spill]] %s2906_s1 }
   0x3   :  { %2933 = sst [smem:[#allocation13_spill]] %s2907_s2 }
   0x4   :  { %2934 = sst [smem:[#allocation14_spill]] %s2908_s3 }
   0x5   :  { %24 = vsyncpa [#allocation3], 0 }
   0x6   :  { %26 = vsyncpa [#allocation3 + $0x1], 0  ;;  %s2479_s0 = smov 0   ;;  %s2481_s30 = smov 0  }
   0x7   :  { %s2483_s20 = smov 0   ;;  %s2485_s21 = smov 0  }
   0x8 LB: > { %2935 = sst [smem:[#allocation5_spill]] %s2361_s0  ;;  %s2500_s1 = sadd.s32 4294967295, %s2373_s21   ;;  %s2373_s21 = sphi %s2485_s21, %s2956_s21   ;;  %s2369_s20 = sphi %s2483_s20, %s2958_s20   ;;  %s2365_s30 = sphi %s2481_s30, %s2960_s30   ;;  %s2361_s0 = sphi %s2479_s0, %s2959_s0  }
   0x9   : > { %2936 = sst [smem:[#allocation6_spill]] %s2369_s20  ;;  %s1970_s22 = sadd.s32 4294967294, %s2373_s21  }
   0xa   : > { %2937 = sst [smem:[#allocation7_spill]] %s2373_s21  ;;  %s2504_s2 = sadd.s32 1, %s2373_s21  }
   0xb   : > { %2938 = sst [smem:[#allocation8_spill]] %s2504_s2  ;;  %s458_s23 = sadd.s32 1, %s2369_s20 }
   0xc   : > { %s455_s24 = ssub.s32 %s2373_s21, %s2504_s2  ;;  %p468_p0 = scmp.ne.s32.totalorder %s2369_s20, %s2365_s30 }
   0xd   : > { %p456_p1 = scmp.eq.s32.totalorder %s455_s24, 0  ;;  %p469_p2 = scmp.eq.s32.totalorder %s2500_s1, 1 }
   0xe   : > { %p474_p3 = scmp.ne.s32.totalorder %s2365_s30, %s2361_s0  ;;  %p475_p4 = scmp.eq.s32.totalorder %s1970_s22, 1 }
   0xf   : > { %s2515_s25 = scalar_select %p456_p1, %s2369_s20, %s458_s23  }
  0x10   : > { %p2517_p5 = por %p469_p2, %p468_p0  ;;  %p2521_p6 = por %p475_p4, %p474_p3 }
  0x11   : > { %2939 = sst [smem:[#allocation9_spill]] %s2515_s25  ;;  %p1973_p7 = scmp.ge.s32.totalorder %s2373_s21, 1 }
  0x12   : > { %s2941_s26 = scalar_select %p2521_p6, 1, 0 }
  0x13   : > { %p565_p8 = scmp.lt.s32.totalorder %s2373_s21, 3 }
  0x14   : > { %2942 = sst [smem:[#allocation10_spill]] %s2941_s26 }
  0x15   : > { %p566_p9 = pnand %p1973_p7, %p565_p8 }
  0x16   : > { %p631_p10 = scmp.lt.s32.totalorder (!%p566_p9), %s2500_s1, 1  ;;  %vm653_vm0 = vcmask (!%p566_p9), 261120   ;;  %s2943_s23 = sld [smem:[#allocation12_spill]] (!%p566_p9)  ;;  %v2375_v4 = vmov (!%p566_p9), 0   ;;  %v698_v22 = vlaneseq (!%p566_p9)  ;;  %v1978_v25 = vld [vmem:[%s2909_s4] ss:$0 sm:$0xff] (!%p566_p9) }
  0x17   : > { %569 = sbr.rel (%p566_p9) target bundleno = 2694 (0xa86), region = 96  ;;  %s2944_s2 = sld [smem:[#allocation11_spill]] (!%p566_p9)  ;;  %2262 = vset.pattern.permute.xlu0 (!%p566_p9), %v2375_v4  ;;  %v1979_v28 = vld [vmem:[%s2910_s5] ss:$0 sm:$0xff] (!%p566_p9)  ;;  %v1992_v36 = vld [vmem:[%s2911_s6 + $0x3] ss:$0 sm:$0xff] (!%p566_p9) }
  0x18   : > { %s2945_s29 = sld [smem:[#allocation13_spill]] (!%p566_p9)  ;;  %v2554_v23 = vshrl.u32 (!%p566_p9), %v698_v22, 7  ;;  %v1980_v33 = vld [vmem:[%s2911_s6] ss:$0 sm:$0xff] (!%p566_p9)  ;;  %v2011_v37 = vld [vmem:[%s2911_s6 + $0x6] ss:$0 sm:$0xff] (!%p566_p9) }
  0x19   : > { %v1982_v38 = vld [vmem:[%s2911_s6 + $0x1] ss:$0 sm:$0xff] (!%p566_p9)  ;;  %v1994_v39 = vld [vmem:[%s2911_s6 + $0x4] ss:$0 sm:$0xff] (!%p566_p9)  ;;  %v2013_v40 = vld [vmem:[%s2911_s6 + $0x7] ss:$0 sm:$0xff] (!%p566_p9) }
  0x1a   : > { %v2560_v27 = vadd.s32 (!%p566_p9), 4294967295, %v2554_v23  ;;  %v1984_v43 = vld [vmem:[%s2911_s6 + $0x2] ss:$0 sm:$0xff] (!%p566_p9)  ;;  %v1996_v44 = vld [vmem:[%s2911_s6 + $0x5] ss:$0 sm:$0xff] (!%p566_p9)  ;;  %vm2377_vm2 = vmmov (!%p566_p9), 0  }
  0x1b   : > { %v2015_v48 = vld [vmem:[%s2911_s6 + $0x8] ss:$0 sm:$0xff] (!%p566_p9)  ;;  %vm1252_vm13 = vcmask (!%p566_p9), 1043456   ;;  %vm1165_vm14 = vcmask (!%p566_p9), 64512  }
  0x1c   : > { %vm701_vm1 = vcmp.ge.s32.totalorder (!%p566_p9), %v2560_v27, 0 }
  0x1e   : > { %s2529_s27 = scalar_select %p631_p10, %s2500_s1, 1 }
  0x20   : > { %s1975_s28 = sshll.u32 %s2529_s27, 3 }
  0x21   : > { %s638_s24 = scalar_lea.vmem %s2943_s23, %s1975_s28  ;;  %s634_s26 = scalar_lea.vmem %s2944_s2, %s1975_s28 }
  0x22   : > { %v2538_v0 = vld [vmem:[%s638_s24] sm:$0xff]  ;;  %s642_s22 = scalar_lea.vmem %s2945_s29, %s1975_s28  ;;  %s628_s24 = sand.u32 1, %s2365_s30  }
  0x23   : > { %v2540_v1 = vld [vmem:[%s634_s26] sm:$0xff]  ;;  %v682_v2 = vsel %vm653_vm0, %v2538_v0, 0.0  ;;  %s1974_s29 = sshll.u32 %s628_s24, 3  ;;  %s2378_s23 = smov [#allocation2]  }
  0x24   : > { %683 = vadd.xlane.f32.xlu0 %v682_v2  ;;  %v654_v3 = vsel %vm653_vm0, %v2540_v1, 0.0  ;;  %v649_v5 = vld [vmem:[%s642_s22] sm:$0xff]  ;;  %s2952_s22 = sld [smem:[#allocation14_spill]]  ;;  %s630_s20 = scalar_lea.vmem [#allocation2], %s1974_s29 }
  0x25   : > { %s1878_s21 = sshll.u32 %s630_s20, 4  ;;  %s2315_s29 = sshll.u32 %s2378_s23, 4  ;;  %s2864_s21 = int_to_ptr.vmem [resolvable:$true] %s1878_s21  ;;  %s2316_s29 = int_to_ptr.vmem [resolvable:$false] %s2315_s29 }
  0x26   : > { %s2311_s28 = scalar_lea.vmem %s2864_s21, 128  ;;  %p2318_p0 = scmp.lt.s32.totalorder %s2864_s21, %s2316_s29 }
  0x27   : > { %p2312_p11 = scmp.ne.s32.totalorder %s2864_s21, %s2311_s28 }
  0x28   : > { %655 = vadd.xlane.f32.xlu0 %v654_v3 }
  0x29   : > { %p2313_p12 = pnand %p2312_p11, %p2517_p5 }
  0x2a   : > { %s645_s0 = scalar_lea.vmem %s2952_s22, %s2529_s27  ;;  %s2057_s27 = sshll.u32 %s2500_s1, 7 }
  0x2b   : > { %s2862_s26 = scalar_lea.hbm %s2924_s19, %s2057_s27  ;;  %s1865_s1 = scalar_lea.sflag [#allocation3], %s628_s24 }
  0x2c   : > { %p2314_p13 = pneg %p2313_p12  ;;  %s2317_s22 = scalar_lea.vmem %s2316_s29, 256 }
  0x2d   : > { %p2319_p1 = scmp.lt.s32.totalorder %s2317_s22, %s2311_s28 }
  0x2f   : > { %p2320_p2 = por %p2319_p1, %p2318_p0 }
  0x31   : > { %p2321_p3 = pnand %p2320_p2, %p2314_p13 }
  0x3e   : > { %739 = vperm.xlu0 %2262, %v649_v5  }
  0xb1   : > { %v684_v6 = vpop.xlane.xlu0 %683 }
  0xb2   : > { %v685_v7 = vmul.f32 0.03125, %v684_v6 }
  0xb4   : > { %v686_v8 = vsub.f32 %v2538_v0, %v685_v7 }
  0xb5   : > { %v656_v9 = vpop.xlane.xlu0 %655 }
  0xb6   : > { %v658_v10 = vmul.f32 0.03125, %v656_v9  ;;  %v687_v11 = vmul.f32 %v686_v8, %v686_v8 }
  0xb8   : > { %v659_v12 = vsub.f32 %v2540_v1, %v658_v10  ;;  %v688_v13 = vsel %vm653_vm0, %v687_v11, 0.0 }
  0xb9   : > { %689 = vadd.xlane.f32.xlu1 %v688_v13 }
  0xba   : > { %v660_v14 = vmul.f32 %v659_v12, %v659_v12 }
  0xbc   : > { %v661_v15 = vsel %vm653_vm0, %v660_v14, 0.0 }
  0xbd   : > { %662 = vadd.xlane.f32.xlu1 %v661_v15  ;;  %v2595_v58 = vpop.permute.xlu0 %739 }
 0x146   : > { %v690_v16 = vpop.xlane.xlu1 %689 }
 0x147   : > { %v691_v17 = vmul.f32 0.03125, %v690_v16  ;;  %v2263_v16 = vld [vmem:[%s2914_s9] sm:$0xff]  }
 0x149   : > { %v692_v18 = vadd.f32 1e-05, %v691_v17  ;;  %v2376_v17 = vmov 0.0  }
 0x14a   : > { %v663_v19 = vpop.xlane.xlu1 %662  ;;  %2100 = vmatprep.subr.bf16.mxu0 %v2376_v17  ;;  %2124 = vmatprep.subr.bf16.mxu1 %v2376_v17 }
 0x14b   : > { %2281 = vrsqrt.f32 %v692_v18  ;;  %v664_v20 = vmul.f32 0.03125, %v663_v19  ;;  %2101 = vmatpush3.bf16.msra.mxu0 %v2263_v16  ;;  %v2264_v18 = vld [vmem:[%s2914_s9 + $0x8] sm:$0xff]   ;;  %2104 = vmatprep.mubr.msk.bf16.mxu0 %vm2377_vm2, %v2376_v17 }
 0x14c   : > { %2102 = vmatprep.subr.bf16.mxu0 %v2376_v17  ;;  %2126 = vmatprep.mubr.msk.bf16.mxu1 %vm2377_vm2, %v2376_v17 }
 0x14d   : > { %v665_v21 = vadd.f32 1e-05, %v664_v20 }
 0x14f   : > { %2283 = vrsqrt.f32 %v665_v21  ;;  %2103 = vmatpush3.bf16.msra.mxu0 %v2264_v18 }
 0x150   : > { %2108 = vmatprep.subr.bf16.mxu0 %v2376_v17 }
 0x155   : > { %v2282_v24 = vpop.eup %2281 }
 0x156   : > { %v694_v26 = vmul.f32 %v2282_v24, %v686_v8 }
 0x158   : > { %v695_v29 = vmul.f32 %v1978_v25, %v694_v26 }
 0x159   : > { %v2284_v30 = vpop.eup %2283 }
 0x15a   : > { %v667_v31 = vmul.f32 %v2284_v30, %v659_v12  ;;  %v696_v32 = vadd.f32 %v1979_v28, %v695_v29 }
 0x15c   : > { %v674_v34 = vmul.f32 %v1978_v25, %v667_v31  ;;  %v707_v35 = vrot.slane %v696_v32, 7  ;;  %v735_v52 = vmul.f32 %v1984_v43, %v696_v32  ;;  %v866_v53 = vmul.f32 %v1996_v44, %v696_v32 }
 0x15d   : > { %v996_v57 = vmul.f32 %v2015_v48, %v696_v32 }
 0x15e   : > { %v681_v41 = vadd.f32 %v1979_v28, %v674_v34  ;;  %v708_v42 = vsel %vm701_vm1, %v707_v35, 0.0  ;;  %v1985_v34 = vld [vmem:[%s2912_s7] ss:$0 sm:$0xff] }
 0x15f   : > { %v716_v45 = vmul.f32 %v1980_v33, %v708_v42  ;;  %v847_v46 = vmul.f32 %v1992_v36, %v708_v42  ;;  %v977_v47 = vmul.f32 %v2011_v37, %v708_v42  ;;  %v1986_v36 = vld [vmem:[%s2913_s8] ss:$0 sm:$0xff]  ;;  %v2265_v42 = vld [vmem:[%s2914_s9 + $0x10] sm:$0xff]  }
 0x160   : > { %v725_v49 = vmul.f32 %v1982_v38, %v681_v41  ;;  %v856_v50 = vmul.f32 %v1994_v39, %v681_v41  ;;  %v986_v51 = vmul.f32 %v2013_v40, %v681_v41  ;;  %v1999_v39 = vld [vmem:[%s2912_s7 + $0x1] ss:$0 sm:$0xff] }
 0x162   : > { %v726_v54 = vadd.f32 %v725_v49, %v716_v45  ;;  %v857_v55 = vadd.f32 %v856_v50, %v847_v46  ;;  %v987_v56 = vadd.f32 %v986_v51, %v977_v47  ;;  %v2000_v45 = vld [vmem:[%s2913_s8 + $0x1] ss:$0 sm:$0xff]  ;;  %v2266_v46 = vld [vmem:[%s2914_s9 + $0x18] sm:$0xff]   ;;  %v2268_v50 = vld [vmem:[%s2914_s9 + $0x28] sm:$0xff]  }
 0x163   : > { %v2267_v49 = vld [vmem:[%s2914_s9 + $0x20] sm:$0xff]  }
 0x164   : > { %v736_v59 = vadd.f32 %v735_v52, %v726_v54  ;;  %v867_v60 = vadd.f32 %v866_v53, %v857_v55  ;;  %v997_v61 = vadd.f32 %v996_v57, %v987_v56  ;;  %v2018_v55 = vld [vmem:[%s2912_s7 + $0x2] ss:$0 sm:$0xff] }
 0x165   : > { %v2019_v57 = vld [vmem:[%s2913_s8 + $0x2] ss:$0 sm:$0xff] }
 0x166   : > { %v742_v62 = vmul.f32 %v2595_v58, %v736_v59  ;;  %v868_v2 = vmul.f32 %v867_v60, %v2595_v58  ;;  %v998_v14 = vmul.f32 %v997_v61, %v2595_v58 }
 0x168   : > { %v745_v63 = vsel %vm653_vm0, %v742_v62, 0.0  ;;  %v873_v3 = vsel %vm653_vm0, %v868_v2, 0.0  ;;  %v1003_v15 = vsel %vm653_vm0, %v998_v14, 0.0 }
 0x169   : > { %746 = vadd.xlane.f32.xlu1 %v745_v63 }
 0x16d   : > { %874 = vadd.xlane.f32.xlu1 %v873_v3  ;;  %v2664_v3 = vand.u32 127, %v698_v22 }
 0x16f   : > { %vm1180_vm3 = vcmp.ge.s32.totalorder %v2664_v3, 8  ;;  %vm1181_vm4 = vcmp.lt.s32.totalorder %v2664_v3, 16  ;;  %vm1105_vm5 = vcmp.lt.s32.totalorder %v2664_v3, 8  ;;  %vm1342_vm7 = vcmp.ge.s32.totalorder %v2664_v3, 16 }
 0x170   : > { %vm2675_vm6 = vmand %vm1180_vm3, %vm1181_vm4  ;;  %vm1343_vm8 = vcmp.lt.s32.totalorder %v2664_v3, 24  ;;  %vm1458_vm10 = vcmp.ge.s32.totalorder %v2664_v3, 24  ;;  %vm1459_vm11 = vcmp.lt.s32.totalorder %v2664_v3, 32 }
 0x171   : > { %vm2687_vm9 = vmand %vm1342_vm7, %vm1343_vm8 }
 0x172   : > { %vm2704_vm12 = vmand %vm1458_vm10, %vm1459_vm11 }
 0x1f6   : > { %v747_v4 = vpop.xlane.xlu1 %746 }
 0x1f7   : > { %v748_v5 = vmul.f32 0.03125, %v747_v4 }
 0x1f9   : > { %v749_v6 = vsub.f32 %v742_v62, %v748_v5  ;;  %v2006_v5 = vld [vmem:[%s2915_s10 + $0x1] ss:$0 sm:$0xff] }
 0x1fa   : > { %v875_v7 = vpop.xlane.xlu1 %874 }
 0x1fb   : > { %v876_v8 = vmul.f32 0.03125, %v875_v7  ;;  %v750_v9 = vmul.f32 %v749_v6, %v749_v6 }
 0x1fd   : > { %v877_v10 = vsub.f32 %v868_v2, %v876_v8  ;;  %v751_v11 = vsel %vm653_vm0, %v750_v9, 0.0  ;;  %v1987_v9 = vld [vmem:[%s2915_s10] ss:$0 sm:$0xff] }
 0x1fe   : > { %752 = vadd.xlane.f32.xlu1 %v751_v11 }
 0x1ff   : > { %v878_v12 = vmul.f32 %v877_v10, %v877_v10 }
 0x201   : > { %v879_v13 = vsel %vm653_vm0, %v878_v12, 0.0 }
 0x202   : > { %880 = vadd.xlane.f32.xlu1 %v879_v13 }
 0x206   : > { %1004 = vadd.xlane.f32.xlu1 %v1003_v15 }
 0x28b   : > { %v753_v19 = vpop.xlane.xlu1 %752 }
 0x28c   : > { %v754_v20 = vmul.f32 0.03125, %v753_v19 }
 0x28e   : > { %v755_v21 = vadd.f32 1e-05, %v754_v20 }
 0x28f   : > { %v881_v24 = vpop.xlane.xlu1 %880 }
 0x290   : > { %2285 = vrsqrt.f32 %v755_v21  ;;  %v882_v25 = vmul.f32 0.03125, %v881_v24 }
 0x292   : > { %v883_v26 = vadd.f32 1e-05, %v882_v25 }
 0x293   : > { %v1005_v28 = vpop.xlane.xlu1 %1004 }
 0x294   : > { %2287 = vrsqrt.f32 %v883_v26  ;;  %v1006_v29 = vmul.f32 0.03125, %v1005_v28 }
 0x296   : > { %v1007_v30 = vsub.f32 %v998_v14, %v1006_v29 }
 0x298   : > { %v1008_v31 = vmul.f32 %v1007_v30, %v1007_v30 }
 0x29a   : > { %v2286_v32 = vpop.eup %2285  ;;  %v1009_v33 = vsel %vm653_vm0, %v1008_v31, 0.0 }
 0x29b   : > { %1010 = vadd.xlane.f32.xlu1 %v1009_v33  ;;  %v757_v35 = vmul.f32 %v2286_v32, %v749_v6 }
 0x29d   : > { %v764_v37 = vmul.f32 %v1985_v34, %v757_v35 }
 0x29e   : > { %v2288_v38 = vpop.eup %2287 }
 0x29f   : > { %v885_v40 = vmul.f32 %v2288_v38, %v877_v10  ;;  %v771_v41 = vadd.f32 %v1986_v36, %v764_v37 }
 0x2a1   : > { %v776_v43 = vpack.c.bf16 %v771_v41, %v771_v41  ;;  %v892_v44 = vmul.f32 %v1999_v39, %v885_v40  ;;  %v2025_v39 = vld [vmem:[%s2915_s10 + $0x2] ss:$0 sm:$0xff] }
 0x2a3   : > { %2105 = vmatmul.mubr.msk.bf16.vlgmr.msra.gmra.mrb[0].mxu0 %vm653_vm0, %v776_v43  ;;  %v899_v47 = vadd.f32 %v2000_v45, %v892_v44 }
 0x2a4   : > { %2109 = vmatpush3.bf16.msra.mxu0 %v2265_v42  ;;  %2112 = vmatprep.mubr.msk.bf16.mxu0 %vm2377_vm2, %v2376_v17 }
 0x2a5   : > { %2110 = vmatprep.subr.bf16.mxu0 %v2376_v17  ;;  %v905_v48 = vpack.c.bf16 %v899_v47, %v899_v47 }
 0x2a8   : > { %2111 = vmatpush3.bf16.msra.mxu0 %v2266_v46 }
 0x2a9   : > { %2116 = vmatprep.subr.bf16.mxu0 %v2376_v17 }
 0x2ab   : > { %2113 = vmatmul.mubr.msk.bf16.vlgmr.msra.gmra.mrb[4].mxu0 %vm653_vm0, %v905_v48 }
 0x2ac   : > { %2120 = vmatprep.mubr.msk.bf16.mxu0 %vm2377_vm2, %v2376_v17  ;;  %2117 = vmatpush3.bf16.msra.mxu0 %v2267_v49 }
 0x2ad   : > { %2118 = vmatprep.subr.bf16.mxu0 %v2376_v17 }
 0x2b0   : > { %2119 = vmatpush3.bf16.msra.mxu0 %v2268_v50 }
 0x2b1   : > { %2130 = vmatprep.subr.bf16.mxu0 %v2376_v17 }
 0x328   : > { %v1011_v51 = vpop.xlane.xlu1 %1010 }
 0x329   : > { %v1012_v52 = vmul.f32 0.03125, %v1011_v51 }
 0x32b   : > { %v1013_v53 = vadd.f32 1e-05, %v1012_v52 }
 0x32d   : > { %2289 = vrsqrt.f32 %v1013_v53 }
 0x337   : > { %v2290_v54 = vpop.eup %2289 }
 0x338   : > { %v1015_v56 = vmul.f32 %v2290_v54, %v1007_v30 }
 0x33a   : > { %v1022_v59 = vmul.f32 %v2018_v55, %v1015_v56 }
 0x33c   : > { %v1029_v60 = vadd.f32 %v2019_v57, %v1022_v59  ;;  %v650_v59 = vld [vmem:[%s645_s0] sm:$0x1] }
 0x33e   : > { %v1035_v61 = vpack.c.bf16 %v1029_v60, %v1029_v60  ;;  %v1102_v60 = vsub.f32 1.0, %v650_v59 }
 0x340   : > { %2121 = vmatmul.mubr.msk.bf16.vlgmr.msra.gmra.mrb[8].mxu0 %vm653_vm0, %v1035_v61  ;;  %v1103_v61 = vmul.f32 -1e+30, %v1102_v60 }
 0x341   : > { %2132 = vmatprep.mubr.msk.bf16.mxu0 %vm2377_vm2, %v2376_v17 }
 0x376   : > { %v833_v62 = vpop.f32.mrb[0].mxu0 }
 0x377   : > { %v2106_v63 = vpop.f32.mrb[1].mxu0  ;;  %v834_v16 = vadd.f32 %v1987_v9, %v833_v62  ;;  %v1116_v62 = vsub.s32 0, %v2554_v23 }
 0x378   : > { %v836_v2 = vpop.f32.mrb[2].mxu0 }
 0x379   : > { %v2107_v4 = vpop.f32.mrb[3].mxu0  ;;  %v1109_v24 = vsel %vm1105_vm5, %v834_v16, 0.0  ;;  %v1185_v25 = vsel %vm2675_vm6, %v834_v16, 0.0  ;;  %v1347_v33 = vsel %vm2687_vm9, %v834_v16, 0.0  ;;  %v1463_v37 = vsel %vm2704_vm12, %v834_v16, 0.0 }
 0x37a   : > { %v1187_v28 = vpack.c.bf16 %v1185_v25, %v1185_v25  ;;  %v1111_v29 = vpack.c.bf16 %v1109_v24, %v1109_v24  ;;  %v1349_v35 = vpack.c.bf16 %v1347_v33, %v1347_v33  ;;  %v1465_v38 = vpack.c.bf16 %v1463_v37, %v1463_v37 }
 0x37b   : > { %v1117_v63 = vrot.slane %v1103_v61, %v1116_v62 }
 0x37e   : > { %v963_v6 = vpop.f32.mrb[4].mxu0 }
 0x37f   : > { %v964_v7 = vadd.f32 %v2006_v5, %v963_v6  ;;  %v2114_v8 = vpop.f32.mrb[5].mxu0 }
 0x380   : > { %v966_v10 = vpop.f32.mrb[6].mxu0 }
 0x381   : > { %v2115_v11 = vpop.f32.mrb[7].mxu0  ;;  %v1110_v12 = vsel %vm1105_vm5, %v964_v7, 0.0  ;;  %v1186_v13 = vsel %vm2675_vm6, %v964_v7, 0.0  ;;  %v1348_v21 = vsel %vm2687_vm9, %v964_v7, 0.0  ;;  %v1464_v32 = vsel %vm2704_vm12, %v964_v7, 0.0 }
 0x382   : > { %v1112_v14 = vpack.c.bf16 %v1110_v12, %v1110_v12  ;;  %v1188_v15 = vpack.c.bf16 %v1186_v13, %v1186_v13  ;;  %v1350_v26 = vpack.c.bf16 %v1348_v21, %v1348_v21  ;;  %v1466_v34 = vpack.c.bf16 %v1464_v32, %v1464_v32 }
 0x384   : > { %v1123_v18 = vsel %vm653_vm0, %v1112_v14, 0  ;;  %v1193_v19 = vsel %vm653_vm0, %v1188_v15, 0  ;;  %v1355_v30 = vsel %vm653_vm0, %v1350_v26, 0  ;;  %v1471_v36 = vsel %vm653_vm0, %v1466_v34, 0 }
 0x385   : > { %2125 = vmatpush3.bf16.xpose.msra.mxu1 %v1123_v18  ;;  %2131 = vmatpush3.bf16.xpose.msra.mxu0 %v1193_v19 }
 0x386   : > { %2148 = vmatprep.subr.bf16.mxu0 %v2376_v17  ;;  %2136 = vmatprep.subr.bf16.mxu1 %v2376_v17 }
 0x38c   : > { %2127 = vmatmul.mubr.msk.bf16.vlgmr.msra.gmra.mrb[0].mxu1 %vm653_vm0, %v1111_v29  ;;  %2133 = vmatmul.mubr.msk.bf16.vlgmr.msra.gmra.mrb[12].mxu0 %vm653_vm0, %v1187_v28 }
 0x38d   : > { %2149 = vmatpush3.bf16.xpose.msra.mxu0 %v1355_v30  ;;  %2150 = vmatprep.mubr.msk.bf16.mxu0 %vm2377_vm2, %v2376_v17 }
 0x38e   : > { %2160 = vmatprep.subr.bf16.mxu0 %v2376_v17  ;;  %2138 = vmatprep.mubr.msk.bf16.mxu1 %vm2377_vm2, %v2376_v17 }
 0x394   : > { %2151 = vmatmul.mubr.msk.bf16.vlgmr.msra.gmra.mrb[16].mxu0 %vm653_vm0, %v1349_v35 }
 0x395   : > { %2161 = vmatpush3.bf16.xpose.msra.mxu0 %v1471_v36  ;;  %2162 = vmatprep.mubr.msk.bf16.mxu0 %vm2377_vm2, %v2376_v17 }
 0x396   : > { %2172 = vmatprep.subr.bf16.mxu0 %v2376_v17 }
 0x39c   : > { %2163 = vmatmul.mubr.msk.bf16.vlgmr.msra.gmra.mrb[20].mxu0 %vm653_vm0, %v1465_v38 }
 0x39d   : > { %2176 = vmatprep.mubr.msk.bf16.mxu0 %vm2377_vm2, %v2376_v17 }
 0x413   : > { %v1093_v40 = vpop.f32.mrb[8].mxu0 }
 0x414   : > { %v1094_v41 = vadd.f32 %v2025_v39, %v1093_v40  ;;  %v2122_v42 = vpop.f32.mrb[9].mxu0 }
 0x415   : > { %v1096_v43 = vpop.f32.mrb[10].mxu0 }
 0x416   : > { %v1101_v44 = vmul.f32 %v1094_v41, %v2595_v58  ;;  %v2123_v45 = vpop.f32.mrb[11].mxu0 }
 0x418   : > { %v1246_v46 = vsel %vm2675_vm6, %v1101_v44, 0.0  ;;  %v1177_v47 = vsel %vm1105_vm5, %v1101_v44, 0.0  ;;  %v1408_v48 = vsel %vm2687_vm9, %v1101_v44, 0.0  ;;  %v1524_v49 = vsel %vm2704_vm12, %v1101_v44, 0.0 }
 0x419   : > { %v1248_v50 = vpack.c.bf16 %v1246_v46, %v1246_v46  ;;  %v1179_v51 = vpack.c.bf16 %v1177_v47, %v1177_v47  ;;  %v1410_v52 = vpack.c.bf16 %v1408_v48, %v1408_v48  ;;  %v1526_v53 = vpack.c.bf16 %v1524_v49, %v1524_v49  ;;  %v2269_v48 = vld [vmem:[%s2916_s11] sm:$0xff]  }
 0x41a   : > { %2173 = vmatpush3.bf16.msra.mxu0 %v2269_v48  ;;  %v2043_v48 = vld [vmem:[%s2921_s16] ss:$0 sm:$0xff] }
 0x41b   : > { %v1254_v54 = vsel %vm1252_vm13, %v1248_v50, 0  ;;  %v2739_v55 = vsel %vm1252_vm13, %v1179_v51, 0  ;;  %v2741_v56 = vsel %vm1252_vm13, %v1410_v52, 0  ;;  %v2743_v57 = vsel %vm1252_vm13, %v1526_v53, 0  ;;  %2174 = vmatprep.subr.bf16.mxu0 %v2376_v17 }
 0x41c   : > { %2137 = vmatpush3.bf16.msra.mxu1 %v1254_v54 }
 0x41d   : > { %2142 = vmatprep.subr.bf16.mxu1 %v2376_v17 }
 0x45f   : > { %v1159_v2 = vpop.f32.mrb[0].mxu1  ;;  %v1229_v3 = vpop.f32.mrb[12].mxu0 }
 0x460   : > { %v1160_v4 = vadd.f32 %v1159_v2, %v1117_v63  ;;  %v1230_v5 = vadd.f32 %v1229_v3, %v1117_v63  ;;  %v2128_v6 = vpop.f32.mrb[1].mxu1  ;;  %v2134_v7 = vpop.f32.mrb[13].mxu0 }
 0x461   : > { %v1162_v8 = vpop.f32.mrb[2].mxu1  ;;  %v1232_v9 = vpop.f32.mrb[14].mxu0 }
 0x462   : > { %v2129_v10 = vpop.f32.mrb[3].mxu1  ;;  %v2135_v22 = vpop.f32.mrb[15].mxu0  ;;  %v1235_v11 = vsel %vm1165_vm14, %v1230_v5, -inf  ;;  %v1166_v12 = vsel %vm1165_vm14, %v1160_v4, -inf }
 0x463   : > { %1236 = vmax.xlane.f32.xlu1 %v1235_v11  ;;  %v697_v10 = vrot.slane %v2538_v0, 7 }
 0x465   : > { %v704_v22 = vsel %vm701_vm1, %v697_v10, -1e+30 }
 0x466   : > { %v705_v11 = vmax.f32 %v704_v22, %v2540_v1 }
 0x467   : > { %1167 = vmax.xlane.f32.xlu1 %v1166_v12  ;;  %v1391_v13 = vpop.f32.mrb[16].mxu0  ;;  %v2037_v12 = vld [vmem:[%s2917_s12] ss:$0 sm:$0xff] }
 0x468   : > { %v1392_v23 = vadd.f32 %v1391_v13, %v1117_v63  ;;  %v2152_v14 = vpop.f32.mrb[17].mxu0  ;;  %v706_v13 = vmax.f32 %v705_v11, %v2538_v0 }
 0x469   : > { %v1394_v15 = vpop.f32.mrb[18].mxu0 }
 0x46a   : > { %v2153_v16 = vpop.f32.mrb[19].mxu0  ;;  %v1397_v18 = vsel %vm1165_vm14, %v1392_v23, -inf }
 0x46b   : > { %1398 = vmax.xlane.f32.xlu1 %v1397_v18 }
 0x46f   : > { %v1507_v19 = vpop.f32.mrb[20].mxu0 }
 0x470   : > { %v1508_v20 = vadd.f32 %v1507_v19, %v1117_v63  ;;  %v2164_v21 = vpop.f32.mrb[21].mxu0  ;;  %v1642_v19 = vmul.f32 %v2595_v58, %v706_v13 }
 0x471   : > { %v1510_v24 = vpop.f32.mrb[22].mxu0 }
 0x472   : > { %v2165_v25 = vpop.f32.mrb[23].mxu0  ;;  %v1513_v26 = vsel %vm1165_vm14, %v1508_v20, -inf }
 0x473   : > { %1514 = vmax.xlane.f32.xlu1 %v1513_v26 }
 0x4f0   : > { %v1237_v28 = vpop.xlane.xlu1 %1236 }
 0x4f1   : > { %v1238_v29 = vsub.f32 %v1230_v5, %v1237_v28  ;;  %v2270_v5 = vld [vmem:[%s2916_s11 + $0x8] sm:$0xff]   ;;  %v2271_v28 = vld [vmem:[%s2920_s15] sm:$0xff]  }
 0x4f2   : > { %2175 = vmatpush3.bf16.msra.mxu0 %v2270_v5 }
 0x4f3   : > { %v1239_v30 = vmul.f32 1.442695, %v1238_v29  ;;  %2180 = vmatprep.subr.bf16.mxu0 %v2376_v17  ;;  %v2272_v29 = vld [vmem:[%s2920_s15 + $0x8] sm:$0xff]  }
 0x4f4   : > { %v1168_v31 = vpop.xlane.xlu1 %1167 }
 0x4f5   : > { %2291 = vpow2.f32 %v1239_v30  ;;  %v1169_v32 = vsub.f32 %v1160_v4, %v1168_v31  ;;  %v2273_v30 = vld [vmem:[%s2922_s17] sm:$0xff]  }
 0x4f7   : > { %v1170_v33 = vmul.f32 1.442695, %v1169_v32 }
 0x4f8   : > { %v1399_v34 = vpop.xlane.xlu1 %1398 }
 0x4f9   : > { %2293 = vpow2.f32 %v1170_v33  ;;  %v1400_v35 = vsub.f32 %v1392_v23, %v1399_v34 }
 0x4fb   : > { %v1401_v36 = vmul.f32 1.442695, %v1400_v35  ;;  %v2041_v35 = vld [vmem:[%s2918_s13] ss:$0 sm:$0xff] }
 0x4fd   : > { %2295 = vpow2.f32 %v1401_v36 }
 0x4ff   : > { %v2292_v37 = vpop.eup %2291 }
 0x500   : > { %v1515_v38 = vpop.xlane.xlu1 %1514  ;;  %v1241_v39 = vsel %vm1165_vm14, %v2292_v37, 0.0 }
 0x501   : > { %v1516_v40 = vsub.f32 %v1508_v20, %v1515_v38  ;;  %1242 = vadd.xlane.f32.xlu1 %v1241_v39 }
 0x503   : > { %v2294_v41 = vpop.eup %2293  ;;  %v1517_v42 = vmul.f32 1.442695, %v1516_v40 }
 0x504   : > { %v1172_v43 = vsel %vm1165_vm14, %v2294_v41, 0.0 }
 0x505   : > { %2297 = vpow2.f32 %v1517_v42  ;;  %1173 = vadd.xlane.f32.xlu0 %v1172_v43  ;;  %v2275_v42 = vld [vmem:[%s2922_s17 + $0x10] sm:$0xff]   ;;  %v2276_v43 = vld [vmem:[%s2922_s17 + $0x18] sm:$0xff]  }
 0x507   : > { %v2296_v44 = vpop.eup %2295 }
 0x508   : > { %v1403_v45 = vsel %vm1165_vm14, %v2296_v44, 0.0 }
 0x509   : > { %1404 = vadd.xlane.f32.xlu1 %v1403_v45  ;;  %v2278_v45 = vld [vmem:[%s2922_s17 + $0x28] sm:$0xff]  }
 0x50f   : > { %v2298_v46 = vpop.eup %2297 }
 0x510   : > { %v1519_v47 = vsel %vm1165_vm14, %v2298_v46, 0.0 }
 0x511   : > { %1520 = vadd.xlane.f32.xlu1 %v1519_v47  ;;  %v2280_v47 = vld [vmem:[%s2922_s17 + $0x38] sm:$0xff]  }
 0x58e   : > { %v1243_v49 = vpop.xlane.xlu1 %1242 }
 0x58f   : > { %2299 = vrcp.f32 %v1243_v49 }
 0x592   : > { %v1174_v50 = vpop.xlane.xlu0 %1173 }
 0x593   : > { %2301 = vrcp.f32 %v1174_v50 }
 0x596   : > { %v1405_v54 = vpop.xlane.xlu1 %1404 }
 0x597   : > { %2303 = vrcp.f32 %v1405_v54 }
 0x599   : > { %v2300_v51 = vpop.eup %2299 }
 0x59a   : > { %v1245_v52 = vmul.f32 %v2300_v51, %v2292_v37  ;;  %v2042_v37 = vld [vmem:[%s2919_s14] ss:$0 sm:$0xff] }
 0x59c   : > { %v1247_v53 = vpack.c.bf16 %v1245_v52, %v1245_v52 }
 0x59d   : > { %v2302_v59 = vpop.eup %2301 }
 0x59e   : > { %2139 = vmatmul.mubr.msk.bf16.vlgmr.msra.gmra.mrb[4].mxu1 %vm1165_vm14, %v1247_v53  ;;  %v1176_v60 = vmul.f32 %v2302_v59, %v2294_v41  ;;  %v1521_v62 = vpop.xlane.xlu1 %1520  ;;  %v2274_v41 = vld [vmem:[%s2922_s17 + $0x8] sm:$0xff]  }
 0x59f   : > { %2143 = vmatpush3.bf16.msra.mxu1 %v2739_v55  ;;  %2144 = vmatprep.mubr.msk.bf16.mxu1 %vm2377_vm2, %v2376_v17  ;;  %2305 = vrcp.f32 %v1521_v62 }
 0x5a0   : > { %2154 = vmatprep.subr.bf16.mxu1 %v2376_v17  ;;  %v1178_v61 = vpack.c.bf16 %v1176_v60, %v1176_v60 }
 0x5a1   : > { %v2304_v55 = vpop.eup %2303 }
 0x5a2   : > { %v1407_v63 = vmul.f32 %v2304_v55, %v2296_v44  ;;  %v2277_v44 = vld [vmem:[%s2922_s17 + $0x20] sm:$0xff]  }
 0x5a4   : > { %v1409_v2 = vpack.c.bf16 %v1407_v63, %v1407_v63 }
 0x5aa   : > { %2145 = vmatmul.mubr.msk.bf16.vlgmr.msra.gmra.mrb[4].mxu1 %vm1165_vm14, %v1178_v61 }
 0x5ab   : > { %2155 = vmatpush3.bf16.msra.mxu1 %v2741_v56  ;;  %2156 = vmatprep.mubr.msk.bf16.mxu1 %vm2377_vm2, %v2376_v17  ;;  %v2306_v56 = vpop.eup %2305 }
 0x5ac   : > { %2166 = vmatprep.subr.bf16.mxu1 %v2376_v17  ;;  %v1523_v3 = vmul.f32 %v2306_v56, %v2298_v46  ;;  %v2279_v46 = vld [vmem:[%s2922_s17 + $0x30] sm:$0xff]  }
 0x5ae   : > { %v1525_v4 = vpack.c.bf16 %v1523_v3, %v1523_v3  ;;  %v2047_v3 = vld [vmem:[%s2923_s18] ss:$0 sm:$0xff] }
 0x5b6   : > { %2157 = vmatmul.mubr.msk.bf16.vlgmr.msra.gmra.mrb[4].mxu1 %vm1165_vm14, %v1409_v2 }
 0x5b7   : > { %2167 = vmatpush3.bf16.msra.mxu1 %v2743_v57  ;;  %2168 = vmatprep.mubr.msk.bf16.mxu1 %vm2377_vm2, %v2376_v17 }
 0x5b8   : > { %2188 = vmatprep.subr.bf16.mxu1 %v2376_v17 }
 0x5c2   : > { %2169 = vmatmul.mubr.msk.bf16.vlgmr.msra.gmra.mrb[4].mxu1 %vm1165_vm14, %v1525_v4 }
 0x5c3   : > { %2204 = vmatprep.mubr.msk.bf16.mxu1 %vm2377_vm2, %v2376_v17  ;;  %2189 = vmatpush3.bf16.msra.mxu1 %v2273_v30 }
 0x5c4   : > { %2190 = vmatprep.subr.bf16.mxu1 %v2376_v17 }
 0x5c7   : > { %2191 = vmatpush3.bf16.msra.mxu1 %v2274_v41 }
 0x5c8   : > { %2192 = vmatprep.subr.bf16.mxu1 %v2376_v17 }
 0x5cb   : > { %2193 = vmatpush3.bf16.msra.mxu1 %v2275_v42 }
 0x5cc   : > { %2194 = vmatprep.subr.bf16.mxu1 %v2376_v17 }
 0x5cf   : > { %2195 = vmatpush3.bf16.msra.mxu1 %v2276_v43 }
 0x5d0   : > { %2196 = vmatprep.subr.bf16.mxu1 %v2376_v17 }
 0x5d3   : > { %2197 = vmatpush3.bf16.msra.mxu1 %v2277_v44 }
 0x5d4   : > { %2198 = vmatprep.subr.bf16.mxu1 %v2376_v17 }
 0x5d7   : > { %2199 = vmatpush3.bf16.msra.mxu1 %v2278_v45 }
 0x5d8   : > { %2200 = vmatprep.subr.bf16.mxu1 %v2376_v17 }
 0x5db   : > { %2201 = vmatpush3.bf16.msra.mxu1 %v2279_v46 }
 0x5dc   : > { %2202 = vmatprep.subr.bf16.mxu1 %v2376_v17 }
 0x5df   : > { %2203 = vmatpush3.bf16.msra.mxu1 %v2280_v47 }
 0x695   : > { %v1567_v57 = vpop.f32.mrb[4].mxu1 }
 0x696   : > { %v1578_v6 = vpack.c.bf16 %v1567_v57, %v1567_v57  ;;  %v2170_v7 = vpop.f32.mrb[5].mxu1 }
 0x697   : > { %v1570_v8 = vpop.f32.mrb[6].mxu1 }
 0x698   : > { %v2171_v9 = vpop.f32.mrb[7].mxu1  ;;  %2177 = vmatmul.mubr.msk.bf16.vlgmr.msra.gmra.mrb[24].mxu0 %vm653_vm0, %v1578_v6 }
 0x699   : > { %2184 = vmatprep.mubr.msk.bf16.mxu0 %vm2377_vm2, %v2376_v17  ;;  %2181 = vmatpush3.bf16.msra.mxu0 %v2271_v28 }
 0x69a   : > { %2182 = vmatprep.subr.bf16.mxu0 %v2376_v17 }
 0x69d   : > { %2183 = vmatpush3.bf16.msra.mxu0 %v2272_v29 }
 0x76b   : > { %v1635_v23 = vpop.f32.mrb[24].mxu0 }
 0x76c   : > { %v1636_v14 = vadd.f32 %v2037_v12, %v1635_v23  ;;  %v2178_v15 = vpop.f32.mrb[25].mxu0 }
 0x76d   : > { %v1638_v16 = vpop.f32.mrb[26].mxu0 }
 0x76e   : > { %v1641_v18 = vmul.f32 %v1636_v14, %v2595_v58  ;;  %v2179_v20 = vpop.f32.mrb[27].mxu0 }
 0x770   : > { %v2798_v21 = vadd.f32 %v1642_v19, %v1641_v18 }
 0x772   : > { %v1646_v1 = vsel %vm653_vm0, %v2798_v21, 0.0 }
 0x773   : > { %1647 = vadd.xlane.f32.xlu1 %v1646_v1 }
 0x800   : > { %v1648_v27 = vpop.xlane.xlu1 %1647 }
 0x801   : > { %v1649_v24 = vmul.f32 0.03125, %v1648_v27 }
 0x803   : > { %v1650_v25 = vsub.f32 %v2798_v21, %v1649_v24 }
 0x805   : > { %v1651_v0 = vmul.f32 %v1650_v25, %v1650_v25 }
 0x807   : > { %v1652_v26 = vsel %vm653_vm0, %v1651_v0, 0.0 }
 0x808   : > { %1653 = vadd.xlane.f32.xlu1 %v1652_v26 }
 0x895   : > { %v1654_v31 = vpop.xlane.xlu1 %1653 }
 0x896   : > { %v1655_v32 = vmul.f32 0.03125, %v1654_v31 }
 0x898   : > { %v1656_v33 = vadd.f32 1e-05, %v1655_v32 }
 0x89a   : > { %2307 = vrsqrt.f32 %v1656_v33 }
 0x8a4   : > { %v2308_v34 = vpop.eup %2307 }
 0x8a5   : > { %v1658_v36 = vmul.f32 %v2308_v34, %v1650_v25 }
 0x8a7   : > { %v1665_v38 = vmul.f32 %v2041_v35, %v1658_v36 }
 0x8a9   : > { %v1672_v39 = vadd.f32 %v2042_v37, %v1665_v38 }
 0x8ab   : > { %v1677_v40 = vpack.c.bf16 %v1672_v39, %v1672_v39 }
 0x8ad   : > { %2185 = vmatmul.mubr.msk.bf16.vlgmr.msra.gmra.mrb[28].mxu0 %vm653_vm0, %v1677_v40 }
 0x980   : > { %v1734_v49 = vpop.f32.mrb[28].mxu0 }
 0x981   : > { %v1735_v50 = vadd.f32 %v2043_v48, %v1734_v49  ;;  %v2186_v51 = vpop.f32.mrb[29].mxu0 }
 0x982   : > { %v1737_v52 = vpop.f32.mrb[30].mxu0 }
 0x983   : > { %v1741_v53 = vmul.f32 %v1735_v50, %v1735_v50  ;;  %v2187_v54 = vpop.f32.mrb[31].mxu0  ;;  %v1740_v17 = vmul.f32 0.5, %v1735_v50 }
 0x985   : > { %v1742_v59 = vmul.f32 %v1741_v53, %v1735_v50 }
 0x987   : > { %v1743_v60 = vmul.f32 0.044715, %v1742_v59 }
 0x989   : > { %v1744_v61 = vadd.f32 %v1743_v60, %v1735_v50 }
 0x98b   : > { %v1745_v62 = vmul.f32 0.7978846, %v1744_v61 }
 0x98d   : > { %2309 = vtanh.f32 %v1745_v62 }
 0x997   : > { %v2310_v55 = vpop.eup %2309 }
 0x998   : > { %v1747_v63 = vadd.f32 1.0, %v2310_v55 }
 0x99a   : > { %v1748_v2 = vmul.f32 %v1747_v63, %v1740_v17 }
 0x99c   : > { %v1765_v56 = vpack.c.bf16 %v1748_v2, %v1748_v2 }
 0x99e   : > { %2205 = vmatmul.mubr.bf16.vlgmr.msra.gmra.mrb[8].mxu1 %v1765_v56 }
 0xa71   : > { %v1855_v4 = vpop.f32.mrb[8].mxu1 }
 0xa72   : > { %v1856_v5 = vadd.f32 %v2047_v3, %v1855_v4  ;;  %v2206_v57 = vpop.f32.mrb[9].mxu1 }
 0xa73   : > { %v1858_v6 = vpop.f32.mrb[10].mxu1 }
 0xa74   : > { %v1861_v7 = vmul.f32 %v1856_v5, %v2595_v58  ;;  %v2207_v8 = vpop.f32.mrb[11].mxu1 }
 0xa76   : > { %v1862_v9 = vadd.f32 %v1861_v7, %v2798_v21 }
 0xa78   : > { %1863 = vst.msk [vmem:[%s630_s20] sm:$0xff] %vm653_vm0, %v1862_v9 }
 0xa79   : > { %2324 = shalt.err (!%p2321_p3)
}
 0xa7a   : > { %s2325_s24 = scalar_lea.hbm %s2862_s26, 128  ;;  %s2329_s20 = scalar_lea.hbm %s2924_s19, 256 }
 0xa7b   : > { %p2326_p4 = scmp.ne.s32.totalorder %s2862_s26, %s2325_s24  ;;  %p2330_p9 = scmp.lt.u32.totalorder %s2862_s26, %s2924_s19 }
 0xa7c   : > { %p2331_p10 = scmp.lt.u32.totalorder %s2329_s20, %s2325_s24  ;;  %p2333_p12 = scmp.lt.u32.totalorder %s2325_s24, %s2862_s26 }
 0xa7d   : > { %p2327_p7 = pnand %p2326_p4, %p2517_p5 }
 0xa7e   : > { %p2332_p11 = por %p2331_p10, %p2330_p9 }
 0xa7f   : > { %p2328_p8 = pneg %p2327_p7 }
 0xa80   : > { %p2334_p13 = por %p2333_p12, %p2332_p11 }
 0xa82   : > { %p2335_p0 = pnand %p2334_p13, %p2328_p8 }
 0xa84   : > { %2338 = shalt.err (!%p2335_p0)
}
 0xa85   : > { %2220 = dma.vmem_to_hbm [thread:$0]  (%p2517_p5), %s2864_s21, 128, %s2862_s26, %s1865_s1  }
 0xa86 PF: > { %s2953_s28 = sld [smem:[#allocation7_spill]]  ;;  %s2954_s23 = sld [smem:[#allocation5_spill]] }
 0xa8c   : > { %p2226_p1 = scmp.ge.s32.totalorder %s2953_s28, 2  ;;  %s1890_s22 = sand.u32 1, %s2954_s23  }
 0xa8d   : > { %s1891_s0 = scalar_lea.sflag [#allocation3], %s1890_s22 }
 0xa8e   : > { %p2223_p2 = pnand %p2226_p1, %p2521_p6 }
 0xa90   : > { %2356 = dma.done.wait (!%p2223_p2), %s1891_s0, 128  }
 0xa91   : > { %2358 = vsyncadd (!%p2223_p2), %s1891_s0, 4294967168  ;;  %s2956_s21 = sld [smem:[#allocation8_spill]]  ;;  %s2957_s24 = sld [smem:[#allocation6_spill]] }
 0xa92   : > { %s2958_s20 = sld [smem:[#allocation9_spill]]  ;;  %s2959_s0 = smov %s2365_s30 }
 0xa97   : > { %p29_p3 = scmp.ge.s32.totalorder %s2956_s21, 4   ;;  %s2960_s30 = smov %s2957_s24 }
 0xa99   :  { %31 = sbr.rel (!%p29_p3) target bundleno = 8 (0x8), region = 156 }
 0xaa0   :  { %1896 = vsyncpa [#allocation3], 1 }
 0xaa1   :  { %1898 = vsyncpa [#allocation3 + $0x1], 1 }

</bundles_post_ra>
